<compile_context>
chip_gen: v7x
topology: tpu7x:2x2x1
jax: 0.10.0
libtpu: 0.0.40
codegen_flags: <defaults>
</compile_context>

<pallas_src>
import jax
import jax.numpy as jnp
import numpy as np
from jax import lax
from jax.experimental import pallas as pl
from jax.experimental.pallas import tpu as pltpu

# MXU operand dtype (accumulation is always f32).
COMPUTE_DTYPE = jnp.bfloat16
_PREC = lax.Precision.HIGHEST if COMPUTE_DTYPE == jnp.float32 else None


# ----------------------------------------------------------------------------
# Fused kernel body helpers (traced inside the single pallas_call)
# ----------------------------------------------------------------------------
def _conv_relu_pool(x, w_ref, b_ref, sel_ref):
    """Conv2d(3x3, VALID) + bias + ReLU + MaxPool2d(2,2), one image.

    x:       (H, W*Cin) f32 value
    w_ref:   (3, W*Cin_pad, 2*Wp*Cout)  per-H-tap Toeplitz, cols [0,half)=even
             conv columns, [half,2*half)=odd conv columns
    b_ref:   (1, Wp*Cout) f32 bias tiled per pooled W position
    sel_ref: (2, Hp, Ho)  0/1 row-selection matrices (COMPUTE_DTYPE)
    returns  (Hp, Wp*Cout) f32
    """
    kh = w_ref.shape[0]
    ho = x.shape[0] - kh + 1
    half = b_ref.shape[1]
    acc = jnp.zeros((ho, 2 * half), jnp.float32)
    for ki in range(kh):                                   # static unroll, 3 taps
        rows = x[ki:ki + ho, :].astype(COMPUTE_DTYPE)      # MXU operand cast
        acc += jnp.dot(rows, w_ref[ki],
                       preferred_element_type=jnp.float32, precision=_PREC)
    b = b_ref[...]
    even = jnp.maximum(acc[:, :half] + b, 0.0)             # f32 bias+ReLU epilogue
    odd = jnp.maximum(acc[:, half:] + b, 0.0)              # (128-aligned lane slice)
    m = jnp.maximum(even, odd).astype(COMPUTE_DTYPE)       # W-direction pool pair max
    # H-direction pool + 2x downsample: precomputed 0/1 selection matmuls (MXU).
    pooled = jnp.maximum(
        jnp.dot(sel_ref[0], m, preferred_element_type=jnp.float32, precision=_PREC),
        jnp.dot(sel_ref[1], m, preferred_element_type=jnp.float32, precision=_PREC))
    return pooled


def _deconv2x2(x, w_ref, b_ref, p_ref, relu):
    """ConvTranspose2d(2x2, stride 2) + bias (+ReLU) incl. row interleave.

    x:     (H, W*Cin) f32 value
    w_ref: (W*Cin, 2*half)  cols [0,half) -> output rows 2i, [half,..) -> rows 2i+1
    b_ref: (1, half) f32
    p_ref: (2, 2H, H) 0/1 placement matrices (COMPUTE_DTYPE)
    returns (2H, half) f32
    """
    half = b_ref.shape[1]
    y = jnp.dot(x.astype(COMPUTE_DTYPE), w_ref[...],
                preferred_element_type=jnp.float32, precision=_PREC)
    b = b_ref[...]
    y0 = y[:, :half] + b                                   # output rows 2i
    y1 = y[:, half:] + b                                   # output rows 2i+1
    if relu:
        y0 = jnp.maximum(y0, 0.0)
        y1 = jnp.maximum(y1, 0.0)
    y0 = y0.astype(COMPUTE_DTYPE)
    y1 = y1.astype(COMPUTE_DTYPE)
    # out[2i+d] = y_d[i] via precomputed 0/1 placement matmuls (exact selection).
    return (jnp.dot(p_ref[0], y0, preferred_element_type=jnp.float32, precision=_PREC)
            + jnp.dot(p_ref[1], y1, preferred_element_type=jnp.float32, precision=_PREC))


def _fused_forward_kernel(x_ref, w1_ref, b1_ref, sel1_ref,
                          w2_ref, b2_ref, sel2_ref,
                          w3_ref, b3_ref, p3_ref,
                          w4_ref, b4_ref, p4_ref, o_ref):
    """Whole encoder+decoder for one image (grid step = one batch element)."""
    x = x_ref[0].astype(jnp.float32)                       # (H, K1), lane-dense
    x = _conv_relu_pool(x, w1_ref, b1_ref, sel1_ref)       # (Hp1, Wp1*64)
    x = _conv_relu_pool(x, w2_ref, b2_ref, sel2_ref)       # (Hp2, Wp2*128)
    x = _deconv2x2(x, w3_ref, b3_ref, p3_ref, relu=True)   # (2*Hp2, 2*Wp2*64)
    x = _deconv2x2(x, w4_ref, b4_ref, p4_ref, relu=False)  # (Hf, Wf*cout_pad)
    o_ref[0] = x.astype(o_ref.dtype)                       # lane-dense (16, 128)


# ----------------------------------------------------------------------------
# Single pallas_call wrapper (grid over batch; weights VMEM-resident)
# ----------------------------------------------------------------------------
def _fused_call(prep, x_pad):
    n, h, k1 = x_pad.shape
    weights = (prep["w1"], prep["b1"], prep["sel1"],
               prep["w2"], prep["b2"], prep["sel2"],
               prep["w3"], prep["b3"], prep["p3"],
               prep["w4"], prep["b4"], prep["p4"])
    const3d = lambda i: (0, 0, 0)
    const2d = lambda i: (0, 0)
    in_specs = [pl.BlockSpec((1, h, k1), lambda i: (i, 0, 0))]
    in_specs += [pl.BlockSpec(w.shape, const3d if w.ndim == 3 else const2d)
                 for w in weights]
    h_out = prep["p4"].shape[1]
    out_lanes = prep["b4"].shape[1]
    return pl.pallas_call(
        _fused_forward_kernel,
        grid=(n,),
        in_specs=in_specs,
        out_specs=pl.BlockSpec((1, h_out, out_lanes), lambda i: (i, 0, 0)),
        out_shape=jax.ShapeDtypeStruct((n, h_out, out_lanes), jnp.float32),
        compiler_params=pltpu.CompilerParams(
            dimension_semantics=("parallel",)),
    )(x_pad, *weights)


# ----------------------------------------------------------------------------
# One-time weight preparation (outside the per-forward path)
# ----------------------------------------------------------------------------
def _round_up(x, m):
    return ((x + m - 1) // m) * m


def _conv_toeplitz_combined(w_oihw, width, k_rows, dtype):
    """(Cout,Cin,3,3) -> (3, k_rows, 2*Wp*Cout) per-H-tap Toeplitz matrices.

    Columns [0, Wp*Cout) give the even conv columns (j=2wp), columns
    [Wp*Cout, 2*Wp*Cout) the odd ones (j=2wp+1).  Rows >= width*Cin are zero
    padding (lane-dense K)."""
    cout, cin, kh, kw = w_oihw.shape
    assert k_rows >= width * cin
    wo = width - kw + 1
    wp = wo // 2
    w_np = np.transpose(np.asarray(w_oihw, np.float32), (2, 3, 1, 0))  # (kh,kw,ci,co)
    mat = np.zeros((kh, k_rows, 2 * wp * cout), np.float32)
    for parity in range(2):
        cbase = parity * wp * cout
        for kj in range(kw):
            for j in range(wp):
                r0 = (2 * j + parity + kj) * cin
                c0 = cbase + j * cout
                mat[:, r0:r0 + cin, c0:c0 + cout] = w_np[:, kj]
    return jnp.asarray(mat, dtype)


def _deconv_combined(w_iohw, width, cout_pad, dtype):
    """(Cin,Cout,2,2) -> (W*Cin, 2*half): cols [0,half) produce output rows 2i,
    [half,2*half) rows 2i+1; within a half, column = (2j+dj)*cout_pad + c.
    Channels >= Cout are zero padding (lane-dense output)."""
    cin, cout, kh, kw = w_iohw.shape
    assert kh == 2 and kw == 2 and cout_pad >= cout
    w_np = np.asarray(w_iohw, np.float32)
    half = kw * width * cout_pad
    mat = np.zeros((width * cin, 2 * half), np.float32)
    for di in range(kh):
        cbase = di * half
        for j in range(width):
            for dj in range(kw):
                r0 = j * cin
                c0 = cbase + (kw * j + dj) * cout_pad
                mat[r0:r0 + cin, c0:c0 + cout] = w_np[:, :, di, dj]
    return jnp.asarray(mat, dtype)


def _bias_row(b, reps):
    return jnp.asarray(np.tile(np.asarray(b, np.float32), reps).reshape(1, -1))


def _bias_row_padded(b, cout_pad, reps):
    b = np.asarray(b, np.float32)
    bp = np.zeros((cout_pad,), np.float32)
    bp[:b.shape[0]] = b
    return jnp.asarray(np.tile(bp, reps).reshape(1, -1))


def _pool_select(hp, dtype):
    """(2, Hp, 2*Hp) 0/1 matrices: slot d, row i selects conv row 2i+d."""
    ho = 2 * hp
    d = np.arange(2)[:, None, None]
    i = np.arange(hp)[None, :, None]
    j = np.arange(ho)[None, None, :]
    return jnp.asarray((j == 2 * i + d).astype(np.float32), dtype)


def _interleave_select(h, dtype):
    """(2, 2H, H) 0/1 matrices: slot d places input row i at output row 2i+d."""
    d = np.arange(2)[:, None, None]
    r = np.arange(2 * h)[None, :, None]
    i = np.arange(h)[None, None, :]
    return jnp.asarray((r == 2 * i + d).astype(np.float32), dtype)


def prepare_params(params, height, width):
    """Toeplitz-ify / pad / cast the PyTorch-layout weights once per shape.

    Returns an array-only pytree (safe to pass straight through jax.jit)."""
    dt = COMPUTE_DTYPE
    cin = 3
    assert height > 4 and width > 4, "image too small for two conv+pool stages"
    assert (height - 2) % 2 == 0 and (width - 2) % 2 == 0, \
        "conv1 output must be even for MaxPool2d(2,2)"
    h2, w2 = (height - 2) // 2, (width - 2) // 2
    assert (h2 - 2) % 2 == 0 and (w2 - 2) % 2 == 0, \
        "conv2 output must be even for MaxPool2d(2,2)"
    h3, w3 = (h2 - 2) // 2, (w2 - 2) // 2      # encoder output / deconv1 input
    h4, w4 = 2 * h3, 2 * w3                    # deconv1 output / deconv2 input

    k1 = _round_up(width * cin, 128)           # lane-dense stage-1 K
    cout_pad = 3                               # pad final Cout so the output
    while (2 * w4 * cout_pad) % 128:           # store is a multiple of 128 lanes
        cout_pad += 1

    return {
        # encoder stage 1: Conv2d(3,64,3) + ReLU + MaxPool(2,2)
        "w1": _conv_toeplitz_combined(params["w1"], width, k1, dt),
        "b1": _bias_row(params["b1"], (width - 2) // 2),
        "sel1": _pool_select((height - 2) // 2, dt),
        # encoder stage 2: Conv2d(64,128,3) + ReLU + MaxPool(2,2)
        "w2": _conv_toeplitz_combined(params["w2"], w2, w2 * 64, dt),
        "b2": _bias_row(params["b2"], (w2 - 2) // 2),
        "sel2": _pool_select((h2 - 2) // 2, dt),
        # decoder stage 3: ConvTranspose2d(128,64,2,2) + ReLU
        "w3": _deconv_combined(params["w3"], w3, 64, dt),
        "b3": _bias_row(params["b3"], 2 * w3),
        "p3": _interleave_select(h3, dt),
        # decoder stage 4: ConvTranspose2d(64,3,2,2), Cout zero-padded -> cout_pad
        "w4": _deconv_combined(params["w4"], w4, cout_pad, dt),
        "b4": _bias_row_padded(params["b4"], cout_pad, 2 * w4),
        "p4": _interleave_select(h4, dt),
    }


# ----------------------------------------------------------------------------
# Parameters (deterministic, PyTorch-default-style uniform init)
# ----------------------------------------------------------------------------
def init_params(key):
    def uconv(k, shape, fan_in):
        bound = 1.0 / np.sqrt(fan_in)
        return jax.random.uniform(k, shape, jnp.float32, -bound, bound)

    ks = jax.random.split(key, 8)
    p = {}
    # encoder: Conv2d(3, 64, 3), Conv2d(64, 128, 3)
    p["w1"] = uconv(ks[0], (64, 3, 3, 3), 3 * 9)
    p["b1"] = uconv(ks[1], (64,), 3 * 9)
    p["w2"] = uconv(ks[2], (128, 64, 3, 3), 64 * 9)
    p["b2"] = uconv(ks[3], (128,), 64 * 9)
    # decoder: ConvTranspose2d(128, 64, 2, 2), ConvTranspose2d(64, 3, 2, 2)
    p["w3"] = uconv(ks[4], (128, 64, 2, 2), 128 * 4)   # (Cin, Cout, kH, kW)
    p["b3"] = uconv(ks[5], (64,), 128 * 4)
    p["w4"] = uconv(ks[6], (64, 3, 2, 2), 64 * 4)
    p["b4"] = uconv(ks[7], (3,), 64 * 4)
    return p


# ----------------------------------------------------------------------------
# Full forward pass (NCHW in, NCHW out — matches the PyTorch module)
# ----------------------------------------------------------------------------
def image_generator_forward(prep, image_nchw):
    n, c, h, w = image_nchw.shape
    # entry glue: NCHW -> per-image 2-D layout (H, W*C), lane-padded to 128
    x = jnp.transpose(image_nchw, (0, 2, 3, 1)).reshape(n, h, w * c)
    x = x.astype(jnp.float32)
    k1 = prep["w1"].shape[1]
    if k1 > w * c:
        x = jnp.pad(x, ((0, 0), (0, 0), (0, k1 - w * c)))
    # one fused pallas_call for the whole encoder+decoder
    out = _fused_call(prep, x)                       # (N, Hf, Wf*cout_pad) f32
    # exit glue: drop channel padding, back to NCHW
    h_out = out.shape[1]
    w_out = 4 * (((w - 2) // 2 - 2) // 2)            # 2 * (2 * W3)
    cout_pad = out.shape[2] // w_out
    y = out.reshape(n, h_out, w_out, cout_pad)[..., :3]
    return jnp.transpose(y, (0, 3, 1, 2))


# ----------------------------------------------------------------------------
# Pure-JAX reference (lax conv / reduce_window / einsum) for verification
# ----------------------------------------------------------------------------
def reference_forward(params, x):
    def conv(x, w, b, relu):
        y = lax.conv_general_dilated(x, w, (1, 1), "VALID",
                                     dimension_numbers=("NCHW", "OIHW", "NCHW"))
        y = y + b[None, :, None, None]
        return jnp.maximum(y, 0.0) if relu else y

    def pool(x):
        return lax.reduce_window(x, -jnp.inf, lax.max,
                                 (1, 1, 2, 2), (1, 1, 2, 2), "VALID")

    def convT(x, w, b, relu):
        # out[n, co, 2i+di, 2j+dj] = sum_ci x[n,ci,i,j] * w[ci,co,di,dj] + b[co]
        y = jnp.einsum("ncij,codk->noidjk", x, w)          # (N,Cout,H,2,W,2)
        N, Co, H, _, W, _ = y.shape
        y = y.reshape(N, Co, 2 * H, 2 * W) + b[None, :, None, None]
        return jnp.maximum(y, 0.0) if relu else y

    x = x.astype(jnp.float32)
    x = pool(conv(x, params["w1"], params["b1"], True))
    x = pool(conv(x, params["w2"], params["b2"], True))
    x = convT(x, params["w3"], params["b3"], True)
    x = convT(x, params["w4"], params["b4"], False)
    return x


if __name__ == "__main__":
    key = jax.random.PRNGKey(0)
    k_img, _ = jax.random.split(key)

    # Input: 22x22 so the encoder/decoder arithmetic stays clean:
    # 22 -conv3-> 20 -pool-> 10 -conv3-> 8 -pool-> 4 -convT-> 8 -convT-> 16
    image = jax.random.normal(k_img, (2, 3, 22, 22), jnp.float32)
    params = init_params(jax.random.PRNGKey(42))
    prep = prepare_params(params, height=22, width=22)     # one-time weight prep

    fwd = jax.jit(image_generator_forward)
    out = jax.block_until_ready(fwd(prep, image))

    assert out.shape == (2, 3, 16, 16), out.shape
    assert bool(jnp.all(jnp.isfinite(out)))

    ref = jax.block_until_ready(reference_forward(params, image))
    tol = 2e-2 if COMPUTE_DTYPE == jnp.bfloat16 else 2e-4
    np.testing.assert_allclose(np.asarray(out, np.float32), np.asarray(ref),
                               rtol=tol, atol=tol)

    print("KERNEL_OK")
</pallas_src>

<mosaic_0001>
module attributes {stable_mosaic.version = 11 : i64} {
  func.func @_fused_forward_kernel(%arg0: i32, %arg1: memref<1x22x128xf32, #tpu.memory_space<vmem>>, %arg2: memref<3x128x1280xbf16, #tpu.memory_space<vmem>>, %arg3: memref<1x640xf32, #tpu.memory_space<vmem>>, %arg4: memref<2x10x20xbf16, #tpu.memory_space<vmem>>, %arg5: memref<3x640x1024xbf16, #tpu.memory_space<vmem>>, %arg6: memref<1x512xf32, #tpu.memory_space<vmem>>, %arg7: memref<2x4x8xbf16, #tpu.memory_space<vmem>>, %arg8: memref<512x1024xbf16, #tpu.memory_space<vmem>>, %arg9: memref<1x512xf32, #tpu.memory_space<vmem>>, %arg10: memref<2x8x4xbf16, #tpu.memory_space<vmem>>, %arg11: memref<512x256xbf16, #tpu.memory_space<vmem>>, %arg12: memref<1x128xf32, #tpu.memory_space<vmem>>, %arg13: memref<2x16x8xbf16, #tpu.memory_space<vmem>>, %arg14: memref<1x16x128xf32, #tpu.memory_space<vmem>>) attributes {dimension_semantics = [#tpu.dimension_semantics<parallel>], iteration_bounds = array<i64: 2>, scalar_prefetch = 0 : i64, scratch_operands = 0 : i64, tpu.core_type = #tpu.core_type<tc>, window_params = [{transform_indices = @transform_0, window_bounds = array<i64: 1, 22, 128>}, {pipeline_mode = #tpu.pipeline_mode<synchronous>, transform_indices = @transform_1, window_bounds = array<i64: 3, 128, 1280>}, {pipeline_mode = #tpu.pipeline_mode<synchronous>, transform_indices = @transform_2, window_bounds = array<i64: 1, 640>}, {pipeline_mode = #tpu.pipeline_mode<synchronous>, transform_indices = @transform_3, window_bounds = array<i64: 2, 10, 20>}, {pipeline_mode = #tpu.pipeline_mode<synchronous>, transform_indices = @transform_4, window_bounds = array<i64: 3, 640, 1024>}, {pipeline_mode = #tpu.pipeline_mode<synchronous>, transform_indices = @transform_5, window_bounds = array<i64: 1, 512>}, {pipeline_mode = #tpu.pipeline_mode<synchronous>, transform_indices = @transform_6, window_bounds = array<i64: 2, 4, 8>}, {pipeline_mode = #tpu.pipeline_mode<synchronous>, transform_indices = @transform_7, window_bounds = array<i64: 512, 1024>}, {pipeline_mode = #tpu.pipeline_mode<synchronous>, transform_indices = @transform_8, window_bounds = array<i64: 1, 512>}, {pipeline_mode = #tpu.pipeline_mode<synchronous>, transform_indices = @transform_9, window_bounds = array<i64: 2, 8, 4>}, {pipeline_mode = #tpu.pipeline_mode<synchronous>, transform_indices = @transform_10, window_bounds = array<i64: 512, 256>}, {pipeline_mode = #tpu.pipeline_mode<synchronous>, transform_indices = @transform_11, window_bounds = array<i64: 1, 128>}, {pipeline_mode = #tpu.pipeline_mode<synchronous>, transform_indices = @transform_12, window_bounds = array<i64: 2, 16, 8>}, {transform_indices = @transform_13, window_bounds = array<i64: 1, 16, 128>}]} {
    %c0 = arith.constant 0 : index
    %c0_0 = arith.constant 0 : index
    %c0_1 = arith.constant 0 : index
    %0 = vector.load %arg1[%c0, %c0_0, %c0_1] : memref<1x22x128xf32, #tpu.memory_space<vmem>>, vector<1x22x128xf32>
    %1 = vector.shape_cast %0 : vector<1x22x128xf32> to vector<22x128xf32>
    %cst = arith.constant 0.000000e+00 : f32
    %2 = vector.broadcast %cst : f32 to vector<20x1280xf32>
    %3 = vector.extract_strided_slice %1 {offsets = [0, 0], sizes = [20, 128], strides = [1, 1]} : vector<22x128xf32> to vector<20x128xf32>
    %4 = arith.truncf %3 : vector<20x128xf32> to vector<20x128xbf16>
    %c0_2 = arith.constant 0 : index
    %c0_3 = arith.constant 0 : index
    %c0_4 = arith.constant 0 : index
    %5 = vector.load %arg2[%c0_2, %c0_3, %c0_4] : memref<3x128x1280xbf16, #tpu.memory_space<vmem>>, vector<1x128x1280xbf16>
    %6 = vector.shape_cast %5 : vector<1x128x1280xbf16> to vector<128x1280xbf16>
    %cst_5 = arith.constant dense<0.000000e+00> : vector<20x1280xf32>
    %7 = tpu.matmul %4, %6, %cst_5 {dimension_numbers = #tpu.dot_dimension_numbers<[1], [0], [0], [1], [0, 0, 1, 1], [], []>} : vector<20x128xbf16>, vector<128x1280xbf16>, vector<20x1280xf32> -> vector<20x1280xf32>
    %8 = arith.addf %2, %7 : vector<20x1280xf32>
    %9 = vector.extract_strided_slice %1 {offsets = [1, 0], sizes = [20, 128], strides = [1, 1]} : vector<22x128xf32> to vector<20x128xf32>
    %10 = arith.truncf %9 : vector<20x128xf32> to vector<20x128xbf16>
    %c1 = arith.constant 1 : index
    %c0_6 = arith.constant 0 : index
    %c0_7 = arith.constant 0 : index
    %11 = vector.load %arg2[%c1, %c0_6, %c0_7] : memref<3x128x1280xbf16, #tpu.memory_space<vmem>>, vector<1x128x1280xbf16>
    %12 = vector.shape_cast %11 : vector<1x128x1280xbf16> to vector<128x1280xbf16>
    %cst_8 = arith.constant dense<0.000000e+00> : vector<20x1280xf32>
    %13 = tpu.matmul %10, %12, %cst_8 {dimension_numbers = #tpu.dot_dimension_numbers<[1], [0], [0], [1], [0, 0, 1, 1], [], []>} : vector<20x128xbf16>, vector<128x1280xbf16>, vector<20x1280xf32> -> vector<20x1280xf32>
    %14 = arith.addf %8, %13 : vector<20x1280xf32>
    %15 = vector.extract_strided_slice %1 {offsets = [2, 0], sizes = [20, 128], strides = [1, 1]} : vector<22x128xf32> to vector<20x128xf32>
    %16 = arith.truncf %15 : vector<20x128xf32> to vector<20x128xbf16>
    %c2 = arith.constant 2 : index
    %c0_9 = arith.constant 0 : index
    %c0_10 = arith.constant 0 : index
    %17 = vector.load %arg2[%c2, %c0_9, %c0_10] : memref<3x128x1280xbf16, #tpu.memory_space<vmem>>, vector<1x128x1280xbf16>
    %18 = vector.shape_cast %17 : vector<1x128x1280xbf16> to vector<128x1280xbf16>
    %cst_11 = arith.constant dense<0.000000e+00> : vector<20x1280xf32>
    %19 = tpu.matmul %16, %18, %cst_11 {dimension_numbers = #tpu.dot_dimension_numbers<[1], [0], [0], [1], [0, 0, 1, 1], [], []>} : vector<20x128xbf16>, vector<128x1280xbf16>, vector<20x1280xf32> -> vector<20x1280xf32>
    %20 = arith.addf %14, %19 : vector<20x1280xf32>
    %c0_12 = arith.constant 0 : index
    %c0_13 = arith.constant 0 : index
    %21 = vector.load %arg3[%c0_12, %c0_13] : memref<1x640xf32, #tpu.memory_space<vmem>>, vector<1x640xf32>
    %22 = vector.extract_strided_slice %20 {offsets = [0, 0], sizes = [20, 640], strides = [1, 1]} : vector<20x1280xf32> to vector<20x640xf32>
    %23 = vector.broadcast %21 : vector<1x640xf32> to vector<20x640xf32>
    %24 = arith.addf %22, %23 : vector<20x640xf32>
    %cst_14 = arith.constant 0.000000e+00 : f32
    %25 = vector.broadcast %cst_14 : f32 to vector<20x640xf32>
    %26 = arith.maximumf %24, %25 : vector<20x640xf32>
    %27 = vector.extract_strided_slice %20 {offsets = [0, 640], sizes = [20, 640], strides = [1, 1]} : vector<20x1280xf32> to vector<20x640xf32>
    %28 = vector.broadcast %21 : vector<1x640xf32> to vector<20x640xf32>
    %29 = arith.addf %27, %28 : vector<20x640xf32>
    %cst_15 = arith.constant 0.000000e+00 : f32
    %30 = vector.broadcast %cst_15 : f32 to vector<20x640xf32>
    %31 = arith.maximumf %29, %30 : vector<20x640xf32>
    %32 = arith.maximumf %26, %31 : vector<20x640xf32>
    %33 = arith.truncf %32 : vector<20x640xf32> to vector<20x640xbf16>
    %c0_16 = arith.constant 0 : index
    %c0_17 = arith.constant 0 : index
    %c0_18 = arith.constant 0 : index
    %34 = vector.load %arg4[%c0_16, %c0_17, %c0_18] : memref<2x10x20xbf16, #tpu.memory_space<vmem>>, vector<1x10x20xbf16>
    %35 = vector.shape_cast %34 : vector<1x10x20xbf16> to vector<10x20xbf16>
    %cst_19 = arith.constant dense<0.000000e+00> : vector<10x640xf32>
    %36 = tpu.matmul %35, %33, %cst_19 {dimension_numbers = #tpu.dot_dimension_numbers<[1], [0], [0], [1], [0, 0, 1, 1], [], []>} : vector<10x20xbf16>, vector<20x640xbf16>, vector<10x640xf32> -> vector<10x640xf32>
    %c1_20 = arith.constant 1 : index
    %c0_21 = arith.constant 0 : index
    %c0_22 = arith.constant 0 : index
    %37 = vector.load %arg4[%c1_20, %c0_21, %c0_22] : memref<2x10x20xbf16, #tpu.memory_space<vmem>>, vector<1x10x20xbf16>
    %38 = vector.shape_cast %37 : vector<1x10x20xbf16> to vector<10x20xbf16>
    %cst_23 = arith.constant dense<0.000000e+00> : vector<10x640xf32>
    %39 = tpu.matmul %38, %33, %cst_23 {dimension_numbers = #tpu.dot_dimension_numbers<[1], [0], [0], [1], [0, 0, 1, 1], [], []>} : vector<10x20xbf16>, vector<20x640xbf16>, vector<10x640xf32> -> vector<10x640xf32>
    %40 = arith.maximumf %36, %39 : vector<10x640xf32>
    %cst_24 = arith.constant 0.000000e+00 : f32
    %41 = vector.broadcast %cst_24 : f32 to vector<8x1024xf32>
    %42 = vector.extract_strided_slice %40 {offsets = [0, 0], sizes = [8, 640], strides = [1, 1]} : vector<10x640xf32> to vector<8x640xf32>
    %43 = arith.truncf %42 : vector<8x640xf32> to vector<8x640xbf16>
    %c0_25 = arith.constant 0 : index
    %c0_26 = arith.constant 0 : index
    %c0_27 = arith.constant 0 : index
    %44 = vector.load %arg5[%c0_25, %c0_26, %c0_27] : memref<3x640x1024xbf16, #tpu.memory_space<vmem>>, vector<1x640x1024xbf16>
    %45 = vector.shape_cast %44 : vector<1x640x1024xbf16> to vector<640x1024xbf16>
    %cst_28 = arith.constant dense<0.000000e+00> : vector<8x1024xf32>
    %46 = tpu.matmul %43, %45, %cst_28 {dimension_numbers = #tpu.dot_dimension_numbers<[1], [0], [0], [1], [0, 0, 1, 1], [], []>} : vector<8x640xbf16>, vector<640x1024xbf16>, vector<8x1024xf32> -> vector<8x1024xf32>
    %47 = arith.addf %41, %46 : vector<8x1024xf32>
    %48 = vector.extract_strided_slice %40 {offsets = [1, 0], sizes = [8, 640], strides = [1, 1]} : vector<10x640xf32> to vector<8x640xf32>
    %49 = arith.truncf %48 : vector<8x640xf32> to vector<8x640xbf16>
    %c1_29 = arith.constant 1 : index
    %c0_30 = arith.constant 0 : index
    %c0_31 = arith.constant 0 : index
    %50 = vector.load %arg5[%c1_29, %c0_30, %c0_31] : memref<3x640x1024xbf16, #tpu.memory_space<vmem>>, vector<1x640x1024xbf16>
    %51 = vector.shape_cast %50 : vector<1x640x1024xbf16> to vector<640x1024xbf16>
    %cst_32 = arith.constant dense<0.000000e+00> : vector<8x1024xf32>
    %52 = tpu.matmul %49, %51, %cst_32 {dimension_numbers = #tpu.dot_dimension_numbers<[1], [0], [0], [1], [0, 0, 1, 1], [], []>} : vector<8x640xbf16>, vector<640x1024xbf16>, vector<8x1024xf32> -> vector<8x1024xf32>
    %53 = arith.addf %47, %52 : vector<8x1024xf32>
    %54 = vector.extract_strided_slice %40 {offsets = [2, 0], sizes = [8, 640], strides = [1, 1]} : vector<10x640xf32> to vector<8x640xf32>
    %55 = arith.truncf %54 : vector<8x640xf32> to vector<8x640xbf16>
    %c2_33 = arith.constant 2 : index
    %c0_34 = arith.constant 0 : index
    %c0_35 = arith.constant 0 : index
    %56 = vector.load %arg5[%c2_33, %c0_34, %c0_35] : memref<3x640x1024xbf16, #tpu.memory_space<vmem>>, vector<1x640x1024xbf16>
    %57 = vector.shape_cast %56 : vector<1x640x1024xbf16> to vector<640x1024xbf16>
    %cst_36 = arith.constant dense<0.000000e+00> : vector<8x1024xf32>
    %58 = tpu.matmul %55, %57, %cst_36 {dimension_numbers = #tpu.dot_dimension_numbers<[1], [0], [0], [1], [0, 0, 1, 1], [], []>} : vector<8x640xbf16>, vector<640x1024xbf16>, vector<8x1024xf32> -> vector<8x1024xf32>
    %59 = arith.addf %53, %58 : vector<8x1024xf32>
    %c0_37 = arith.constant 0 : index
    %c0_38 = arith.constant 0 : index
    %60 = vector.load %arg6[%c0_37, %c0_38] : memref<1x512xf32, #tpu.memory_space<vmem>>, vector<1x512xf32>
    %61 = vector.extract_strided_slice %59 {offsets = [0, 0], sizes = [8, 512], strides = [1, 1]} : vector<8x1024xf32> to vector<8x512xf32>
    %62 = vector.broadcast %60 : vector<1x512xf32> to vector<8x512xf32>
    %63 = arith.addf %61, %62 : vector<8x512xf32>
    %cst_39 = arith.constant 0.000000e+00 : f32
    %64 = vector.broadcast %cst_39 : f32 to vector<8x512xf32>
    %65 = arith.maximumf %63, %64 : vector<8x512xf32>
    %66 = vector.extract_strided_slice %59 {offsets = [0, 512], sizes = [8, 512], strides = [1, 1]} : vector<8x1024xf32> to vector<8x512xf32>
    %67 = vector.broadcast %60 : vector<1x512xf32> to vector<8x512xf32>
    %68 = arith.addf %66, %67 : vector<8x512xf32>
    %cst_40 = arith.constant 0.000000e+00 : f32
    %69 = vector.broadcast %cst_40 : f32 to vector<8x512xf32>
    %70 = arith.maximumf %68, %69 : vector<8x512xf32>
    %71 = arith.maximumf %65, %70 : vector<8x512xf32>
    %72 = arith.truncf %71 : vector<8x512xf32> to vector<8x512xbf16>
    %c0_41 = arith.constant 0 : index
    %c0_42 = arith.constant 0 : index
    %c0_43 = arith.constant 0 : index
    %73 = vector.load %arg7[%c0_41, %c0_42, %c0_43] : memref<2x4x8xbf16, #tpu.memory_space<vmem>>, vector<1x4x8xbf16>
    %74 = vector.shape_cast %73 : vector<1x4x8xbf16> to vector<4x8xbf16>
    %cst_44 = arith.constant dense<0.000000e+00> : vector<4x512xf32>
    %75 = tpu.matmul %74, %72, %cst_44 {dimension_numbers = #tpu.dot_dimension_numbers<[1], [0], [0], [1], [0, 0, 1, 1], [], []>} : vector<4x8xbf16>, vector<8x512xbf16>, vector<4x512xf32> -> vector<4x512xf32>
    %c1_45 = arith.constant 1 : index
    %c0_46 = arith.constant 0 : index
    %c0_47 = arith.constant 0 : index
    %76 = vector.load %arg7[%c1_45, %c0_46, %c0_47] : memref<2x4x8xbf16, #tpu.memory_space<vmem>>, vector<1x4x8xbf16>
    %77 = vector.shape_cast %76 : vector<1x4x8xbf16> to vector<4x8xbf16>
    %cst_48 = arith.constant dense<0.000000e+00> : vector<4x512xf32>
    %78 = tpu.matmul %77, %72, %cst_48 {dimension_numbers = #tpu.dot_dimension_numbers<[1], [0], [0], [1], [0, 0, 1, 1], [], []>} : vector<4x8xbf16>, vector<8x512xbf16>, vector<4x512xf32> -> vector<4x512xf32>
    %79 = arith.maximumf %75, %78 : vector<4x512xf32>
    %80 = arith.truncf %79 : vector<4x512xf32> to vector<4x512xbf16>
    %c0_49 = arith.constant 0 : index
    %c0_50 = arith.constant 0 : index
    %81 = vector.load %arg8[%c0_49, %c0_50] : memref<512x1024xbf16, #tpu.memory_space<vmem>>, vector<512x1024xbf16>
    %cst_51 = arith.constant dense<0.000000e+00> : vector<4x1024xf32>
    %82 = tpu.matmul %80, %81, %cst_51 {dimension_numbers = #tpu.dot_dimension_numbers<[1], [0], [0], [1], [0, 0, 1, 1], [], []>} : vector<4x512xbf16>, vector<512x1024xbf16>, vector<4x1024xf32> -> vector<4x1024xf32>
    %c0_52 = arith.constant 0 : index
    %c0_53 = arith.constant 0 : index
    %83 = vector.load %arg9[%c0_52, %c0_53] : memref<1x512xf32, #tpu.memory_space<vmem>>, vector<1x512xf32>
    %84 = vector.extract_strided_slice %82 {offsets = [0, 0], sizes = [4, 512], strides = [1, 1]} : vector<4x1024xf32> to vector<4x512xf32>
    %85 = vector.broadcast %83 : vector<1x512xf32> to vector<4x512xf32>
    %86 = arith.addf %84, %85 : vector<4x512xf32>
    %87 = vector.extract_strided_slice %82 {offsets = [0, 512], sizes = [4, 512], strides = [1, 1]} : vector<4x1024xf32> to vector<4x512xf32>
    %88 = vector.broadcast %83 : vector<1x512xf32> to vector<4x512xf32>
    %89 = arith.addf %87, %88 : vector<4x512xf32>
    %cst_54 = arith.constant 0.000000e+00 : f32
    %90 = vector.broadcast %cst_54 : f32 to vector<4x512xf32>
    %91 = arith.maximumf %86, %90 : vector<4x512xf32>
    %cst_55 = arith.constant 0.000000e+00 : f32
    %92 = vector.broadcast %cst_55 : f32 to vector<4x512xf32>
    %93 = arith.maximumf %89, %92 : vector<4x512xf32>
    %94 = arith.truncf %91 : vector<4x512xf32> to vector<4x512xbf16>
    %95 = arith.truncf %93 : vector<4x512xf32> to vector<4x512xbf16>
    %c0_56 = arith.constant 0 : index
    %c0_57 = arith.constant 0 : index
    %c0_58 = arith.constant 0 : index
    %96 = vector.load %arg10[%c0_56, %c0_57, %c0_58] : memref<2x8x4xbf16, #tpu.memory_space<vmem>>, vector<1x8x4xbf16>
    %97 = vector.shape_cast %96 : vector<1x8x4xbf16> to vector<8x4xbf16>
    %cst_59 = arith.constant dense<0.000000e+00> : vector<8x512xf32>
    %98 = tpu.matmul %97, %94, %cst_59 {dimension_numbers = #tpu.dot_dimension_numbers<[1], [0], [0], [1], [0, 0, 1, 1], [], []>} : vector<8x4xbf16>, vector<4x512xbf16>, vector<8x512xf32> -> vector<8x512xf32>
    %c1_60 = arith.constant 1 : index
    %c0_61 = arith.constant 0 : index
    %c0_62 = arith.constant 0 : index
    %99 = vector.load %arg10[%c1_60, %c0_61, %c0_62] : memref<2x8x4xbf16, #tpu.memory_space<vmem>>, vector<1x8x4xbf16>
    %100 = vector.shape_cast %99 : vector<1x8x4xbf16> to vector<8x4xbf16>
    %cst_63 = arith.constant dense<0.000000e+00> : vector<8x512xf32>
    %101 = tpu.matmul %100, %95, %cst_63 {dimension_numbers = #tpu.dot_dimension_numbers<[1], [0], [0], [1], [0, 0, 1, 1], [], []>} : vector<8x4xbf16>, vector<4x512xbf16>, vector<8x512xf32> -> vector<8x512xf32>
    %102 = arith.addf %98, %101 : vector<8x512xf32>
    %103 = arith.truncf %102 : vector<8x512xf32> to vector<8x512xbf16>
    %c0_64 = arith.constant 0 : index
    %c0_65 = arith.constant 0 : index
    %104 = vector.load %arg11[%c0_64, %c0_65] : memref<512x256xbf16, #tpu.memory_space<vmem>>, vector<512x256xbf16>
    %cst_66 = arith.constant dense<0.000000e+00> : vector<8x256xf32>
    %105 = tpu.matmul %103, %104, %cst_66 {dimension_numbers = #tpu.dot_dimension_numbers<[1], [0], [0], [1], [0, 0, 1, 1], [], []>} : vector<8x512xbf16>, vector<512x256xbf16>, vector<8x256xf32> -> vector<8x256xf32>
    %c0_67 = arith.constant 0 : index
    %c0_68 = arith.constant 0 : index
    %106 = vector.load %arg12[%c0_67, %c0_68] : memref<1x128xf32, #tpu.memory_space<vmem>>, vector<1x128xf32>
    %107 = vector.extract_strided_slice %105 {offsets = [0, 0], sizes = [8, 128], strides = [1, 1]} : vector<8x256xf32> to vector<8x128xf32>
    %108 = vector.broadcast %106 : vector<1x128xf32> to vector<8x128xf32>
    %109 = arith.addf %107, %108 : vector<8x128xf32>
    %110 = vector.extract_strided_slice %105 {offsets = [0, 128], sizes = [8, 128], strides = [1, 1]} : vector<8x256xf32> to vector<8x128xf32>
    %111 = vector.broadcast %106 : vector<1x128xf32> to vector<8x128xf32>
    %112 = arith.addf %110, %111 : vector<8x128xf32>
    %113 = arith.truncf %109 : vector<8x128xf32> to vector<8x128xbf16>
    %114 = arith.truncf %112 : vector<8x128xf32> to vector<8x128xbf16>
    %c0_69 = arith.constant 0 : index
    %c0_70 = arith.constant 0 : index
    %c0_71 = arith.constant 0 : index
    %115 = vector.load %arg13[%c0_69, %c0_70, %c0_71] : memref<2x16x8xbf16, #tpu.memory_space<vmem>>, vector<1x16x8xbf16>
    %116 = vector.shape_cast %115 : vector<1x16x8xbf16> to vector<16x8xbf16>
    %cst_72 = arith.constant dense<0.000000e+00> : vector<16x128xf32>
    %117 = tpu.matmul %116, %113, %cst_72 {dimension_numbers = #tpu.dot_dimension_numbers<[1], [0], [0], [1], [0, 0, 1, 1], [], []>} : vector<16x8xbf16>, vector<8x128xbf16>, vector<16x128xf32> -> vector<16x128xf32>
    %c1_73 = arith.constant 1 : index
    %c0_74 = arith.constant 0 : index
    %c0_75 = arith.constant 0 : index
    %118 = vector.load %arg13[%c1_73, %c0_74, %c0_75] : memref<2x16x8xbf16, #tpu.memory_space<vmem>>, vector<1x16x8xbf16>
    %119 = vector.shape_cast %118 : vector<1x16x8xbf16> to vector<16x8xbf16>
    %cst_76 = arith.constant dense<0.000000e+00> : vector<16x128xf32>
    %120 = tpu.matmul %119, %114, %cst_76 {dimension_numbers = #tpu.dot_dimension_numbers<[1], [0], [0], [1], [0, 0, 1, 1], [], []>} : vector<16x8xbf16>, vector<8x128xbf16>, vector<16x128xf32> -> vector<16x128xf32>
    %121 = arith.addf %117, %120 : vector<16x128xf32>
    %c0_77 = arith.constant 0 : index
    %c0_78 = arith.constant 0 : index
    %c0_79 = arith.constant 0 : index
    %122 = vector.load %arg14[%c0_77, %c0_78, %c0_79] : memref<1x16x128xf32, #tpu.memory_space<vmem>>, vector<1x16x128xf32>
    %123 = vector.shape_cast %122 : vector<1x16x128xf32> to vector<16x128xf32>
    %124 = vector.shape_cast %121 : vector<16x128xf32> to vector<1x16x128xf32>
    tpu.vector_store %arg14[%c0_77, %c0_78, %c0_79], %124 {strides = array<i32>} : memref<1x16x128xf32, #tpu.memory_space<vmem>>, vector<1x16x128xf32>,
    return
  }
  func.func @transform_0(%arg0: i32) -> (i32, i32, i32) {
    %c0_i32 = arith.constant 0 : i32
    %c0_i32_0 = arith.constant 0 : i32
    %c0_i32_1 = arith.constant 0 : i32
    return %arg0, %c0_i32, %c0_i32_0 : i32, i32, i32
  }
  func.func @transform_1(%arg0: i32) -> (i32, i32, i32) {
    %c0_i32 = arith.constant 0 : i32
    %c0_i32_0 = arith.constant 0 : i32
    %c0_i32_1 = arith.constant 0 : i32
    %c0_i32_2 = arith.constant 0 : i32
    return %c0_i32, %c0_i32_0, %c0_i32_1 : i32, i32, i32
  }
  func.func @transform_2(%arg0: i32) -> (i32, i32) {
    %c0_i32 = arith.constant 0 : i32
    %c0_i32_0 = arith.constant 0 : i32
    %c0_i32_1 = arith.constant 0 : i32
    return %c0_i32, %c0_i32_0 : i32, i32
  }
  func.func @transform_3(%arg0: i32) -> (i32, i32, i32) {
    %c0_i32 = arith.constant 0 : i32
    %c0_i32_0 = arith.constant 0 : i32
    %c0_i32_1 = arith.constant 0 : i32
    %c0_i32_2 = arith.constant 0 : i32
    return %c0_i32, %c0_i32_0, %c0_i32_1 : i32, i32, i32
  }
  func.func @transform_4(%arg0: i32) -> (i32, i32, i32) {
    %c0_i32 = arith.constant 0 : i32
    %c0_i32_0 = arith.constant 0 : i32
    %c0_i32_1 = arith.constant 0 : i32
    %c0_i32_2 = arith.constant 0 : i32
    return %c0_i32, %c0_i32_0, %c0_i32_1 : i32, i32, i32
  }
  func.func @transform_5(%arg0: i32) -> (i32, i32) {
    %c0_i32 = arith.constant 0 : i32
    %c0_i32_0 = arith.constant 0 : i32
    %c0_i32_1 = arith.constant 0 : i32
    return %c0_i32, %c0_i32_0 : i32, i32
  }
  func.func @transform_6(%arg0: i32) -> (i32, i32, i32) {
    %c0_i32 = arith.constant 0 : i32
    %c0_i32_0 = arith.constant 0 : i32
    %c0_i32_1 = arith.constant 0 : i32
    %c0_i32_2 = arith.constant 0 : i32
    return %c0_i32, %c0_i32_0, %c0_i32_1 : i32, i32, i32
  }
  func.func @transform_7(%arg0: i32) -> (i32, i32) {
    %c0_i32 = arith.constant 0 : i32
    %c0_i32_0 = arith.constant 0 : i32
    %c0_i32_1 = arith.constant 0 : i32
    return %c0_i32, %c0_i32_0 : i32, i32
  }
  func.func @transform_8(%arg0: i32) -> (i32, i32) {
    %c0_i32 = arith.constant 0 : i32
    %c0_i32_0 = arith.constant 0 : i32
    %c0_i32_1 = arith.constant 0 : i32
    return %c0_i32, %c0_i32_0 : i32, i32
  }
  func.func @transform_9(%arg0: i32) -> (i32, i32, i32) {
    %c0_i32 = arith.constant 0 : i32
    %c0_i32_0 = arith.constant 0 : i32
    %c0_i32_1 = arith.constant 0 : i32
    %c0_i32_2 = arith.constant 0 : i32
    return %c0_i32, %c0_i32_0, %c0_i32_1 : i32, i32, i32
  }
  func.func @transform_10(%arg0: i32) -> (i32, i32) {
    %c0_i32 = arith.constant 0 : i32
    %c0_i32_0 = arith.constant 0 : i32
    %c0_i32_1 = arith.constant 0 : i32
    return %c0_i32, %c0_i32_0 : i32, i32
  }
  func.func @transform_11(%arg0: i32) -> (i32, i32) {
    %c0_i32 = arith.constant 0 : i32
    %c0_i32_0 = arith.constant 0 : i32
    %c0_i32_1 = arith.constant 0 : i32
    return %c0_i32, %c0_i32_0 : i32, i32
  }
  func.func @transform_12(%arg0: i32) -> (i32, i32, i32) {
    %c0_i32 = arith.constant 0 : i32
    %c0_i32_0 = arith.constant 0 : i32
    %c0_i32_1 = arith.constant 0 : i32
    %c0_i32_2 = arith.constant 0 : i32
    return %c0_i32, %c0_i32_0, %c0_i32_1 : i32, i32, i32
  }
  func.func @transform_13(%arg0: i32) -> (i32, i32, i32) {
    %c0_i32 = arith.constant 0 : i32
    %c0_i32_0 = arith.constant 0 : i32
    %c0_i32_1 = arith.constant 0 : i32
    return %arg0, %c0_i32, %c0_i32_0 : i32, i32, i32
  }
}

</mosaic_0001>

<bundles_post_ra>
// kernel: image_generator_forward.1
= control target key start
LH: loop header
LB: loop body
LE: loop exit
PB: predicated region body
PF: predicated region fallthrough
CT: control target
= control target key end

     0   :  { %s17184_s0 = inlined_call_operand.vmem [shape: f32[2,22,128], index: 0, kind: input, shape index: {}]   ;;  %s17185_s1 = inlined_call_operand.hbm [shape: bf16[3,128,1280], index: 1, kind: input, shape index: {}]   ;;  %s17186_s2 = inlined_call_operand.hbm [shape: f32[1,640], index: 2, kind: input, shape index: {}]   ;;  %s17187_s3 = inlined_call_operand.vmem [shape: bf16[2,10,20], index: 3, kind: input, shape index: {}]   ;;  %s17188_s4 = inlined_call_operand.hbm [shape: bf16[3,640,1024], index: 4, kind: input, shape index: {}]   ;;  %s17189_s5 = inlined_call_operand.hbm [shape: f32[1,512], index: 5, kind: input, shape index: {}]   ;;  %s17190_s6 = inlined_call_operand.hbm [shape: bf16[2,4,8], index: 6, kind: input, shape index: {}]   ;;  %s17191_s7 = inlined_call_operand.hbm [shape: bf16[512,1024], index: 7, kind: input, shape index: {}]   ;;  %s17192_s8 = inlined_call_operand.hbm [shape: f32[1,512], index: 8, kind: input, shape index: {}]   ;;  %s17193_s9 = inlined_call_operand.vmem [shape: bf16[2,8,4], index: 9, kind: input, shape index: {}]   ;;  %s17194_s10 = inlined_call_operand.hbm [shape: bf16[512,256], index: 10, kind: input, shape index: {}]   ;;  %s17195_s11 = inlined_call_operand.hbm [shape: f32[1,128], index: 11, kind: input, shape index: {}]   ;;  %s17196_s12 = inlined_call_operand.vmem [shape: bf16[2,16,8], index: 12, kind: input, shape index: {}]   ;;  %s17197_s13 = inlined_call_operand.vmem [shape: f32[2,16,128], index: 13, kind: output, shape index: {}]  }
   0x1   :  { %17204 = sst [smem:[#allocation22_spill]] %s17185_s1 }
   0x2   :  { %17205 = sst [smem:[#allocation23_spill]] %s17186_s2 }
   0x3   :  { %18 = vsyncpa [#allocation3], 0 }
   0x4   :  { %19 = vsyncpa [#allocation5], 0 }
   0x5   :  { %20 = vsyncpa [#allocation8], 0 }
   0x6   :  { %21 = vsyncpa [#allocation11], 0 }
   0x7   :  { %22 = vsyncpa [#allocation14], 0  ;;  %s16258_s25 = smov 0  }
   0x8 LB: > { %17206 = sst [smem:[#allocation21_spill]] %s16167_s25  ;;  %s16169_s26 = smov [#allocation4]   ;;  %s16167_s25 = sphi %s16258_s25, %s28_s25  }
   0x9   : > { %s363_s27 = sshll.u32 %s16169_s26, 4  ;;  %s16264_s28 = sadd.s32 4294967295, %s16167_s25   ;;  %s16269_s27 = int_to_ptr.vmem [resolvable:$true] %s363_s27 }
   0xa   : > { %p13644_p0 = scmp.ge.s32.totalorder %s16167_s25, 1  ;;  %p337_p1 = scmp.lt.s32.totalorder %s16167_s25, 3 }
   0xb   : > { %p17199_p2 = scmp.eq.s32.totalorder %s16264_s28, 0  ;;  %s16170_s30 = smov [#allocation7]  }
   0xc   : > { %p16271_p3 = pnand %p13644_p0, %p337_p1  ;;  %s390_s14 = sshll.u32 %s16170_s30, 4  ;;  %s16277_s14 = int_to_ptr.vmem [resolvable:$true] %s390_s14 }
   0xd   : > { %s16171_s16 = smov [#allocation10]   ;;  %s16172_s18 = smov [#allocation13]  }
   0xe   : > { %s17207_s29 = scalar_select %p16271_p3, 1, 0 }
   0xf   : > { %p15356_p4 = pneg %p16271_p3  ;;  %s413_s17 = sshll.u32 %s16171_s16, 4  ;;  %s16285_s17 = int_to_ptr.vmem [resolvable:$true] %s413_s17 }
  0x10   : > { %s16287_s19 = sshll.u32 %s16172_s18, 4  ;;  %s17209_s2 = sld [smem:[#allocation23_spill]]  ;;  %s441_s19 = int_to_ptr.vmem [resolvable:$true] %s16287_s19 }
  0x11   : > { %p16281_p5 = pnand %p17199_p2, %p15356_p4 }
  0x13   : > { %p16297_p7 = pneg %p16281_p5 }
  0x16   : > { %s15889_s22 = scalar_lea.hbm %s17209_s2, 80 }
  0x17   : > { %p15890_p6 = scmp.ne.s32.totalorder %s17209_s2, %s15889_s22  ;;  %p15896_p10 = scmp.lt.u32.totalorder %s15889_s22, %s17209_s2 }
  0x19   : > { %p15892_p8 = pnand %p16297_p7, %p15890_p6 }
  0x1b   : > { %p15893_p9 = pneg %p15892_p8 }
  0x1d   : > { %p15898_p11 = pnand %p15896_p10, %p15893_p9 }
  0x1f   : > { %15901 = shalt.err (!%p15898_p11)
}
  0x20   : > { %s15902_s18 = scalar_lea.vmem %s16269_s27, 80  ;;  %s15909_s20 = scalar_lea.vmem %s16269_s27, 96 }
  0x21   : > { %p15903_p12 = scmp.ne.s32.totalorder %s16269_s27, %s15902_s18  ;;  %p15910_p1 = scmp.lt.s32.totalorder %s16269_s27, %s16269_s27 }
  0x22   : > { %p15911_p4 = scmp.lt.s32.totalorder %s15909_s20, %s15902_s18 }
  0x23   : > { %p15905_p13 = pnand %p15903_p12, %p16297_p7 }
  0x24   : > { %p15912_p6 = por %p15911_p4, %p15910_p1 }
  0x25   : > { %p15906_p0 = pneg %p15905_p13 }
  0x27   : > { %p15913_p8 = pnand %p15912_p6, %p15906_p0 }
  0x29   : > { %15916 = shalt.err (!%p15913_p8)
}
  0x2a   : > { %15362 = dma.hbm_to_vmem [thread:$0]  (!%p16281_p5), %s17209_s2, 80, %s16269_s27, [#allocation5]  }
  0x2b   : > { %s15917_s30 = scalar_lea.hbm %s17189_s5, 64 }
  0x2c   : > { %p15918_p9 = scmp.ne.s32.totalorder %s17189_s5, %s15917_s30  ;;  %p15924_p12 = scmp.lt.u32.totalorder %s15917_s30, %s17189_s5 }
  0x2e   : > { %p15920_p10 = pnand %p15918_p9, %p16297_p7 }
  0x30   : > { %p15921_p11 = pneg %p15920_p10 }
  0x32   : > { %p15926_p13 = pnand %p15924_p12, %p15921_p11 }
  0x34   : > { %15929 = shalt.err (!%p15926_p13)
}
  0x35   : > { %s15930_s27 = scalar_lea.vmem %s16277_s14, 64  ;;  %p15938_p6 = scmp.lt.s32.totalorder %s16277_s14, %s16277_s14 }
  0x36   : > { %p15931_p0 = scmp.ne.s32.totalorder %s16277_s14, %s15930_s27  ;;  %p15939_p8 = scmp.lt.s32.totalorder %s15930_s27, %s15930_s27 }
  0x38   : > { %p15933_p1 = pnand %p15931_p0, %p16297_p7  ;;  %p15940_p9 = por %p15939_p8, %p15938_p6 }
  0x3a   : > { %p15934_p4 = pneg %p15933_p1 }
  0x3c   : > { %p15941_p10 = pnand %p15940_p9, %p15934_p4 }
  0x3e   : > { %15944 = shalt.err (!%p15941_p10)
}
  0x3f   : > { %15368 = dma.hbm_to_vmem [thread:$0]  (!%p16281_p5), %s17189_s5, 64, %s16277_s14, [#allocation8]  }
  0x40   : > { %s15945_s24 = scalar_lea.hbm %s17191_s7, 32768 }
  0x41   : > { %p15946_p11 = scmp.ne.s32.totalorder %s17191_s7, %s15945_s24  ;;  %p15952_p0 = scmp.lt.u32.totalorder %s15945_s24, %s17191_s7 }
  0x43   : > { %p15948_p12 = pnand %p15946_p11, %p16297_p7 }
  0x45   : > { %p15949_p13 = pneg %p15948_p12 }
  0x47   : > { %p15954_p1 = pnand %p15952_p0, %p15949_p13 }
  0x49   : > { %15957 = shalt.err (!%p15954_p1)
}
  0x4a   : > { %s15958_s14 = scalar_lea.vmem %s16285_s17, 32768  ;;  %p15966_p9 = scmp.lt.s32.totalorder %s16285_s17, %s16285_s17 }
  0x4b   : > { %p15959_p4 = scmp.ne.s32.totalorder %s16285_s17, %s15958_s14  ;;  %p15967_p10 = scmp.lt.s32.totalorder %s15958_s14, %s15958_s14 }
  0x4d   : > { %p15961_p6 = pnand %p15959_p4, %p16297_p7  ;;  %p15968_p11 = por %p15967_p10, %p15966_p9 }
  0x4f   : > { %p15962_p8 = pneg %p15961_p6 }
  0x51   : > { %p15969_p12 = pnand %p15968_p11, %p15962_p8 }
  0x53   : > { %15972 = shalt.err (!%p15969_p12)
}
  0x54   : > { %s17201_s27 = smov 512   ;;  %s17202_s25 = smov 32  }
  0x55   : > { %15374 = dma.hbm_to_vmem [thread:$0]  (!%p16281_p5), %s17191_s7, 32768, %s16285_s17, [#allocation11], %s17201_s27, %s17201_s27, %s17202_s25  }
  0x56   : > { %s15973_s30 = scalar_lea.hbm %s17194_s10, 8192 }
  0x57   : > { %p15974_p13 = scmp.ne.s32.totalorder %s17194_s10, %s15973_s30  ;;  %p15980_p4 = scmp.lt.u32.totalorder %s15973_s30, %s17194_s10 }
  0x59   : > { %p15976_p0 = pnand %p15974_p13, %p16297_p7 }
  0x5b   : > { %p15977_p1 = pneg %p15976_p0 }
  0x5d   : > { %p15982_p6 = pnand %p15980_p4, %p15977_p1 }
  0x5f   : > { %15985 = shalt.err (!%p15982_p6)
}
  0x60   : > { %s15986_s21 = scalar_lea.vmem %s441_s19, 8192  ;;  %p15994_p11 = scmp.lt.s32.totalorder %s441_s19, %s441_s19 }
  0x61   : > { %p15987_p8 = scmp.ne.s32.totalorder %s441_s19, %s15986_s21  ;;  %p15995_p12 = scmp.lt.s32.totalorder %s15986_s21, %s15986_s21 }
  0x63   : > { %p15989_p9 = pnand %p15987_p8, %p16297_p7  ;;  %p15996_p2 = por %p15995_p12, %p15994_p11 }
  0x65   : > { %p15990_p10 = pneg %p15989_p9 }
  0x67   : > { %p15997_p3 = pnand %p15996_p2, %p15990_p10 }
  0x69   : > { %16000 = shalt.err (!%p15997_p3)
}
  0x6a   : > { %s16175_s17 = smov 128   ;;  %s16176_s22 = smov 8  }
  0x6b   : > { %15380 = dma.hbm_to_vmem [thread:$0]  (!%p16281_p5), %s17194_s10, 8192, %s441_s19, [#allocation14], %s16175_s17, %s16175_s17, %s16176_s22  }
  0x6c   : > { %s16177_s30 = smov [#allocation2]   ;;  %s17211_s1 = sld [smem:[#allocation22_spill]] }
  0x6d   : > { %s349_s16 = sshll.u32 %s16177_s30, 4  ;;  %s350_s16 = int_to_ptr.vmem [resolvable:$true] %s349_s16 }
  0x72   : > { %s16001_s14 = scalar_lea.hbm %s17211_s1, 30720 }
  0x73   : > { %p16002_p2 = scmp.ne.s32.totalorder %s17211_s1, %s16001_s14  ;;  %p16008_p0 = scmp.lt.u32.totalorder %s16001_s14, %s17211_s1 }
  0x75   : > { %p16004_p3 = pnand %p16002_p2, %p16297_p7 }
  0x77   : > { %p16005_p13 = pneg %p16004_p3 }
  0x79   : > { %p16010_p1 = pnand %p16008_p0, %p16005_p13 }
  0x7b   : > { %16013 = shalt.err (!%p16010_p1)
}
  0x7c   : > { %s16014_s19 = scalar_lea.vmem %s350_s16, 30720  ;;  %p16022_p9 = scmp.lt.s32.totalorder %s350_s16, %s350_s16 }
  0x7d   : > { %p16015_p4 = scmp.ne.s32.totalorder %s350_s16, %s16014_s19  ;;  %p16023_p10 = scmp.lt.s32.totalorder %s16014_s19, %s16014_s19 }
  0x7f   : > { %p16017_p6 = pnand %p16015_p4, %p16297_p7  ;;  %p16024_p11 = por %p16023_p10, %p16022_p9 }
  0x81   : > { %p16018_p8 = pneg %p16017_p6 }
  0x83   : > { %p16025_p12 = pnand %p16024_p11, %p16018_p8 }
  0x85   : > { %16028 = shalt.err (!%p16025_p12)
}
  0x86   : > { %s16178_s27 = smov 640   ;;  %s16179_s17 = smov 40  }
  0x87   : > { %15359 = dma.hbm_to_vmem [thread:$0]  (!%p16281_p5), %s17211_s1, 30720, %s350_s16, [#allocation3], %s16178_s27, %s16178_s27, %s16179_s17  }
  0x88   : > { %s16180_s22 = smov [#allocation6]   ;;  %s16181_s24 = smov [#allocation9]  }
  0x89   : > { %s376_s23 = sshll.u32 %s16180_s22, 4  ;;  %s400_s30 = sshll.u32 %s16181_s24, 4  ;;  %s377_s23 = int_to_ptr.vmem [resolvable:$true] %s376_s23  ;;  %s16405_s30 = int_to_ptr.vmem [resolvable:$true] %s400_s30 }
  0x8a   : > { %s16029_s14 = scalar_lea.hbm %s17188_s4, 122880 }
  0x8b   : > { %p16030_p2 = scmp.ne.s32.totalorder %s17188_s4, %s16029_s14  ;;  %p16036_p0 = scmp.lt.u32.totalorder %s16029_s14, %s17188_s4 }
  0x8d   : > { %p16032_p3 = pnand %p16030_p2, %p16297_p7 }
  0x8f   : > { %p16033_p13 = pneg %p16032_p3 }
  0x91   : > { %p16038_p1 = pnand %p16036_p0, %p16033_p13 }
  0x93   : > { %16041 = shalt.err (!%p16038_p1)
}
  0x94   : > { %s16042_s27 = scalar_lea.vmem %s377_s23, 122880  ;;  %p16050_p9 = scmp.lt.s32.totalorder %s377_s23, %s377_s23 }
  0x95   : > { %p16043_p4 = scmp.ne.s32.totalorder %s377_s23, %s16042_s27  ;;  %p16051_p10 = scmp.lt.s32.totalorder %s16042_s27, %s16042_s27 }
  0x97   : > { %p16045_p6 = pnand %p16043_p4, %p16297_p7  ;;  %p16052_p11 = por %p16051_p10, %p16050_p9 }
  0x99   : > { %p16046_p8 = pneg %p16045_p6 }
  0x9b   : > { %p16053_p12 = pnand %p16052_p11, %p16046_p8 }
  0x9d   : > { %16056 = shalt.err (!%p16053_p12)
}
  0x9e   : > { %s17212_s17 = smov 32   ;;  %s17213_s25 = smov 512  }
  0x9f   : > { %15365 = dma.hbm_to_vmem [thread:$0]  (!%p16281_p5), %s17188_s4, 122880, %s377_s23, [#allocation5], %s17213_s25, %s17213_s25, %s17212_s17  }
  0xa0   : > { %s16057_s14 = scalar_lea.hbm %s17190_s6, 64 }
  0xa1   : > { %p16058_p2 = scmp.ne.s32.totalorder %s17190_s6, %s16057_s14  ;;  %p16064_p0 = scmp.lt.u32.totalorder %s16057_s14, %s17190_s6 }
  0xa3   : > { %p16060_p3 = pnand %p16058_p2, %p16297_p7 }
  0xa5   : > { %p16061_p13 = pneg %p16060_p3 }
  0xa7   : > { %p16066_p1 = pnand %p16064_p0, %p16061_p13 }
  0xa9   : > { %16069 = shalt.err (!%p16066_p1)
}
  0xaa   : > { %s16070_s23 = scalar_lea.vmem %s16405_s30, 64  ;;  %p16078_p9 = scmp.lt.s32.totalorder %s16405_s30, %s16405_s30 }
  0xab   : > { %p16071_p4 = scmp.ne.s32.totalorder %s16405_s30, %s16070_s23  ;;  %p16079_p10 = scmp.lt.s32.totalorder %s16070_s23, %s16070_s23 }
  0xad   : > { %p16073_p6 = pnand %p16071_p4, %p16297_p7  ;;  %p16080_p11 = por %p16079_p10, %p16078_p9 }
  0xaf   : > { %p16074_p8 = pneg %p16073_p6 }
  0xb1   : > { %p16081_p12 = pnand %p16080_p11, %p16074_p8 }
  0xb3   : > { %16084 = shalt.err (!%p16081_p12)
}
  0xb4   : > { %s16182_s27 = smov 2   ;;  %s16183_s24 = smov [#allocation12]  }
  0xb5   : > { %15371 = dma.hbm_to_vmem [thread:$0]  (!%p16281_p5), %s17190_s6, 64, %s16405_s30, [#allocation8], %s17212_s17, %s17212_s17, %s16182_s27  }
  0xb6   : > { %s427_s18 = sshll.u32 %s16183_s24, 4  ;;  %s16184_s20 = smov [#allocation15]   ;;  %s428_s18 = int_to_ptr.vmem [resolvable:$true] %s427_s18 }
  0xb7   : > { %s454_s14 = sshll.u32 %s16184_s20, 4  ;;  %s16085_s2 = scalar_lea.hbm %s17192_s8, 64  ;;  %s455_s14 = int_to_ptr.vmem [resolvable:$true] %s454_s14 }
  0xb8   : > { %p16086_p2 = scmp.ne.s32.totalorder %s17192_s8, %s16085_s2  ;;  %p16092_p0 = scmp.lt.u32.totalorder %s16085_s2, %s17192_s8 }
  0xba   : > { %p16088_p3 = pnand %p16086_p2, %p16297_p7 }
  0xbc   : > { %p16089_p13 = pneg %p16088_p3 }
  0xbe   : > { %p16094_p1 = pnand %p16092_p0, %p16089_p13 }
  0xc0   : > { %16097 = shalt.err (!%p16094_p1)
}
  0xc1   : > { %s16098_s30 = scalar_lea.vmem %s428_s18, 64  ;;  %p16106_p9 = scmp.lt.s32.totalorder %s428_s18, %s428_s18 }
  0xc2   : > { %p16099_p4 = scmp.ne.s32.totalorder %s428_s18, %s16098_s30  ;;  %p16107_p10 = scmp.lt.s32.totalorder %s16098_s30, %s16098_s30 }
  0xc4   : > { %p16101_p6 = pnand %p16099_p4, %p16297_p7  ;;  %p16108_p11 = por %p16107_p10, %p16106_p9 }
  0xc6   : > { %p16102_p8 = pneg %p16101_p6 }
  0xc8   : > { %p16109_p12 = pnand %p16108_p11, %p16102_p8 }
  0xca   : > { %16112 = shalt.err (!%p16109_p12)
}
  0xcb   : > { %15377 = dma.hbm_to_vmem [thread:$0]  (!%p16281_p5), %s17192_s8, 64, %s428_s18, [#allocation11]  }
  0xcc   : > { %s16113_s24 = scalar_lea.hbm %s17195_s11, 16 }
  0xcd   : > { %p16114_p2 = scmp.ne.s32.totalorder %s17195_s11, %s16113_s24  ;;  %p16120_p0 = scmp.lt.u32.totalorder %s16113_s24, %s17195_s11 }
  0xcf   : > { %p16116_p3 = pnand %p16114_p2, %p16297_p7 }
  0xd1   : > { %p16117_p13 = pneg %p16116_p3 }
  0xd3   : > { %p16122_p1 = pnand %p16120_p0, %p16117_p13 }
  0xd5   : > { %16125 = shalt.err (!%p16122_p1)
}
  0xd6   : > { %s16126_s16 = scalar_lea.vmem %s455_s14, 16  ;;  %s16133_s18 = scalar_lea.vmem %s455_s14, 32 }
  0xd7   : > { %p16127_p4 = scmp.ne.s32.totalorder %s455_s14, %s16126_s16  ;;  %p16134_p9 = scmp.lt.s32.totalorder %s455_s14, %s455_s14 }
  0xd8   : > { %p16135_p10 = scmp.lt.s32.totalorder %s16133_s18, %s16126_s16 }
  0xd9   : > { %p16129_p6 = pnand %p16127_p4, %p16297_p7 }
  0xda   : > { %p16136_p11 = por %p16135_p10, %p16134_p9 }
  0xdb   : > { %p16130_p8 = pneg %p16129_p6 }
  0xdd   : > { %p16137_p12 = pnand %p16136_p11, %p16130_p8 }
  0xdf   : > { %16140 = shalt.err (!%p16137_p12)
}
  0xe0   : > { %15383 = dma.hbm_to_vmem [thread:$0]  (!%p16281_p5), %s17195_s11, 16, %s455_s14, [#allocation14]  }
  0xe1   : > { %p17214_p2 = scmp.ne.s32.totalorder %s17207_s29, 0 }
  0xe2   : > { %p17215_p3 = scmp.eq.s32.totalorder (!%p17214_p2), %s16264_s28, 0 }
  0xe3   : > { %478 = sbr.rel (%p17214_p2) target bundleno = 3500 (0xdac), region = 72 }
  0xea   : > { %16146 = dma.done.wait (%p17215_p3), [#allocation3], 30720   ;;  %p17216_p7 = pmov %p17215_p3 }
  0xeb   : > { %p17217_p13 = pmov %p17215_p3 }
  0xec   : > { %16148 = vsyncadd (%p17216_p7), [#allocation3], 4294936576 }
  0xed   : > { %16150 = dma.done.wait (%p17217_p13), [#allocation5], 122960   ;;  %p17218_p0 = pmov %p17215_p3 }
  0xef   : > { %16152 = vsyncadd (%p17218_p0), [#allocation5], 4294844336  ;;  %p17219_p1 = pmov %p17218_p0 }
  0xf0   : > { %p17220_p5 = pmov %p17218_p0 }
  0xf1   : > { %16154 = dma.done.wait (%p17219_p1), [#allocation8], 128  }
  0xf2   : > { %16156 = vsyncadd (%p17220_p5), [#allocation8], 4294967168  ;;  %p17221_p4 = pmov %p17218_p0 }
  0xf3   : > { %p17222_p6 = pmov %p17218_p0 }
  0xf4   : > { %16158 = dma.done.wait (%p17221_p4), [#allocation11], 32832  }
  0xf5   : > { %16160 = vsyncadd (%p17222_p6), [#allocation11], 4294934464  ;;  %p17223_p8 = pmov %p17218_p0 }
  0xf6   : > { %p17224_p9 = pmov %p17218_p0 }
  0xf7   : > { %16162 = dma.done.wait (%p17223_p8), [#allocation14], 8208  }
  0xf8   : > { %16164 = vsyncadd (%p17224_p9), [#allocation14], 4294959088  ;;  %v16185_v0 = vmov 0   ;;  %v15429_v1 = vld [vmem:[#allocation2 + $0x284] ss:$40 sps:$4 sm:$0xff]   ;;  %p554_p10 = scmp.lt.s32.totalorder %s16264_s28, 1 }
  0xf9   : > { %1181 = vmatprep.mubr.bf16.mxu0 %v16185_v0  ;;  %1232 = vmatprep.mubr.bf16.mxu1 %v16185_v0  ;;  %v15431_v2 = vld [vmem:[#allocation2 + $0x28c] ss:$40 sps:$4 sm:$0xff]   ;;  %v15433_v3 = vld [vmem:[#allocation2 + $0x280] ss:$40 sps:$4 sm:$0xff]   ;;  %v15437_v6 = vld [vmem:[#allocation2 + $0x2dc] ss:$40 sps:$4 sm:$0xff]  }
  0xfa   : > { %1149 = vmatprep.subr.bf16.mxu0 %v15429_v1  ;;  %v15434_v4 = vld [vmem:[#allocation2 + $0x288] ss:$40 sps:$4 sm:$0xff]   ;;  %1200 = vmatprep.subr.bf16.mxu1 %v15431_v2  ;;  %v15435_v5 = vld [vmem:[#allocation2 + $0x2d4] ss:$40 sps:$4 sm:$0xff]   ;;  %v15440_v8 = vld [vmem:[#allocation2 + $0x2d8] ss:$40 sps:$4 sm:$0xff]  }
  0xfb   : > { %1150 = vmatpush1.bf16.msra.mxu0 %v15433_v3  ;;  %1201 = vmatpush1.bf16.msra.mxu1 %v15434_v4  ;;  %v15439_v7 = vld [vmem:[#allocation2 + $0x2d0] ss:$40 sps:$4 sm:$0xff]   ;;  %v15441_v9 = vld [vmem:[#allocation2 + $0x324] ss:$40 sps:$4 sm:$0xff]   ;;  %v15445_v11 = vld [vmem:[#allocation2 + $0x320] ss:$40 sps:$4 sm:$0xff]  }
  0xfc   : > { %1151 = vmatprep.subr.bf16.mxu0 %v15435_v5  ;;  %1202 = vmatprep.subr.bf16.mxu1 %v15437_v6  ;;  %v15443_v10 = vld [vmem:[#allocation2 + $0x32c] ss:$40 sps:$4 sm:$0xff]   ;;  %v15446_v12 = vld [vmem:[#allocation2 + $0x328] ss:$40 sps:$4 sm:$0xff]   ;;  %v15449_v14 = vld [vmem:[#allocation2 + $0x37c] ss:$40 sps:$4 sm:$0xff]  }
  0xfd   : > { %v15447_v13 = vld [vmem:[#allocation2 + $0x374] ss:$40 sps:$4 sm:$0xff]   ;;  %v15451_v15 = vld [vmem:[#allocation2 + $0x370] ss:$40 sps:$4 sm:$0xff]   ;;  %v15453_v17 = vld [vmem:[#allocation2 + $0x3c4] ss:$40 sps:$4 sm:$0xff]  }
  0xfe   : > { %v15452_v16 = vld [vmem:[#allocation2 + $0x378] ss:$40 sps:$4 sm:$0xff]   ;;  %v15455_v18 = vld [vmem:[#allocation2 + $0x3cc] ss:$40 sps:$4 sm:$0xff]   ;;  %s17227_s28 = smov (!%p554_p10, %s16264_s28), 1  ;;  %vm2142_vm1 = vcmask 1046528  }
  0xff   : > { %1152 = vmatpush1.bf16.msra.mxu0 %v15439_v7  ;;  %1203 = vmatpush1.bf16.msra.mxu1 %v15440_v8  ;;  %v15457_v19 = vld [vmem:[#allocation2 + $0x3c0] ss:$40 sps:$4 sm:$0xff]   ;;  %v15459_v21 = vld [vmem:[#allocation2 + $0x414] ss:$40 sps:$4 sm:$0xff]   ;;  %s15319_s29 = smul.u32 24, %s17227_s28  ;;  %vm2956_vm2 = vcmask 1041408  }
 0x100   : > { %1153 = vmatprep.subr.bf16.mxu0 %v15441_v9  ;;  %1204 = vmatprep.subr.bf16.mxu1 %v15443_v10  ;;  %v15458_v20 = vld [vmem:[#allocation2 + $0x3c8] ss:$40 sps:$4 sm:$0xff]   ;;  %v15461_v22 = vld [vmem:[#allocation2 + $0x41c] ss:$40 sps:$4 sm:$0xff]   ;;  %v15464_v24 = vld [vmem:[#allocation2 + $0x418] ss:$40 sps:$4 sm:$0xff]  }
 0x101   : > { %v15463_v23 = vld [vmem:[#allocation2 + $0x410] ss:$40 sps:$4 sm:$0xff]   ;;  %v15465_v25 = vld [vmem:[#allocation2 + $0x464] ss:$40 sps:$4 sm:$0xff]   ;;  %s558_s14 = scalar_lea.vmem %s17184_s0, %s15319_s29  ;;  %v15469_v27 = vld [vmem:[#allocation2 + $0x460] ss:$40 sps:$4 sm:$0xff]  }
 0x102   : > { %v15467_v26 = vld [vmem:[#allocation2 + $0x46c] ss:$40 sps:$4 sm:$0xff]   ;;  %v15470_v28 = vld [vmem:[#allocation2 + $0x468] ss:$40 sps:$4 sm:$0xff]   ;;  %v565_v30 = vld [vmem:[%s558_s14] sm:$0xff]  ;;  %vm2952_vm3 = vcmask 162816  }
 0x103   : > { %1154 = vmatpush1.bf16.msra.mxu0 %v15445_v11  ;;  %1205 = vmatpush1.bf16.msra.mxu1 %v15446_v12  ;;  %v15471_v29 = vld [vmem:[#allocation2 + $0x4b4] ss:$40 sps:$4 sm:$0xff]   ;;  %v566_v31 = vld [vmem:[%s558_s14 + $0x8] sm:$0xff]  ;;  %v15475_v36 = vld [vmem:[#allocation2 + $0x4b0] ss:$40 sps:$4 sm:$0xff]   ;;  %vm16187_vm4 = vmmov 0  }
 0x104   : > { %1155 = vmatprep.subr.bf16.mxu0 %v15447_v13  ;;  %1206 = vmatprep.subr.bf16.mxu1 %v15449_v14  ;;  %v567_v32 = vld [vmem:[%s558_s14 + $0x10] sm:$0x3f]  ;;  %v15473_v33 = vld [vmem:[#allocation2 + $0x4bc] ss:$40 sps:$4 sm:$0xff]   ;;  %v16521_v34 = vpack.c.bf16 %v566_v31, %v565_v30  ;;  %v15476_v40 = vld [vmem:[#allocation2 + $0x4b8] ss:$40 sps:$4 sm:$0xff]  }
 0x105   : > { %v16523_v35 = vpack.c.bf16 %v567_v32, %v567_v32  ;;  %v15479_v41 = vld [vmem:[#allocation2 + $0x294] ss:$40 sps:$4 sm:$0xff]   ;;  %vm731_vm0 = vsmask.f32 7424  ;;  %v15477_v45 = vld [vmem:[#allocation2 + $0x290] ss:$40 sps:$4 sm:$0xff]  }
 0x106   : > { %v733_v37 = vshrl.u32 %v16521_v34, 16  ;;  %v735_v38 = vshll.u32 %v16521_v34, 16  ;;  %v15482_v42 = vld [vmem:[#allocation2 + $0x29c] ss:$40 sps:$4 sm:$0xff]   ;;  %v15480_v46 = vld [vmem:[#allocation2 + $0x298] ss:$40 sps:$4 sm:$0xff]  }
 0x107   : > { %1156 = vmatpush1.bf16.msra.mxu0 %v15451_v15  ;;  %1207 = vmatpush1.bf16.msra.mxu1 %v15452_v16  ;;  %v740_v39 = vshll.u32 %v16523_v35, 16  ;;  %v15485_v48 = vld [vmem:[#allocation2 + $0x2e4] ss:$40 sps:$4 sm:$0xff]   ;;  %v15483_v51 = vld [vmem:[#allocation2 + $0x2e0] ss:$40 sps:$4 sm:$0xff]   ;;  %v744_v53 = vshrl.u32 %v16523_v35, 16 }
 0x108   : > { %1157 = vmatprep.subr.bf16.mxu0 %v15453_v17  ;;  %1208 = vmatprep.subr.bf16.mxu1 %v15455_v18  ;;  %v737_v43 = vrot.slane %v735_v38, 1  ;;  %v15488_v50 = vld [vmem:[#allocation2 + $0x2ec] ss:$40 sps:$4 sm:$0xff]   ;;  %v15486_v52 = vld [vmem:[#allocation2 + $0x2e8] ss:$40 sps:$4 sm:$0xff]   ;;  %vm10609_vm5 = vcmask 1043456  }
 0x109   : > { %v742_v44 = vrot.slane %v740_v39, 1  ;;  %v15491_v54 = vld [vmem:[#allocation2 + $0x334] ss:$40 sps:$4 sm:$0xff]   ;;  %v15489_v56 = vld [vmem:[#allocation2 + $0x330] ss:$40 sps:$4 sm:$0xff]   ;;  %vm10605_vm6 = vcmask 64512  }
 0x10a   : > { %v738_v47 = vor.u32 %v737_v43, %v733_v37  ;;  %v15494_v55 = vld [vmem:[#allocation2 + $0x33c] ss:$40 sps:$4 sm:$0xff]   ;;  %v15492_v57 = vld [vmem:[#allocation2 + $0x338] ss:$40 sps:$4 sm:$0xff]   ;;  %v15500_v60 = vld [vmem:[#allocation2 + $0x38c] ss:$40 sps:$4 sm:$0xff]  }
 0x10b   : > { %1158 = vmatpush1.bf16.msra.mxu0 %v15457_v19  ;;  %1209 = vmatpush1.bf16.msra.mxu1 %v15458_v20  ;;  %v16535_v58 = vor.u32 %v744_v53, %v742_v44  ;;  %v15497_v59 = vld [vmem:[#allocation2 + $0x384] ss:$40 sps:$4 sm:$0xff]   ;;  %v15495_v61 = vld [vmem:[#allocation2 + $0x380] ss:$40 sps:$4 sm:$0xff]   ;;  %v15503_v63 = vld [vmem:[#allocation2 + $0x3d4] ss:$40 sps:$4 sm:$0xff]  }
 0x10c   : > { %1159 = vmatprep.subr.bf16.mxu0 %v15459_v21  ;;  %1210 = vmatprep.subr.bf16.mxu1 %v15461_v22  ;;  %v16528_v49 = vsel %vm731_vm0, %v738_v47, %v742_v44  ;;  %v15498_v62 = vld [vmem:[#allocation2 + $0x388] ss:$40 sps:$4 sm:$0xff]   ;;  %v15506_v1 = vld [vmem:[#allocation2 + $0x3dc] ss:$40 sps:$4 sm:$0xff]   ;;  %v15504_v3 = vld [vmem:[#allocation2 + $0x3d8] ss:$40 sps:$4 sm:$0xff]  }
 0x10d   : > { %v15501_v2 = vld [vmem:[#allocation2 + $0x3d0] ss:$40 sps:$4 sm:$0xff]   ;;  %v15509_v4 = vld [vmem:[#allocation2 + $0x424] ss:$40 sps:$4 sm:$0xff]   ;;  %v15507_v6 = vld [vmem:[#allocation2 + $0x420] ss:$40 sps:$4 sm:$0xff]  }
 0x10e   : > { %v15512_v5 = vld [vmem:[#allocation2 + $0x42c] ss:$40 sps:$4 sm:$0xff]   ;;  %v15510_v7 = vld [vmem:[#allocation2 + $0x428] ss:$40 sps:$4 sm:$0xff]   ;;  %v15518_v9 = vld [vmem:[#allocation2 + $0x47c] ss:$40 sps:$4 sm:$0xff]  }
 0x10f   : > { %1160 = vmatpush1.bf16.msra.mxu0 %v15463_v23  ;;  %1211 = vmatpush1.bf16.msra.mxu1 %v15464_v24  ;;  %v15515_v8 = vld [vmem:[#allocation2 + $0x474] ss:$40 sps:$4 sm:$0xff]   ;;  %v15513_v10 = vld [vmem:[#allocation2 + $0x470] ss:$40 sps:$4 sm:$0xff]   ;;  %v15521_v12 = vld [vmem:[#allocation2 + $0x4c4] ss:$40 sps:$4 sm:$0xff]  }
 0x110   : > { %1161 = vmatprep.subr.bf16.mxu0 %v15465_v25  ;;  %1212 = vmatprep.subr.bf16.mxu1 %v15467_v26  ;;  %v15516_v11 = vld [vmem:[#allocation2 + $0x478] ss:$40 sps:$4 sm:$0xff]   ;;  %v15524_v13 = vld [vmem:[#allocation2 + $0x4cc] ss:$40 sps:$4 sm:$0xff]   ;;  %v15522_v15 = vld [vmem:[#allocation2 + $0x4c8] ss:$40 sps:$4 sm:$0xff]  }
 0x111   : > { %v15519_v14 = vld [vmem:[#allocation2 + $0x4c0] ss:$40 sps:$4 sm:$0xff]   ;;  %v15527_v16 = vld [vmem:[#allocation2 + $0x2a4] ss:$40 sps:$4 sm:$0xff]   ;;  %v15533_v20 = vld [vmem:[#allocation2 + $0x2f4] ss:$40 sps:$4 sm:$0xff]  }
 0x112   : > { %v15530_v17 = vld [vmem:[#allocation2 + $0xc] ss:$40 sps:$4 sm:$0xff]   ;;  %v15525_v18 = vld [vmem:[#allocation2 + $0x2a0] ss:$40 sps:$4 sm:$0xff]   ;;  %v15536_v21 = vld [vmem:[#allocation2 + $0x5c] ss:$40 sps:$4 sm:$0xff]  }
 0x113   : > { %1162 = vmatpush1.bf16.msra.mxu0 %v15469_v27  ;;  %1213 = vmatpush1.bf16.msra.mxu1 %v15470_v28  ;;  %v15528_v19 = vld [vmem:[#allocation2 + $0x8] ss:$40 sps:$4 sm:$0xff]   ;;  %v15534_v23 = vld [vmem:[#allocation2 + $0x58] ss:$40 sps:$4 sm:$0xff]   ;;  %v15539_v24 = vld [vmem:[#allocation2 + $0x344] ss:$40 sps:$4 sm:$0xff]  }
 0x114   : > { %1163 = vmatprep.subr.bf16.mxu0 %v15471_v29  ;;  %1214 = vmatprep.subr.bf16.mxu1 %v15473_v33  ;;  %v15531_v22 = vld [vmem:[#allocation2 + $0x2f0] ss:$40 sps:$4 sm:$0xff]   ;;  %v15542_v25 = vld [vmem:[#allocation2 + $0xac] ss:$40 sps:$4 sm:$0xff]   ;;  %v15537_v26 = vld [vmem:[#allocation2 + $0x340] ss:$40 sps:$4 sm:$0xff]  }
 0x115   : > { %v15540_v27 = vld [vmem:[#allocation2 + $0xa8] ss:$40 sps:$4 sm:$0xff]   ;;  %v15545_v28 = vld [vmem:[#allocation2 + $0x394] ss:$40 sps:$4 sm:$0xff]   ;;  %v15546_v31 = vld [vmem:[#allocation2 + $0xf8] ss:$40 sps:$4 sm:$0xff]  }
 0x116   : > { %v15548_v29 = vld [vmem:[#allocation2 + $0xfc] ss:$40 sps:$4 sm:$0xff]   ;;  %v15543_v30 = vld [vmem:[#allocation2 + $0x390] ss:$40 sps:$4 sm:$0xff]   ;;  %v15554_v33 = vld [vmem:[#allocation2 + $0x14c] ss:$40 sps:$4 sm:$0xff]  }
 0x117   : > { %1164 = vmatpush1.bf16.msra.mxu0 %v15475_v36  ;;  %1215 = vmatpush1.bf16.msra.mxu1 %v15476_v40  ;;  %v15551_v32 = vld [vmem:[#allocation2 + $0x3e4] ss:$40 sps:$4 sm:$0xff]   ;;  %v15549_v36 = vld [vmem:[#allocation2 + $0x3e0] ss:$40 sps:$4 sm:$0xff]   ;;  %v15557_v38 = vld [vmem:[#allocation2 + $0x434] ss:$40 sps:$4 sm:$0xff]  }
 0x118   : > { %1251 = vmatprep.subr.bf16.mxu0 %v15479_v41  ;;  %1302 = vmatprep.subr.bf16.mxu1 %v15482_v42  ;;  %v15552_v37 = vld [vmem:[#allocation2 + $0x148] ss:$40 sps:$4 sm:$0xff]   ;;  %v15560_v39 = vld [vmem:[#allocation2 + $0x19c] ss:$40 sps:$4 sm:$0xff]   ;;  %v15558_v41 = vld [vmem:[#allocation2 + $0x198] ss:$40 sps:$4 sm:$0xff]  }
 0x119   : > { %v15555_v40 = vld [vmem:[#allocation2 + $0x430] ss:$40 sps:$4 sm:$0xff]   ;;  %v15563_v42 = vld [vmem:[#allocation2 + $0x484] ss:$40 sps:$4 sm:$0xff]   ;;  %v15561_v44 = vld [vmem:[#allocation2 + $0x480] ss:$40 sps:$4 sm:$0xff]  }
 0x11a   : > { %1182 = vmatmul.mubr.bf16.vlgmr.msra.gmra.mrb[0].mxu0 %v16528_v49  ;;  %1233 = vmatmul.mubr.bf16.vlgmr.msra.gmra.mrb[0].mxu1 %v16528_v49  ;;  %v15566_v43 = vld [vmem:[#allocation2 + $0x1ec] ss:$40 sps:$4 sm:$0xff]   ;;  %v15572_v47 = vld [vmem:[#allocation2 + $0x23c] ss:$40 sps:$4 sm:$0xff]   ;;  %v15573_v53 = vld [vmem:[#allocation2] ss:$40 sps:$4 sm:$0xff]  }
 0x11b   : > { %1252 = vmatpush1.bf16.msra.mxu0 %v15477_v45  ;;  %1303 = vmatpush1.bf16.msra.mxu1 %v15480_v46  ;;  %v15564_v45 = vld [vmem:[#allocation2 + $0x1e8] ss:$40 sps:$4 sm:$0xff]   ;;  %v15569_v46 = vld [vmem:[#allocation2 + $0x4d4] ss:$40 sps:$4 sm:$0xff]   ;;  %vm12712_vm7 = vcmask 31744   ;;  %s15228_s23 = sshll.u32 %s17227_s28, 4 }
 0x11c   : > { %1253 = vmatprep.subr.bf16.mxu0 %v15485_v48  ;;  %1304 = vmatprep.subr.bf16.mxu1 %v15488_v50  ;;  %v15567_v48 = vld [vmem:[#allocation2 + $0x4d0] ss:$40 sps:$4 sm:$0xff]   ;;  %s563_s15 = scalar_lea.vmem %s17197_s13, %s15228_s23 }
 0x11d   : > { %1191 = vmatprep.mubr.bf16.mxu0 %v16185_v0  ;;  %1242 = vmatprep.mubr.bf16.mxu1 %v16185_v0  ;;  %v15570_v50 = vld [vmem:[#allocation2 + $0x238] ss:$40 sps:$4 sm:$0xff]  }
 0x11f   : > { %1254 = vmatpush1.bf16.msra.mxu0 %v15483_v51  ;;  %1305 = vmatpush1.bf16.msra.mxu1 %v15486_v52  ;;  %v15575_v51 = vld [vmem:[#allocation2 + $0x4] ss:$40 sps:$4 sm:$0xff]  }
 0x120   : > { %1255 = vmatprep.subr.bf16.mxu0 %v15491_v54  ;;  %1306 = vmatprep.subr.bf16.mxu1 %v15494_v55  ;;  %v15578_v52 = vld [vmem:[#allocation2 + $0x1c] ss:$40 sps:$4 sm:$0xff]   ;;  %v15576_v54 = vld [vmem:[#allocation2 + $0x18] ss:$40 sps:$4 sm:$0xff]  }
 0x121   : > { %v15581_v55 = vld [vmem:[#allocation2 + $0x54] ss:$40 sps:$4 sm:$0xff]  }
 0x122   : > { %1192 = vmatmul.mubr.bf16.gmra.mrb[4].mxu0 %v16535_v58  ;;  %1243 = vmatmul.mubr.bf16.gmra.mrb[4].mxu1 %v16535_v58 }
 0x123   : > { %1256 = vmatpush1.bf16.msra.mxu0 %v15489_v56  ;;  %1307 = vmatpush1.bf16.msra.mxu1 %v15492_v57  ;;  %v15584_v56 = vld [vmem:[#allocation2 + $0x6c] ss:$40 sps:$4 sm:$0xff]   ;;  %v15579_v57 = vld [vmem:[#allocation2 + $0x50] ss:$40 sps:$4 sm:$0xff]  }
 0x124   : > { %1257 = vmatprep.subr.bf16.mxu0 %v15497_v59  ;;  %1308 = vmatprep.subr.bf16.mxu1 %v15500_v60  ;;  %v15582_v59 = vld [vmem:[#allocation2 + $0x68] ss:$40 sps:$4 sm:$0xff]   ;;  %v15587_v60 = vld [vmem:[#allocation2 + $0xa4] ss:$40 sps:$4 sm:$0xff]  }
 0x125   : > { %1283 = vmatprep.mubr.bf16.mxu0 %v16185_v0  ;;  %1334 = vmatprep.mubr.bf16.mxu1 %v16185_v0 }
 0x127   : > { %1258 = vmatpush1.bf16.msra.mxu0 %v15495_v61  ;;  %1309 = vmatpush1.bf16.msra.mxu1 %v15498_v62  ;;  %v15590_v61 = vld [vmem:[#allocation2 + $0xbc] ss:$40 sps:$4 sm:$0xff]   ;;  %v15585_v62 = vld [vmem:[#allocation2 + $0xa0] ss:$40 sps:$4 sm:$0xff]  }
 0x128   : > { %1259 = vmatprep.subr.bf16.mxu0 %v15503_v63  ;;  %1310 = vmatprep.subr.bf16.mxu1 %v15506_v1  ;;  %v15588_v63 = vld [vmem:[#allocation2 + $0xb8] ss:$40 sps:$4 sm:$0xff]   ;;  %v15593_v1 = vld [vmem:[#allocation2 + $0xf4] ss:$40 sps:$4 sm:$0xff]  }
 0x12b   : > { %1260 = vmatpush1.bf16.msra.mxu0 %v15501_v2  ;;  %1311 = vmatpush1.bf16.msra.mxu1 %v15504_v3  ;;  %v15591_v2 = vld [vmem:[#allocation2 + $0xf0] ss:$40 sps:$4 sm:$0xff]  }
 0x12c   : > { %1261 = vmatprep.subr.bf16.mxu0 %v15509_v4  ;;  %1312 = vmatprep.subr.bf16.mxu1 %v15512_v5  ;;  %v15594_v3 = vld [vmem:[#allocation2 + $0x108] ss:$40 sps:$4 sm:$0xff]   ;;  %v15599_v4 = vld [vmem:[#allocation2 + $0x144] ss:$40 sps:$4 sm:$0xff]  }
 0x12d   : > { %v15602_v5 = vld [vmem:[#allocation2 + $0x15c] ss:$40 sps:$4 sm:$0xff]  }
 0x12f   : > { %1262 = vmatpush1.bf16.msra.mxu0 %v15507_v6  ;;  %1313 = vmatpush1.bf16.msra.mxu1 %v15510_v7  ;;  %v15597_v6 = vld [vmem:[#allocation2 + $0x140] ss:$40 sps:$4 sm:$0xff]  }
 0x130   : > { %1263 = vmatprep.subr.bf16.mxu0 %v15515_v8  ;;  %1314 = vmatprep.subr.bf16.mxu1 %v15518_v9  ;;  %v15600_v7 = vld [vmem:[#allocation2 + $0x158] ss:$40 sps:$4 sm:$0xff]   ;;  %v15605_v8 = vld [vmem:[#allocation2 + $0x194] ss:$40 sps:$4 sm:$0xff]  }
 0x131   : > { %v15603_v9 = vld [vmem:[#allocation2 + $0x190] ss:$40 sps:$4 sm:$0xff]  }
 0x133   : > { %1264 = vmatpush1.bf16.msra.mxu0 %v15513_v10  ;;  %1315 = vmatpush1.bf16.msra.mxu1 %v15516_v11  ;;  %v15606_v10 = vld [vmem:[#allocation2 + $0x1a8] ss:$40 sps:$4 sm:$0xff]   ;;  %v15611_v11 = vld [vmem:[#allocation2 + $0x1e4] ss:$40 sps:$4 sm:$0xff]  }
 0x134   : > { %1265 = vmatprep.subr.bf16.mxu0 %v15521_v12  ;;  %1316 = vmatprep.subr.bf16.mxu1 %v15524_v13  ;;  %v15614_v12 = vld [vmem:[#allocation2 + $0x1fc] ss:$40 sps:$4 sm:$0xff]   ;;  %v15609_v13 = vld [vmem:[#allocation2 + $0x1e0] ss:$40 sps:$4 sm:$0xff]  }
 0x137   : > { %1266 = vmatpush1.bf16.msra.mxu0 %v15519_v14  ;;  %1317 = vmatpush1.bf16.msra.mxu1 %v15522_v15  ;;  %v15612_v14 = vld [vmem:[#allocation2 + $0x1f8] ss:$40 sps:$4 sm:$0xff]   ;;  %v15617_v15 = vld [vmem:[#allocation2 + $0x234] ss:$40 sps:$4 sm:$0xff]  }
 0x138   : > { %1353 = vmatprep.subr.bf16.mxu0 %v15527_v16  ;;  %1855 = vmatprep.subr.bf16.mxu1 %v15530_v17  ;;  %v15620_v16 = vld [vmem:[#allocation2 + $0x24c] ss:$40 sps:$4 sm:$0xff]   ;;  %v15615_v17 = vld [vmem:[#allocation2 + $0x230] ss:$40 sps:$4 sm:$0xff]  }
 0x13a   : > { %1284 = vmatmul.mubr.bf16.vlgmr.msra.gmra.mrb[8].mxu0 %v16528_v49  ;;  %1335 = vmatmul.mubr.bf16.vlgmr.msra.gmra.mrb[8].mxu1 %v16528_v49 }
 0x13b   : > { %1354 = vmatpush1.bf16.msra.mxu0 %v15525_v18  ;;  %1856 = vmatpush1.bf16.msra.mxu1 %v15528_v19  ;;  %v15618_v18 = vld [vmem:[#allocation2 + $0x248] ss:$40 sps:$4 sm:$0xff]   ;;  %v15623_v19 = vld [vmem:[#allocation2 + $0x14] ss:$40 sps:$4 sm:$0xff]  }
 0x13c   : > { %1355 = vmatprep.subr.bf16.mxu0 %v15533_v20  ;;  %1857 = vmatprep.subr.bf16.mxu1 %v15536_v21  ;;  %v15626_v20 = vld [vmem:[#allocation2 + $0x50c] ss:$40 sps:$4 sm:$0xff]   ;;  %v15621_v21 = vld [vmem:[#allocation2 + $0x10] ss:$40 sps:$4 sm:$0xff]  }
 0x13d   : > { %1293 = vmatprep.mubr.bf16.mxu0 %v16185_v0  ;;  %1344 = vmatprep.mubr.bf16.mxu1 %v16185_v0 }
 0x13f   : > { %1356 = vmatpush1.bf16.msra.mxu0 %v15531_v22  ;;  %1858 = vmatpush1.bf16.msra.mxu1 %v15534_v23  ;;  %v15624_v22 = vld [vmem:[#allocation2 + $0x508] ss:$40 sps:$4 sm:$0xff]   ;;  %v15629_v23 = vld [vmem:[#allocation2 + $0x64] ss:$40 sps:$4 sm:$0xff]  }
 0x140   : > { %1357 = vmatprep.subr.bf16.mxu0 %v15539_v24  ;;  %1859 = vmatprep.subr.bf16.mxu1 %v15542_v25  ;;  %v15632_v24 = vld [vmem:[#allocation2 + $0x55c] ss:$40 sps:$4 sm:$0xff]   ;;  %v15627_v25 = vld [vmem:[#allocation2 + $0x60] ss:$40 sps:$4 sm:$0xff]  }
 0x142   : > { %1294 = vmatmul.mubr.bf16.gmra.mrb[12].mxu0 %v16535_v58  ;;  %1345 = vmatmul.mubr.bf16.gmra.mrb[12].mxu1 %v16535_v58 }
 0x143   : > { %1358 = vmatpush1.bf16.msra.mxu0 %v15537_v26  ;;  %1860 = vmatpush1.bf16.msra.mxu1 %v15540_v27  ;;  %v15630_v26 = vld [vmem:[#allocation2 + $0x558] ss:$40 sps:$4 sm:$0xff]   ;;  %v15635_v27 = vld [vmem:[#allocation2 + $0xb4] ss:$40 sps:$4 sm:$0xff]  }
 0x144   : > { %1359 = vmatprep.subr.bf16.mxu0 %v15545_v28  ;;  %1861 = vmatprep.subr.bf16.mxu1 %v15548_v29  ;;  %v15638_v28 = vld [vmem:[#allocation2 + $0x5ac] ss:$40 sps:$4 sm:$0xff]   ;;  %v15633_v29 = vld [vmem:[#allocation2 + $0xb0] ss:$40 sps:$4 sm:$0xff]  }
 0x145   : > { %1385 = vmatprep.mubr.bf16.mxu0 %v16185_v0  ;;  %1887 = vmatprep.mubr.bf16.mxu1 %v16185_v0 }
 0x147   : > { %1360 = vmatpush1.bf16.msra.mxu0 %v15543_v30  ;;  %1862 = vmatpush1.bf16.msra.mxu1 %v15546_v31  ;;  %v15636_v30 = vld [vmem:[#allocation2 + $0x5a8] ss:$40 sps:$4 sm:$0xff]   ;;  %v15641_v31 = vld [vmem:[#allocation2 + $0x104] ss:$40 sps:$4 sm:$0xff]  }
 0x148   : > { %1361 = vmatprep.subr.bf16.mxu0 %v15551_v32  ;;  %1863 = vmatprep.subr.bf16.mxu1 %v15554_v33  ;;  %v15644_v32 = vld [vmem:[#allocation2 + $0x5fc] ss:$40 sps:$4 sm:$0xff]   ;;  %v15639_v33 = vld [vmem:[#allocation2 + $0x100] ss:$40 sps:$4 sm:$0xff]  }
 0x14b   : > { %1362 = vmatpush1.bf16.msra.mxu0 %v15549_v36  ;;  %1864 = vmatpush1.bf16.msra.mxu1 %v15552_v37  ;;  %v15642_v36 = vld [vmem:[#allocation2 + $0x5f8] ss:$40 sps:$4 sm:$0xff]   ;;  %v15647_v37 = vld [vmem:[#allocation2 + $0x154] ss:$40 sps:$4 sm:$0xff]  }
 0x14c   : > { %1363 = vmatprep.subr.bf16.mxu0 %v15557_v38  ;;  %1865 = vmatprep.subr.bf16.mxu1 %v15560_v39  ;;  %v15650_v38 = vld [vmem:[#allocation2 + $0x64c] ss:$40 sps:$4 sm:$0xff]   ;;  %v15645_v39 = vld [vmem:[#allocation2 + $0x150] ss:$40 sps:$4 sm:$0xff]  }
 0x14f   : > { %1364 = vmatpush1.bf16.msra.mxu0 %v15555_v40  ;;  %1866 = vmatpush1.bf16.msra.mxu1 %v15558_v41  ;;  %v15648_v40 = vld [vmem:[#allocation2 + $0x648] ss:$40 sps:$4 sm:$0xff]   ;;  %v15653_v41 = vld [vmem:[#allocation2 + $0x1a4] ss:$40 sps:$4 sm:$0xff]  }
 0x150   : > { %1365 = vmatprep.subr.bf16.mxu0 %v15563_v42  ;;  %1867 = vmatprep.subr.bf16.mxu1 %v15566_v43  ;;  %v15656_v42 = vld [vmem:[#allocation2 + $0x69c] ss:$40 sps:$4 sm:$0xff]   ;;  %v15651_v43 = vld [vmem:[#allocation2 + $0x1a0] ss:$40 sps:$4 sm:$0xff]  }
 0x153   : > { %1366 = vmatpush1.bf16.msra.mxu0 %v15561_v44  ;;  %1868 = vmatpush1.bf16.msra.mxu1 %v15564_v45  ;;  %v15654_v44 = vld [vmem:[#allocation2 + $0x698] ss:$40 sps:$4 sm:$0xff]   ;;  %v15659_v45 = vld [vmem:[#allocation2 + $0x1f4] ss:$40 sps:$4 sm:$0xff]  }
 0x154   : > { %1367 = vmatprep.subr.bf16.mxu0 %v15569_v46  ;;  %1869 = vmatprep.subr.bf16.mxu1 %v15572_v47  ;;  %v15662_v46 = vld [vmem:[#allocation2 + $0x6ec] ss:$40 sps:$4 sm:$0xff]   ;;  %v15657_v47 = vld [vmem:[#allocation2 + $0x1f0] ss:$40 sps:$4 sm:$0xff]  }
 0x157   : > { %1368 = vmatpush1.bf16.msra.mxu0 %v15567_v48  ;;  %1870 = vmatpush1.bf16.msra.mxu1 %v15570_v50  ;;  %v15660_v48 = vld [vmem:[#allocation2 + $0x6e8] ss:$40 sps:$4 sm:$0xff]   ;;  %v15665_v50 = vld [vmem:[#allocation2 + $0x244] ss:$40 sps:$4 sm:$0xff]  }
 0x158   : > { %1804 = vmatprep.subr.bf16.mxu0 %v15575_v51  ;;  %1957 = vmatprep.subr.bf16.mxu1 %v15578_v52  ;;  %v15668_v51 = vld [vmem:[#allocation2 + $0x73c] ss:$40 sps:$4 sm:$0xff]   ;;  %v15663_v52 = vld [vmem:[#allocation2 + $0x240] ss:$40 sps:$4 sm:$0xff]  }
 0x15a   : > { %1386 = vmatmul.mubr.bf16.vlgmr.msra.gmra.mrb[16].mxu0 %v16528_v49  ;;  %1888 = vmatmul.mubr.bf16.vlgmr.msra.gmra.mrb[0].mxu1 %v16521_v34  ;;  %v15596_v49 = vld [vmem:[#allocation2 + $0x10c] ss:$40 sps:$4 sm:$0xff]  }
 0x15b   : > { %1805 = vmatpush1.bf16.msra.mxu0 %v15573_v53  ;;  %1958 = vmatpush1.bf16.msra.mxu1 %v15576_v54  ;;  %v15666_v53 = vld [vmem:[#allocation2 + $0x738] ss:$40 sps:$4 sm:$0xff]   ;;  %v15671_v54 = vld [vmem:[#allocation2 + $0x24] ss:$40 sps:$4 sm:$0xff]  }
 0x15c   : > { %1806 = vmatprep.subr.bf16.mxu0 %v15581_v55  ;;  %1959 = vmatprep.subr.bf16.mxu1 %v15584_v56  ;;  %v2143_v55 = vrot.slane %v16521_v34, 1  ;;  %v16567_v56 = vrot.slane %v16523_v35, 1 }
 0x15d   : > { %1395 = vmatprep.mubr.bf16.mxu0 %v16185_v0  ;;  %1897 = vmatprep.mubr.bf16.mxu1 %v16185_v0 }
 0x15f   : > { %1807 = vmatpush1.bf16.msra.mxu0 %v15579_v57  ;;  %1960 = vmatpush1.bf16.msra.mxu1 %v15582_v59  ;;  %v15674_v57 = vld [vmem:[#allocation2 + $0x51c] ss:$40 sps:$4 sm:$0xff]   ;;  %v15669_v59 = vld [vmem:[#allocation2 + $0x20] ss:$40 sps:$4 sm:$0xff]  }
 0x160   : > { %1808 = vmatprep.subr.bf16.mxu0 %v15587_v60  ;;  %1961 = vmatprep.subr.bf16.mxu1 %v15590_v61  ;;  %v15672_v60 = vld [vmem:[#allocation2 + $0x518] ss:$40 sps:$4 sm:$0xff]   ;;  %v16570_v61 = vsel %vm2142_vm1, %v2143_v55, %v16567_v56 }
 0x161   : > { %v15759_v55 = vld [vmem:[#allocation2 + $0x6f0] ss:$40 sps:$4 sm:$0xff]  }
 0x162   : > { %1396 = vmatmul.mubr.bf16.gmra.mrb[20].mxu0 %v16535_v58  ;;  %1898 = vmatmul.mubr.bf16.gmra.mrb[16].mxu1 %v16523_v35  ;;  %v15608_v58 = vld [vmem:[#allocation2 + $0x1ac] ss:$40 sps:$4 sm:$0xff]  }
 0x163   : > { %1809 = vmatpush1.bf16.msra.mxu0 %v15585_v62  ;;  %1962 = vmatpush1.bf16.msra.mxu1 %v15588_v63  ;;  %v15677_v62 = vld [vmem:[#allocation2 + $0x74] ss:$40 sps:$4 sm:$0xff]  }
 0x164   : > { %1810 = vmatprep.subr.bf16.mxu0 %v15593_v1  ;;  %1963 = vmatprep.subr.bf16.mxu1 %v15596_v49  ;;  %v15680_v63 = vld [vmem:[#allocation2 + $0x56c] ss:$40 sps:$4 sm:$0xff]   ;;  %v15675_v1 = vld [vmem:[#allocation2 + $0x70] ss:$40 sps:$4 sm:$0xff]  }
 0x165   : > { %1836 = vmatprep.mubr.bf16.mxu0 %v16185_v0  ;;  %1989 = vmatprep.mubr.bf16.mxu1 %v16185_v0  ;;  %v15678_v49 = vld [vmem:[#allocation2 + $0x568] ss:$40 sps:$4 sm:$0xff]  }
 0x167   : > { %1811 = vmatpush1.bf16.msra.mxu0 %v15591_v2  ;;  %1964 = vmatpush1.bf16.msra.mxu1 %v15594_v3  ;;  %v15683_v2 = vld [vmem:[#allocation2 + $0xc4] ss:$40 sps:$4 sm:$0xff]  }
 0x168   : > { %1812 = vmatprep.subr.bf16.mxu0 %v15599_v4  ;;  %1965 = vmatprep.subr.bf16.mxu1 %v15602_v5  ;;  %v15686_v3 = vld [vmem:[#allocation2 + $0x5bc] ss:$40 sps:$4 sm:$0xff]   ;;  %v15681_v4 = vld [vmem:[#allocation2 + $0xc0] ss:$40 sps:$4 sm:$0xff]  }
 0x169   : > { %v15684_v5 = vld [vmem:[#allocation2 + $0x5b8] ss:$40 sps:$4 sm:$0xff]  }
 0x16b   : > { %1813 = vmatpush1.bf16.msra.mxu0 %v15597_v6  ;;  %1966 = vmatpush1.bf16.msra.mxu1 %v15600_v7  ;;  %v15689_v6 = vld [vmem:[#allocation2 + $0x114] ss:$40 sps:$4 sm:$0xff]  }
 0x16c   : > { %1814 = vmatprep.subr.bf16.mxu0 %v15605_v8  ;;  %1967 = vmatprep.subr.bf16.mxu1 %v15608_v58  ;;  %v15692_v7 = vld [vmem:[#allocation2 + $0x60c] ss:$40 sps:$4 sm:$0xff]   ;;  %v15687_v8 = vld [vmem:[#allocation2 + $0x110] ss:$40 sps:$4 sm:$0xff]  }
 0x16d   : > { %v15690_v58 = vld [vmem:[#allocation2 + $0x608] ss:$40 sps:$4 sm:$0xff]  }
 0x16f   : > { %1815 = vmatpush1.bf16.msra.mxu0 %v15603_v9  ;;  %1968 = vmatpush1.bf16.msra.mxu1 %v15606_v10  ;;  %v15695_v9 = vld [vmem:[#allocation2 + $0x164] ss:$40 sps:$4 sm:$0xff]  }
 0x170   : > { %1816 = vmatprep.subr.bf16.mxu0 %v15611_v11  ;;  %1969 = vmatprep.subr.bf16.mxu1 %v15614_v12  ;;  %v15698_v10 = vld [vmem:[#allocation2 + $0x65c] ss:$40 sps:$4 sm:$0xff]   ;;  %v15693_v11 = vld [vmem:[#allocation2 + $0x160] ss:$40 sps:$4 sm:$0xff]  }
 0x171   : > { %v15696_v12 = vld [vmem:[#allocation2 + $0x658] ss:$40 sps:$4 sm:$0xff]  }
 0x173   : > { %1817 = vmatpush1.bf16.msra.mxu0 %v15609_v13  ;;  %1970 = vmatpush1.bf16.msra.mxu1 %v15612_v14  ;;  %v15701_v13 = vld [vmem:[#allocation2 + $0x1b4] ss:$40 sps:$4 sm:$0xff]  }
 0x174   : > { %1818 = vmatprep.subr.bf16.mxu0 %v15617_v15  ;;  %1971 = vmatprep.subr.bf16.mxu1 %v15620_v16  ;;  %v15704_v14 = vld [vmem:[#allocation2 + $0x6ac] ss:$40 sps:$4 sm:$0xff]   ;;  %v15699_v15 = vld [vmem:[#allocation2 + $0x1b0] ss:$40 sps:$4 sm:$0xff]  }
 0x175   : > { %v15702_v16 = vld [vmem:[#allocation2 + $0x6a8] ss:$40 sps:$4 sm:$0xff]  }
 0x177   : > { %1819 = vmatpush1.bf16.msra.mxu0 %v15615_v17  ;;  %1972 = vmatpush1.bf16.msra.mxu1 %v15618_v18  ;;  %v15707_v17 = vld [vmem:[#allocation2 + $0x204] ss:$40 sps:$4 sm:$0xff]  }
 0x178   : > { %1906 = vmatprep.subr.bf16.mxu0 %v15623_v19  ;;  %2599 = vmatprep.subr.bf16.mxu1 %v15626_v20  ;;  %v15710_v18 = vld [vmem:[#allocation2 + $0x6fc] ss:$40 sps:$4 sm:$0xff]   ;;  %v15705_v19 = vld [vmem:[#allocation2 + $0x200] ss:$40 sps:$4 sm:$0xff]  }
 0x179   : > { %v15708_v20 = vld [vmem:[#allocation2 + $0x6f8] ss:$40 sps:$4 sm:$0xff]  }
 0x17a   : > { %1837 = vmatmul.mubr.bf16.vlgmr.msra.gmra.mrb[0].mxu0 %v16521_v34  ;;  %1990 = vmatmul.mubr.bf16.vlgmr.msra.gmra.mrb[8].mxu1 %v16521_v34 }
 0x17b   : > { %1907 = vmatpush1.bf16.msra.mxu0 %v15621_v21  ;;  %2600 = vmatpush1.bf16.msra.mxu1 %v15624_v22  ;;  %v15713_v21 = vld [vmem:[#allocation2 + $0x254] ss:$40 sps:$4 sm:$0xff]  }
 0x17c   : > { %1908 = vmatprep.subr.bf16.mxu0 %v15629_v23  ;;  %2601 = vmatprep.subr.bf16.mxu1 %v15632_v24  ;;  %v15716_v22 = vld [vmem:[#allocation2 + $0x74c] ss:$40 sps:$4 sm:$0xff]   ;;  %v15711_v23 = vld [vmem:[#allocation2 + $0x250] ss:$40 sps:$4 sm:$0xff]  }
 0x17d   : > { %1846 = vmatprep.mubr.bf16.mxu0 %v16185_v0  ;;  %1999 = vmatprep.mubr.bf16.mxu1 %v16185_v0  ;;  %v15714_v24 = vld [vmem:[#allocation2 + $0x748] ss:$40 sps:$4 sm:$0xff]  }
 0x17f   : > { %1909 = vmatpush1.bf16.msra.mxu0 %v15627_v25  ;;  %2602 = vmatpush1.bf16.msra.mxu1 %v15630_v26  ;;  %v15719_v25 = vld [vmem:[#allocation2 + $0x504] ss:$40 sps:$4 sm:$0xff]   ;;  %v15717_v26 = vld [vmem:[#allocation2 + $0x500] ss:$40 sps:$4 sm:$0xff]  }
 0x180   : > { %1910 = vmatprep.subr.bf16.mxu0 %v15635_v27  ;;  %2603 = vmatprep.subr.bf16.mxu1 %v15638_v28  ;;  %v15722_v27 = vld [vmem:[#allocation2 + $0x554] ss:$40 sps:$4 sm:$0xff]   ;;  %v15720_v28 = vld [vmem:[#allocation2 + $0x550] ss:$40 sps:$4 sm:$0xff]  }
 0x182   : > { %1847 = vmatmul.mubr.bf16.gmra.mrb[24].mxu0 %v16523_v35  ;;  %2000 = vmatmul.mubr.bf16.gmra.mrb[20].mxu1 %v16523_v35 }
 0x183   : > { %1911 = vmatpush1.bf16.msra.mxu0 %v15633_v29  ;;  %2604 = vmatpush1.bf16.msra.mxu1 %v15636_v30  ;;  %v15725_v29 = vld [vmem:[#allocation2 + $0x5a4] ss:$40 sps:$4 sm:$0xff]   ;;  %v15723_v30 = vld [vmem:[#allocation2 + $0x5a0] ss:$40 sps:$4 sm:$0xff]  }
 0x184   : > { %1912 = vmatprep.subr.bf16.mxu0 %v15641_v31  ;;  %2605 = vmatprep.subr.bf16.mxu1 %v15644_v32  ;;  %v15728_v31 = vld [vmem:[#allocation2 + $0x5f4] ss:$40 sps:$4 sm:$0xff]   ;;  %v15731_v32 = vld [vmem:[#allocation2 + $0x644] ss:$40 sps:$4 sm:$0xff]  }
 0x185   : > { %1938 = vmatprep.mubr.bf16.mxu0 %v16185_v0  ;;  %2631 = vmatprep.mubr.bf16.mxu1 %v16185_v0 }
 0x187   : > { %1913 = vmatpush1.bf16.msra.mxu0 %v15639_v33  ;;  %2606 = vmatpush1.bf16.msra.mxu1 %v15642_v36  ;;  %v15729_v33 = vld [vmem:[#allocation2 + $0x640] ss:$40 sps:$4 sm:$0xff]   ;;  %v15734_v36 = vld [vmem:[#allocation2 + $0x694] ss:$40 sps:$4 sm:$0xff]  }
 0x188   : > { %1914 = vmatprep.subr.bf16.mxu0 %v15647_v37  ;;  %2607 = vmatprep.subr.bf16.mxu1 %v15650_v38  ;;  %v15732_v37 = vld [vmem:[#allocation2 + $0x690] ss:$40 sps:$4 sm:$0xff]   ;;  %v15737_v38 = vld [vmem:[#allocation2 + $0x6e4] ss:$40 sps:$4 sm:$0xff]  }
 0x18b   : > { %1915 = vmatpush1.bf16.msra.mxu0 %v15645_v39  ;;  %2608 = vmatpush1.bf16.msra.mxu1 %v15648_v40  ;;  %v15740_v39 = vld [vmem:[#allocation2 + $0x734] ss:$40 sps:$4 sm:$0xff]   ;;  %v15738_v40 = vld [vmem:[#allocation2 + $0x730] ss:$40 sps:$4 sm:$0xff]  }
 0x18c   : > { %1916 = vmatprep.subr.bf16.mxu0 %v15653_v41  ;;  %2609 = vmatprep.subr.bf16.mxu1 %v15656_v42  ;;  %v15743_v41 = vld [vmem:[#allocation2 + $0x514] ss:$40 sps:$4 sm:$0xff]   ;;  %v15741_v42 = vld [vmem:[#allocation2 + $0x510] ss:$40 sps:$4 sm:$0xff]  }
 0x18f   : > { %1917 = vmatpush1.bf16.msra.mxu0 %v15651_v43  ;;  %2610 = vmatpush1.bf16.msra.mxu1 %v15654_v44  ;;  %v15746_v43 = vld [vmem:[#allocation2 + $0x564] ss:$40 sps:$4 sm:$0xff]   ;;  %v15744_v44 = vld [vmem:[#allocation2 + $0x560] ss:$40 sps:$4 sm:$0xff]  }
 0x190   : > { %1918 = vmatprep.subr.bf16.mxu0 %v15659_v45  ;;  %2611 = vmatprep.subr.bf16.mxu1 %v15662_v46  ;;  %v15749_v45 = vld [vmem:[#allocation2 + $0x5b4] ss:$40 sps:$4 sm:$0xff]   ;;  %v15747_v46 = vld [vmem:[#allocation2 + $0x5b0] ss:$40 sps:$4 sm:$0xff]  }
 0x193   : > { %1919 = vmatpush1.bf16.msra.mxu0 %v15657_v47  ;;  %2612 = vmatpush1.bf16.msra.mxu1 %v15660_v48  ;;  %v15752_v47 = vld [vmem:[#allocation2 + $0x604] ss:$40 sps:$4 sm:$0xff]   ;;  %v15750_v48 = vld [vmem:[#allocation2 + $0x600] ss:$40 sps:$4 sm:$0xff]  }
 0x194   : > { %1920 = vmatprep.subr.bf16.mxu0 %v15665_v50  ;;  %2613 = vmatprep.subr.bf16.mxu1 %v15668_v51  ;;  %v15755_v50 = vld [vmem:[#allocation2 + $0x654] ss:$40 sps:$4 sm:$0xff]   ;;  %v15753_v51 = vld [vmem:[#allocation2 + $0x650] ss:$40 sps:$4 sm:$0xff]  }
 0x197   : > { %1921 = vmatpush1.bf16.msra.mxu0 %v15663_v52  ;;  %2614 = vmatpush1.bf16.msra.mxu1 %v15666_v53  ;;  %v15758_v52 = vld [vmem:[#allocation2 + $0x6a4] ss:$40 sps:$4 sm:$0xff]   ;;  %v15756_v53 = vld [vmem:[#allocation2 + $0x6a0] ss:$40 sps:$4 sm:$0xff]  }
 0x198   : > { %2008 = vmatprep.subr.bf16.mxu0 %v15671_v54  ;;  %2701 = vmatprep.subr.bf16.mxu1 %v15674_v57  ;;  %v15761_v54 = vld [vmem:[#allocation2 + $0x6f4] ss:$40 sps:$4 sm:$0xff]   ;;  %v15764_v57 = vld [vmem:[#allocation2 + $0x744] ss:$40 sps:$4 sm:$0xff]  }
 0x19a   : > { %1939 = vmatmul.mubr.bf16.vlgmr.msra.gmra.mrb[8].mxu0 %v16521_v34  ;;  %2632 = vmatmul.mubr.bf16.vlgmr.msra.gmra.mrb[0].mxu1 %v16570_v61 }
 0x19b   : > { %2009 = vmatpush1.bf16.msra.mxu0 %v15669_v59  ;;  %2702 = vmatpush1.bf16.msra.mxu1 %v15672_v60  ;;  %v15762_v59 = vld [vmem:[#allocation2 + $0x740] ss:$40 sps:$4 sm:$0xff]   ;;  %v15767_v60 = vld [vmem:[#allocation2 + $0x524] ss:$40 sps:$4 sm:$0xff]  }
 0x19c   : > { %2010 = vmatprep.subr.bf16.mxu0 %v15677_v62  ;;  %2703 = vmatprep.subr.bf16.mxu1 %v15680_v63 }
 0x19d   : > { %1948 = vmatprep.mubr.bf16.mxu0 %v16185_v0  ;;  %2641 = vmatprep.mubr.bf16.mxu1 %v16185_v0 }
 0x19f   : > { %2011 = vmatpush1.bf16.msra.mxu0 %v15675_v1  ;;  %2704 = vmatpush1.bf16.msra.mxu1 %v15678_v49 }
 0x1a0   : > { %2012 = vmatprep.subr.bf16.mxu0 %v15683_v2  ;;  %2705 = vmatprep.subr.bf16.mxu1 %v15686_v3  ;;  %v15765_v2 = vld [vmem:[#allocation2 + $0x520] ss:$40 sps:$4 sm:$0xff]  }
 0x1a2   : > { %1949 = vmatmul.mubr.bf16.gmra.mrb[28].mxu0 %v16523_v35  ;;  %2642 = vmatmul.mubr.bf16.gmra.mrb[24].mxu1 %v16567_v56 }
 0x1a3   : > { %2013 = vmatpush1.bf16.msra.mxu0 %v15681_v4  ;;  %2706 = vmatpush1.bf16.msra.mxu1 %v15684_v5  ;;  %v15770_v5 = vld [vmem:[#allocation2 + $0x574] ss:$40 sps:$4 sm:$0xff]  }
 0x1a4   : > { %2014 = vmatprep.subr.bf16.mxu0 %v15689_v6  ;;  %2707 = vmatprep.subr.bf16.mxu1 %v15692_v7 }
 0x1a5   : > { %2040 = vmatprep.mubr.bf16.mxu0 %v16185_v0  ;;  %2733 = vmatprep.mubr.bf16.mxu1 %v16185_v0 }
 0x1a7   : > { %2015 = vmatpush1.bf16.msra.mxu0 %v15687_v8  ;;  %2708 = vmatpush1.bf16.msra.mxu1 %v15690_v58  ;;  %v15768_v8 = vld [vmem:[#allocation2 + $0x570] ss:$40 sps:$4 sm:$0xff]   ;;  %v15773_v58 = vld [vmem:[#allocation2 + $0x5c4] ss:$40 sps:$4 sm:$0xff]  }
 0x1a8   : > { %2016 = vmatprep.subr.bf16.mxu0 %v15695_v9  ;;  %2709 = vmatprep.subr.bf16.mxu1 %v15698_v10  ;;  %v15771_v9 = vld [vmem:[#allocation2 + $0x5c0] ss:$40 sps:$4 sm:$0xff]   ;;  %v15776_v10 = vld [vmem:[#allocation2 + $0x614] ss:$40 sps:$4 sm:$0xff]  }
 0x1ab   : > { %2017 = vmatpush1.bf16.msra.mxu0 %v15693_v11  ;;  %2710 = vmatpush1.bf16.msra.mxu1 %v15696_v12  ;;  %v15774_v11 = vld [vmem:[#allocation2 + $0x610] ss:$40 sps:$4 sm:$0xff]   ;;  %v15779_v12 = vld [vmem:[#allocation2 + $0x664] ss:$40 sps:$4 sm:$0xff]  }
 0x1ac   : > { %2018 = vmatprep.subr.bf16.mxu0 %v15701_v13  ;;  %2711 = vmatprep.subr.bf16.mxu1 %v15704_v14  ;;  %v15777_v13 = vld [vmem:[#allocation2 + $0x660] ss:$40 sps:$4 sm:$0xff]   ;;  %v15782_v14 = vld [vmem:[#allocation2 + $0x6b4] ss:$40 sps:$4 sm:$0xff]  }
 0x1af   : > { %2019 = vmatpush1.bf16.msra.mxu0 %v15699_v15  ;;  %2712 = vmatpush1.bf16.msra.mxu1 %v15702_v16  ;;  %v15780_v15 = vld [vmem:[#allocation2 + $0x6b0] ss:$40 sps:$4 sm:$0xff]   ;;  %v15785_v16 = vld [vmem:[#allocation2 + $0x704] ss:$40 sps:$4 sm:$0xff]  }
 0x1b0   : > { %2020 = vmatprep.subr.bf16.mxu0 %v15707_v17  ;;  %2713 = vmatprep.subr.bf16.mxu1 %v15710_v18  ;;  %v15783_v17 = vld [vmem:[#allocation2 + $0x700] ss:$40 sps:$4 sm:$0xff]   ;;  %v15788_v18 = vld [vmem:[#allocation2 + $0x754] ss:$40 sps:$4 sm:$0xff]  }
 0x1b3   : > { %2021 = vmatpush1.bf16.msra.mxu0 %v15705_v19  ;;  %2714 = vmatpush1.bf16.msra.mxu1 %v15708_v20  ;;  %v15786_v19 = vld [vmem:[#allocation2 + $0x750] ss:$40 sps:$4 sm:$0xff]  }
 0x1b4   : > { %2022 = vmatprep.subr.bf16.mxu0 %v15713_v21  ;;  %2715 = vmatprep.subr.bf16.mxu1 %v15716_v22 }
 0x1b7   : > { %2023 = vmatpush1.bf16.msra.mxu0 %v15711_v23  ;;  %2716 = vmatpush1.bf16.msra.mxu1 %v15714_v24 }
 0x1b8   : > { %2548 = vmatprep.subr.bf16.mxu0 %v15719_v25 }
 0x1ba   : > { %2041 = vmatmul.mubr.bf16.vlgmr.msra.gmra.mrb[16].mxu0 %v16521_v34  ;;  %2734 = vmatmul.mubr.bf16.vlgmr.msra.gmra.mrb[8].mxu1 %v16570_v61  ;;  %v15726_v34 = vld [vmem:[#allocation2 + $0x5f0] ss:$40 sps:$4 sm:$0xff]  }
 0x1bb   : > { %2549 = vmatpush1.bf16.msra.mxu0 %v15717_v26  ;;  %2050 = vmatprep.mubr.bf16.mxu0 %v16185_v0 }
 0x1bc   : > { %2550 = vmatprep.subr.bf16.mxu0 %v15722_v27  ;;  %2743 = vmatprep.mubr.bf16.mxu1 %v16185_v0 }
 0x1bf   : > { %2551 = vmatpush1.bf16.msra.mxu0 %v15720_v28 }
 0x1c0   : > { %2552 = vmatprep.subr.bf16.mxu0 %v15725_v29 }
 0x1c2   : > { %2051 = vmatmul.mubr.bf16.gmra.mrb[32].mxu0 %v16523_v35  ;;  %2744 = vmatmul.mubr.bf16.gmra.mrb[28].mxu1 %v16567_v56  ;;  %v15735_v35 = vld [vmem:[#allocation2 + $0x6e0] ss:$40 sps:$4 sm:$0xff]  }
 0x1c3   : > { %2553 = vmatpush1.bf16.msra.mxu0 %v15723_v30  ;;  %2580 = vmatprep.mubr.bf16.mxu0 %v16185_v0 }
 0x1c4   : > { %2554 = vmatprep.subr.bf16.mxu0 %v15728_v31  ;;  %3004 = vmatprep.mubr.bf16.mxu1 %v16185_v0 }
 0x1c7   : > { %2555 = vmatpush1.bf16.msra.mxu0 %v15726_v34 }
 0x1c8   : > { %2556 = vmatprep.subr.bf16.mxu0 %v15731_v32 }
 0x1cb   : > { %2557 = vmatpush1.bf16.msra.mxu0 %v15729_v33 }
 0x1cc   : > { %2558 = vmatprep.subr.bf16.mxu0 %v15734_v36 }
 0x1cf   : > { %2559 = vmatpush1.bf16.msra.mxu0 %v15732_v37 }
 0x1d0   : > { %2560 = vmatprep.subr.bf16.mxu0 %v15737_v38 }
 0x1d3   : > { %2561 = vmatpush1.bf16.msra.mxu0 %v15735_v35 }
 0x1d4   : > { %2562 = vmatprep.subr.bf16.mxu0 %v15740_v39 }
 0x1d7   : > { %2563 = vmatpush1.bf16.msra.mxu0 %v15738_v40 }
 0x1d8   : > { %2650 = vmatprep.subr.bf16.mxu0 %v15743_v41 }
 0x1da   : > { %2581 = vmatmul.mubr.bf16.vlgmr.msra.gmra.mrb[0].mxu0 %v16570_v61 }
 0x1db   : > { %2651 = vmatpush1.bf16.msra.mxu0 %v15741_v42  ;;  %2590 = vmatprep.mubr.bf16.mxu0 %v16185_v0 }
 0x1dc   : > { %2652 = vmatprep.subr.bf16.mxu0 %v15746_v43 }
 0x1df   : > { %2653 = vmatpush1.bf16.msra.mxu0 %v15744_v44 }
 0x1e0   : > { %2654 = vmatprep.subr.bf16.mxu0 %v15749_v45 }
 0x1e2   : > { %2591 = vmatmul.mubr.bf16.gmra.mrb[36].mxu0 %v16567_v56 }
 0x1e3   : > { %2655 = vmatpush1.bf16.msra.mxu0 %v15747_v46  ;;  %2682 = vmatprep.mubr.bf16.mxu0 %v16185_v0 }
 0x1e4   : > { %2656 = vmatprep.subr.bf16.mxu0 %v15752_v47 }
 0x1e7   : > { %2657 = vmatpush1.bf16.msra.mxu0 %v15750_v48 }
 0x1e8   : > { %2658 = vmatprep.subr.bf16.mxu0 %v15755_v50 }
 0x1eb   : > { %2659 = vmatpush1.bf16.msra.mxu0 %v15753_v51 }
 0x1ec   : > { %2660 = vmatprep.subr.bf16.mxu0 %v15758_v52 }
 0x1ef   : > { %2661 = vmatpush1.bf16.msra.mxu0 %v15756_v53 }
 0x1f0   : > { %2662 = vmatprep.subr.bf16.mxu0 %v15761_v54 }
 0x1f3   : > { %2663 = vmatpush1.bf16.msra.mxu0 %v15759_v55 }
 0x1f4   : > { %2664 = vmatprep.subr.bf16.mxu0 %v15764_v57 }
 0x1f5   : > { %v16592_v62 = vpop.f32.mrb[4].mxu0  ;;  %v1244_v63 = vpop.f32.mrb[4].mxu1 }
 0x1f6   : > { %v16594_v1 = vpop.f32.mrb[5].mxu0  ;;  %v1246_v49 = vpop.f32.mrb[5].mxu1 }
 0x1f7   : > { %2665 = vmatpush1.bf16.msra.mxu0 %v15762_v59  ;;  %v1197_v3 = vpop.f32.mrb[6].mxu0  ;;  %v1248_v4 = vpop.f32.mrb[6].mxu1 }
 0x1f8   : > { %2752 = vmatprep.subr.bf16.mxu0 %v15767_v60  ;;  %v1198_v6 = vpop.f32.mrb[7].mxu0  ;;  %v1249_v7 = vpop.f32.mrb[7].mxu1  ;;  %v2835_v4 = vlaneseq }
 0x1f9   : > { %v16626_v7 = vld [vmem:[#allocation4] sm:$0x1f] }
 0x1fa   : > { %2683 = vmatmul.mubr.bf16.vlgmr.msra.gmra.mrb[8].mxu0 %v16570_v61 }
 0x1fb   : > { %2753 = vmatpush1.bf16.msra.mxu0 %v15765_v2  ;;  %2692 = vmatprep.mubr.bf16.mxu0 %v16185_v0 }
 0x1fc   : > { %2754 = vmatprep.subr.bf16.mxu0 %v15770_v5  ;;  %v16621_v5 = vshrl.u32 %v2835_v4, 7 }
 0x1fe   : > { %v16624_v6 = vsub.s32 2, %v16621_v5 }
 0x1ff   : > { %2755 = vmatpush1.bf16.msra.mxu0 %v15768_v8 }
 0x200   : > { %2756 = vmatprep.subr.bf16.mxu0 %v15773_v58  ;;  %v2846_v8 = vrot.slane %v16626_v7, %v16624_v6 }
 0x202   : > { %2693 = vmatmul.mubr.bf16.gmra.mrb[40].mxu0 %v16567_v56 }
 0x203   : > { %2757 = vmatpush1.bf16.msra.mxu0 %v15771_v9  ;;  %2784 = vmatprep.mubr.bf16.mxu0 %v16185_v0 }
 0x204   : > { %2758 = vmatprep.subr.bf16.mxu0 %v15776_v10 }
 0x207   : > { %2759 = vmatpush1.bf16.msra.mxu0 %v15774_v11 }
 0x208   : > { %2760 = vmatprep.subr.bf16.mxu0 %v15779_v12 }
 0x20b   : > { %2761 = vmatpush1.bf16.msra.mxu0 %v15777_v13 }
 0x20c   : > { %2762 = vmatprep.subr.bf16.mxu0 %v15782_v14 }
 0x20f   : > { %2763 = vmatpush1.bf16.msra.mxu0 %v15780_v15 }
 0x210   : > { %2764 = vmatprep.subr.bf16.mxu0 %v15785_v16 }
 0x213   : > { %2765 = vmatpush1.bf16.msra.mxu0 %v15783_v17 }
 0x214   : > { %2766 = vmatprep.subr.bf16.mxu0 %v15788_v18 }
 0x215   : > { %v1295_v20 = vpop.f32.mrb[12].mxu0  ;;  %v1346_v21 = vpop.f32.mrb[12].mxu1 }
 0x216   : > { %v1297_v22 = vpop.f32.mrb[13].mxu0  ;;  %v1348_v23 = vpop.f32.mrb[13].mxu1 }
 0x217   : > { %2767 = vmatpush1.bf16.msra.mxu0 %v15786_v19  ;;  %v1299_v24 = vpop.f32.mrb[14].mxu0  ;;  %v1350_v25 = vpop.f32.mrb[14].mxu1 }
 0x218   : > { %v1300_v26 = vpop.f32.mrb[15].mxu0  ;;  %v1351_v27 = vpop.f32.mrb[15].mxu1 }
 0x21a   : > { %2785 = vmatmul.mubr.bf16.vlgmr.msra.gmra.mrb[16].mxu0 %v16570_v61 }
 0x21b   : > { %2794 = vmatprep.mubr.bf16.mxu0 %v16185_v0 }
 0x222   : > { %2795 = vmatmul.mubr.bf16.gmra.mrb[44].mxu0 %v16567_v56 }
 0x235   : > { %v1397_v28 = vpop.f32.mrb[20].mxu0  ;;  %v1899_v29 = vpop.f32.mrb[16].mxu1 }
 0x236   : > { %v16603_v30 = vpop.f32.mrb[21].mxu0  ;;  %v1900_v31 = vadd.f32 %v1899_v29, %v1244_v63  ;;  %v1901_v34 = vpop.f32.mrb[17].mxu1 }
 0x237   : > { %v1401_v32 = vpop.f32.mrb[22].mxu0  ;;  %v1902_v33 = vadd.f32 %v1901_v34, %v1246_v49  ;;  %v1903_v36 = vpop.f32.mrb[18].mxu1 }
 0x238   : > { %v1402_v37 = vpop.f32.mrb[23].mxu0  ;;  %v1904_v38 = vpop.f32.mrb[19].mxu1 }
 0x255   : > { %v1848_v35 = vpop.f32.mrb[24].mxu0  ;;  %v2001_v39 = vpop.f32.mrb[20].mxu1 }
 0x256   : > { %v16606_v40 = vadd.f32 %v1848_v35, %v16592_v62  ;;  %v1850_v61 = vpop.f32.mrb[25].mxu0  ;;  %v2002_v41 = vadd.f32 %v2001_v39, %v1346_v21  ;;  %v2003_v42 = vpop.f32.mrb[21].mxu1 }
 0x257   : > { %v16609_v56 = vadd.f32 %v1850_v61, %v16594_v1  ;;  %v1852_v43 = vpop.f32.mrb[26].mxu0  ;;  %v2004_v44 = vadd.f32 %v2003_v42, %v1348_v23  ;;  %v2005_v45 = vpop.f32.mrb[22].mxu1 }
 0x258   : > { %v1853_v46 = vpop.f32.mrb[27].mxu0  ;;  %v2006_v47 = vpop.f32.mrb[23].mxu1  ;;  %v3706_v43 = vld [vmem:[#allocation6 + $0xe00] sm:$0xff] }
 0x259   : > { %v3710_v45 = vld [vmem:[#allocation6 + $0xe20] sm:$0xff] }
 0x25a   : > { %v14051_v46 = vcombine.high %v3706_v43, %v3710_v45 }
 0x25c   : > { %5579 = vmatprep.subr.bf16.mxu0 %v14051_v46 }
 0x26d   : > { %v2633_v48 = vpop.f32.mrb[0].mxu1 }
 0x26e   : > { %v16611_v50 = vpop.f32.mrb[1].mxu1  ;;  %v2862_v58 = vadd.f32 %v2846_v8, %v2633_v48 }
 0x26f   : > { %v2637_v51 = vpop.f32.mrb[2].mxu1 }
 0x270   : > { %v16613_v52 = vpop.f32.mrb[3].mxu1  ;;  %v2867_v11 = vadd.f32 %v2846_v8, %v2637_v51  ;;  %v2877_v15 = vmax.f32 %v2862_v58, 0.0  ;;  %v3722_v58 = vld [vmem:[#allocation6 + $0xe80] sm:$0xff] }
 0x272   : > { %v2882_v18 = vmax.f32 %v2867_v11, 0.0 }
 0x275   : > { %v1950_v53 = vpop.f32.mrb[28].mxu0  ;;  %v2643_v54 = vpop.f32.mrb[24].mxu1 }
 0x276   : > { %v16615_v55 = vadd.f32 %v1950_v53, %v1295_v20  ;;  %v2825_v57 = vadd.f32 %v2643_v54, %v1900_v31  ;;  %v1952_v59 = vpop.f32.mrb[29].mxu0  ;;  %v2645_v60 = vpop.f32.mrb[25].mxu1  ;;  %v3714_v53 = vld [vmem:[#allocation6 + $0xe40] sm:$0xff] }
 0x277   : > { %v16617_v62 = vadd.f32 %v1952_v59, %v1297_v22  ;;  %v16619_v63 = vadd.f32 %v2645_v60, %v1902_v33  ;;  %v1954_v1 = vpop.f32.mrb[30].mxu0  ;;  %v2647_v49 = vpop.f32.mrb[26].mxu1  ;;  %v3718_v54 = vld [vmem:[#allocation6 + $0xe60] sm:$0xff] }
 0x278   : > { %v1955_v2 = vpop.f32.mrb[31].mxu0  ;;  %v2648_v3 = vpop.f32.mrb[27].mxu1  ;;  %v2872_v29 = vadd.f32 %v2846_v8, %v2825_v57  ;;  %v14058_v60 = vcombine.low %v3714_v53, %v3718_v54  ;;  %v14059_v1 = vcombine.high %v3714_v53, %v3718_v54 }
 0x27a   : > { %v2887_v39 = vmax.f32 %v2872_v29, 0.0 }
 0x28d   : > { %v2735_v9 = vpop.f32.mrb[8].mxu1 }
 0x28e   : > { %v2737_v10 = vpop.f32.mrb[9].mxu1 }
 0x28f   : > { %v2892_v12 = vadd.f32 %v2846_v8, %v2737_v10  ;;  %v2739_v13 = vpop.f32.mrb[10].mxu1 }
 0x290   : > { %v2741_v14 = vpop.f32.mrb[11].mxu1 }
 0x291   : > { %v2907_v16 = vmax.f32 %v2892_v12, 0.0  ;;  %v2897_v17 = vadd.f32 %v2846_v8, %v2741_v14 }
 0x293   : > { %v2922_v19 = vmax.f32 %v2877_v15, %v2907_v16  ;;  %v2912_v20 = vmax.f32 %v2897_v17, 0.0 }
 0x295   : > { %v2927_v21 = vmax.f32 %v2882_v18, %v2912_v20  ;;  %v2052_v22 = vpop.f32.mrb[32].mxu0  ;;  %v2745_v23 = vpop.f32.mrb[28].mxu1  ;;  %v3734_v20 = vld [vmem:[#allocation6 + $0xee0] sm:$0xff] }
 0x296   : > { %v16630_v24 = vadd.f32 %v2052_v22, %v1397_v28  ;;  %v2829_v25 = vadd.f32 %v2745_v23, %v2002_v41  ;;  %v2054_v26 = vpop.f32.mrb[33].mxu0  ;;  %v2747_v27 = vpop.f32.mrb[29].mxu1  ;;  %v16640_v28 = vsub.s32 1, %v16621_v5 }
 0x297   : > { %v16632_v31 = vpack.c.bf16 %v2927_v21, %v2922_v19  ;;  %v16635_v34 = vadd.f32 %v2054_v26, %v16603_v30  ;;  %v2830_v32 = vadd.f32 %v2747_v27, %v2004_v44  ;;  %v2056_v33 = vpop.f32.mrb[34].mxu0  ;;  %v2749_v36 = vpop.f32.mrb[30].mxu1  ;;  %v14050_v30 = vcombine.low %v3706_v43, %v3710_v45  ;;  %v3730_v19 = vld [vmem:[#allocation6 + $0xec0] sm:$0xff] }
 0x298   : > { %v2057_v37 = vpop.f32.mrb[35].mxu0  ;;  %v2750_v38 = vpop.f32.mrb[31].mxu1  ;;  %v2842_v41 = vrot.slane %v16626_v7, %v16640_v28  ;;  %v14074_v26 = vcombine.low %v3730_v19, %v3734_v20  ;;  %v14075_v27 = vcombine.high %v3730_v19, %v3734_v20  ;;  %v16650_v36 = vsub.s32 0, %v16621_v5 }
 0x299   : > { %v2902_v35 = vadd.f32 %v2846_v8, %v2830_v32  ;;  %5580 = vmatpush1.bf16.msra.mxu0 %v14050_v30 }
 0x29a   : > { %v2891_v44 = vadd.f32 %v2842_v41, %v2735_v9  ;;  %v2896_v48 = vadd.f32 %v2842_v41, %v2739_v13  ;;  %5581 = vmatprep.subr.bf16.mxu0 %v14059_v1  ;;  %v3726_v9 = vld [vmem:[#allocation6 + $0xea0] sm:$0xff]  ;;  %v2901_v16 = vadd.f32 %v2842_v41, %v2829_v25 }
 0x29b   : > { %v2917_v61 = vmax.f32 %v2902_v35, 0.0  ;;  %v14066_v12 = vcombine.low %v3722_v58, %v3726_v9  ;;  %v14067_v13 = vcombine.high %v3722_v58, %v3726_v9 }
 0x29c   : > { %v2906_v2 = vmax.f32 %v2891_v44, 0.0  ;;  %v2911_v8 = vmax.f32 %v2896_v48, 0.0  ;;  %v2916_v25 = vmax.f32 %v2901_v16, 0.0 }
 0x29d   : > { %v16637_v42 = vmax.f32 %v2887_v39, %v2917_v61  ;;  %5582 = vmatpush1.bf16.msra.mxu0 %v14058_v60 }
 0x29e   : > { %5583 = vmatprep.subr.bf16.mxu0 %v14067_v13 }
 0x2a1   : > { %5584 = vmatpush1.bf16.msra.mxu0 %v14066_v12  ;;  %v2853_v12 = vsub.s32 4, %v16621_v5 }
 0x2a2   : > { %5585 = vmatprep.subr.bf16.mxu0 %v14075_v27 }
 0x2a5   : > { %5586 = vmatpush1.bf16.msra.mxu0 %v14074_v26 }
 0x2ad   : > { %v2582_v47 = vpop.f32.mrb[0].mxu0 }
 0x2ae   : > { %v2584_v51 = vpop.f32.mrb[1].mxu0 }
 0x2af   : > { %v2861_v57 = vadd.f32 %v2842_v41, %v2584_v51  ;;  %v2586_v59 = vpop.f32.mrb[2].mxu0 }
 0x2b0   : > { %v2588_v49 = vpop.f32.mrb[3].mxu0 }
 0x2b1   : > { %v2876_v3 = vmax.f32 %v2861_v57, 0.0  ;;  %v2866_v4 = vadd.f32 %v2842_v41, %v2588_v49 }
 0x2b3   : > { %v2921_v10 = vmax.f32 %v2876_v3, %v2906_v2  ;;  %v2881_v11 = vmax.f32 %v2866_v4, 0.0 }
 0x2b5   : > { %v2926_v14 = vmax.f32 %v2881_v11, %v2911_v8  ;;  %v2592_v15 = vpop.f32.mrb[36].mxu0  ;;  %v16673_v11 = vsub.s32 3, %v16621_v5 }
 0x2b6   : > { %v2823_v17 = vadd.f32 %v2592_v15, %v16606_v40  ;;  %v2594_v18 = vpop.f32.mrb[37].mxu0 }
 0x2b7   : > { %v2824_v21 = vadd.f32 %v2594_v18, %v16609_v56  ;;  %v16646_v22 = vpack.c.bf16 %v2926_v14, %v2921_v10  ;;  %v2596_v23 = vpop.f32.mrb[38].mxu0  ;;  %v2838_v56 = vrot.slane %v16626_v7, %v16650_v36  ;;  %v2850_v13 = vrot.slane %v16626_v7, %v16673_v11 }
 0x2b8   : > { %v2597_v29 = vpop.f32.mrb[39].mxu0  ;;  %v2854_v14 = vrot.slane %v16626_v7, %v2853_v12  ;;  %v3594_v12 = vld [vmem:[#allocation6 + $0xa80] sm:$0xff] }
 0x2b9   : > { %v2871_v32 = vadd.f32 %v2842_v41, %v2824_v21  ;;  %2972 = vmatprep.subr.bf16.mxu1 %v16646_v22  ;;  %v2860_v37 = vadd.f32 %v2838_v56, %v2582_v47  ;;  %v2865_v39 = vadd.f32 %v2838_v56, %v2586_v59  ;;  %v2870_v1 = vadd.f32 %v2838_v56, %v2823_v17 }
 0x2ba   : > { %v2863_v15 = vadd.f32 %v2850_v13, %v16611_v50  ;;  %v2868_v18 = vadd.f32 %v2850_v13, %v16613_v52 }
 0x2bb   : > { %v2886_v33 = vmax.f32 %v2871_v32, 0.0  ;;  %v2875_v45 = vmax.f32 %v2860_v37, 0.0  ;;  %v2880_v44 = vmax.f32 %v2865_v39, 0.0  ;;  %v2885_v8 = vmax.f32 %v2870_v1, 0.0 }
 0x2bc   : > { %v2878_v26 = vmax.f32 %v2863_v15, 0.0 }
 0x2bd   : > { %v2931_v40 = vmax.f32 %v2886_v33, %v2916_v25 }
 0x2bf   : > { %v16658_v2 = vpack.c.bf16 %v2931_v40, %v2931_v40 }
 0x2cd   : > { %v2684_v38 = vpop.f32.mrb[8].mxu0 }
 0x2ce   : > { %v2686_v35 = vpop.f32.mrb[9].mxu0  ;;  %v2864_v16 = vadd.f32 %v2854_v14, %v2684_v38 }
 0x2cf   : > { %v2890_v61 = vadd.f32 %v2838_v56, %v2686_v35  ;;  %v2688_v43 = vpop.f32.mrb[10].mxu0 }
 0x2d0   : > { %v2690_v41 = vpop.f32.mrb[11].mxu0  ;;  %v2869_v21 = vadd.f32 %v2854_v14, %v2688_v43  ;;  %v2879_v25 = vmax.f32 %v2864_v16, 0.0  ;;  %v2873_v43 = vadd.f32 %v2850_v13, %v16619_v63  ;;  %v3602_v16 = vld [vmem:[#allocation6 + $0xac0] sm:$0xff] }
 0x2d1   : > { %v2905_v30 = vmax.f32 %v2890_v61, 0.0  ;;  %v2895_v46 = vadd.f32 %v2838_v56, %v2690_v41 }
 0x2d2   : > { %v2884_v50 = vmax.f32 %v2869_v21, 0.0  ;;  %v2888_v1 = vmax.f32 %v2873_v43, 0.0  ;;  %v3614_v21 = vld [vmem:[#allocation6 + $0xb20] sm:$0xff] }
 0x2d3   : > { %v2920_v48 = vmax.f32 %v2875_v45, %v2905_v30  ;;  %v2910_v51 = vmax.f32 %v2895_v46, 0.0 }
 0x2d5   : > { %v2925_v53 = vmax.f32 %v2880_v44, %v2910_v51  ;;  %v2694_v54 = vpop.f32.mrb[40].mxu0 }
 0x2d6   : > { %v2827_v57 = vadd.f32 %v2694_v54, %v16615_v55  ;;  %v2696_v60 = vpop.f32.mrb[41].mxu0 }
 0x2d7   : > { %v16655_v49 = vpack.c.bf16 %v2925_v53, %v2920_v48  ;;  %v2828_v47 = vadd.f32 %v2696_v60, %v16617_v62  ;;  %v2698_v59 = vpop.f32.mrb[42].mxu0  ;;  %v16669_v62 = vld [vmem:[%s17187_s3] sm:$0x1f]  }
 0x2d8   : > { %v2699_v3 = vpop.f32.mrb[43].mxu0  ;;  %v2874_v46 = vadd.f32 %v2854_v14, %v2827_v57 }
 0x2d9   : > { %v2900_v4 = vadd.f32 %v2838_v56, %v2828_v47  ;;  %2973 = vmatpush1.bf16.msra.mxu1 %v16655_v49  ;;  %v2883_v56 = vmax.f32 %v2868_v18, 0.0 }
 0x2da   : > { %13909 = vmatprep.subr.msk.bf16.mxu1 %vm2956_vm2, %v16658_v2  ;;  %v2889_v59 = vmax.f32 %v2874_v46, 0.0 }
 0x2db   : > { %v2915_v58 = vmax.f32 %v2900_v4, 0.0 }
 0x2dd   : > { %v2930_v55 = vmax.f32 %v2885_v8, %v2915_v58  ;;  %v16186_v8 = vmov 0.0  }
 0x2df   : > { %v2940_v9 = vpack.c.bf16 %v2930_v55, %v2930_v55  ;;  %v15790_v55 = vld [vmem:[%s17187_s3 + $0x8] sm:$0x1f]  }
 0x2e1   : > { %v16664_v10 = vsel %vm2956_vm2, %v2940_v9, 0  ;;  %v3586_v9 = vld [vmem:[#allocation6 + $0xa40] sm:$0xff] }
 0x2e2   : > { %2975 = vmatpush1.bf16.msra.mxu1 %v16664_v10 }
 0x2e5   : > { %13910 = vmatmul.mubr.msk.bf16.vlgmr.msra.gmra.mrb[32].mxu1 %vm2952_vm3, %v16669_v62 }
 0x2e6   : > { %3047 = vmatprep.mubr.bf16.mxu1 %v16185_v0 }
 0x2ed   : > { %v2786_v17 = vpop.f32.mrb[16].mxu0 }
 0x2ee   : > { %v2893_v19 = vadd.f32 %v2850_v13, %v2786_v17  ;;  %v2788_v20 = vpop.f32.mrb[17].mxu0  ;;  %v3606_v17 = vld [vmem:[#allocation6 + $0xae0] sm:$0xff] }
 0x2ef   : > { %v2894_v5 = vadd.f32 %v2854_v14, %v2788_v20  ;;  %v2790_v23 = vpop.f32.mrb[18].mxu0  ;;  %v3610_v20 = vld [vmem:[#allocation6 + $0xb00] sm:$0xff] }
 0x2f0   : > { %v2908_v27 = vmax.f32 %v2893_v19, 0.0  ;;  %v2898_v29 = vadd.f32 %v2850_v13, %v2790_v23  ;;  %v2792_v32 = vpop.f32.mrb[19].mxu0  ;;  %v13947_v19 = vcombine.high %v3602_v16, %v3606_v17  ;;  %v13955_v23 = vcombine.high %v3610_v20, %v3614_v21 }
 0x2f1   : > { %v2909_v33 = vmax.f32 %v2894_v5, 0.0  ;;  %v2899_v40 = vadd.f32 %v2854_v14, %v2792_v32  ;;  %v13946_v5 = vcombine.low %v3602_v16, %v3606_v17 }
 0x2f2   : > { %v2923_v7 = vmax.f32 %v2878_v26, %v2908_v27  ;;  %v2913_v37 = vmax.f32 %v2898_v29, 0.0  ;;  %v3618_v26 = vld [vmem:[#allocation6 + $0xb40] sm:$0xff]  ;;  %v13954_v29 = vcombine.low %v3610_v20, %v3614_v21 }
 0x2f3   : > { %v2924_v38 = vmax.f32 %v2879_v25, %v2909_v33  ;;  %v2914_v35 = vmax.f32 %v2899_v40, 0.0  ;;  %v3622_v27 = vld [vmem:[#allocation6 + $0xb60] sm:$0xff] }
 0x2f4   : > { %v2928_v39 = vmax.f32 %v2883_v56, %v2913_v37  ;;  %v13963_v32 = vcombine.high %v3618_v26, %v3622_v27  ;;  %v13962_v25 = vcombine.low %v3618_v26, %v3622_v27  ;;  %v3626_v33 = vld [vmem:[#allocation6 + $0xb80] sm:$0xff] }
 0x2f5   : > { %v2929_v52 = vmax.f32 %v2884_v50, %v2914_v35  ;;  %v2796_v61 = vpop.f32.mrb[44].mxu0  ;;  %v3630_v40 = vld [vmem:[#allocation6 + $0xba0] sm:$0xff] }
 0x2f6   : > { %v2831_v41 = vadd.f32 %v2796_v61, %v16630_v24  ;;  %v2798_v45 = vpop.f32.mrb[45].mxu0  ;;  %v2938_v30 = vpack.c.bf16 %v2928_v39, %v2923_v7  ;;  %v2942_v24 = vpack.c.bf16 %v16637_v42, %v16637_v42  ;;  %v3738_v56 = vld [vmem:[#allocation6 + $0xf00] sm:$0xff]  ;;  %v13970_v7 = vcombine.low %v3626_v33, %v3630_v40 }
 0x2f7   : > { %v2939_v44 = vpack.c.bf16 %v2929_v52, %v2924_v38  ;;  %v2832_v48 = vadd.f32 %v2798_v45, %v16635_v34  ;;  %v2800_v51 = vpop.f32.mrb[46].mxu0  ;;  %v13971_v37 = vcombine.high %v3626_v33, %v3630_v40  ;;  %v3742_v50 = vld [vmem:[#allocation6 + $0xf20] sm:$0xff] }
 0x2f8   : > { %v2903_v53 = vadd.f32 %v2850_v13, %v2831_v41  ;;  %v2801_v54 = vpop.f32.mrb[47].mxu0  ;;  %3015 = vmatprep.subr.bf16.mxu1 %v2938_v30  ;;  %v2964_v34 = vsel %vm2956_vm2, %v2942_v24, 0  ;;  %v3598_v13 = vld [vmem:[#allocation6 + $0xaa0] sm:$0xff]  ;;  %v14082_v38 = vcombine.low %v3738_v56, %v3742_v50  ;;  %v14083_v35 = vcombine.high %v3738_v56, %v3742_v50 }
 0x2f9   : > { %v2904_v60 = vadd.f32 %v2854_v14, %v2832_v48  ;;  %3016 = vmatpush1.bf16.msra.mxu1 %v16632_v31  ;;  %v13939_v15 = vcombine.high %v3594_v12, %v3598_v13  ;;  %v13938_v18 = vcombine.low %v3594_v12, %v3598_v13  ;;  %v3634_v39 = vld [vmem:[#allocation6 + $0xbc0] sm:$0xff] }
 0x2fa   : > { %v2918_v47 = vmax.f32 %v2903_v53, 0.0  ;;  %v3638_v52 = vld [vmem:[#allocation6 + $0xbe0] sm:$0xff]  ;;  %5587 = vmatprep.subr.bf16.mxu0 %v14083_v35 }
 0x2fb   : > { %v2919_v3 = vmax.f32 %v2904_v60, 0.0  ;;  %v3746_v61 = vld [vmem:[#allocation6 + $0xf40] sm:$0xff]  ;;  %v13979_v43 = vcombine.high %v3634_v39, %v3638_v52  ;;  %v13978_v46 = vcombine.low %v3634_v39, %v3638_v52  ;;  %5588 = vmatpush1.bf16.msra.mxu0 %v14082_v38 }
 0x2fc   : > { %v2933_v63 = vmax.f32 %v2888_v1, %v2918_v47  ;;  %v3750_v41 = vld [vmem:[#allocation6 + $0xf60] sm:$0xff] }
 0x2fd   : > { %v2934_v4 = vmax.f32 %v2889_v59, %v2919_v3  ;;  %v3642_v45 = vld [vmem:[#allocation6 + $0xc00] sm:$0xff]  ;;  %v14090_v53 = vcombine.low %v3746_v61, %v3750_v41 }
 0x2fe   : > { %v2943_v57 = vpack.c.bf16 %v2933_v63, %v2933_v63  ;;  %v3754_v48 = vld [vmem:[#allocation6 + $0xf80] sm:$0xff] }
 0x2ff   : > { %v2944_v58 = vpack.c.bf16 %v2934_v4, %v2934_v4  ;;  %v3758_v51 = vld [vmem:[#allocation6 + $0xfa0] sm:$0xff] }
 0x300   : > { %13911 = vmatprep.subr.msk.bf16.mxu1 %vm2956_vm2, %v2943_v57  ;;  %v14099_v60 = vcombine.high %v3754_v48, %v3758_v51  ;;  %v14098_v47 = vcombine.low %v3754_v48, %v3758_v51  ;;  %v3650_v59 = vld [vmem:[#allocation6 + $0xc40] sm:$0xff] }
 0x301   : > { %3018 = vmatpush1.bf16.msra.mxu1 %v2964_v34  ;;  %v2970_v42 = vsel %vm2956_vm2, %v2944_v58, 0  ;;  %v3654_v3 = vld [vmem:[#allocation6 + $0xc60] sm:$0xff] }
 0x302   : > { %15239 = vmatprep.subr.bf16.mxu1 %v16186_v8  ;;  %v3762_v63 = vld [vmem:[#allocation6 + $0xfc0] sm:$0xff]  ;;  %v13995_v24 = vcombine.high %v3650_v59, %v3654_v3 }
 0x303   : > { %v3766_v4 = vld [vmem:[#allocation6 + $0xfe0] sm:$0xff] }
 0x304   : > { %13912 = vmatmul.mubr.msk.bf16.vlgmr.msra.gmra.mrb[36].mxu1 %vm2952_vm3, %v16669_v62  ;;  %v14107_v58 = vcombine.high %v3762_v63, %v3766_v4  ;;  %v3670_v12 = vld [vmem:[#allocation6 + $0xce0] sm:$0xff] }
 0x305   : > { %15240 = vmatpush3.bf16.msra.mxu1 %v2939_v44  ;;  %15243 = vmatprep.mubr.msk.bf16.mxu1 %vm16187_vm4, %v16186_v8  ;;  %v3778_v13 = vld [vmem:[#allocation6 + $0x1040] sm:$0xff] }
 0x306   : > { %15241 = vmatprep.subr.bf16.mxu1 %v16186_v8  ;;  %v3678_v20 = vld [vmem:[#allocation6 + $0xd20] sm:$0xff] }
 0x307   : > { %v3786_v21 = vld [vmem:[#allocation6 + $0x1080] sm:$0xff] }
 0x308   : > { %v3790_v26 = vld [vmem:[#allocation6 + $0x10a0] sm:$0xff] }
 0x309   : > { %15242 = vmatpush3.bf16.msra.mxu1 %v2970_v42  ;;  %v14130_v27 = vcombine.low %v3786_v21, %v3790_v26  ;;  %v3794_v33 = vld [vmem:[#allocation6 + $0x10c0] sm:$0xff] }
 0x30a   : > { %3110 = vmatprep.subr.bf16.mxu1 %v16646_v22  ;;  %v3578_v22 = vld [vmem:[#allocation6 + $0xa00] sm:$0xff] }
 0x30b   : > { %v3798_v56 = vld [vmem:[#allocation6 + $0x10e0] sm:$0xff] }
 0x30c   : > { %15244 = vmatmul.mubr.msk.bf16.vlgmr.msra.gmra.mrb[40].mxu1 %vm2952_vm3, %v16669_v62  ;;  %v14139_v50 = vcombine.high %v3794_v33, %v3798_v56  ;;  %v3690_v38 = vld [vmem:[#allocation6 + $0xd80] sm:$0xff] }
 0x30d   : > { %3111 = vmatpush1.bf16.msra.mxu1 %v16655_v49  ;;  %3142 = vmatprep.mubr.bf16.mxu1 %v16185_v0  ;;  %v3582_v49 = vld [vmem:[#allocation6 + $0xa20] sm:$0xff] }
 0x30e   : > { %13917 = vmatprep.subr.msk.bf16.mxu1 %vm2956_vm2, %v16658_v2  ;;  %v13923_v2 = vcombine.high %v3578_v22, %v3582_v49  ;;  %v3694_v35 = vld [vmem:[#allocation6 + $0xda0] sm:$0xff] }
 0x30f   : > { %v3802_v39 = vld [vmem:[#allocation6 + $0x1100] sm:$0xff]  ;;  %v14035_v52 = vcombine.high %v3690_v38, %v3694_v35 }
 0x310   : > { %v3814_v51 = vld [vmem:[#allocation6 + $0x1160] sm:$0xff] }
 0x311   : > { %3113 = vmatpush1.bf16.msra.mxu1 %v16664_v10  ;;  %v13922_v10 = vcombine.low %v3578_v22, %v3582_v49  ;;  %v3770_v22 = vld [vmem:[#allocation6 + $0x1000] sm:$0xff] }
 0x312   : > { %3153 = vmatprep.subr.bf16.mxu1 %v2938_v30  ;;  %v3646_v30 = vld [vmem:[#allocation6 + $0xc20] sm:$0xff] }
 0x313   : > { %v13987_v54 = vcombine.high %v3642_v45, %v3646_v30  ;;  %v13986_v1 = vcombine.low %v3642_v45, %v3646_v30  ;;  %v3698_v30 = vld [vmem:[#allocation6 + $0xdc0] sm:$0xff] }
 0x314   : > { %13918 = vmatmul.mubr.msk.bf16.vlgmr.msra.gmra.mrb[44].mxu1 %vm2952_vm3, %v15790_v55 }
 0x315   : > { %3154 = vmatpush1.bf16.msra.mxu1 %v16632_v31  ;;  %3185 = vmatprep.mubr.bf16.mxu1 %v16185_v0  ;;  %v3590_v31 = vld [vmem:[#allocation6 + $0xa60] sm:$0xff] }
 0x316   : > { %13919 = vmatprep.subr.msk.bf16.mxu1 %vm2956_vm2, %v2943_v57  ;;  %v13931_v62 = vcombine.high %v3586_v9, %v3590_v31  ;;  %v13930_v14 = vcombine.low %v3586_v9, %v3590_v31  ;;  %v13994_v57 = vcombine.low %v3650_v59, %v3654_v3  ;;  %v3774_v9 = vld [vmem:[#allocation6 + $0x1020] sm:$0xff] }
 0x317   : > { %v14114_v31 = vcombine.low %v3770_v22, %v3774_v9  ;;  %v16720_v59 = vld [vmem:[#allocation6 + $0x1200] sm:$0xff] }
 0x319   : > { %3156 = vmatpush1.bf16.msra.mxu1 %v2964_v34  ;;  %v14106_v34 = vcombine.low %v3762_v63, %v3766_v4  ;;  %v16722_v63 = vld [vmem:[#allocation6 + $0x1220] sm:$0xff] }
 0x31a   : > { %15247 = vmatprep.subr.bf16.mxu1 %v16186_v8  ;;  %v14178_v4 = vcombine.low %v16720_v59, %v16722_v63 }
 0x31c   : > { %13920 = vmatmul.mubr.msk.bf16.vlgmr.msra.gmra.mrb[48].mxu1 %vm2952_vm3, %v15790_v55 }
 0x31d   : > { %15248 = vmatpush3.bf16.msra.mxu1 %v2939_v44  ;;  %15251 = vmatprep.mubr.msk.bf16.mxu1 %vm16187_vm4, %v16186_v8  ;;  %v14091_v44 = vcombine.high %v3746_v61, %v3750_v41  ;;  %v3806_v61 = vld [vmem:[#allocation6 + $0x1120] sm:$0xff] }
 0x31e   : > { %15249 = vmatprep.subr.bf16.mxu1 %v16186_v8  ;;  %v14146_v41 = vcombine.low %v3802_v39, %v3806_v61  ;;  %v14147_v45 = vcombine.high %v3802_v39, %v3806_v61 }
 0x31f   : > { %5589 = vmatprep.subr.bf16.mxu0 %v14091_v44  ;;  %v3810_v44 = vld [vmem:[#allocation6 + $0x1140] sm:$0xff] }
 0x320   : > { %5590 = vmatpush1.bf16.msra.mxu0 %v14090_v53 }
 0x321   : > { %15250 = vmatpush3.bf16.msra.mxu1 %v2970_v42  ;;  %5591 = vmatprep.subr.bf16.mxu0 %v14099_v60  ;;  %v3658_v42 = vld [vmem:[#allocation6 + $0xc80] sm:$0xff]  ;;  %v14155_v60 = vcombine.high %v3810_v44, %v3814_v51 }
 0x322   : > { %5538 = vmatprep.subr.bf16.mxu1 %v13923_v2 }
 0x324   : > { %15252 = vmatmul.mubr.msk.bf16.vlgmr.msra.gmra.mrb[52].mxu1 %vm2952_vm3, %v15790_v55  ;;  %5592 = vmatpush1.bf16.msra.mxu0 %v14098_v47  ;;  %v3662_v55 = vld [vmem:[#allocation6 + $0xca0] sm:$0xff] }
 0x325   : > { %5539 = vmatpush1.bf16.msra.mxu1 %v13922_v10  ;;  %5593 = vmatprep.subr.bf16.mxu0 %v14107_v58  ;;  %v14002_v49 = vcombine.low %v3658_v42, %v3662_v55  ;;  %v14003_v2 = vcombine.high %v3658_v42, %v3662_v55  ;;  %v14115_v10 = vcombine.high %v3770_v22, %v3774_v9  ;;  %v3822_v47 = vld [vmem:[#allocation6 + $0x11a0] sm:$0xff]  ;;  %v16728_v22 = vld [vmem:[#allocation6 + $0xe08] sm:$0xff] }
 0x326   : > { %5540 = vmatprep.subr.bf16.mxu1 %v13931_v62  ;;  %v3666_v62 = vld [vmem:[#allocation6 + $0xcc0] sm:$0xff] }
 0x327   : > { %v14010_v16 = vcombine.low %v3666_v62, %v3670_v12  ;;  %v3830_v58 = vld [vmem:[#allocation6 + $0x11e0] sm:$0xff] }
 0x328   : > { %5594 = vmatpush1.bf16.msra.mxu0 %v14106_v34  ;;  %v3826_v34 = vld [vmem:[#allocation6 + $0x11c0] sm:$0xff] }
 0x329   : > { %5541 = vmatpush1.bf16.msra.mxu1 %v13930_v14  ;;  %5595 = vmatprep.subr.bf16.mxu0 %v14115_v10  ;;  %v14011_v14 = vcombine.high %v3666_v62, %v3670_v12  ;;  %v14171_v42 = vcombine.high %v3826_v34, %v3830_v58  ;;  %v14170_v55 = vcombine.low %v3826_v34, %v3830_v58 }
 0x32a   : > { %5542 = vmatprep.subr.bf16.mxu1 %v13939_v15  ;;  %v3782_v15 = vld [vmem:[#allocation6 + $0x1060] sm:$0xff] }
 0x32b   : > { %v14122_v17 = vcombine.low %v3778_v13, %v3782_v15 }
 0x32c   : > { %5596 = vmatpush1.bf16.msra.mxu0 %v14114_v31 }
 0x32d   : > { %5543 = vmatpush1.bf16.msra.mxu1 %v13938_v18  ;;  %v14123_v18 = vcombine.high %v3778_v13, %v3782_v15 }
 0x32e   : > { %5544 = vmatprep.subr.bf16.mxu1 %v13947_v19  ;;  %v3674_v19 = vld [vmem:[#allocation6 + $0xd00] sm:$0xff] }
 0x32f   : > { %5597 = vmatprep.subr.bf16.mxu0 %v14123_v18 }
 0x330   : > { %5598 = vmatpush1.bf16.msra.mxu0 %v14122_v17 }
 0x331   : > { %5545 = vmatpush1.bf16.msra.mxu1 %v13946_v5  ;;  %v14018_v5 = vcombine.low %v3674_v19, %v3678_v20 }
 0x332   : > { %5546 = vmatprep.subr.bf16.mxu1 %v13955_v23  ;;  %v14019_v23 = vcombine.high %v3674_v19, %v3678_v20 }
 0x335   : > { %5547 = vmatpush1.bf16.msra.mxu1 %v13954_v29  ;;  %v14131_v29 = vcombine.high %v3786_v21, %v3790_v26 }
 0x336   : > { %5548 = vmatprep.subr.bf16.mxu1 %v13963_v32  ;;  %v3682_v32 = vld [vmem:[#allocation6 + $0xd40] sm:$0xff] }
 0x337   : > { %5599 = vmatprep.subr.bf16.mxu0 %v14131_v29 }
 0x338   : > { %5600 = vmatpush1.bf16.msra.mxu0 %v14130_v27 }
 0x339   : > { %5549 = vmatpush1.bf16.msra.mxu1 %v13962_v25  ;;  %v3686_v25 = vld [vmem:[#allocation6 + $0xd60] sm:$0xff]  ;;  %5601 = vmatprep.subr.bf16.mxu0 %v14139_v50 }
 0x33a   : > { %5550 = vmatprep.subr.bf16.mxu1 %v13971_v37  ;;  %v14027_v40 = vcombine.high %v3682_v32, %v3686_v25  ;;  %v14138_v37 = vcombine.low %v3794_v33, %v3798_v56 }
 0x33c   : > { %5602 = vmatpush1.bf16.msra.mxu0 %v14138_v37 }
 0x33d   : > { %5551 = vmatpush1.bf16.msra.mxu1 %v13970_v7  ;;  %v14026_v7 = vcombine.low %v3682_v32, %v3686_v25  ;;  %5603 = vmatprep.subr.bf16.mxu0 %v14147_v45  ;;  %v3846_v45 = vld [vmem:[#allocation6 + $0x1260] sm:$0xff] }
 0x33e   : > { %5552 = vmatprep.subr.bf16.mxu1 %v13979_v43  ;;  %v14034_v43 = vcombine.low %v3690_v38, %v3694_v35 }
 0x340   : > { %5604 = vmatpush1.bf16.msra.mxu0 %v14146_v41  ;;  %v3842_v41 = vld [vmem:[#allocation6 + $0x1240] sm:$0xff] }
 0x341   : > { %5553 = vmatpush1.bf16.msra.mxu1 %v13978_v46  ;;  %v3702_v46 = vld [vmem:[#allocation6 + $0xde0] sm:$0xff]  ;;  %5605 = vmatprep.subr.bf16.mxu0 %v14155_v60  ;;  %v14187_v60 = vcombine.high %v3842_v41, %v3846_v45  ;;  %v14186_v58 = vcombine.low %v3842_v41, %v3846_v45 }
 0x342   : > { %5554 = vmatprep.subr.bf16.mxu1 %v13987_v54  ;;  %v14043_v48 = vcombine.high %v3698_v30, %v3702_v46  ;;  %v14042_v53 = vcombine.low %v3698_v30, %v3702_v46  ;;  %v14154_v54 = vcombine.low %v3810_v44, %v3814_v51 }
 0x344   : > { %5606 = vmatpush1.bf16.msra.mxu0 %v14154_v54 }
 0x345   : > { %5555 = vmatpush1.bf16.msra.mxu1 %v13986_v1  ;;  %v3818_v1 = vld [vmem:[#allocation6 + $0x1180] sm:$0xff] }
 0x346   : > { %5556 = vmatprep.subr.bf16.mxu1 %v13995_v24  ;;  %v14163_v3 = vcombine.high %v3818_v1, %v3822_v47  ;;  %v14162_v24 = vcombine.low %v3818_v1, %v3822_v47  ;;  %v3850_v47 = vld [vmem:[#allocation6 + $0x1280] sm:$0xff] }
 0x348   : > { %5607 = vmatprep.subr.bf16.mxu0 %v14163_v3  ;;  %v3854_v3 = vld [vmem:[#allocation6 + $0x12a0] sm:$0xff] }
 0x349   : > { %5557 = vmatpush1.bf16.msra.mxu1 %v13994_v57  ;;  %v14179_v57 = vcombine.high %v16720_v59, %v16722_v63  ;;  %5608 = vmatpush1.bf16.msra.mxu0 %v14162_v24  ;;  %v3715_v63 = vld [vmem:[#allocation6 + $0xe48] sm:$0xff] }
 0x34a   : > { %5558 = vmatprep.subr.bf16.mxu1 %v14003_v2  ;;  %5609 = vmatprep.subr.bf16.mxu0 %v14171_v42 }
 0x34d   : > { %5559 = vmatpush1.bf16.msra.mxu1 %v14002_v49  ;;  %5610 = vmatpush1.bf16.msra.mxu0 %v14170_v55  ;;  %v16730_v49 = vld [vmem:[#allocation6 + $0xe28] sm:$0xff] }
 0x34e   : > { %5560 = vmatprep.subr.bf16.mxu1 %v14011_v14  ;;  %v14052_v2 = vcombine.low %v16728_v22, %v16730_v49  ;;  %v14053_v9 = vcombine.high %v16728_v22, %v16730_v49 }
 0x350   : > { %5702 = vmatprep.subr.bf16.mxu0 %v14053_v9 }
 0x351   : > { %5561 = vmatpush1.bf16.msra.mxu1 %v14010_v16 }
 0x352   : > { %5562 = vmatprep.subr.bf16.mxu1 %v14019_v23 }
 0x355   : > { %5563 = vmatpush1.bf16.msra.mxu1 %v14018_v5 }
 0x356   : > { %5564 = vmatprep.subr.bf16.mxu1 %v14027_v40 }
 0x359   : > { %5565 = vmatpush1.bf16.msra.mxu1 %v14026_v7 }
 0x35a   : > { %5566 = vmatprep.subr.bf16.mxu1 %v14035_v52 }
 0x35d   : > { %5567 = vmatpush1.bf16.msra.mxu1 %v14034_v43 }
 0x35e   : > { %5568 = vmatprep.subr.bf16.mxu1 %v14043_v48 }
 0x361   : > { %5569 = vmatpush1.bf16.msra.mxu1 %v14042_v53 }
 0x362   : > { %5620 = vmatprep.subr.bf16.mxu1 %v14179_v57 }
 0x3b8   : > { %v3006_v31 = vpop.f32.mrb[32].mxu1 }
 0x3b9   : > { %v3008_v10 = vpop.f32.mrb[33].mxu1 }
 0x3ba   : > { %v3010_v62 = vpop.f32.mrb[34].mxu1 }
 0x3bb   : > { %v3012_v12 = vpop.f32.mrb[35].mxu1 }
 0x3d7   : > { %v3049_v13 = vpop.f32.mrb[36].mxu1 }
 0x3d8   : > { %v3051_v14 = vpop.f32.mrb[37].mxu1 }
 0x3d9   : > { %v3053_v15 = vpop.f32.mrb[38].mxu1 }
 0x3da   : > { %v3055_v16 = vpop.f32.mrb[39].mxu1 }
 0x3df   : > { %v3092_v17 = vpop.f32.mrb[40].mxu1 }
 0x3e0   : > { %v15245_v18 = vpop.f32.mrb[41].mxu1 }
 0x3e1   : > { %v16736_v19 = vpop.f32.mrb[42].mxu1 }
 0x3e2   : > { %v15246_v20 = vpop.f32.mrb[43].mxu1 }
 0x3e7   : > { %v3144_v21 = vpop.f32.mrb[44].mxu1 }
 0x3e8   : > { %v16738_v5 = vmax.f32 %v3006_v31, %v3144_v21  ;;  %v3146_v23 = vpop.f32.mrb[45].mxu1  ;;  %v14195_v31 = vcombine.high %v3850_v47, %v3854_v3 }
 0x3e9   : > { %v16740_v26 = vmax.f32 %v3008_v10, %v3146_v23  ;;  %v3148_v27 = vpop.f32.mrb[46].mxu1 }
 0x3ea   : > { %v3242_v29 = vmax.f32 %v3010_v62, %v3148_v27  ;;  %v3150_v32 = vpop.f32.mrb[47].mxu1  ;;  %v3866_v27 = vld [vmem:[#allocation6 + $0x1300] sm:$0xff] }
 0x3eb   : > { %v3243_v25 = vmax.f32 %v3012_v12, %v3150_v32  ;;  %v3870_v32 = vld [vmem:[#allocation6 + $0x1320] sm:$0xff] }
 0x3ec   : > { %v16743_v33 = vpack.c.bf16 %v3242_v29, %v16738_v5  ;;  %v14210_v41 = vcombine.low %v3866_v27, %v3870_v32 }
 0x3ed   : > { %v16746_v40 = vpack.c.bf16 %v3243_v25, %v16740_v26  ;;  %v3727_v25 = vld [vmem:[#allocation6 + $0xea8] sm:$0xff] }
 0x3ee   : > { %v3901_v56 = vshll.u32 %v16743_v33, 16  ;;  %v3899_v30 = vshrl.u32 %v16743_v33, 16 }
 0x3ef   : > { %v3908_v7 = vshll.u32 %v16746_v40, 16  ;;  %v3187_v37 = vpop.f32.mrb[48].mxu1  ;;  %v3906_v39 = vshrl.u32 %v16746_v40, 16 }
 0x3f0   : > { %v3903_v50 = vrot.slane %v3901_v56, 1  ;;  %v16750_v38 = vmax.f32 %v3049_v13, %v3187_v37  ;;  %v3189_v35 = vpop.f32.mrb[49].mxu1  ;;  %v3858_v13 = vld [vmem:[#allocation6 + $0x12c0] sm:$0xff]  ;;  %v14211_v37 = vcombine.high %v3866_v27, %v3870_v32  ;;  %v3591_v27 = vld [vmem:[#allocation6 + $0xa68] sm:$0xff] }
 0x3f1   : > { %v3910_v52 = vrot.slane %v3908_v7, 1  ;;  %v16753_v61 = vmax.f32 %v3051_v14, %v3189_v35  ;;  %v3191_v43 = vpop.f32.mrb[50].mxu1  ;;  %v3862_v14 = vld [vmem:[#allocation6 + $0x12e0] sm:$0xff]  ;;  %v3763_v32 = vld [vmem:[#allocation6 + $0xfc8] sm:$0xff] }
 0x3f2   : > { %v3244_v46 = vmax.f32 %v3053_v15, %v3191_v43  ;;  %v3193_v44 = vpop.f32.mrb[51].mxu1  ;;  %v16761_v54 = vor.u32 %v3903_v50, %v3899_v30  ;;  %v14203_v23 = vcombine.high %v3858_v13, %v3862_v14  ;;  %v14202_v56 = vcombine.low %v3858_v13, %v3862_v14  ;;  %v3874_v35 = vld [vmem:[#allocation6 + $0x1340] sm:$0xff]  ;;  %v3735_v43 = vld [vmem:[#allocation6 + $0xee8] sm:$0xff] }
 0x3f3   : > { %v3245_v48 = vmax.f32 %v3055_v16, %v3193_v44  ;;  %v16756_v51 = vor.u32 %v3910_v52, %v3906_v39  ;;  %v3878_v39 = vld [vmem:[#allocation6 + $0x1360] sm:$0xff]  ;;  %v3731_v52 = vld [vmem:[#allocation6 + $0xec8] sm:$0xff] }
 0x3f4   : > { %v16759_v53 = vpack.c.bf16 %v3244_v46, %v16750_v38  ;;  %v14219_v22 = vcombine.high %v3874_v35, %v3878_v39  ;;  %v14077_v49 = vcombine.high %v3731_v52, %v3735_v43  ;;  %v3886_v30 = vld [vmem:[#allocation6 + $0x13a0] sm:$0xff]  ;;  %v3739_v46 = vld [vmem:[#allocation6 + $0xf08] sm:$0xff] }
 0x3f5   : > { %v16764_v1 = vpack.c.bf16 %v3245_v48, %v16753_v61  ;;  %5570 = vmatprep.mubr.bf16.mxu1 %v16756_v51  ;;  %v3743_v44 = vld [vmem:[#allocation6 + $0xf28] sm:$0xff]  ;;  %v14218_v48 = vcombine.low %v3874_v35, %v3878_v39 }
 0x3f6   : > { %v3915_v24 = vshll.u32 %v16759_v53, 16  ;;  %5571 = vmatmul.mubr.bf16.vlgmr.msra.gmra.mrb[56].mxu1 %v16761_v54  ;;  %v3913_v15 = vshrl.u32 %v16759_v53, 16  ;;  %v3583_v13 = vld [vmem:[#allocation6 + $0xa28] sm:$0xff] }
 0x3f7   : > { %v3922_v57 = vshll.u32 %v16764_v1, 16  ;;  %5621 = vmatpush1.bf16.msra.mxu1 %v14178_v4  ;;  %v3230_v34 = vpop.f32.mrb[52].mxu1  ;;  %5652 = vmatprep.mubr.bf16.mxu1 %v16185_v0  ;;  %v3920_v10 = vshrl.u32 %v16764_v1, 16  ;;  %v3719_v4 = vld [vmem:[#allocation6 + $0xe68] sm:$0xff] }
 0x3f8   : > { %v3917_v42 = vrot.slane %v3915_v24, 1  ;;  %v16774_v55 = vmax.f32 %v3092_v17, %v3230_v34  ;;  %v15253_v9 = vpop.f32.mrb[53].mxu1  ;;  %5622 = vmatprep.subr.bf16.mxu1 %v14187_v60  ;;  %v14194_v17 = vcombine.low %v3850_v47, %v3854_v3  ;;  %v14061_v29 = vcombine.high %v3715_v63, %v3719_v4  ;;  %v3890_v24 = vld [vmem:[#allocation6 + $0x13c0] sm:$0xff]  ;;  %v3747_v34 = vld [vmem:[#allocation6 + $0xf48] sm:$0xff] }
 0x3f9   : > { %v3924_v62 = vrot.slane %v3922_v57, 1  ;;  %v3233_v12 = vpop.f32.mrb[54].mxu1  ;;  %v14060_v7 = vcombine.low %v3715_v63, %v3719_v4  ;;  %v14076_v60 = vcombine.low %v3731_v52, %v3735_v43  ;;  %v14085_v3 = vcombine.high %v3739_v46, %v3743_v44  ;;  %v3894_v57 = vld [vmem:[#allocation6 + $0x13e0] sm:$0xff]  ;;  %v3755_v14 = vld [vmem:[#allocation6 + $0xf88] sm:$0xff] }
 0x3fa   : > { %v3246_v59 = vmax.f32 %v16736_v19, %v3233_v12  ;;  %v15254_v16 = vpop.f32.mrb[55].mxu1  ;;  %v16781_v20 = vor.u32 %v3917_v42, %v3913_v15  ;;  %v3723_v19 = vld [vmem:[#allocation6 + $0xe88] sm:$0xff]  ;;  %v14084_v9 = vcombine.low %v3739_v46, %v3743_v44 }
 0x3fb   : > { %5623 = vmatpush1.bf16.msra.mxu1 %v14186_v58  ;;  %v16779_v18 = vor.u32 %v3924_v62, %v3920_v10  ;;  %v14069_v50 = vcombine.high %v3723_v19, %v3727_v25  ;;  %v14068_v45 = vcombine.low %v3723_v19, %v3727_v25  ;;  %v3751_v58 = vld [vmem:[#allocation6 + $0xf68] sm:$0xff]  ;;  %v14235_v10 = vcombine.high %v3890_v24, %v3894_v57 }
 0x3fc   : > { %v16784_v21 = vpack.c.bf16 %v3246_v59, %v16774_v55  ;;  %5624 = vmatprep.subr.bf16.mxu1 %v14195_v31  ;;  %v14093_v62 = vcombine.high %v3747_v34, %v3751_v58  ;;  %v3579_v12 = vld [vmem:[#allocation6 + $0xa08] sm:$0xff]  ;;  %v14234_v59 = vcombine.low %v3890_v24, %v3894_v57  ;;  %v14092_v63 = vcombine.low %v3747_v34, %v3751_v58 }
 0x3fd   : > { %5611 = vmatprep.mubr.bf16.mxu0 %v16779_v18  ;;  %v3759_v15 = vld [vmem:[#allocation6 + $0xfa8] sm:$0xff]  ;;  %v13925_v16 = vcombine.high %v3579_v12, %v3583_v13  ;;  %v13924_v25 = vcombine.low %v3579_v12, %v3583_v13 }
 0x3fe   : > { %5612 = vmatmul.mubr.bf16.vlgmr.msra.gmra.mrb[48].mxu0 %v16781_v20  ;;  %v3929_v31 = vshll.u32 %v16784_v21, 16  ;;  %v3767_v19 = vld [vmem:[#allocation6 + $0xfe8] sm:$0xff] }
 0x3ff   : > { %5625 = vmatpush1.bf16.msra.mxu1 %v14194_v17  ;;  %5703 = vmatpush1.bf16.msra.mxu0 %v14052_v2  ;;  %v3882_v2 = vld [vmem:[#allocation6 + $0x1380] sm:$0xff]  ;;  %v14101_v17 = vcombine.high %v3755_v14, %v3759_v15  ;;  %v3595_v35 = vld [vmem:[#allocation6 + $0xa88] sm:$0xff] }
 0x400   : > { %5734 = vmatprep.mubr.bf16.mxu0 %v16779_v18  ;;  %5626 = vmatprep.subr.bf16.mxu1 %v14203_v23  ;;  %v14227_v47 = vcombine.high %v3882_v2, %v3886_v30  ;;  %v14226_v42 = vcombine.low %v3882_v2, %v3886_v30  ;;  %v3931_v4 = vrot.slane %v3929_v31, 1  ;;  %v3587_v23 = vld [vmem:[#allocation6 + $0xa48] sm:$0xff] }
 0x401   : > { %5704 = vmatprep.subr.bf16.mxu0 %v14061_v29  ;;  %v3927_v29 = vshrl.u32 %v16784_v21, 16  ;;  %v3599_v39 = vld [vmem:[#allocation6 + $0xaa8] sm:$0xff] }
 0x402   : > { %v3771_v52 = vld [vmem:[#allocation6 + $0x1008] sm:$0xff] }
 0x403   : > { %5627 = vmatpush1.bf16.msra.mxu1 %v14202_v56  ;;  %5705 = vmatpush1.bf16.msra.mxu0 %v14060_v7  ;;  %v16794_v56 = vor.u32 %v3931_v4, %v3927_v29  ;;  %v14100_v7 = vcombine.low %v3755_v14, %v3759_v15  ;;  %v3775_v43 = vld [vmem:[#allocation6 + $0x1028] sm:$0xff] }
 0x404   : > { %5628 = vmatprep.subr.bf16.mxu1 %v14211_v37  ;;  %5706 = vmatprep.subr.bf16.mxu0 %v14069_v50  ;;  %v13933_v37 = vcombine.high %v3587_v23, %v3591_v27  ;;  %v14109_v50 = vcombine.high %v3763_v32, %v3767_v19  ;;  %v3603_v2 = vld [vmem:[#allocation6 + $0xac8] sm:$0xff] }
 0x405   : > { %v3607_v30 = vld [vmem:[#allocation6 + $0xae8] sm:$0xff] }
 0x406   : > { %v3779_v46 = vld [vmem:[#allocation6 + $0x1048] sm:$0xff] }
 0x407   : > { %5629 = vmatpush1.bf16.msra.mxu1 %v14210_v41  ;;  %5707 = vmatpush1.bf16.msra.mxu0 %v14068_v45  ;;  %v13932_v41 = vcombine.low %v3587_v23, %v3591_v27  ;;  %v14108_v45 = vcombine.low %v3763_v32, %v3767_v19  ;;  %v3783_v44 = vld [vmem:[#allocation6 + $0x1068] sm:$0xff] }
 0x408   : > { %5630 = vmatprep.subr.bf16.mxu1 %v14219_v22  ;;  %5708 = vmatprep.subr.bf16.mxu0 %v14077_v49  ;;  %v13941_v22 = vcombine.high %v3595_v35, %v3599_v39  ;;  %v14117_v49 = vcombine.high %v3771_v52, %v3775_v43  ;;  %v3611_v24 = vld [vmem:[#allocation6 + $0xb08] sm:$0xff] }
 0x409   : > { %v3615_v57 = vld [vmem:[#allocation6 + $0xb28] sm:$0xff] }
 0x40a   : > { %v3787_v34 = vld [vmem:[#allocation6 + $0x1088] sm:$0xff]  ;;  %v13957_v31 = vcombine.high %v3611_v24, %v3615_v57  ;;  %v13956_v15 = vcombine.low %v3611_v24, %v3615_v57 }
 0x40b   : > { %5631 = vmatpush1.bf16.msra.mxu1 %v14218_v48  ;;  %5709 = vmatpush1.bf16.msra.mxu0 %v14076_v60  ;;  %v13940_v48 = vcombine.low %v3595_v35, %v3599_v39  ;;  %v14116_v60 = vcombine.low %v3771_v52, %v3775_v43  ;;  %v3791_v58 = vld [vmem:[#allocation6 + $0x10a8] sm:$0xff] }
 0x40c   : > { %5632 = vmatprep.subr.bf16.mxu1 %v14227_v47  ;;  %5710 = vmatprep.subr.bf16.mxu0 %v14085_v3  ;;  %v13949_v47 = vcombine.high %v3603_v2, %v3607_v30  ;;  %v14125_v3 = vcombine.high %v3779_v46, %v3783_v44  ;;  %v3623_v12 = vld [vmem:[#allocation6 + $0xb68] sm:$0xff] }
 0x40d   : > { %v3795_v13 = vld [vmem:[#allocation6 + $0x10c8] sm:$0xff] }
 0x40e   : > { %v3799_v14 = vld [vmem:[#allocation6 + $0x10e8] sm:$0xff] }
 0x40f   : > { %5633 = vmatpush1.bf16.msra.mxu1 %v14226_v42  ;;  %5711 = vmatpush1.bf16.msra.mxu0 %v14084_v9  ;;  %v13948_v42 = vcombine.low %v3603_v2, %v3607_v30  ;;  %v14124_v9 = vcombine.low %v3779_v46, %v3783_v44  ;;  %v14141_v4 = vcombine.high %v3795_v13, %v3799_v14  ;;  %v3803_v23 = vld [vmem:[#allocation6 + $0x1108] sm:$0xff] }
 0x410   : > { %5634 = vmatprep.subr.bf16.mxu1 %v14235_v10  ;;  %5712 = vmatprep.subr.bf16.mxu0 %v14093_v62  ;;  %v14133_v10 = vcombine.high %v3787_v34, %v3791_v58  ;;  %v3619_v62 = vld [vmem:[#allocation6 + $0xb48] sm:$0xff]  ;;  %v14140_v32 = vcombine.low %v3795_v13, %v3799_v14 }
 0x411   : > { %v3807_v27 = vld [vmem:[#allocation6 + $0x1128] sm:$0xff]  ;;  %v13964_v29 = vcombine.low %v3619_v62, %v3623_v12 }
 0x412   : > { %v3815_v35 = vld [vmem:[#allocation6 + $0x1168] sm:$0xff]  ;;  %v14148_v52 = vcombine.low %v3803_v23, %v3807_v27 }
 0x413   : > { %5635 = vmatpush1.bf16.msra.mxu1 %v14234_v59  ;;  %5713 = vmatpush1.bf16.msra.mxu0 %v14092_v63  ;;  %v14132_v59 = vcombine.low %v3787_v34, %v3791_v58  ;;  %v13965_v63 = vcombine.high %v3619_v62, %v3623_v12  ;;  %v3823_v2 = vld [vmem:[#allocation6 + $0x11a8] sm:$0xff]  ;;  %v3584_v62 = vld [vmem:[#allocation6 + $0xa30] sm:$0xff] }
 0x414   : > { %5661 = vmatprep.subr.bf16.mxu1 %v13925_v16  ;;  %5714 = vmatprep.subr.bf16.mxu0 %v14101_v17  ;;  %v3627_v16 = vld [vmem:[#allocation6 + $0xb88] sm:$0xff] }
 0x415   : > { %v3631_v17 = vld [vmem:[#allocation6 + $0xba8] sm:$0xff] }
 0x416   : > { %5653 = vmatmul.mubr.bf16.vlgmr.msra.gmra.mrb[60].mxu1 %v16794_v56  ;;  %v13973_v19 = vcombine.high %v3627_v16, %v3631_v17  ;;  %v13972_v39 = vcombine.low %v3627_v16, %v3631_v17  ;;  %v3831_v24 = vld [vmem:[#allocation6 + $0x11e8] sm:$0xff]  ;;  %v3592_v16 = vld [vmem:[#allocation6 + $0xa70] sm:$0xff] }
 0x417   : > { %5662 = vmatpush1.bf16.msra.mxu1 %v13924_v25  ;;  %5693 = vmatprep.mubr.bf16.mxu1 %v16756_v51  ;;  %v14149_v25 = vcombine.high %v3803_v23, %v3807_v27 }
 0x418   : > { %5715 = vmatpush1.bf16.msra.mxu0 %v14100_v7  ;;  %5663 = vmatprep.subr.bf16.mxu1 %v13933_v37  ;;  %v3635_v7 = vld [vmem:[#allocation6 + $0xbc8] sm:$0xff] }
 0x419   : > { %5716 = vmatprep.subr.bf16.mxu0 %v14109_v50  ;;  %v3639_v37 = vld [vmem:[#allocation6 + $0xbe8] sm:$0xff] }
 0x41a   : > { %v3811_v50 = vld [vmem:[#allocation6 + $0x1148] sm:$0xff]  ;;  %v13981_v43 = vcombine.high %v3635_v7, %v3639_v37  ;;  %v13980_v30 = vcombine.low %v3635_v7, %v3639_v37  ;;  %v3600_v7 = vld [vmem:[#allocation6 + $0xab0] sm:$0xff] }
 0x41b   : > { %5664 = vmatpush1.bf16.msra.mxu1 %v13932_v41  ;;  %v14157_v41 = vcombine.high %v3811_v50, %v3815_v35  ;;  %v14156_v46 = vcombine.low %v3811_v50, %v3815_v35 }
 0x41c   : > { %5717 = vmatpush1.bf16.msra.mxu0 %v14108_v45  ;;  %5665 = vmatprep.subr.bf16.mxu1 %v13941_v22  ;;  %v3643_v45 = vld [vmem:[#allocation6 + $0xc08] sm:$0xff] }
 0x41d   : > { %5718 = vmatprep.subr.bf16.mxu0 %v14117_v49  ;;  %v3647_v22 = vld [vmem:[#allocation6 + $0xc28] sm:$0xff] }
 0x41e   : > { %v3819_v49 = vld [vmem:[#allocation6 + $0x1188] sm:$0xff]  ;;  %v13989_v44 = vcombine.high %v3643_v45, %v3647_v22  ;;  %v13988_v57 = vcombine.low %v3643_v45, %v3647_v22  ;;  %v3608_v45 = vld [vmem:[#allocation6 + $0xaf0] sm:$0xff] }
 0x41f   : > { %5666 = vmatpush1.bf16.msra.mxu1 %v13940_v48  ;;  %v14165_v48 = vcombine.high %v3819_v49, %v3823_v2  ;;  %v14164_v34 = vcombine.low %v3819_v49, %v3823_v2 }
 0x420   : > { %5719 = vmatpush1.bf16.msra.mxu0 %v14116_v60  ;;  %5667 = vmatprep.subr.bf16.mxu1 %v13949_v47  ;;  %v3651_v60 = vld [vmem:[#allocation6 + $0xc48] sm:$0xff] }
 0x421   : > { %5720 = vmatprep.subr.bf16.mxu0 %v14125_v3  ;;  %v3655_v47 = vld [vmem:[#allocation6 + $0xc68] sm:$0xff] }
 0x422   : > { %v3827_v3 = vld [vmem:[#allocation6 + $0x11c8] sm:$0xff]  ;;  %v13997_v58 = vcombine.high %v3651_v60, %v3655_v47  ;;  %v13996_v12 = vcombine.low %v3651_v60, %v3655_v47  ;;  %v3616_v60 = vld [vmem:[#allocation6 + $0xb30] sm:$0xff] }
 0x423   : > { %5668 = vmatpush1.bf16.msra.mxu1 %v13948_v42  ;;  %v14173_v42 = vcombine.high %v3827_v3, %v3831_v24  ;;  %v14172_v13 = vcombine.low %v3827_v3, %v3831_v24 }
 0x424   : > { %5721 = vmatpush1.bf16.msra.mxu0 %v14124_v9  ;;  %5669 = vmatprep.subr.bf16.mxu1 %v13957_v31  ;;  %v3659_v9 = vld [vmem:[#allocation6 + $0xc88] sm:$0xff] }
 0x425   : > { %5722 = vmatprep.subr.bf16.mxu0 %v14133_v10  ;;  %v3663_v31 = vld [vmem:[#allocation6 + $0xca8] sm:$0xff]  ;;  %v3580_v10 = vld [vmem:[#allocation6 + $0xa10] sm:$0xff] }
 0x426   : > { %v14005_v14 = vcombine.high %v3659_v9, %v3663_v31  ;;  %v14004_v17 = vcombine.low %v3659_v9, %v3663_v31  ;;  %v13926_v23 = vcombine.low %v3580_v10, %v3584_v62  ;;  %v3624_v9 = vld [vmem:[#allocation6 + $0xb70] sm:$0xff] }
 0x427   : > { %5670 = vmatpush1.bf16.msra.mxu1 %v13956_v15  ;;  %v13927_v15 = vcombine.high %v3580_v10, %v3584_v62 }
 0x428   : > { %5723 = vmatpush1.bf16.msra.mxu0 %v14132_v59  ;;  %5671 = vmatprep.subr.bf16.mxu1 %v13965_v63  ;;  %v3667_v59 = vld [vmem:[#allocation6 + $0xcc8] sm:$0xff] }
 0x429   : > { %5724 = vmatprep.subr.bf16.mxu0 %v14141_v4  ;;  %v3671_v63 = vld [vmem:[#allocation6 + $0xce8] sm:$0xff]  ;;  %v3588_v4 = vld [vmem:[#allocation6 + $0xa50] sm:$0xff] }
 0x42a   : > { %v14013_v27 = vcombine.high %v3667_v59, %v3671_v63  ;;  %v14012_v37 = vcombine.low %v3667_v59, %v3671_v63  ;;  %v13934_v50 = vcombine.low %v3588_v4, %v3592_v16  ;;  %v3632_v59 = vld [vmem:[#allocation6 + $0xbb0] sm:$0xff] }
 0x42b   : > { %5672 = vmatpush1.bf16.msra.mxu1 %v13964_v29  ;;  %v13935_v29 = vcombine.high %v3588_v4, %v3592_v16 }
 0x42c   : > { %5725 = vmatpush1.bf16.msra.mxu0 %v14140_v32  ;;  %5673 = vmatprep.subr.bf16.mxu1 %v13973_v19  ;;  %v3675_v32 = vld [vmem:[#allocation6 + $0xd08] sm:$0xff] }
 0x42d   : > { %5726 = vmatprep.subr.bf16.mxu0 %v14149_v25  ;;  %v3679_v19 = vld [vmem:[#allocation6 + $0xd28] sm:$0xff]  ;;  %v3596_v25 = vld [vmem:[#allocation6 + $0xa90] sm:$0xff] }
 0x42e   : > { %v14021_v35 = vcombine.high %v3675_v32, %v3679_v19  ;;  %v14020_v22 = vcombine.low %v3675_v32, %v3679_v19  ;;  %v13942_v49 = vcombine.low %v3596_v25, %v3600_v7  ;;  %v3640_v32 = vld [vmem:[#allocation6 + $0xbf0] sm:$0xff] }
 0x42f   : > { %5674 = vmatpush1.bf16.msra.mxu1 %v13972_v39  ;;  %v13943_v39 = vcombine.high %v3596_v25, %v3600_v7 }
 0x430   : > { %5727 = vmatpush1.bf16.msra.mxu0 %v14148_v52  ;;  %5675 = vmatprep.subr.bf16.mxu1 %v13981_v43  ;;  %v3683_v52 = vld [vmem:[#allocation6 + $0xd48] sm:$0xff] }
 0x431   : > { %5728 = vmatprep.subr.bf16.mxu0 %v14157_v41  ;;  %v3687_v43 = vld [vmem:[#allocation6 + $0xd68] sm:$0xff]  ;;  %v3604_v41 = vld [vmem:[#allocation6 + $0xad0] sm:$0xff] }
 0x432   : > { %v14029_v2 = vcombine.high %v3683_v52, %v3687_v43  ;;  %v14028_v47 = vcombine.low %v3683_v52, %v3687_v43  ;;  %v13950_v3 = vcombine.low %v3604_v41, %v3608_v45  ;;  %v3648_v52 = vld [vmem:[#allocation6 + $0xc30] sm:$0xff] }
 0x433   : > { %5676 = vmatpush1.bf16.msra.mxu1 %v13980_v30  ;;  %v13951_v30 = vcombine.high %v3604_v41, %v3608_v45 }
 0x434   : > { %5729 = vmatpush1.bf16.msra.mxu0 %v14156_v46  ;;  %5677 = vmatprep.subr.bf16.mxu1 %v13989_v44  ;;  %v3691_v46 = vld [vmem:[#allocation6 + $0xd88] sm:$0xff] }
 0x435   : > { %5730 = vmatprep.subr.bf16.mxu0 %v14165_v48  ;;  %v3695_v44 = vld [vmem:[#allocation6 + $0xda8] sm:$0xff]  ;;  %v3612_v48 = vld [vmem:[#allocation6 + $0xb10] sm:$0xff] }
 0x436   : > { %v14037_v24 = vcombine.high %v3691_v46, %v3695_v44  ;;  %v14036_v31 = vcombine.low %v3691_v46, %v3695_v44  ;;  %v13958_v10 = vcombine.low %v3612_v48, %v3616_v60  ;;  %v3656_v46 = vld [vmem:[#allocation6 + $0xc70] sm:$0xff] }
 0x437   : > { %5678 = vmatpush1.bf16.msra.mxu1 %v13988_v57  ;;  %v13959_v57 = vcombine.high %v3612_v48, %v3616_v60 }
 0x438   : > { %5731 = vmatpush1.bf16.msra.mxu0 %v14164_v34  ;;  %5679 = vmatprep.subr.bf16.mxu1 %v13997_v58  ;;  %v3699_v34 = vld [vmem:[#allocation6 + $0xdc8] sm:$0xff] }
 0x439   : > { %5732 = vmatprep.subr.bf16.mxu0 %v14173_v42  ;;  %v3703_v58 = vld [vmem:[#allocation6 + $0xde8] sm:$0xff]  ;;  %v3620_v42 = vld [vmem:[#allocation6 + $0xb50] sm:$0xff] }
 0x43a   : > { %v14045_v62 = vcombine.high %v3699_v34, %v3703_v58  ;;  %v14044_v63 = vcombine.low %v3699_v34, %v3703_v58  ;;  %v13966_v4 = vcombine.low %v3620_v42, %v3624_v9  ;;  %v3664_v34 = vld [vmem:[#allocation6 + $0xcb0] sm:$0xff] }
 0x43b   : > { %5680 = vmatpush1.bf16.msra.mxu1 %v13996_v12  ;;  %v13967_v12 = vcombine.high %v3620_v42, %v3624_v9 }
 0x43c   : > { %5733 = vmatpush1.bf16.msra.mxu0 %v14172_v13  ;;  %5681 = vmatprep.subr.bf16.mxu1 %v14005_v14  ;;  %v3835_v13 = vld [vmem:[#allocation6 + $0x1208] sm:$0xff] }
 0x43d   : > { %5784 = vmatprep.subr.bf16.mxu0 %v13927_v15  ;;  %v3839_v14 = vld [vmem:[#allocation6 + $0x1228] sm:$0xff]  ;;  %v3628_v15 = vld [vmem:[#allocation6 + $0xb90] sm:$0xff] }
 0x43e   : > { %v14181_v16 = vcombine.high %v3835_v13, %v3839_v14  ;;  %v14180_v19 = vcombine.low %v3835_v13, %v3839_v14  ;;  %v13974_v25 = vcombine.low %v3628_v15, %v3632_v59  ;;  %v3672_v13 = vld [vmem:[#allocation6 + $0xcf0] sm:$0xff] }
 0x43f   : > { %5735 = vmatmul.mubr.bf16.vlgmr.msra.gmra.mrb[52].mxu0 %v16781_v20  ;;  %5682 = vmatpush1.bf16.msra.mxu1 %v14004_v17  ;;  %v13975_v17 = vcombine.high %v3628_v15, %v3632_v59 }
 0x440   : > { %5785 = vmatpush1.bf16.msra.mxu0 %v13926_v23  ;;  %5816 = vmatprep.mubr.bf16.mxu0 %v16756_v51  ;;  %v3843_v23 = vld [vmem:[#allocation6 + $0x1248] sm:$0xff] }
 0x441   : > { %5683 = vmatprep.subr.bf16.mxu1 %v14013_v27  ;;  %5786 = vmatprep.subr.bf16.mxu0 %v13935_v29  ;;  %v3847_v27 = vld [vmem:[#allocation6 + $0x1268] sm:$0xff]  ;;  %v3636_v29 = vld [vmem:[#allocation6 + $0xbd0] sm:$0xff] }
 0x442   : > { %v14189_v7 = vcombine.high %v3843_v23, %v3847_v27  ;;  %v14188_v43 = vcombine.low %v3843_v23, %v3847_v27  ;;  %v13982_v41 = vcombine.low %v3636_v29, %v3640_v32  ;;  %v3680_v23 = vld [vmem:[#allocation6 + $0xd30] sm:$0xff] }
 0x443   : > { %5684 = vmatpush1.bf16.msra.mxu1 %v14012_v37  ;;  %v13983_v37 = vcombine.high %v3636_v29, %v3640_v32 }
 0x444   : > { %5787 = vmatpush1.bf16.msra.mxu0 %v13934_v50  ;;  %5685 = vmatprep.subr.bf16.mxu1 %v14021_v35  ;;  %v3851_v50 = vld [vmem:[#allocation6 + $0x1288] sm:$0xff] }
 0x445   : > { %5788 = vmatprep.subr.bf16.mxu0 %v13943_v39  ;;  %v3855_v35 = vld [vmem:[#allocation6 + $0x12a8] sm:$0xff]  ;;  %v3644_v39 = vld [vmem:[#allocation6 + $0xc10] sm:$0xff] }
 0x446   : > { %v14197_v45 = vcombine.high %v3851_v50, %v3855_v35  ;;  %v14196_v44 = vcombine.low %v3851_v50, %v3855_v35  ;;  %v13990_v48 = vcombine.low %v3644_v39, %v3648_v52  ;;  %v3688_v50 = vld [vmem:[#allocation6 + $0xd70] sm:$0xff] }
 0x447   : > { %5686 = vmatpush1.bf16.msra.mxu1 %v14020_v22  ;;  %v13991_v22 = vcombine.high %v3644_v39, %v3648_v52 }
 0x448   : > { %5789 = vmatpush1.bf16.msra.mxu0 %v13942_v49  ;;  %5687 = vmatprep.subr.bf16.mxu1 %v14029_v2  ;;  %v3859_v49 = vld [vmem:[#allocation6 + $0x12c8] sm:$0xff] }
 0x449   : > { %5790 = vmatprep.subr.bf16.mxu0 %v13951_v30  ;;  %v3863_v2 = vld [vmem:[#allocation6 + $0x12e8] sm:$0xff]  ;;  %v3652_v30 = vld [vmem:[#allocation6 + $0xc50] sm:$0xff] }
 0x44a   : > { %v14205_v60 = vcombine.high %v3859_v49, %v3863_v2  ;;  %v14204_v58 = vcombine.low %v3859_v49, %v3863_v2  ;;  %v13998_v42 = vcombine.low %v3652_v30, %v3656_v46  ;;  %v3696_v49 = vld [vmem:[#allocation6 + $0xdb0] sm:$0xff] }
 0x44b   : > { %5688 = vmatpush1.bf16.msra.mxu1 %v14028_v47  ;;  %v13999_v47 = vcombine.high %v3652_v30, %v3656_v46 }
 0x44c   : > { %5791 = vmatpush1.bf16.msra.mxu0 %v13950_v3  ;;  %5689 = vmatprep.subr.bf16.mxu1 %v14037_v24  ;;  %v3867_v3 = vld [vmem:[#allocation6 + $0x1308] sm:$0xff] }
 0x44d   : > { %5792 = vmatprep.subr.bf16.mxu0 %v13959_v57  ;;  %v3871_v24 = vld [vmem:[#allocation6 + $0x1328] sm:$0xff]  ;;  %v3660_v57 = vld [vmem:[#allocation6 + $0xc90] sm:$0xff] }
 0x44e   : > { %v14213_v9 = vcombine.high %v3867_v3, %v3871_v24  ;;  %v14212_v14 = vcombine.low %v3867_v3, %v3871_v24  ;;  %v14006_v15 = vcombine.low %v3660_v57, %v3664_v34  ;;  %v3704_v3 = vld [vmem:[#allocation6 + $0xdf0] sm:$0xff] }
 0x44f   : > { %5690 = vmatpush1.bf16.msra.mxu1 %v14036_v31  ;;  %v14007_v31 = vcombine.high %v3660_v57, %v3664_v34 }
 0x450   : > { %5793 = vmatpush1.bf16.msra.mxu0 %v13958_v10  ;;  %5691 = vmatprep.subr.bf16.mxu1 %v14045_v62  ;;  %v3875_v10 = vld [vmem:[#allocation6 + $0x1348] sm:$0xff] }
 0x451   : > { %5794 = vmatprep.subr.bf16.mxu0 %v13967_v12  ;;  %v3879_v62 = vld [vmem:[#allocation6 + $0x1368] sm:$0xff]  ;;  %v3668_v12 = vld [vmem:[#allocation6 + $0xcd0] sm:$0xff] }
 0x452   : > { %v14221_v59 = vcombine.high %v3875_v10, %v3879_v62  ;;  %v14220_v27 = vcombine.low %v3875_v10, %v3879_v62  ;;  %v14014_v29 = vcombine.low %v3668_v12, %v3672_v13  ;;  %v3840_v10 = vld [vmem:[#allocation6 + $0x1230] sm:$0xff] }
 0x453   : > { %5692 = vmatpush1.bf16.msra.mxu1 %v14044_v63  ;;  %v14015_v63 = vcombine.high %v3668_v12, %v3672_v13 }
 0x454   : > { %5795 = vmatpush1.bf16.msra.mxu0 %v13966_v4  ;;  %5743 = vmatprep.subr.bf16.mxu1 %v14181_v16  ;;  %v3883_v4 = vld [vmem:[#allocation6 + $0x1388] sm:$0xff] }
 0x455   : > { %5796 = vmatprep.subr.bf16.mxu0 %v13975_v17  ;;  %v3887_v16 = vld [vmem:[#allocation6 + $0x13a8] sm:$0xff]  ;;  %v3676_v17 = vld [vmem:[#allocation6 + $0xd10] sm:$0xff] }
 0x456   : > { %5694 = vmatmul.mubr.bf16.vlgmr.msra.gmra.mrb[64].mxu1 %v16761_v54  ;;  %v14229_v32 = vcombine.high %v3883_v4, %v3887_v16  ;;  %v14228_v35 = vcombine.low %v3883_v4, %v3887_v16  ;;  %v14022_v39 = vcombine.low %v3676_v17, %v3680_v23  ;;  %v3848_v4 = vld [vmem:[#allocation6 + $0x1270] sm:$0xff] }
 0x457   : > { %5744 = vmatpush1.bf16.msra.mxu1 %v14180_v19  ;;  %5775 = vmatprep.mubr.bf16.mxu1 %v16185_v0  ;;  %v14023_v19 = vcombine.high %v3676_v17, %v3680_v23 }
 0x458   : > { %5797 = vmatpush1.bf16.msra.mxu0 %v13974_v25  ;;  %5745 = vmatprep.subr.bf16.mxu1 %v14189_v7  ;;  %v3891_v25 = vld [vmem:[#allocation6 + $0x13c8] sm:$0xff] }
 0x459   : > { %5798 = vmatprep.subr.bf16.mxu0 %v13983_v37  ;;  %v3895_v7 = vld [vmem:[#allocation6 + $0x13e8] sm:$0xff]  ;;  %v3684_v37 = vld [vmem:[#allocation6 + $0xd50] sm:$0xff] }
 0x45a   : > { %v14237_v52 = vcombine.high %v3891_v25, %v3895_v7  ;;  %v14236_v2 = vcombine.low %v3891_v25, %v3895_v7  ;;  %v14030_v30 = vcombine.low %v3684_v37, %v3688_v50  ;;  %v3856_v25 = vld [vmem:[#allocation6 + $0x12b0] sm:$0xff] }
 0x45b   : > { %5746 = vmatpush1.bf16.msra.mxu1 %v14188_v43  ;;  %v14031_v43 = vcombine.high %v3684_v37, %v3688_v50 }
 0x45c   : > { %5799 = vmatpush1.bf16.msra.mxu0 %v13982_v41  ;;  %5747 = vmatprep.subr.bf16.mxu1 %v14197_v45  ;;  %v3708_v41 = vld [vmem:[#allocation6 + $0xe10] sm:$0xff] }
 0x45d   : > { %5800 = vmatprep.subr.bf16.mxu0 %v13991_v22  ;;  %v3712_v45 = vld [vmem:[#allocation6 + $0xe30] sm:$0xff] }
 0x45e   : > { %v3692_v22 = vld [vmem:[#allocation6 + $0xd90] sm:$0xff]  ;;  %v14055_v46 = vcombine.high %v3708_v41, %v3712_v45  ;;  %v14054_v24 = vcombine.low %v3708_v41, %v3712_v45 }
 0x45f   : > { %5748 = vmatpush1.bf16.msra.mxu1 %v14196_v44  ;;  %v14039_v44 = vcombine.high %v3692_v22, %v3696_v49  ;;  %v14038_v57 = vcombine.low %v3692_v22, %v3696_v49  ;;  %v3864_v41 = vld [vmem:[#allocation6 + $0x12f0] sm:$0xff] }
 0x460   : > { %5801 = vmatpush1.bf16.msra.mxu0 %v13990_v48  ;;  %5749 = vmatprep.subr.bf16.mxu1 %v14205_v60  ;;  %v3716_v48 = vld [vmem:[#allocation6 + $0xe50] sm:$0xff] }
 0x461   : > { %5802 = vmatprep.subr.bf16.mxu0 %v13999_v47  ;;  %v3720_v60 = vld [vmem:[#allocation6 + $0xe70] sm:$0xff] }
 0x462   : > { %v3700_v47 = vld [vmem:[#allocation6 + $0xdd0] sm:$0xff]  ;;  %v14063_v34 = vcombine.high %v3716_v48, %v3720_v60  ;;  %v14062_v62 = vcombine.low %v3716_v48, %v3720_v60 }
 0x463   : > { %5750 = vmatpush1.bf16.msra.mxu1 %v14204_v58  ;;  %v14047_v58 = vcombine.high %v3700_v47, %v3704_v3  ;;  %v14046_v12 = vcombine.low %v3700_v47, %v3704_v3  ;;  %v3872_v48 = vld [vmem:[#allocation6 + $0x1330] sm:$0xff] }
 0x464   : > { %5803 = vmatpush1.bf16.msra.mxu0 %v13998_v42  ;;  %5751 = vmatprep.subr.bf16.mxu1 %v14213_v9  ;;  %v3724_v42 = vld [vmem:[#allocation6 + $0xe90] sm:$0xff] }
 0x465   : > { %5804 = vmatprep.subr.bf16.mxu0 %v14007_v31  ;;  %v3728_v9 = vld [vmem:[#allocation6 + $0xeb0] sm:$0xff] }
 0x466   : > { %v3836_v31 = vld [vmem:[#allocation6 + $0x1210] sm:$0xff]  ;;  %v14071_v13 = vcombine.high %v3724_v42, %v3728_v9  ;;  %v14070_v16 = vcombine.low %v3724_v42, %v3728_v9 }
 0x467   : > { %5752 = vmatpush1.bf16.msra.mxu1 %v14212_v14  ;;  %v14183_v14 = vcombine.high %v3836_v31, %v3840_v10  ;;  %v14182_v17 = vcombine.low %v3836_v31, %v3840_v10  ;;  %v3880_v42 = vld [vmem:[#allocation6 + $0x1370] sm:$0xff] }
 0x468   : > { %5805 = vmatpush1.bf16.msra.mxu0 %v14006_v15  ;;  %5753 = vmatprep.subr.bf16.mxu1 %v14221_v59  ;;  %v3732_v15 = vld [vmem:[#allocation6 + $0xed0] sm:$0xff] }
 0x469   : > { %5806 = vmatprep.subr.bf16.mxu0 %v14015_v63  ;;  %v3736_v59 = vld [vmem:[#allocation6 + $0xef0] sm:$0xff] }
 0x46a   : > { %v3844_v63 = vld [vmem:[#allocation6 + $0x1250] sm:$0xff]  ;;  %v14079_v23 = vcombine.high %v3732_v15, %v3736_v59  ;;  %v14078_v7 = vcombine.low %v3732_v15, %v3736_v59 }
 0x46b   : > { %5754 = vmatpush1.bf16.msra.mxu1 %v14220_v27  ;;  %v14191_v27 = vcombine.high %v3844_v63, %v3848_v4  ;;  %v14190_v37 = vcombine.low %v3844_v63, %v3848_v4  ;;  %v3888_v15 = vld [vmem:[#allocation6 + $0x13b0] sm:$0xff] }
 0x46c   : > { %5807 = vmatpush1.bf16.msra.mxu0 %v14014_v29  ;;  %5755 = vmatprep.subr.bf16.mxu1 %v14229_v32  ;;  %v3740_v29 = vld [vmem:[#allocation6 + $0xf10] sm:$0xff] }
 0x46d   : > { %5808 = vmatprep.subr.bf16.mxu0 %v14023_v19  ;;  %v3744_v32 = vld [vmem:[#allocation6 + $0xf30] sm:$0xff] }
 0x46e   : > { %v3852_v19 = vld [vmem:[#allocation6 + $0x1290] sm:$0xff]  ;;  %v14087_v50 = vcombine.high %v3740_v29, %v3744_v32  ;;  %v14086_v45 = vcombine.low %v3740_v29, %v3744_v32 }
 0x46f   : > { %5756 = vmatpush1.bf16.msra.mxu1 %v14228_v35  ;;  %v14199_v35 = vcombine.high %v3852_v19, %v3856_v25  ;;  %v14198_v22 = vcombine.low %v3852_v19, %v3856_v25  ;;  %v3896_v29 = vld [vmem:[#allocation6 + $0x13f0] sm:$0xff] }
 0x470   : > { %5809 = vmatpush1.bf16.msra.mxu0 %v14022_v39  ;;  %5757 = vmatprep.subr.bf16.mxu1 %v14237_v52  ;;  %v3748_v39 = vld [vmem:[#allocation6 + $0xf50] sm:$0xff] }
 0x471   : > { %5810 = vmatprep.subr.bf16.mxu0 %v14031_v43  ;;  %v3752_v52 = vld [vmem:[#allocation6 + $0xf70] sm:$0xff] }
 0x472   : > { %v3860_v43 = vld [vmem:[#allocation6 + $0x12d0] sm:$0xff]  ;;  %v14095_v49 = vcombine.high %v3748_v39, %v3752_v52  ;;  %v14094_v60 = vcombine.low %v3748_v39, %v3752_v52  ;;  %v3713_v39 = vld [vmem:[#allocation6 + $0xe38] sm:$0xff] }
 0x473   : > { %5758 = vmatpush1.bf16.msra.mxu1 %v14236_v2  ;;  %v14207_v2 = vcombine.high %v3860_v43, %v3864_v41  ;;  %v14206_v47 = vcombine.low %v3860_v43, %v3864_v41 }
 0x474   : > { %5811 = vmatpush1.bf16.msra.mxu0 %v14030_v30  ;;  %5825 = vmatprep.subr.bf16.mxu1 %v14055_v46  ;;  %v3756_v30 = vld [vmem:[#allocation6 + $0xf90] sm:$0xff] }
 0x475   : > { %5812 = vmatprep.subr.bf16.mxu0 %v14039_v44  ;;  %v3760_v46 = vld [vmem:[#allocation6 + $0xfb0] sm:$0xff] }
 0x476   : > { %5776 = vmatmul.mubr.bf16.vlgmr.msra.gmra.mrb[68].mxu1 %v16794_v56  ;;  %v3868_v44 = vld [vmem:[#allocation6 + $0x1310] sm:$0xff]  ;;  %v14103_v3 = vcombine.high %v3756_v30, %v3760_v46  ;;  %v14102_v9 = vcombine.low %v3756_v30, %v3760_v46  ;;  %v3721_v30 = vld [vmem:[#allocation6 + $0xe78] sm:$0xff] }
 0x477   : > { %5826 = vmatpush1.bf16.msra.mxu1 %v14054_v24  ;;  %5857 = vmatprep.mubr.bf16.mxu1 %v16779_v18  ;;  %v14215_v24 = vcombine.high %v3868_v44, %v3872_v48  ;;  %v14214_v31 = vcombine.low %v3868_v44, %v3872_v48 }
 0x478   : > { %5813 = vmatpush1.bf16.msra.mxu0 %v14038_v57  ;;  %5827 = vmatprep.subr.bf16.mxu1 %v14063_v34  ;;  %v3764_v57 = vld [vmem:[#allocation6 + $0xfd0] sm:$0xff] }
 0x479   : > { %5814 = vmatprep.subr.bf16.mxu0 %v14047_v58  ;;  %v3768_v34 = vld [vmem:[#allocation6 + $0xff0] sm:$0xff] }
 0x47a   : > { %v3876_v58 = vld [vmem:[#allocation6 + $0x1350] sm:$0xff]  ;;  %v14111_v10 = vcombine.high %v3764_v57, %v3768_v34  ;;  %v14110_v59 = vcombine.low %v3764_v57, %v3768_v34  ;;  %v3729_v57 = vld [vmem:[#allocation6 + $0xeb8] sm:$0xff] }
 0x47b   : > { %5828 = vmatpush1.bf16.msra.mxu1 %v14062_v62  ;;  %v14223_v62 = vcombine.high %v3876_v58, %v3880_v42  ;;  %v14222_v63 = vcombine.low %v3876_v58, %v3880_v42 }
 0x47c   : > { %5815 = vmatpush1.bf16.msra.mxu0 %v14046_v12  ;;  %5829 = vmatprep.subr.bf16.mxu1 %v14071_v13  ;;  %v3772_v12 = vld [vmem:[#allocation6 + $0x1010] sm:$0xff] }
 0x47d   : > { %5866 = vmatprep.subr.bf16.mxu0 %v14183_v14  ;;  %v3776_v13 = vld [vmem:[#allocation6 + $0x1030] sm:$0xff] }
 0x47e   : > { %v3884_v14 = vld [vmem:[#allocation6 + $0x1390] sm:$0xff]  ;;  %v14119_v4 = vcombine.high %v3772_v12, %v3776_v13  ;;  %v14118_v32 = vcombine.low %v3772_v12, %v3776_v13  ;;  %v3737_v12 = vld [vmem:[#allocation6 + $0xef8] sm:$0xff] }
 0x47f   : > { %5817 = vmatmul.mubr.bf16.vlgmr.msra.gmra.mrb[56].mxu0 %v16761_v54  ;;  %5830 = vmatpush1.bf16.msra.mxu1 %v14070_v16  ;;  %v14231_v16 = vcombine.high %v3884_v14, %v3888_v15  ;;  %v14230_v19 = vcombine.low %v3884_v14, %v3888_v15 }
 0x480   : > { %5867 = vmatpush1.bf16.msra.mxu0 %v14182_v17  ;;  %5831 = vmatprep.subr.bf16.mxu1 %v14079_v23  ;;  %v3780_v17 = vld [vmem:[#allocation6 + $0x1050] sm:$0xff] }
 0x481   : > { %5868 = vmatprep.subr.bf16.mxu0 %v14191_v27  ;;  %5898 = vmatprep.mubr.bf16.mxu0 %v16185_v0  ;;  %v3784_v23 = vld [vmem:[#allocation6 + $0x1070] sm:$0xff] }
 0x482   : > { %v3892_v27 = vld [vmem:[#allocation6 + $0x13d0] sm:$0xff]  ;;  %v14127_v25 = vcombine.high %v3780_v17, %v3784_v23  ;;  %v14126_v52 = vcombine.low %v3780_v17, %v3784_v23 }
 0x483   : > { %5832 = vmatpush1.bf16.msra.mxu1 %v14078_v7  ;;  %v14239_v7 = vcombine.high %v3892_v27, %v3896_v29  ;;  %v14238_v43 = vcombine.low %v3892_v27, %v3896_v29 }
 0x484   : > { %5869 = vmatpush1.bf16.msra.mxu0 %v14190_v37  ;;  %5833 = vmatprep.subr.bf16.mxu1 %v14087_v50  ;;  %v3788_v37 = vld [vmem:[#allocation6 + $0x1090] sm:$0xff] }
 0x485   : > { %5870 = vmatprep.subr.bf16.mxu0 %v14199_v35  ;;  %v3792_v50 = vld [vmem:[#allocation6 + $0x10b0] sm:$0xff]  ;;  %v3709_v35 = vld [vmem:[#allocation6 + $0xe18] sm:$0xff] }
 0x486   : > { %v14135_v41 = vcombine.high %v3788_v37, %v3792_v50  ;;  %v14134_v46 = vcombine.low %v3788_v37, %v3792_v50  ;;  %v14056_v44 = vcombine.low %v3709_v35, %v3713_v39 }
 0x487   : > { %5834 = vmatpush1.bf16.msra.mxu1 %v14086_v45  ;;  %v14057_v45 = vcombine.high %v3709_v35, %v3713_v39 }
 0x488   : > { %5871 = vmatpush1.bf16.msra.mxu0 %v14198_v22  ;;  %5835 = vmatprep.subr.bf16.mxu1 %v14095_v49  ;;  %v3796_v22 = vld [vmem:[#allocation6 + $0x10d0] sm:$0xff] }
 0x489   : > { %5872 = vmatprep.subr.bf16.mxu0 %v14207_v2  ;;  %v3800_v49 = vld [vmem:[#allocation6 + $0x10f0] sm:$0xff]  ;;  %v3717_v2 = vld [vmem:[#allocation6 + $0xe58] sm:$0xff] }
 0x48a   : > { %v14143_v48 = vcombine.high %v3796_v22, %v3800_v49  ;;  %v14142_v34 = vcombine.low %v3796_v22, %v3800_v49  ;;  %v14064_v58 = vcombine.low %v3717_v2, %v3721_v30 }
 0x48b   : > { %5836 = vmatpush1.bf16.msra.mxu1 %v14094_v60  ;;  %v14065_v60 = vcombine.high %v3717_v2, %v3721_v30 }
 0x48c   : > { %5873 = vmatpush1.bf16.msra.mxu0 %v14206_v47  ;;  %5837 = vmatprep.subr.bf16.mxu1 %v14103_v3  ;;  %v3804_v47 = vld [vmem:[#allocation6 + $0x1110] sm:$0xff] }
 0x48d   : > { %5874 = vmatprep.subr.bf16.mxu0 %v14215_v24  ;;  %v3808_v3 = vld [vmem:[#allocation6 + $0x1130] sm:$0xff]  ;;  %v3725_v24 = vld [vmem:[#allocation6 + $0xe98] sm:$0xff] }
 0x48e   : > { %v14151_v42 = vcombine.high %v3804_v47, %v3808_v3  ;;  %v14150_v13 = vcombine.low %v3804_v47, %v3808_v3  ;;  %v14072_v14 = vcombine.low %v3725_v24, %v3729_v57 }
 0x48f   : > { %5838 = vmatpush1.bf16.msra.mxu1 %v14102_v9  ;;  %v14073_v9 = vcombine.high %v3725_v24, %v3729_v57 }
 0x490   : > { %5875 = vmatpush1.bf16.msra.mxu0 %v14214_v31  ;;  %5839 = vmatprep.subr.bf16.mxu1 %v14111_v10  ;;  %v3812_v31 = vld [vmem:[#allocation6 + $0x1150] sm:$0xff] }
 0x491   : > { %5876 = vmatprep.subr.bf16.mxu0 %v14223_v62  ;;  %v3816_v10 = vld [vmem:[#allocation6 + $0x1170] sm:$0xff]  ;;  %v3733_v62 = vld [vmem:[#allocation6 + $0xed8] sm:$0xff] }
 0x492   : > { %v14159_v15 = vcombine.high %v3812_v31, %v3816_v10  ;;  %v14158_v17 = vcombine.low %v3812_v31, %v3816_v10  ;;  %v14080_v23 = vcombine.low %v3733_v62, %v3737_v12 }
 0x493   : > { %5840 = vmatpush1.bf16.msra.mxu1 %v14110_v59  ;;  %v14081_v59 = vcombine.high %v3733_v62, %v3737_v12 }
 0x494   : > { %5877 = vmatpush1.bf16.msra.mxu0 %v14222_v63  ;;  %5841 = vmatprep.subr.bf16.mxu1 %v14119_v4  ;;  %v3820_v63 = vld [vmem:[#allocation6 + $0x1190] sm:$0xff] }
 0x495   : > { %5878 = vmatprep.subr.bf16.mxu0 %v14231_v16  ;;  %v3824_v4 = vld [vmem:[#allocation6 + $0x11b0] sm:$0xff]  ;;  %v3745_v16 = vld [vmem:[#allocation6 + $0xf38] sm:$0xff] }
 0x496   : > { %v14167_v27 = vcombine.high %v3820_v63, %v3824_v4  ;;  %v14166_v37 = vcombine.low %v3820_v63, %v3824_v4 }
 0x497   : > { %5842 = vmatpush1.bf16.msra.mxu1 %v14118_v32  ;;  %v3828_v32 = vld [vmem:[#allocation6 + $0x11d0] sm:$0xff] }
 0x498   : > { %5879 = vmatpush1.bf16.msra.mxu0 %v14230_v19  ;;  %5843 = vmatprep.subr.bf16.mxu1 %v14127_v25  ;;  %v3832_v19 = vld [vmem:[#allocation6 + $0x11f0] sm:$0xff]  ;;  %v3749_v25 = vld [vmem:[#allocation6 + $0xf58] sm:$0xff] }
 0x499   : > { %5880 = vmatprep.subr.bf16.mxu0 %v14239_v7  ;;  %v3753_v7 = vld [vmem:[#allocation6 + $0xf78] sm:$0xff]  ;;  %v14175_v35 = vcombine.high %v3828_v32, %v3832_v19  ;;  %v14174_v22 = vcombine.low %v3828_v32, %v3832_v19 }
 0x49a   : > { %v14097_v39 = vcombine.high %v3749_v25, %v3753_v7  ;;  %v14096_v49 = vcombine.low %v3749_v25, %v3753_v7  ;;  %v3621_v7 = vld [vmem:[#allocation6 + $0xb58] sm:$0xff] }
 0x49b   : > { %5844 = vmatpush1.bf16.msra.mxu1 %v14126_v52  ;;  %v3581_v52 = vld [vmem:[#allocation6 + $0xa18] sm:$0xff] }
 0x49c   : > { %5881 = vmatpush1.bf16.msra.mxu0 %v14238_v43  ;;  %5845 = vmatprep.subr.bf16.mxu1 %v14135_v41  ;;  %v3585_v43 = vld [vmem:[#allocation6 + $0xa38] sm:$0xff] }
 0x49d   : > { %5948 = vmatprep.subr.bf16.mxu0 %v14057_v45  ;;  %v3757_v41 = vld [vmem:[#allocation6 + $0xf98] sm:$0xff]  ;;  %v13929_v2 = vcombine.high %v3581_v52, %v3585_v43  ;;  %v13928_v47 = vcombine.low %v3581_v52, %v3585_v43 }
 0x49e   : > { %v3761_v45 = vld [vmem:[#allocation6 + $0xfb8] sm:$0xff] }
 0x49f   : > { %5899 = vmatmul.mubr.bf16.vlgmr.msra.gmra.mrb[60].mxu0 %v16794_v56  ;;  %5846 = vmatpush1.bf16.msra.mxu1 %v14134_v46  ;;  %v14105_v30 = vcombine.high %v3757_v41, %v3761_v45  ;;  %v3589_v46 = vld [vmem:[#allocation6 + $0xa58] sm:$0xff]  ;;  %v14104_v3 = vcombine.low %v3757_v41, %v3761_v45 }
 0x4a0   : > { %5949 = vmatpush1.bf16.msra.mxu0 %v14056_v44  ;;  %5980 = vmatprep.mubr.bf16.mxu0 %v16779_v18  ;;  %v3741_v18 = vld [vmem:[#allocation6 + $0xf18] sm:$0xff] }
 0x4a1   : > { %5847 = vmatprep.subr.bf16.mxu1 %v14143_v48  ;;  %5950 = vmatprep.subr.bf16.mxu0 %v14065_v60  ;;  %v14089_v29 = vcombine.high %v3741_v18, %v3745_v16  ;;  %v14088_v50 = vcombine.low %v3741_v18, %v3745_v16  ;;  %v3593_v44 = vld [vmem:[#allocation6 + $0xa78] sm:$0xff] }
 0x4a2   : > { %v3765_v48 = vld [vmem:[#allocation6 + $0xfd8] sm:$0xff]  ;;  %v13937_v24 = vcombine.high %v3589_v46, %v3593_v44  ;;  %v13936_v31 = vcombine.low %v3589_v46, %v3593_v44 }
 0x4a3   : > { %5848 = vmatpush1.bf16.msra.mxu1 %v14142_v34  ;;  %v3769_v60 = vld [vmem:[#allocation6 + $0xff8] sm:$0xff] }
 0x4a4   : > { %5951 = vmatpush1.bf16.msra.mxu0 %v14064_v58  ;;  %5849 = vmatprep.subr.bf16.mxu1 %v14151_v42  ;;  %v14113_v57 = vcombine.high %v3765_v48, %v3769_v60  ;;  %v3597_v34 = vld [vmem:[#allocation6 + $0xa98] sm:$0xff]  ;;  %v14112_v10 = vcombine.low %v3765_v48, %v3769_v60 }
 0x4a5   : > { %5952 = vmatprep.subr.bf16.mxu0 %v14073_v9  ;;  %v3601_v58 = vld [vmem:[#allocation6 + $0xab8] sm:$0xff] }
 0x4a6   : > { %v3773_v42 = vld [vmem:[#allocation6 + $0x1018] sm:$0xff]  ;;  %v13945_v62 = vcombine.high %v3597_v34, %v3601_v58  ;;  %v13944_v63 = vcombine.low %v3597_v34, %v3601_v58 }
 0x4a7   : > { %5850 = vmatpush1.bf16.msra.mxu1 %v14150_v13  ;;  %v3777_v9 = vld [vmem:[#allocation6 + $0x1038] sm:$0xff] }
 0x4a8   : > { %5953 = vmatpush1.bf16.msra.mxu0 %v14072_v14  ;;  %5851 = vmatprep.subr.bf16.mxu1 %v14159_v15  ;;  %v14121_v12 = vcombine.high %v3773_v42, %v3777_v9  ;;  %v3605_v13 = vld [vmem:[#allocation6 + $0xad8] sm:$0xff]  ;;  %v14120_v4 = vcombine.low %v3773_v42, %v3777_v9 }
 0x4a9   : > { %5954 = vmatprep.subr.bf16.mxu0 %v14081_v59  ;;  %v3609_v14 = vld [vmem:[#allocation6 + $0xaf8] sm:$0xff] }
 0x4aa   : > { %v3781_v15 = vld [vmem:[#allocation6 + $0x1058] sm:$0xff]  ;;  %v13953_v18 = vcombine.high %v3605_v13, %v3609_v14 }
 0x4ab   : > { %5852 = vmatpush1.bf16.msra.mxu1 %v14158_v17  ;;  %v3785_v59 = vld [vmem:[#allocation6 + $0x1078] sm:$0xff] }
 0x4ac   : > { %5955 = vmatpush1.bf16.msra.mxu0 %v14080_v23  ;;  %5853 = vmatprep.subr.bf16.mxu1 %v14167_v27  ;;  %v14129_v16 = vcombine.high %v3781_v15, %v3785_v59  ;;  %v3617_v17 = vld [vmem:[#allocation6 + $0xb38] sm:$0xff]  ;;  %v14128_v32 = vcombine.low %v3781_v15, %v3785_v59 }
 0x4ad   : > { %5956 = vmatprep.subr.bf16.mxu0 %v14089_v29  ;;  %v3789_v23 = vld [vmem:[#allocation6 + $0x1098] sm:$0xff]  ;;  %v13952_v29 = vcombine.low %v3605_v13, %v3609_v14 }
 0x4ae   : > { %v3793_v27 = vld [vmem:[#allocation6 + $0x10b8] sm:$0xff] }
 0x4af   : > { %5854 = vmatpush1.bf16.msra.mxu1 %v14166_v37  ;;  %v14137_v25 = vcombine.high %v3789_v23, %v3793_v27  ;;  %v3625_v37 = vld [vmem:[#allocation6 + $0xb78] sm:$0xff]  ;;  %v14136_v52 = vcombine.low %v3789_v23, %v3793_v27 }
 0x4b0   : > { %5957 = vmatpush1.bf16.msra.mxu0 %v14088_v50  ;;  %5855 = vmatprep.subr.bf16.mxu1 %v14175_v35  ;;  %v3797_v50 = vld [vmem:[#allocation6 + $0x10d8] sm:$0xff]  ;;  %v13969_v43 = vcombine.high %v3621_v7, %v3625_v37 }
 0x4b1   : > { %5958 = vmatprep.subr.bf16.mxu0 %v14097_v39  ;;  %v3801_v35 = vld [vmem:[#allocation6 + $0x10f8] sm:$0xff] }
 0x4b2   : > { %v14145_v41 = vcombine.high %v3797_v50, %v3801_v35  ;;  %v3629_v45 = vld [vmem:[#allocation6 + $0xb98] sm:$0xff]  ;;  %v14144_v46 = vcombine.low %v3797_v50, %v3801_v35 }
 0x4b3   : > { %5856 = vmatpush1.bf16.msra.mxu1 %v14174_v22  ;;  %v3633_v22 = vld [vmem:[#allocation6 + $0xbb8] sm:$0xff] }
 0x4b4   : > { %5959 = vmatpush1.bf16.msra.mxu0 %v14096_v49  ;;  %5907 = vmatprep.subr.bf16.mxu1 %v13929_v2  ;;  %v3805_v49 = vld [vmem:[#allocation6 + $0x1118] sm:$0xff]  ;;  %v13977_v44 = vcombine.high %v3629_v45, %v3633_v22  ;;  %v13976_v42 = vcombine.low %v3629_v45, %v3633_v22  ;;  %v3256_v45 = vld [vmem:[#allocation6 + $0x20] sm:$0xff] }
 0x4b5   : > { %5960 = vmatprep.subr.bf16.mxu0 %v14105_v30  ;;  %v3809_v2 = vld [vmem:[#allocation6 + $0x1138] sm:$0xff]  ;;  %v13968_v30 = vcombine.low %v3621_v7, %v3625_v37 }
 0x4b6   : > { %5858 = vmatmul.mubr.bf16.vlgmr.msra.gmra.mrb[72].mxu1 %v16781_v20  ;;  %v14153_v60 = vcombine.high %v3805_v49, %v3809_v2  ;;  %v3817_v34 = vld [vmem:[#allocation6 + $0x1178] sm:$0xff] }
 0x4b7   : > { %5908 = vmatpush1.bf16.msra.mxu1 %v13928_v47  ;;  %5939 = vmatprep.mubr.bf16.mxu1 %v16756_v51  ;;  %v3613_v51 = vld [vmem:[#allocation6 + $0xb18] sm:$0xff] }
 0x4b8   : > { %5961 = vmatpush1.bf16.msra.mxu0 %v14104_v3  ;;  %5909 = vmatprep.subr.bf16.mxu1 %v13937_v24  ;;  %v13961_v19 = vcombine.high %v3613_v51, %v3617_v17  ;;  %v13960_v39 = vcombine.low %v3613_v51, %v3617_v17  ;;  %v3637_v47 = vld [vmem:[#allocation6 + $0xbd8] sm:$0xff] }
 0x4b9   : > { %5962 = vmatprep.subr.bf16.mxu0 %v14113_v57  ;;  %v3641_v3 = vld [vmem:[#allocation6 + $0xbf8] sm:$0xff] }
 0x4ba   : > { %v3813_v57 = vld [vmem:[#allocation6 + $0x1158] sm:$0xff]  ;;  %v13984_v59 = vcombine.low %v3637_v47, %v3641_v3 }
 0x4bb   : > { %5910 = vmatpush1.bf16.msra.mxu1 %v13936_v31  ;;  %v14152_v31 = vcombine.low %v3805_v49, %v3809_v2  ;;  %v3649_v13 = vld [vmem:[#allocation6 + $0xc38] sm:$0xff] }
 0x4bc   : > { %5963 = vmatpush1.bf16.msra.mxu0 %v14112_v10  ;;  %5911 = vmatprep.subr.bf16.mxu1 %v13945_v62  ;;  %v13985_v10 = vcombine.high %v3637_v47, %v3641_v3  ;;  %v14161_v62 = vcombine.high %v3813_v57, %v3817_v34  ;;  %v3821_v14 = vld [vmem:[#allocation6 + $0x1198] sm:$0xff] }
 0x4bd   : > { %5964 = vmatprep.subr.bf16.mxu0 %v14121_v12  ;;  %v3645_v12 = vld [vmem:[#allocation6 + $0xc18] sm:$0xff] }
 0x4be   : > { %v3825_v15 = vld [vmem:[#allocation6 + $0x11b8] sm:$0xff]  ;;  %v13992_v7 = vcombine.low %v3645_v12, %v3649_v13 }
 0x4bf   : > { %5912 = vmatpush1.bf16.msra.mxu1 %v13944_v63  ;;  %v14160_v63 = vcombine.low %v3813_v57, %v3817_v34  ;;  %v3653_v51 = vld [vmem:[#allocation6 + $0xc58] sm:$0xff]  ;;  %v14168_v50 = vcombine.low %v3821_v14, %v3825_v15 }
 0x4c0   : > { %5965 = vmatpush1.bf16.msra.mxu0 %v14120_v4  ;;  %5913 = vmatprep.subr.bf16.mxu1 %v13953_v18  ;;  %v13993_v4 = vcombine.high %v3645_v12, %v3649_v13  ;;  %v3657_v17 = vld [vmem:[#allocation6 + $0xc78] sm:$0xff] }
 0x4c1   : > { %5966 = vmatprep.subr.bf16.mxu0 %v14129_v16  ;;  %v14169_v16 = vcombine.high %v3821_v14, %v3825_v15  ;;  %v14001_v35 = vcombine.high %v3653_v51, %v3657_v17  ;;  %v14000_v22 = vcombine.low %v3653_v51, %v3657_v17  ;;  %v3677_v34 = vld [vmem:[#allocation6 + $0xd18] sm:$0xff]  ;;  %v3284_v17 = vld [vmem:[#allocation6 + $0x100] sm:$0xff] }
 0x4c2   : > { %v3685_v14 = vld [vmem:[#allocation6 + $0xd58] sm:$0xff] }
 0x4c3   : > { %5914 = vmatpush1.bf16.msra.mxu1 %v13952_v29  ;;  %v3829_v29 = vld [vmem:[#allocation6 + $0x11d8] sm:$0xff] }
 0x4c4   : > { %5967 = vmatpush1.bf16.msra.mxu0 %v14128_v32  ;;  %5915 = vmatprep.subr.bf16.mxu1 %v13961_v19  ;;  %v3833_v32 = vld [vmem:[#allocation6 + $0x11f8] sm:$0xff] }
 0x4c5   : > { %5968 = vmatprep.subr.bf16.mxu0 %v14137_v25  ;;  %v14176_v49 = vcombine.low %v3829_v29, %v3833_v32  ;;  %v3689_v15 = vld [vmem:[#allocation6 + $0xd78] sm:$0xff] }
 0x4c6   : > { %v3697_v51 = vld [vmem:[#allocation6 + $0xdb8] sm:$0xff] }
 0x4c7   : > { %5916 = vmatpush1.bf16.msra.mxu1 %v13960_v39  ;;  %v14177_v39 = vcombine.high %v3829_v29, %v3833_v32  ;;  %v14032_v29 = vcombine.low %v3685_v14, %v3689_v15 }
 0x4c8   : > { %5969 = vmatpush1.bf16.msra.mxu0 %v14136_v52  ;;  %5917 = vmatprep.subr.bf16.mxu1 %v13969_v43  ;;  %v3661_v52 = vld [vmem:[#allocation6 + $0xc98] sm:$0xff] }
 0x4c9   : > { %v5572_v48 = vpop.f32.mrb[56].mxu1  ;;  %5970 = vmatprep.subr.bf16.mxu0 %v14145_v41  ;;  %v3665_v43 = vld [vmem:[#allocation6 + $0xcb8] sm:$0xff]  ;;  %v3252_v41 = vld [vmem:[#allocation6] sm:$0xff] }
 0x4ca   : > { %v5574_v24 = vpop.f32.mrb[57].mxu1  ;;  %v14009_v2 = vcombine.high %v3661_v52, %v3665_v43  ;;  %v14008_v47 = vcombine.low %v3661_v52, %v3665_v43  ;;  %v14242_v3 = vcombine.low %v3252_v41, %v3256_v45  ;;  %v3292_v43 = vld [vmem:[#allocation6 + $0x140] sm:$0xff] }
 0x4cb   : > { %5918 = vmatpush1.bf16.msra.mxu1 %v13968_v30  ;;  %v5576_v58 = vpop.f32.mrb[58].mxu1  ;;  %v14243_v30 = vcombine.high %v3252_v41, %v3256_v45  ;;  %v3296_v41 = vld [vmem:[#allocation6 + $0x160] sm:$0xff] }
 0x4cc   : > { %5971 = vmatpush1.bf16.msra.mxu0 %v14144_v46  ;;  %v5577_v9 = vpop.f32.mrb[59].mxu1  ;;  %5919 = vmatprep.subr.bf16.mxu1 %v13977_v44  ;;  %v3669_v46 = vld [vmem:[#allocation6 + $0xcd8] sm:$0xff] }
 0x4cd   : > { %5972 = vmatprep.subr.bf16.mxu0 %v14153_v60  ;;  %v3673_v44 = vld [vmem:[#allocation6 + $0xcf8] sm:$0xff]  ;;  %v3264_v60 = vld [vmem:[#allocation6 + $0x60] sm:$0xff] }
 0x4ce   : > { %v3681_v58 = vld [vmem:[#allocation6 + $0xd38] sm:$0xff]  ;;  %v3268_v9 = vld [vmem:[#allocation6 + $0x80] sm:$0xff] }
 0x4cf   : > { %5920 = vmatpush1.bf16.msra.mxu1 %v13976_v42  ;;  %v16816_v42 = vpack.c.bf16 %v16740_v26, %v16740_v26  ;;  %v14025_v12 = vcombine.high %v3677_v34, %v3681_v58  ;;  %v14024_v26 = vcombine.low %v3677_v34, %v3681_v58  ;;  %v3845_v34 = vld [vmem:[#allocation6 + $0x1258] sm:$0xff] }
 0x4d0   : > { %5973 = vmatpush1.bf16.msra.mxu0 %v14152_v31  ;;  %5921 = vmatprep.subr.bf16.mxu1 %v13985_v10  ;;  %v3272_v31 = vld [vmem:[#allocation6 + $0xa0] sm:$0xff]  ;;  %v14016_v10 = vcombine.low %v3669_v46, %v3673_v44  ;;  %v3849_v58 = vld [vmem:[#allocation6 + $0x1278] sm:$0xff] }
 0x4d1   : > { %v5613_v18 = vpop.f32.mrb[48].mxu0  ;;  %5974 = vmatprep.subr.bf16.mxu0 %v14161_v62  ;;  %v14259_v13 = vcombine.high %v3268_v9, %v3272_v31 }
 0x4d2   : > { %v16810_v23 = vadd.f32 %v5613_v18, %v5572_v48  ;;  %v5615_v27 = vpop.f32.mrb[49].mxu0  ;;  %v3260_v48 = vld [vmem:[#allocation6 + $0x40] sm:$0xff] }
 0x4d3   : > { %v16812_v19 = vadd.f32 %v5615_v27, %v5574_v24  ;;  %5922 = vmatpush1.bf16.msra.mxu1 %v13984_v59  ;;  %v5617_v25 = vpop.f32.mrb[50].mxu0  ;;  %v14017_v24 = vcombine.high %v3669_v46, %v3673_v44  ;;  %v14251_v57 = vcombine.high %v3260_v48, %v3264_v60  ;;  %v14250_v62 = vcombine.low %v3260_v48, %v3264_v60  ;;  %v3276_v59 = vld [vmem:[#allocation6 + $0xc0] sm:$0xff]  ;;  %v3837_v48 = vld [vmem:[#allocation6 + $0x1218] sm:$0xff] }
 0x4d4   : > { %5975 = vmatpush1.bf16.msra.mxu0 %v14160_v63  ;;  %v5618_v37 = vpop.f32.mrb[51].mxu0  ;;  %5923 = vmatprep.subr.bf16.mxu1 %v13993_v4  ;;  %v3280_v63 = vld [vmem:[#allocation6 + $0xe0] sm:$0xff]  ;;  %v14258_v4 = vcombine.low %v3268_v9, %v3272_v31  ;;  %v14283_v44 = vcombine.high %v3292_v43, %v3296_v41  ;;  %v3841_v60 = vld [vmem:[#allocation6 + $0x1238] sm:$0xff] }
 0x4d5   : > { %5976 = vmatprep.subr.bf16.mxu0 %v14169_v16  ;;  %v14267_v18 = vcombine.high %v3276_v59, %v3280_v63  ;;  %v3693_v16 = vld [vmem:[#allocation6 + $0xd98] sm:$0xff]  ;;  %v3288_v27 = vld [vmem:[#allocation6 + $0x120] sm:$0xff]  ;;  %v14266_v32 = vcombine.low %v3276_v59, %v3280_v63 }
 0x4d6   : > { %v14041_v25 = vcombine.high %v3693_v16, %v3697_v51  ;;  %v14275_v37 = vcombine.high %v3284_v17, %v3288_v27  ;;  %v3308_v9 = vld [vmem:[#allocation6 + $0x1c0] sm:$0xff] }
 0x4d7   : > { %5924 = vmatpush1.bf16.msra.mxu1 %v13992_v7  ;;  %v3312_v31 = vld [vmem:[#allocation6 + $0x1e0] sm:$0xff] }
 0x4d8   : > { %5977 = vmatpush1.bf16.msra.mxu0 %v14168_v50  ;;  %5925 = vmatprep.subr.bf16.mxu1 %v14001_v35  ;;  %v3701_v50 = vld [vmem:[#allocation6 + $0xdd8] sm:$0xff]  ;;  %v3316_v59 = vld [vmem:[#allocation6 + $0x200] sm:$0xff] }
 0x4d9   : > { %5978 = vmatprep.subr.bf16.mxu0 %v14177_v39  ;;  %v3705_v35 = vld [vmem:[#allocation6 + $0xdf8] sm:$0xff]  ;;  %v3320_v63 = vld [vmem:[#allocation6 + $0x220] sm:$0xff] }
 0x4da   : > { %v14049_v46 = vcombine.high %v3701_v50, %v3705_v35 }
 0x4db   : > { %5926 = vmatpush1.bf16.msra.mxu1 %v14000_v22 }
 0x4dc   : > { %5979 = vmatpush1.bf16.msra.mxu0 %v14176_v49  ;;  %5927 = vmatprep.subr.bf16.mxu1 %v14009_v2  ;;  %v14040_v49 = vcombine.low %v3693_v16, %v3697_v51  ;;  %v3861_v16 = vld [vmem:[#allocation6 + $0x12d8] sm:$0xff] }
 0x4dd   : > { %7630 = vmatprep.subr.bf16.mxu0 %v14243_v30  ;;  %v14274_v30 = vcombine.low %v3284_v17, %v3288_v27  ;;  %v3865_v51 = vld [vmem:[#allocation6 + $0x12f8] sm:$0xff]  ;;  %v3324_v17 = vld [vmem:[#allocation6 + $0x240] sm:$0xff] }
 0x4de   : > { %v3328_v27 = vld [vmem:[#allocation6 + $0x260] sm:$0xff] }
 0x4df   : > { %5981 = vmatmul.mubr.bf16.vlgmr.msra.gmra.mrb[64].mxu0 %v16781_v20  ;;  %5928 = vmatpush1.bf16.msra.mxu1 %v14008_v47  ;;  %v14033_v20 = vcombine.high %v3685_v14, %v3689_v15  ;;  %v3304_v47 = vld [vmem:[#allocation6 + $0x1a0] sm:$0xff]  ;;  %v3853_v14 = vld [vmem:[#allocation6 + $0x1298] sm:$0xff] }
 0x4e0   : > { %7631 = vmatpush1.bf16.msra.mxu0 %v14242_v3  ;;  %7662 = vmatprep.mubr.bf16.mxu0 %v16816_v42  ;;  %v14048_v3 = vcombine.low %v3701_v50, %v3705_v35  ;;  %v3857_v15 = vld [vmem:[#allocation6 + $0x12b8] sm:$0xff]  ;;  %v3332_v50 = vld [vmem:[#allocation6 + $0x280] sm:$0xff] }
 0x4e1   : > { %5929 = vmatprep.subr.bf16.mxu1 %v14017_v24  ;;  %7632 = vmatprep.subr.bf16.mxu0 %v14251_v57  ;;  %v14185_v24 = vcombine.high %v3837_v48, %v3841_v60  ;;  %v3336_v35 = vld [vmem:[#allocation6 + $0x2a0] sm:$0xff] }
 0x4e3   : > { %5930 = vmatpush1.bf16.msra.mxu1 %v14016_v10  ;;  %v14184_v10 = vcombine.low %v3837_v48, %v3841_v60  ;;  %v14322_v48 = vcombine.low %v3332_v50, %v3336_v35 }
 0x4e4   : > { %7633 = vmatpush1.bf16.msra.mxu0 %v14250_v62  ;;  %5931 = vmatprep.subr.bf16.mxu1 %v14025_v12  ;;  %v14193_v12 = vcombine.high %v3845_v34, %v3849_v58 }
 0x4e5   : > { %7634 = vmatprep.subr.bf16.mxu0 %v14259_v13  ;;  %v14299_v13 = vcombine.high %v3308_v9, %v3312_v31 }
 0x4e7   : > { %5932 = vmatpush1.bf16.msra.mxu1 %v14024_v26  ;;  %v14192_v26 = vcombine.low %v3845_v34, %v3849_v58 }
 0x4e8   : > { %7635 = vmatpush1.bf16.msra.mxu0 %v14258_v4  ;;  %5933 = vmatprep.subr.bf16.mxu1 %v14033_v20  ;;  %v14298_v4 = vcombine.low %v3308_v9, %v3312_v31  ;;  %v14201_v20 = vcombine.high %v3853_v14, %v3857_v15  ;;  %v3893_v31 = vld [vmem:[#allocation6 + $0x13d8] sm:$0xff] }
 0x4e9   : > { %v5654_v7 = vpop.f32.mrb[60].mxu1  ;;  %7636 = vmatprep.subr.bf16.mxu0 %v14267_v18  ;;  %v14307_v18 = vcombine.high %v3316_v59, %v3320_v63 }
 0x4ea   : > { %v16821_v39 = vadd.f32 %v5654_v7, %v16810_v23  ;;  %v5656_v52 = vpop.f32.mrb[61].mxu1  ;;  %v3300_v23 = vld [vmem:[#allocation6 + $0x180] sm:$0xff]  ;;  %v3869_v7 = vld [vmem:[#allocation6 + $0x1318] sm:$0xff] }
 0x4eb   : > { %v16824_v45 = vadd.f32 %v5656_v52, %v16812_v19  ;;  %v5658_v22 = vpop.f32.mrb[62].mxu1  ;;  %5934 = vmatpush1.bf16.msra.mxu1 %v14032_v29  ;;  %v14282_v19 = vcombine.low %v3292_v43, %v3296_v41  ;;  %v14291_v57 = vcombine.high %v3300_v23, %v3304_v47  ;;  %v14290_v62 = vcombine.low %v3300_v23, %v3304_v47  ;;  %v3885_v47 = vld [vmem:[#allocation6 + $0x1398] sm:$0xff] }
 0x4ec   : > { %7637 = vmatpush1.bf16.msra.mxu0 %v14266_v32  ;;  %v5659_v2 = vpop.f32.mrb[63].mxu1  ;;  %5935 = vmatprep.subr.bf16.mxu1 %v14041_v25  ;;  %v14200_v29 = vcombine.low %v3853_v14, %v3857_v15  ;;  %v14209_v32 = vcombine.high %v3861_v16, %v3865_v51  ;;  %v14315_v25 = vcombine.high %v3324_v17, %v3328_v27 }
 0x4ed   : > { %7638 = vmatprep.subr.bf16.mxu0 %v14275_v37  ;;  %v3873_v37 = vld [vmem:[#allocation6 + $0x1338] sm:$0xff]  ;;  %v14208_v52 = vcombine.low %v3861_v16, %v3865_v51  ;;  %v14314_v43 = vcombine.low %v3324_v17, %v3328_v27  ;;  %v14323_v22 = vcombine.high %v3332_v50, %v3336_v35  ;;  %v3388_v27 = vld [vmem:[#allocation6 + $0x440] sm:$0xff] }
 0x4ee   : > { %v14217_v41 = vcombine.high %v3869_v7, %v3873_v37  ;;  %v3881_v2 = vld [vmem:[#allocation6 + $0x1378] sm:$0xff] }
 0x4ef   : > { %5936 = vmatpush1.bf16.msra.mxu1 %v14040_v49  ;;  %v3877_v49 = vld [vmem:[#allocation6 + $0x1358] sm:$0xff] }
 0x4f0   : > { %7639 = vmatpush1.bf16.msra.mxu0 %v14274_v30  ;;  %5937 = vmatprep.subr.bf16.mxu1 %v14049_v46  ;;  %v3340_v30 = vld [vmem:[#allocation6 + $0x2c0] sm:$0xff]  ;;  %v14225_v60 = vcombine.high %v3877_v49, %v3881_v2 }
 0x4f1   : > { %7640 = vmatprep.subr.bf16.mxu0 %v14283_v44  ;;  %v3344_v46 = vld [vmem:[#allocation6 + $0x2e0] sm:$0xff]  ;;  %v14216_v44 = vcombine.low %v3869_v7, %v3873_v37 }
 0x4f2   : > { %v14331_v23 = vcombine.high %v3340_v30, %v3344_v46  ;;  %v14330_v34 = vcombine.low %v3340_v30, %v3344_v46  ;;  %v3508_v30 = vld [vmem:[#allocation6 + $0x800] sm:$0xff] }
 0x4f3   : > { %5938 = vmatpush1.bf16.msra.mxu1 %v14048_v3  ;;  %v3889_v3 = vld [vmem:[#allocation6 + $0x13b8] sm:$0xff]  ;;  %v3512_v46 = vld [vmem:[#allocation6 + $0x820] sm:$0xff] }
 0x4f4   : > { %7641 = vmatpush1.bf16.msra.mxu0 %v14282_v19  ;;  %5989 = vmatprep.subr.bf16.mxu1 %v14185_v24  ;;  %v3348_v19 = vld [vmem:[#allocation6 + $0x300] sm:$0xff]  ;;  %v14233_v58 = vcombine.high %v3885_v47, %v3889_v3 }
 0x4f5   : > { %7642 = vmatprep.subr.bf16.mxu0 %v14291_v57  ;;  %v3352_v24 = vld [vmem:[#allocation6 + $0x320] sm:$0xff]  ;;  %v14224_v57 = vcombine.low %v3877_v49, %v3881_v2 }
 0x4f6   : > { %5940 = vmatmul.mubr.bf16.vlgmr.msra.gmra.mrb[76].mxu1 %v16761_v54  ;;  %v14306_v54 = vcombine.low %v3316_v59, %v3320_v63  ;;  %v14339_v9 = vcombine.high %v3348_v19, %v3352_v24  ;;  %v14338_v14 = vcombine.low %v3348_v19, %v3352_v24  ;;  %v3380_v63 = vld [vmem:[#allocation6 + $0x400] sm:$0xff] }
 0x4f7   : > { %5990 = vmatpush1.bf16.msra.mxu1 %v14184_v10  ;;  %6021 = vmatprep.mubr.bf16.mxu1 %v16185_v0  ;;  %v3897_v10 = vld [vmem:[#allocation6 + $0x13f8] sm:$0xff]  ;;  %v3396_v49 = vld [vmem:[#allocation6 + $0x480] sm:$0xff] }
 0x4f8   : > { %7643 = vmatpush1.bf16.msra.mxu0 %v14290_v62  ;;  %5991 = vmatprep.subr.bf16.mxu1 %v14193_v12  ;;  %v3356_v62 = vld [vmem:[#allocation6 + $0x340] sm:$0xff]  ;;  %v14241_v15 = vcombine.high %v3893_v31, %v3897_v10 }
 0x4f9   : > { %7644 = vmatprep.subr.bf16.mxu0 %v14299_v13  ;;  %v3360_v12 = vld [vmem:[#allocation6 + $0x360] sm:$0xff]  ;;  %v14232_v13 = vcombine.low %v3885_v47, %v3889_v3 }
 0x4fa   : > { %v14347_v59 = vcombine.high %v3356_v62, %v3360_v12  ;;  %v14346_v16 = vcombine.low %v3356_v62, %v3360_v12  ;;  %v3400_v2 = vld [vmem:[#allocation6 + $0x4a0] sm:$0xff] }
 0x4fb   : > { %5992 = vmatpush1.bf16.msra.mxu1 %v14192_v26  ;;  %v3384_v26 = vld [vmem:[#allocation6 + $0x420] sm:$0xff]  ;;  %v14386_v24 = vcombine.low %v3396_v49, %v3400_v2 }
 0x4fc   : > { %7645 = vmatpush1.bf16.msra.mxu0 %v14298_v4  ;;  %5993 = vmatprep.subr.bf16.mxu1 %v14201_v20  ;;  %v3364_v4 = vld [vmem:[#allocation6 + $0x380] sm:$0xff]  ;;  %v14371_v51 = vcombine.high %v3380_v63, %v3384_v26  ;;  %v14370_v37 = vcombine.low %v3380_v63, %v3384_v26 }
 0x4fd   : > { %7646 = vmatprep.subr.bf16.mxu0 %v14307_v18  ;;  %v3368_v20 = vld [vmem:[#allocation6 + $0x3a0] sm:$0xff]  ;;  %v14240_v18 = vcombine.low %v3893_v31, %v3897_v10 }
 0x4fe   : > { %v14355_v17 = vcombine.high %v3364_v4, %v3368_v20  ;;  %v14354_v35 = vcombine.low %v3364_v4, %v3368_v20  ;;  %v3408_v47 = vld [vmem:[#allocation6 + $0x4e0] sm:$0xff] }
 0x4ff   : > { %5994 = vmatpush1.bf16.msra.mxu1 %v14200_v29  ;;  %v3392_v29 = vld [vmem:[#allocation6 + $0x460] sm:$0xff] }
 0x500   : > { %7647 = vmatpush1.bf16.msra.mxu0 %v14306_v54  ;;  %5995 = vmatprep.subr.bf16.mxu1 %v14209_v32  ;;  %v3372_v32 = vld [vmem:[#allocation6 + $0x3c0] sm:$0xff] }
 0x501   : > { %7648 = vmatprep.subr.bf16.mxu0 %v14315_v25  ;;  %v3376_v25 = vld [vmem:[#allocation6 + $0x3e0] sm:$0xff] }
 0x502   : > { %v3516_v3 = vld [vmem:[#allocation6 + $0x840] sm:$0xff] }
 0x503   : > { %5996 = vmatpush1.bf16.msra.mxu1 %v14208_v52  ;;  %v14379_v52 = vcombine.high %v3388_v27, %v3392_v29  ;;  %v3520_v19 = vld [vmem:[#allocation6 + $0x860] sm:$0xff] }
 0x504   : > { %7649 = vmatpush1.bf16.msra.mxu0 %v14314_v43  ;;  %5997 = vmatprep.subr.bf16.mxu1 %v14217_v41  ;;  %v16834_v43 = vpack.c.bf16 %v16753_v61, %v16753_v61  ;;  %v14499_v61 = vcombine.high %v3508_v30, %v3512_v46  ;;  %v3416_v31 = vld [vmem:[#allocation6 + $0x520] sm:$0xff] }
 0x505   : > { %7650 = vmatprep.subr.bf16.mxu0 %v14323_v22  ;;  %v14363_v22 = vcombine.high %v3372_v32, %v3376_v25  ;;  %v3524_v10 = vld [vmem:[#allocation6 + $0x880] sm:$0xff] }
 0x506   : > { %v3528_v62 = vld [vmem:[#allocation6 + $0x8a0] sm:$0xff] }
 0x507   : > { %5998 = vmatpush1.bf16.msra.mxu1 %v14216_v44  ;;  %v14378_v44 = vcombine.low %v3388_v27, %v3392_v29  ;;  %v3424_v63 = vld [vmem:[#allocation6 + $0x560] sm:$0xff]  ;;  %v14514_v20 = vcombine.low %v3524_v10, %v3528_v62 }
 0x508   : > { %7651 = vmatpush1.bf16.msra.mxu0 %v14322_v48  ;;  %5999 = vmatprep.subr.bf16.mxu1 %v14225_v60  ;;  %v14362_v48 = vcombine.low %v3372_v32, %v3376_v25  ;;  %v14387_v60 = vcombine.high %v3396_v49, %v3400_v2  ;;  %v3536_v26 = vld [vmem:[#allocation6 + $0x8e0] sm:$0xff] }
 0x509   : > { %7652 = vmatprep.subr.bf16.mxu0 %v14331_v23  ;;  %v3404_v23 = vld [vmem:[#allocation6 + $0x4c0] sm:$0xff] }
 0x50a   : > { %v14394_v12 = vcombine.low %v3404_v23, %v3408_v47  ;;  %v3540_v27 = vld [vmem:[#allocation6 + $0x900] sm:$0xff] }
 0x50b   : > { %6000 = vmatpush1.bf16.msra.mxu1 %v14224_v57  ;;  %v14395_v57 = vcombine.high %v3404_v23, %v3408_v47  ;;  %v3544_v29 = vld [vmem:[#allocation6 + $0x920] sm:$0xff] }
 0x50c   : > { %7653 = vmatpush1.bf16.msra.mxu0 %v14330_v34  ;;  %6001 = vmatprep.subr.bf16.mxu1 %v14233_v58  ;;  %v16840_v34 = vpack.c.bf16 %v16738_v5, %v16738_v5  ;;  %v14507_v58 = vcombine.high %v3516_v3, %v3520_v19  ;;  %v3532_v5 = vld [vmem:[#allocation6 + $0x8c0] sm:$0xff] }
 0x50d   : > { %7654 = vmatprep.subr.bf16.mxu0 %v14339_v9  ;;  %v3412_v9 = vld [vmem:[#allocation6 + $0x500] sm:$0xff]  ;;  %v14522_v25 = vcombine.low %v3532_v5, %v3536_v26 }
 0x50e   : > { %v14402_v4 = vcombine.low %v3412_v9, %v3416_v31  ;;  %v3548_v2 = vld [vmem:[#allocation6 + $0x940] sm:$0xff] }
 0x50f   : > { %6002 = vmatpush1.bf16.msra.mxu1 %v14232_v13  ;;  %v14506_v13 = vcombine.low %v3516_v3, %v3520_v19  ;;  %v3444_v3 = vld [vmem:[#allocation6 + $0x600] sm:$0xff] }
 0x510   : > { %7655 = vmatpush1.bf16.msra.mxu0 %v14338_v14  ;;  %6003 = vmatprep.subr.bf16.mxu1 %v14241_v15  ;;  %v14403_v14 = vcombine.high %v3412_v9, %v3416_v31  ;;  %v14515_v15 = vcombine.high %v3524_v10, %v3528_v62  ;;  %v3448_v19 = vld [vmem:[#allocation6 + $0x620] sm:$0xff] }
 0x511   : > { %7656 = vmatprep.subr.bf16.mxu0 %v14347_v59  ;;  %v3420_v59 = vld [vmem:[#allocation6 + $0x540] sm:$0xff] }
 0x512   : > { %v16828_v54 = vpop.f32.mrb[52].mxu0  ;;  %v14410_v32 = vcombine.low %v3420_v59, %v3424_v63  ;;  %v3452_v9 = vld [vmem:[#allocation6 + $0x640] sm:$0xff] }
 0x513   : > { %v16830_v7 = vpop.f32.mrb[53].mxu0  ;;  %6004 = vmatpush1.bf16.msra.mxu1 %v14240_v18  ;;  %v14411_v18 = vcombine.high %v3420_v59, %v3424_v63  ;;  %v3456_v31 = vld [vmem:[#allocation6 + $0x660] sm:$0xff] }
 0x514   : > { %v5740_v50 = vpop.f32.mrb[54].mxu0  ;;  %7657 = vmatpush1.bf16.msra.mxu0 %v14346_v16  ;;  %7671 = vmatprep.subr.bf16.mxu1 %v14371_v51  ;;  %v14523_v16 = vcombine.high %v3532_v5, %v3536_v26  ;;  %v3428_v51 = vld [vmem:[#allocation6 + $0x580] sm:$0xff]  ;;  %v3381_v5 = vld [vmem:[#allocation6 + $0x408] sm:$0xff] }
 0x515   : > { %v5741_v41 = vpop.f32.mrb[55].mxu0  ;;  %7658 = vmatprep.subr.bf16.mxu0 %v14355_v17  ;;  %v3432_v17 = vld [vmem:[#allocation6 + $0x5a0] sm:$0xff]  ;;  %v3385_v26 = vld [vmem:[#allocation6 + $0x428] sm:$0xff] }
 0x516   : > { %6022 = vmatmul.mubr.bf16.vlgmr.msra.gmra.mrb[80].mxu1 %v16794_v56  ;;  %v14498_v56 = vcombine.low %v3508_v30, %v3512_v46  ;;  %v3440_v41 = vld [vmem:[#allocation6 + $0x5e0] sm:$0xff] }
 0x517   : > { %7672 = vmatpush1.bf16.msra.mxu1 %v14370_v37  ;;  %7703 = vmatprep.mubr.bf16.mxu1 %v16834_v43  ;;  %v14419_v37 = vcombine.high %v3428_v51, %v3432_v17  ;;  %v3552_v30 = vld [vmem:[#allocation6 + $0x960] sm:$0xff] }
 0x518   : > { %7659 = vmatpush1.bf16.msra.mxu0 %v14354_v35  ;;  %7673 = vmatprep.subr.bf16.mxu1 %v14379_v52  ;;  %v14531_v35 = vcombine.high %v3540_v27, %v3544_v29  ;;  %v3436_v52 = vld [vmem:[#allocation6 + $0x5c0] sm:$0xff]  ;;  %v14539_v47 = vcombine.high %v3548_v2, %v3552_v30 }
 0x519   : > { %7660 = vmatprep.subr.bf16.mxu0 %v14363_v22  ;;  %v14427_v23 = vcombine.high %v3436_v52, %v3440_v41  ;;  %v3564_v10 = vld [vmem:[#allocation6 + $0x9c0] sm:$0xff] }
 0x51a   : > { %v3568_v62 = vld [vmem:[#allocation6 + $0x9e0] sm:$0xff] }
 0x51b   : > { %7674 = vmatpush1.bf16.msra.mxu1 %v14378_v44  ;;  %v3460_v59 = vld [vmem:[#allocation6 + $0x680] sm:$0xff] }
 0x51c   : > { %7661 = vmatpush1.bf16.msra.mxu0 %v14362_v48  ;;  %7675 = vmatprep.subr.bf16.mxu1 %v14387_v60  ;;  %v14418_v48 = vcombine.low %v3428_v51, %v3432_v17  ;;  %v3464_v63 = vld [vmem:[#allocation6 + $0x6a0] sm:$0xff] }
 0x51d   : > { %7712 = vmatprep.subr.bf16.mxu0 %v14499_v61  ;;  %v14530_v61 = vcombine.low %v3540_v27, %v3544_v29  ;;  %v3468_v51 = vld [vmem:[#allocation6 + $0x6c0] sm:$0xff]  ;;  %v3389_v27 = vld [vmem:[#allocation6 + $0x448] sm:$0xff] }
 0x51e   : > { %v3472_v17 = vld [vmem:[#allocation6 + $0x6e0] sm:$0xff]  ;;  %v3393_v29 = vld [vmem:[#allocation6 + $0x468] sm:$0xff] }
 0x51f   : > { %7663 = vmatmul.mubr.bf16.vlgmr.msra.gmra.mrb[68].mxu0 %v16840_v34  ;;  %7676 = vmatpush1.bf16.msra.mxu1 %v14386_v24  ;;  %v3560_v24 = vld [vmem:[#allocation6 + $0x9a0] sm:$0xff] }
 0x520   : > { %7713 = vmatpush1.bf16.msra.mxu0 %v14498_v56  ;;  %7677 = vmatprep.subr.bf16.mxu1 %v14395_v57  ;;  %v14426_v56 = vcombine.low %v3436_v52, %v3440_v41  ;;  %v14435_v57 = vcombine.high %v3444_v3, %v3448_v19  ;;  %v3476_v52 = vld [vmem:[#allocation6 + $0x700] sm:$0xff] }
 0x521   : > { %7714 = vmatprep.subr.bf16.mxu0 %v14507_v58  ;;  %7744 = vmatprep.mubr.bf16.mxu0 %v16185_v0  ;;  %v3480_v41 = vld [vmem:[#allocation6 + $0x720] sm:$0xff] }
 0x523   : > { %7678 = vmatpush1.bf16.msra.mxu1 %v14394_v12  ;;  %v14434_v12 = vcombine.low %v3444_v3, %v3448_v19  ;;  %v14466_v3 = vcombine.low %v3476_v52, %v3480_v41 }
 0x524   : > { %7715 = vmatpush1.bf16.msra.mxu0 %v14506_v13  ;;  %7679 = vmatprep.subr.bf16.mxu1 %v14403_v14  ;;  %v14443_v14 = vcombine.high %v3452_v9, %v3456_v31 }
 0x525   : > { %7716 = vmatprep.subr.bf16.mxu0 %v14515_v15  ;;  %v14555_v15 = vcombine.high %v3564_v10, %v3568_v62 }
 0x527   : > { %7680 = vmatpush1.bf16.msra.mxu1 %v14402_v4  ;;  %v14442_v4 = vcombine.low %v3452_v9, %v3456_v31 }
 0x528   : > { %7717 = vmatpush1.bf16.msra.mxu0 %v14514_v20  ;;  %7681 = vmatprep.subr.bf16.mxu1 %v14411_v18  ;;  %v14554_v20 = vcombine.low %v3564_v10, %v3568_v62  ;;  %v14451_v18 = vcombine.high %v3460_v59, %v3464_v63 }
 0x529   : > { %v5695_v50 = vpop.f32.mrb[64].mxu1  ;;  %7718 = vmatprep.subr.bf16.mxu0 %v14523_v16  ;;  %v14373_v16 = vcombine.high %v3381_v5, %v3385_v26 }
 0x52a   : > { %v16845_v22 = vadd.f32 %v16828_v54, %v5695_v50  ;;  %v5697_v49 = vpop.f32.mrb[65].mxu1  ;;  %v3556_v54 = vld [vmem:[#allocation6 + $0x980] sm:$0xff]  ;;  %v14459_v50 = vcombine.high %v3468_v51, %v3472_v17 }
 0x52b   : > { %v16848_v46 = vadd.f32 %v16830_v7, %v5697_v49  ;;  %v5699_v44 = vpop.f32.mrb[66].mxu1  ;;  %7682 = vmatpush1.bf16.msra.mxu1 %v14410_v32  ;;  %v14538_v7 = vcombine.low %v3548_v2, %v3552_v30  ;;  %v14547_v58 = vcombine.high %v3556_v54, %v3560_v24  ;;  %v14546_v13 = vcombine.low %v3556_v54, %v3560_v24  ;;  %v3397_v49 = vld [vmem:[#allocation6 + $0x488] sm:$0xff] }
 0x52c   : > { %7719 = vmatpush1.bf16.msra.mxu0 %v14522_v25  ;;  %v5700_v60 = vpop.f32.mrb[67].mxu1  ;;  %7683 = vmatprep.subr.bf16.mxu1 %v14419_v37  ;;  %v14450_v32 = vcombine.low %v3460_v59, %v3464_v63  ;;  %v14372_v25 = vcombine.low %v3381_v5, %v3385_v26  ;;  %v16852_v37 = vpack.c.bf16 %v16774_v55, %v16774_v55  ;;  %v3401_v2 = vld [vmem:[#allocation6 + $0x4a8] sm:$0xff] }
 0x52d   : > { %7720 = vmatprep.subr.bf16.mxu0 %v14531_v35  ;;  %v14381_v35 = vcombine.high %v3389_v27, %v3393_v29  ;;  %v14458_v30 = vcombine.low %v3468_v51, %v3472_v17  ;;  %v14380_v44 = vcombine.low %v3389_v27, %v3393_v29  ;;  %v14389_v55 = vcombine.high %v3397_v49, %v3401_v2  ;;  %v3484_v60 = vld [vmem:[#allocation6 + $0x740] sm:$0xff]  ;;  %v3421_v63 = vld [vmem:[#allocation6 + $0x548] sm:$0xff] }
 0x52e   : > { %v14388_v19 = vcombine.low %v3397_v49, %v3401_v2  ;;  %v3425_v5 = vld [vmem:[#allocation6 + $0x568] sm:$0xff] }
 0x52f   : > { %7684 = vmatpush1.bf16.msra.mxu1 %v14418_v48  ;;  %v14467_v48 = vcombine.high %v3476_v52, %v3480_v41  ;;  %v14413_v17 = vcombine.high %v3421_v63, %v3425_v5  ;;  %v3253_v27 = vld [vmem:[#allocation6 + $0x8] sm:$0xff] }
 0x530   : > { %7721 = vmatpush1.bf16.msra.mxu0 %v14530_v61  ;;  %7685 = vmatprep.subr.bf16.mxu1 %v14427_v23  ;;  %v3488_v61 = vld [vmem:[#allocation6 + $0x760] sm:$0xff]  ;;  %v3405_v23 = vld [vmem:[#allocation6 + $0x4c8] sm:$0xff] }
 0x531   : > { %7722 = vmatprep.subr.bf16.mxu0 %v14539_v47  ;;  %v3409_v47 = vld [vmem:[#allocation6 + $0x4e8] sm:$0xff]  ;;  %v14475_v54 = vcombine.high %v3484_v60, %v3488_v61  ;;  %v14474_v9 = vcombine.low %v3484_v60, %v3488_v61 }
 0x532   : > { %v14397_v24 = vcombine.high %v3405_v23, %v3409_v47  ;;  %v14396_v31 = vcombine.low %v3405_v23, %v3409_v47  ;;  %v3257_v29 = vld [vmem:[#allocation6 + $0x28] sm:$0xff] }
 0x533   : > { %7686 = vmatpush1.bf16.msra.mxu1 %v14426_v56  ;;  %v3492_v56 = vld [vmem:[#allocation6 + $0x780] sm:$0xff]  ;;  %v3261_v52 = vld [vmem:[#allocation6 + $0x48] sm:$0xff] }
 0x534   : > { %7723 = vmatpush1.bf16.msra.mxu0 %v14538_v7  ;;  %7687 = vmatprep.subr.bf16.mxu1 %v14435_v57  ;;  %v3496_v7 = vld [vmem:[#allocation6 + $0x7a0] sm:$0xff]  ;;  %v3413_v57 = vld [vmem:[#allocation6 + $0x508] sm:$0xff] }
 0x535   : > { %7724 = vmatprep.subr.bf16.mxu0 %v14547_v58  ;;  %v3417_v58 = vld [vmem:[#allocation6 + $0x528] sm:$0xff]  ;;  %v14483_v10 = vcombine.high %v3492_v56, %v3496_v7 }
 0x536   : > { %v3265_v41 = vld [vmem:[#allocation6 + $0x68] sm:$0xff] }
 0x537   : > { %7688 = vmatpush1.bf16.msra.mxu1 %v14434_v12  ;;  %v14405_v12 = vcombine.high %v3413_v57, %v3417_v58  ;;  %v3437_v2 = vld [vmem:[#allocation6 + $0x5c8] sm:$0xff]  ;;  %v14253_v23 = vcombine.high %v3261_v52, %v3265_v41 }
 0x538   : > { %7725 = vmatpush1.bf16.msra.mxu0 %v14546_v13  ;;  %7689 = vmatprep.subr.bf16.mxu1 %v14443_v14  ;;  %v3500_v13 = vld [vmem:[#allocation6 + $0x7c0] sm:$0xff] }
 0x539   : > { %7726 = vmatprep.subr.bf16.mxu0 %v14555_v15  ;;  %v3504_v14 = vld [vmem:[#allocation6 + $0x7e0] sm:$0xff] }
 0x53a   : > { %v14491_v51 = vcombine.high %v3500_v13, %v3504_v14 }
 0x53b   : > { %7690 = vmatpush1.bf16.msra.mxu1 %v14442_v4 }
 0x53c   : > { %7727 = vmatpush1.bf16.msra.mxu0 %v14554_v20  ;;  %7691 = vmatprep.subr.bf16.mxu1 %v14451_v18  ;;  %v14482_v20 = vcombine.low %v3492_v56, %v3496_v7  ;;  %v3449_v56 = vld [vmem:[#allocation6 + $0x628] sm:$0xff]  ;;  %v14252_v7 = vcombine.low %v3261_v52, %v3265_v41 }
 0x53d   : > { %7794 = vmatprep.subr.bf16.mxu0 %v14373_v16  ;;  %v14404_v16 = vcombine.low %v3413_v57, %v3417_v58  ;;  %v3301_v52 = vld [vmem:[#allocation6 + $0x188] sm:$0xff] }
 0x53e   : > { %v3305_v41 = vld [vmem:[#allocation6 + $0x1a8] sm:$0xff] }
 0x53f   : > { %7745 = vmatmul.mubr.bf16.vlgmr.msra.gmra.mrb[72].mxu0 %v16852_v37  ;;  %7692 = vmatpush1.bf16.msra.mxu1 %v14450_v32  ;;  %v3433_v32 = vld [vmem:[#allocation6 + $0x5a8] sm:$0xff] }
 0x540   : > { %7795 = vmatpush1.bf16.msra.mxu0 %v14372_v25  ;;  %7826 = vmatprep.mubr.bf16.mxu0 %v16834_v43  ;;  %v14490_v25 = vcombine.low %v3500_v13, %v3504_v14 }
 0x541   : > { %7693 = vmatprep.subr.bf16.mxu1 %v14459_v50  ;;  %7796 = vmatprep.subr.bf16.mxu0 %v14381_v35  ;;  %v14245_v50 = vcombine.high %v3253_v27, %v3257_v29 }
 0x543   : > { %7694 = vmatpush1.bf16.msra.mxu1 %v14458_v30  ;;  %v3441_v30 = vld [vmem:[#allocation6 + $0x5e8] sm:$0xff] }
 0x544   : > { %7797 = vmatpush1.bf16.msra.mxu0 %v14380_v44  ;;  %7695 = vmatprep.subr.bf16.mxu1 %v14467_v48  ;;  %v14244_v48 = vcombine.low %v3253_v27, %v3257_v29  ;;  %v3293_v27 = vld [vmem:[#allocation6 + $0x148] sm:$0xff] }
 0x545   : > { %7798 = vmatprep.subr.bf16.mxu0 %v14389_v55  ;;  %v16868_v55 = vpack.c.bf16 %v16750_v38, %v16750_v38  ;;  %v14428_v38 = vcombine.low %v3437_v2, %v3441_v30  ;;  %v3297_v29 = vld [vmem:[#allocation6 + $0x168] sm:$0xff] }
 0x547   : > { %7696 = vmatpush1.bf16.msra.mxu1 %v14466_v3  ;;  %v14429_v3 = vcombine.high %v3437_v2, %v3441_v30  ;;  %v3477_v2 = vld [vmem:[#allocation6 + $0x708] sm:$0xff] }
 0x548   : > { %7799 = vmatpush1.bf16.msra.mxu0 %v14388_v19  ;;  %7697 = vmatprep.subr.bf16.mxu1 %v14475_v54  ;;  %v3269_v19 = vld [vmem:[#allocation6 + $0x88] sm:$0xff] }
 0x549   : > { %v5777_v62 = vpop.f32.mrb[68].mxu1  ;;  %7800 = vmatprep.subr.bf16.mxu0 %v14397_v24  ;;  %v3273_v54 = vld [vmem:[#allocation6 + $0xa8] sm:$0xff] }
 0x54a   : > { %v16857_v15 = vadd.f32 %v5777_v62, %v16845_v22  ;;  %v5779_v59 = vpop.f32.mrb[69].mxu1  ;;  %v3429_v22 = vld [vmem:[#allocation6 + $0x588] sm:$0xff]  ;;  %v14261_v57 = vcombine.high %v3269_v19, %v3273_v54 }
 0x54b   : > { %v16860_v26 = vadd.f32 %v5779_v59, %v16848_v46  ;;  %v5781_v4 = vpop.f32.mrb[70].mxu1  ;;  %7698 = vmatpush1.bf16.msra.mxu1 %v14474_v9  ;;  %v14412_v46 = vcombine.low %v3421_v63, %v3425_v5  ;;  %v14421_v35 = vcombine.high %v3429_v22, %v3433_v32  ;;  %v14420_v61 = vcombine.low %v3429_v22, %v3433_v32  ;;  %v3445_v24 = vld [vmem:[#allocation6 + $0x608] sm:$0xff] }
 0x54c   : > { %7801 = vmatpush1.bf16.msra.mxu0 %v14396_v31  ;;  %v5782_v18 = vpop.f32.mrb[71].mxu1  ;;  %7699 = vmatprep.subr.bf16.mxu1 %v14483_v10  ;;  %v14437_v58 = vcombine.high %v3445_v24, %v3449_v56  ;;  %v3277_v9 = vld [vmem:[#allocation6 + $0xc8] sm:$0xff]  ;;  %v14436_v13 = vcombine.low %v3445_v24, %v3449_v56  ;;  %v14292_v24 = vcombine.low %v3301_v52, %v3305_v41 }
 0x54d   : > { %7802 = vmatprep.subr.bf16.mxu0 %v14405_v12  ;;  %v3281_v31 = vld [vmem:[#allocation6 + $0xe8] sm:$0xff]  ;;  %v14260_v12 = vcombine.low %v3269_v19, %v3273_v54 }
 0x54e   : > { %v3453_v10 = vld [vmem:[#allocation6 + $0x648] sm:$0xff]  ;;  %v14269_v14 = vcombine.high %v3277_v9, %v3281_v31  ;;  %v14268_v18 = vcombine.low %v3277_v9, %v3281_v31 }
 0x54f   : > { %7700 = vmatpush1.bf16.msra.mxu1 %v14482_v20  ;;  %v3457_v62 = vld [vmem:[#allocation6 + $0x668] sm:$0xff] }
 0x550   : > { %7803 = vmatpush1.bf16.msra.mxu0 %v14404_v16  ;;  %7701 = vmatprep.subr.bf16.mxu1 %v14491_v51  ;;  %v14445_v59 = vcombine.high %v3453_v10, %v3457_v62  ;;  %v3285_v63 = vld [vmem:[#allocation6 + $0x108] sm:$0xff]  ;;  %v14444_v16 = vcombine.low %v3453_v10, %v3457_v62 }
 0x551   : > { %7804 = vmatprep.subr.bf16.mxu0 %v14413_v17  ;;  %v3289_v5 = vld [vmem:[#allocation6 + $0x128] sm:$0xff] }
 0x552   : > { %v16862_v49 = vpop.f32.mrb[56].mxu0  ;;  %v3461_v4 = vld [vmem:[#allocation6 + $0x688] sm:$0xff]  ;;  %v14277_v51 = vcombine.high %v3285_v63, %v3289_v5 }
 0x553   : > { %v16864_v44 = vpop.f32.mrb[57].mxu0  ;;  %7702 = vmatpush1.bf16.msra.mxu1 %v14490_v25  ;;  %v3465_v20 = vld [vmem:[#allocation6 + $0x6a8] sm:$0xff]  ;;  %v14276_v25 = vcombine.low %v3285_v63, %v3289_v5 }
 0x554   : > { %v5822_v60 = vpop.f32.mrb[58].mxu0  ;;  %7805 = vmatpush1.bf16.msra.mxu0 %v14412_v46  ;;  %7753 = vmatprep.subr.bf16.mxu1 %v14245_v50  ;;  %v14453_v17 = vcombine.high %v3461_v4, %v3465_v20  ;;  %v3469_v22 = vld [vmem:[#allocation6 + $0x6c8] sm:$0xff]  ;;  %v14452_v46 = vcombine.low %v3461_v4, %v3465_v20  ;;  %v14285_v50 = vcombine.high %v3293_v27, %v3297_v29 }
 0x555   : > { %v5823_v47 = vpop.f32.mrb[59].mxu0  ;;  %7806 = vmatprep.subr.bf16.mxu0 %v14421_v35  ;;  %v3473_v32 = vld [vmem:[#allocation6 + $0x6e8] sm:$0xff] }
 0x556   : > { %7704 = vmatmul.mubr.bf16.vlgmr.msra.gmra.mrb[84].mxu1 %v16868_v55  ;;  %v14461_v35 = vcombine.high %v3469_v22, %v3473_v32  ;;  %v3481_v30 = vld [vmem:[#allocation6 + $0x728] sm:$0xff]  ;;  %v14460_v60 = vcombine.low %v3469_v22, %v3473_v32 }
 0x557   : > { %7754 = vmatpush1.bf16.msra.mxu1 %v14244_v48  ;;  %7785 = vmatprep.mubr.bf16.mxu1 %v16816_v42  ;;  %v14284_v48 = vcombine.low %v3293_v27, %v3297_v29  ;;  %v3309_v47 = vld [vmem:[#allocation6 + $0x1c8] sm:$0xff]  ;;  %v14468_v56 = vcombine.low %v3477_v2, %v3481_v30 }
 0x558   : > { %7807 = vmatpush1.bf16.msra.mxu0 %v14420_v61  ;;  %7755 = vmatprep.subr.bf16.mxu1 %v14253_v23  ;;  %v14293_v61 = vcombine.high %v3301_v52, %v3305_v41  ;;  %v14469_v23 = vcombine.high %v3477_v2, %v3481_v30  ;;  %v3485_v19 = vld [vmem:[#allocation6 + $0x748] sm:$0xff] }
 0x559   : > { %7808 = vmatprep.subr.bf16.mxu0 %v14429_v3  ;;  %v3313_v3 = vld [vmem:[#allocation6 + $0x1e8] sm:$0xff] }
 0x55a   : > { %v3489_v54 = vld [vmem:[#allocation6 + $0x768] sm:$0xff]  ;;  %v14300_v10 = vcombine.low %v3309_v47, %v3313_v3 }
 0x55b   : > { %7756 = vmatpush1.bf16.msra.mxu1 %v14252_v7  ;;  %v14301_v7 = vcombine.high %v3309_v47, %v3313_v3  ;;  %v3493_v9 = vld [vmem:[#allocation6 + $0x788] sm:$0xff]  ;;  %v14476_v62 = vcombine.low %v3485_v19, %v3489_v54 }
 0x55c   : > { %7809 = vmatpush1.bf16.msra.mxu0 %v14428_v38  ;;  %7757 = vmatprep.subr.bf16.mxu1 %v14261_v57  ;;  %v14477_v38 = vcombine.high %v3485_v19, %v3489_v54  ;;  %v3317_v57 = vld [vmem:[#allocation6 + $0x208] sm:$0xff] }
 0x55d   : > { %7810 = vmatprep.subr.bf16.mxu0 %v14437_v58  ;;  %v3321_v58 = vld [vmem:[#allocation6 + $0x228] sm:$0xff] }
 0x55e   : > { %v3497_v31 = vld [vmem:[#allocation6 + $0x7a8] sm:$0xff] }
 0x55f   : > { %7758 = vmatpush1.bf16.msra.mxu1 %v14260_v12  ;;  %v14309_v12 = vcombine.high %v3317_v57, %v3321_v58  ;;  %v3501_v5 = vld [vmem:[#allocation6 + $0x7c8] sm:$0xff] }
 0x560   : > { %7811 = vmatpush1.bf16.msra.mxu0 %v14436_v13  ;;  %7759 = vmatprep.subr.bf16.mxu1 %v14269_v14  ;;  %v14485_v13 = vcombine.high %v3493_v9, %v3497_v31  ;;  %v3325_v14 = vld [vmem:[#allocation6 + $0x248] sm:$0xff] }
 0x561   : > { %7812 = vmatprep.subr.bf16.mxu0 %v14445_v59  ;;  %v3329_v59 = vld [vmem:[#allocation6 + $0x268] sm:$0xff] }
 0x562   : > { %v3505_v4 = vld [vmem:[#allocation6 + $0x7e8] sm:$0xff] }
 0x563   : > { %7760 = vmatpush1.bf16.msra.mxu1 %v14268_v18  ;;  %v14308_v18 = vcombine.low %v3317_v57, %v3321_v58  ;;  %v14493_v29 = vcombine.high %v3501_v5, %v3505_v4  ;;  %v3333_v22 = vld [vmem:[#allocation6 + $0x288] sm:$0xff] }
 0x564   : > { %7813 = vmatpush1.bf16.msra.mxu0 %v14444_v16  ;;  %7761 = vmatprep.subr.bf16.mxu1 %v14277_v51  ;;  %v14484_v51 = vcombine.low %v3493_v9, %v3497_v31  ;;  %v3337_v32 = vld [vmem:[#allocation6 + $0x2a8] sm:$0xff] }
 0x565   : > { %7814 = vmatprep.subr.bf16.mxu0 %v14453_v17  ;;  %v14317_v17 = vcombine.high %v3325_v14, %v3329_v59  ;;  %v14325_v52 = vcombine.high %v3333_v22, %v3337_v32  ;;  %v3341_v2 = vld [vmem:[#allocation6 + $0x2c8] sm:$0xff] }
 0x566   : > { %v3345_v30 = vld [vmem:[#allocation6 + $0x2e8] sm:$0xff] }
 0x567   : > { %7762 = vmatpush1.bf16.msra.mxu1 %v14276_v25  ;;  %v3254_v25 = vld [vmem:[#allocation6 + $0x10] sm:$0xff]  ;;  %v14333_v47 = vcombine.high %v3341_v2, %v3345_v30  ;;  %v3349_v19 = vld [vmem:[#allocation6 + $0x308] sm:$0xff] }
 0x568   : > { %7815 = vmatpush1.bf16.msra.mxu0 %v14452_v46  ;;  %7763 = vmatprep.subr.bf16.mxu1 %v14285_v50  ;;  %v3258_v46 = vld [vmem:[#allocation6 + $0x30] sm:$0xff]  ;;  %v14316_v50 = vcombine.low %v3325_v14, %v3329_v59  ;;  %v3353_v54 = vld [vmem:[#allocation6 + $0x328] sm:$0xff] }
 0x569   : > { %7816 = vmatprep.subr.bf16.mxu0 %v14461_v35  ;;  %v14492_v35 = vcombine.low %v3501_v5, %v3505_v4  ;;  %v14247_v41 = vcombine.high %v3254_v25, %v3258_v46  ;;  %v14341_v57 = vcombine.high %v3349_v19, %v3353_v54  ;;  %v3357_v9 = vld [vmem:[#allocation6 + $0x348] sm:$0xff] }
 0x56a   : > { %v3361_v31 = vld [vmem:[#allocation6 + $0x368] sm:$0xff] }
 0x56b   : > { %7764 = vmatpush1.bf16.msra.mxu1 %v14284_v48  ;;  %v3262_v48 = vld [vmem:[#allocation6 + $0x50] sm:$0xff]  ;;  %v14349_v14 = vcombine.high %v3357_v9, %v3361_v31  ;;  %v3365_v5 = vld [vmem:[#allocation6 + $0x388] sm:$0xff] }
 0x56c   : > { %7817 = vmatpush1.bf16.msra.mxu0 %v14460_v60  ;;  %7765 = vmatprep.subr.bf16.mxu1 %v14293_v61  ;;  %v3266_v60 = vld [vmem:[#allocation6 + $0x70] sm:$0xff]  ;;  %v14324_v61 = vcombine.low %v3333_v22, %v3337_v32  ;;  %v3369_v4 = vld [vmem:[#allocation6 + $0x3a8] sm:$0xff] }
 0x56d   : > { %7818 = vmatprep.subr.bf16.mxu0 %v14469_v23  ;;  %v14246_v23 = vcombine.low %v3254_v25, %v3258_v46  ;;  %v14255_v3 = vcombine.high %v3262_v48, %v3266_v60  ;;  %v3373_v32 = vld [vmem:[#allocation6 + $0x3c8] sm:$0xff] }
 0x56e   : > { %v3377_v25 = vld [vmem:[#allocation6 + $0x3e8] sm:$0xff] }
 0x56f   : > { %7766 = vmatpush1.bf16.msra.mxu1 %v14292_v24  ;;  %v3270_v24 = vld [vmem:[#allocation6 + $0x90] sm:$0xff] }
 0x570   : > { %7819 = vmatpush1.bf16.msra.mxu0 %v14468_v56  ;;  %7767 = vmatprep.subr.bf16.mxu1 %v14301_v7  ;;  %v3274_v56 = vld [vmem:[#allocation6 + $0xb0] sm:$0xff]  ;;  %v14332_v7 = vcombine.low %v3341_v2, %v3345_v30  ;;  %v14356_v30 = vcombine.low %v3365_v5, %v3369_v4 }
 0x571   : > { %7820 = vmatprep.subr.bf16.mxu0 %v14477_v38  ;;  %v14254_v38 = vcombine.low %v3262_v48, %v3266_v60  ;;  %v14263_v58 = vcombine.high %v3270_v24, %v3274_v56 }
 0x572   : > { %v16872_v63 = vpop.f32.mrb[60].mxu0 }
 0x573   : > { %v16874_v20 = vpop.f32.mrb[61].mxu0  ;;  %7768 = vmatpush1.bf16.msra.mxu1 %v14300_v10  ;;  %v3278_v10 = vld [vmem:[#allocation6 + $0xd0] sm:$0xff] }
 0x574   : > { %v5904_v16 = vpop.f32.mrb[62].mxu0  ;;  %7821 = vmatpush1.bf16.msra.mxu0 %v14476_v62  ;;  %7769 = vmatprep.subr.bf16.mxu1 %v14309_v12  ;;  %v3282_v62 = vld [vmem:[#allocation6 + $0xf0] sm:$0xff]  ;;  %v14340_v12 = vcombine.low %v3349_v19, %v3353_v54 }
 0x575   : > { %v5905_v27 = vpop.f32.mrb[63].mxu0  ;;  %7822 = vmatprep.subr.bf16.mxu0 %v14485_v13  ;;  %v14262_v13 = vcombine.low %v3270_v24, %v3274_v56  ;;  %v14271_v59 = vcombine.high %v3278_v10, %v3282_v62  ;;  %v3290_v16 = vld [vmem:[#allocation6 + $0x130] sm:$0xff]  ;;  %v14364_v24 = vcombine.low %v3373_v32, %v3377_v25 }
 0x576   : > { %v14357_v27 = vcombine.high %v3365_v5, %v3369_v4  ;;  %v3302_v54 = vld [vmem:[#allocation6 + $0x190] sm:$0xff] }
 0x577   : > { %7770 = vmatpush1.bf16.msra.mxu1 %v14308_v18  ;;  %v3286_v18 = vld [vmem:[#allocation6 + $0x110] sm:$0xff] }
 0x578   : > { %7823 = vmatpush1.bf16.msra.mxu0 %v14484_v51  ;;  %7771 = vmatprep.subr.bf16.mxu1 %v14317_v17  ;;  %v14348_v51 = vcombine.low %v3357_v9, %v3361_v31  ;;  %v14270_v17 = vcombine.low %v3278_v10, %v3282_v62  ;;  %v14279_v22 = vcombine.high %v3286_v18, %v3290_v16  ;;  %v3314_v9 = vld [vmem:[#allocation6 + $0x1f0] sm:$0xff] }
 0x579   : > { %7824 = vmatprep.subr.bf16.mxu0 %v14493_v29  ;;  %v14278_v60 = vcombine.low %v3286_v18, %v3290_v16 }
 0x57b   : > { %7772 = vmatpush1.bf16.msra.mxu1 %v14316_v50 }
 0x57c   : > { %7825 = vmatpush1.bf16.msra.mxu0 %v14492_v35  ;;  %7773 = vmatprep.subr.bf16.mxu1 %v14325_v52  ;;  %v3294_v35 = vld [vmem:[#allocation6 + $0x150] sm:$0xff] }
 0x57d   : > { %7876 = vmatprep.subr.bf16.mxu0 %v14247_v41  ;;  %v3298_v52 = vld [vmem:[#allocation6 + $0x170] sm:$0xff] }
 0x57e   : > { %v14286_v56 = vcombine.low %v3294_v35, %v3298_v52 }
 0x57f   : > { %7827 = vmatmul.mubr.bf16.vlgmr.msra.gmra.mrb[76].mxu0 %v16868_v55  ;;  %7774 = vmatpush1.bf16.msra.mxu1 %v14324_v61  ;;  %v14365_v61 = vcombine.high %v3373_v32, %v3377_v25 }
 0x580   : > { %7877 = vmatpush1.bf16.msra.mxu0 %v14246_v23  ;;  %7908 = vmatprep.mubr.bf16.mxu0 %v16816_v42 }
 0x581   : > { %7775 = vmatprep.subr.bf16.mxu1 %v14333_v47  ;;  %7878 = vmatprep.subr.bf16.mxu0 %v14255_v3  ;;  %v14287_v47 = vcombine.high %v3294_v35, %v3298_v52  ;;  %v3509_v3 = vld [vmem:[#allocation6 + $0x808] sm:$0xff]  ;;  %v3334_v52 = vld [vmem:[#allocation6 + $0x290] sm:$0xff] }
 0x582   : > { %v3545_v35 = vld [vmem:[#allocation6 + $0x928] sm:$0xff] }
 0x583   : > { %7776 = vmatpush1.bf16.msra.mxu1 %v14332_v7 }
 0x584   : > { %7879 = vmatpush1.bf16.msra.mxu0 %v14254_v38  ;;  %7777 = vmatprep.subr.bf16.mxu1 %v14341_v57  ;;  %v3517_v57 = vld [vmem:[#allocation6 + $0x848] sm:$0xff] }
 0x585   : > { %7880 = vmatprep.subr.bf16.mxu0 %v14263_v58  ;;  %v3310_v58 = vld [vmem:[#allocation6 + $0x1d0] sm:$0xff] }
 0x586   : > { %v14303_v62 = vcombine.high %v3310_v58, %v3314_v9  ;;  %v14302_v4 = vcombine.low %v3310_v58, %v3314_v9 }
 0x587   : > { %7778 = vmatpush1.bf16.msra.mxu1 %v14340_v12  ;;  %v3525_v12 = vld [vmem:[#allocation6 + $0x888] sm:$0xff] }
 0x588   : > { %7881 = vmatpush1.bf16.msra.mxu0 %v14262_v13  ;;  %7779 = vmatprep.subr.bf16.mxu1 %v14349_v14  ;;  %v3529_v13 = vld [vmem:[#allocation6 + $0x8a8] sm:$0xff]  ;;  %v3318_v14 = vld [vmem:[#allocation6 + $0x210] sm:$0xff] }
 0x589   : > { %v5859_v29 = vpop.f32.mrb[72].mxu1  ;;  %7882 = vmatprep.subr.bf16.mxu0 %v14271_v59  ;;  %v3322_v59 = vld [vmem:[#allocation6 + $0x230] sm:$0xff]  ;;  %v14517_v18 = vcombine.high %v3525_v12, %v3529_v13 }
 0x58a   : > { %v5860_v46 = vadd.f32 %v5859_v29, %v16862_v49  ;;  %v5861_v50 = vpop.f32.mrb[73].mxu1  ;;  %v3513_v49 = vld [vmem:[#allocation6 + $0x828] sm:$0xff]  ;;  %v14311_v16 = vcombine.high %v3318_v14, %v3322_v59  ;;  %v3330_v29 = vld [vmem:[#allocation6 + $0x270] sm:$0xff]  ;;  %v14310_v32 = vcombine.low %v3318_v14, %v3322_v59 }
 0x58b   : > { %v5862_v41 = vadd.f32 %v5861_v50, %v16864_v44  ;;  %v5863_v2 = vpop.f32.mrb[74].mxu1  ;;  %7780 = vmatpush1.bf16.msra.mxu1 %v14348_v51  ;;  %v3306_v44 = vld [vmem:[#allocation6 + $0x1b0] sm:$0xff]  ;;  %v14501_v7 = vcombine.high %v3509_v3, %v3513_v49  ;;  %v14500_v31 = vcombine.low %v3509_v3, %v3513_v49  ;;  %v3533_v51 = vld [vmem:[#allocation6 + $0x8c8] sm:$0xff] }
 0x58c   : > { %7883 = vmatpush1.bf16.msra.mxu0 %v14270_v17  ;;  %v5864_v48 = vpop.f32.mrb[75].mxu1  ;;  %7781 = vmatprep.subr.bf16.mxu1 %v14357_v27  ;;  %v16881_v23 = vadd.f32 %v16872_v63, %v5860_v46  ;;  %v14295_v38 = vcombine.high %v3302_v54, %v3306_v44  ;;  %v3521_v63 = vld [vmem:[#allocation6 + $0x868] sm:$0xff]  ;;  %v3326_v27 = vld [vmem:[#allocation6 + $0x250] sm:$0xff] }
 0x58d   : > { %7884 = vmatprep.subr.bf16.mxu0 %v14279_v22  ;;  %v16884_v19 = vadd.f32 %v16874_v20, %v5862_v41  ;;  %v14294_v20 = vcombine.low %v3302_v54, %v3306_v44  ;;  %v14509_v10 = vcombine.high %v3517_v57, %v3521_v63  ;;  %v14508_v5 = vcombine.low %v3517_v57, %v3521_v63  ;;  %v3537_v17 = vld [vmem:[#allocation6 + $0x8e8] sm:$0xff]  ;;  %v3338_v41 = vld [vmem:[#allocation6 + $0x2b0] sm:$0xff] }
 0x58e   : > { %v14516_v22 = vcombine.low %v3525_v12, %v3529_v13  ;;  %v14525_v25 = vcombine.high %v3533_v51, %v3537_v17  ;;  %v14319_v46 = vcombine.high %v3326_v27, %v3330_v29  ;;  %v3541_v50 = vld [vmem:[#allocation6 + $0x908] sm:$0xff]  ;;  %v14524_v2 = vcombine.low %v3533_v51, %v3537_v17  ;;  %v3342_v3 = vld [vmem:[#allocation6 + $0x2d0] sm:$0xff] }
 0x58f   : > { %7782 = vmatpush1.bf16.msra.mxu1 %v14356_v30  ;;  %v14318_v30 = vcombine.low %v3326_v27, %v3330_v29  ;;  %v14533_v48 = vcombine.high %v3541_v50, %v3545_v35  ;;  %v3346_v49 = vld [vmem:[#allocation6 + $0x2f0] sm:$0xff]  ;;  %v14532_v54 = vcombine.low %v3541_v50, %v3545_v35  ;;  %v14326_v44 = vcombine.low %v3334_v52, %v3338_v41 }
 0x590   : > { %7885 = vmatpush1.bf16.msra.mxu0 %v14278_v60  ;;  %7783 = vmatprep.subr.bf16.mxu1 %v14365_v61  ;;  %v14327_v60 = vcombine.high %v3334_v52, %v3338_v41  ;;  %v3549_v61 = vld [vmem:[#allocation6 + $0x948] sm:$0xff]  ;;  %v3350_v57 = vld [vmem:[#allocation6 + $0x310] sm:$0xff]  ;;  %v14334_v9 = vcombine.low %v3342_v3, %v3346_v49 }
 0x591   : > { %7886 = vmatprep.subr.bf16.mxu0 %v14287_v47  ;;  %v3553_v47 = vld [vmem:[#allocation6 + $0x968] sm:$0xff]  ;;  %v3354_v63 = vld [vmem:[#allocation6 + $0x330] sm:$0xff] }
 0x592   : > { %v14540_v58 = vcombine.low %v3549_v61, %v3553_v47  ;;  %v3358_v12 = vld [vmem:[#allocation6 + $0x350] sm:$0xff]  ;;  %v14342_v59 = vcombine.low %v3350_v57, %v3354_v63 }
 0x593   : > { %7784 = vmatpush1.bf16.msra.mxu1 %v14364_v24  ;;  %v14541_v24 = vcombine.high %v3549_v61, %v3553_v47  ;;  %v3362_v13 = vld [vmem:[#allocation6 + $0x370] sm:$0xff] }
 0x594   : > { %7887 = vmatpush1.bf16.msra.mxu0 %v14286_v56  ;;  %7835 = vmatprep.subr.bf16.mxu1 %v14501_v7  ;;  %v14335_v56 = vcombine.high %v3342_v3, %v3346_v49  ;;  %v3557_v7 = vld [vmem:[#allocation6 + $0x988] sm:$0xff]  ;;  %v3366_v51 = vld [vmem:[#allocation6 + $0x390] sm:$0xff]  ;;  %v14350_v29 = vcombine.low %v3358_v12, %v3362_v13 }
 0x595   : > { %7888 = vmatprep.subr.bf16.mxu0 %v14295_v38  ;;  %v3561_v38 = vld [vmem:[#allocation6 + $0x9a8] sm:$0xff]  ;;  %v3370_v17 = vld [vmem:[#allocation6 + $0x3b0] sm:$0xff] }
 0x596   : > { %7786 = vmatmul.mubr.bf16.vlgmr.msra.gmra.mrb[88].mxu1 %v16840_v34  ;;  %v14548_v14 = vcombine.low %v3557_v7, %v3561_v38  ;;  %v3374_v35 = vld [vmem:[#allocation6 + $0x3d0] sm:$0xff] }
 0x597   : > { %7836 = vmatpush1.bf16.msra.mxu1 %v14500_v31  ;;  %7867 = vmatprep.mubr.bf16.mxu1 %v16185_v0  ;;  %v14549_v31 = vcombine.high %v3557_v7, %v3561_v38  ;;  %v3378_v52 = vld [vmem:[#allocation6 + $0x3f0] sm:$0xff] }
 0x598   : > { %7889 = vmatpush1.bf16.msra.mxu0 %v14294_v20  ;;  %7837 = vmatprep.subr.bf16.mxu1 %v14509_v10  ;;  %v14343_v20 = vcombine.high %v3350_v57, %v3354_v63  ;;  %v3565_v10 = vld [vmem:[#allocation6 + $0x9c8] sm:$0xff]  ;;  %v14367_v47 = vcombine.high %v3374_v35, %v3378_v52  ;;  %v3398_v3 = vld [vmem:[#allocation6 + $0x490] sm:$0xff] }
 0x599   : > { %7890 = vmatprep.subr.bf16.mxu0 %v14303_v62  ;;  %v3569_v62 = vld [vmem:[#allocation6 + $0x9e8] sm:$0xff]  ;;  %v3402_v49 = vld [vmem:[#allocation6 + $0x4b0] sm:$0xff] }
 0x59a   : > { %v14556_v27 = vcombine.low %v3565_v10, %v3569_v62  ;;  %v14391_v7 = vcombine.high %v3398_v3, %v3402_v49  ;;  %v3406_v57 = vld [vmem:[#allocation6 + $0x4d0] sm:$0xff] }
 0x59b   : > { %7838 = vmatpush1.bf16.msra.mxu1 %v14508_v5  ;;  %v14557_v5 = vcombine.high %v3565_v10, %v3569_v62  ;;  %v3410_v63 = vld [vmem:[#allocation6 + $0x4f0] sm:$0xff] }
 0x59c   : > { %7891 = vmatpush1.bf16.msra.mxu0 %v14302_v4  ;;  %7839 = vmatprep.subr.bf16.mxu1 %v14517_v18  ;;  %v14351_v4 = vcombine.high %v3358_v12, %v3362_v13  ;;  %v3382_v18 = vld [vmem:[#allocation6 + $0x410] sm:$0xff]  ;;  %v14399_v10 = vcombine.high %v3406_v57, %v3410_v63 }
 0x59d   : > { %7892 = vmatprep.subr.bf16.mxu0 %v14311_v16  ;;  %v3386_v16 = vld [vmem:[#allocation6 + $0x430] sm:$0xff] }
 0x59e   : > { %v3414_v12 = vld [vmem:[#allocation6 + $0x510] sm:$0xff] }
 0x59f   : > { %7840 = vmatpush1.bf16.msra.mxu1 %v14516_v22  ;;  %v14375_v22 = vcombine.high %v3382_v18, %v3386_v16  ;;  %v3418_v13 = vld [vmem:[#allocation6 + $0x530] sm:$0xff] }
 0x5a0   : > { %7893 = vmatpush1.bf16.msra.mxu0 %v14310_v32  ;;  %7841 = vmatprep.subr.bf16.mxu1 %v14525_v25  ;;  %v14359_v32 = vcombine.high %v3366_v51, %v3370_v17  ;;  %v3390_v25 = vld [vmem:[#allocation6 + $0x450] sm:$0xff] }
 0x5a1   : > { %7894 = vmatprep.subr.bf16.mxu0 %v14319_v46  ;;  %v3394_v46 = vld [vmem:[#allocation6 + $0x470] sm:$0xff] }
 0x5a3   : > { %7842 = vmatpush1.bf16.msra.mxu1 %v14524_v2  ;;  %v14374_v2 = vcombine.low %v3382_v18, %v3386_v16  ;;  %v14407_v18 = vcombine.high %v3414_v12, %v3418_v13 }
 0x5a4   : > { %7895 = vmatpush1.bf16.msra.mxu0 %v14318_v30  ;;  %7843 = vmatprep.subr.bf16.mxu1 %v14533_v48  ;;  %v14358_v48 = vcombine.low %v3366_v51, %v3370_v17  ;;  %v3422_v51 = vld [vmem:[#allocation6 + $0x550] sm:$0xff] }
 0x5a5   : > { %7896 = vmatprep.subr.bf16.mxu0 %v14327_v60  ;;  %v14383_v60 = vcombine.high %v3390_v25, %v3394_v46  ;;  %v3426_v17 = vld [vmem:[#allocation6 + $0x570] sm:$0xff] }
 0x5a7   : > { %7844 = vmatpush1.bf16.msra.mxu1 %v14532_v54  ;;  %v3510_v54 = vld [vmem:[#allocation6 + $0x810] sm:$0xff] }
 0x5a8   : > { %7897 = vmatpush1.bf16.msra.mxu0 %v14326_v44  ;;  %7845 = vmatprep.subr.bf16.mxu1 %v14541_v24  ;;  %v3514_v44 = vld [vmem:[#allocation6 + $0x830] sm:$0xff]  ;;  %v14382_v24 = vcombine.low %v3390_v25, %v3394_v46  ;;  %v14415_v25 = vcombine.high %v3422_v51, %v3426_v17 }
 0x5a9   : > { %7898 = vmatprep.subr.bf16.mxu0 %v14335_v56  ;;  %v14366_v56 = vcombine.low %v3374_v35, %v3378_v52  ;;  %v14503_v38 = vcombine.high %v3510_v54, %v3514_v44  ;;  %v3430_v35 = vld [vmem:[#allocation6 + $0x590] sm:$0xff] }
 0x5aa   : > { %v3434_v52 = vld [vmem:[#allocation6 + $0x5b0] sm:$0xff] }
 0x5ab   : > { %7846 = vmatpush1.bf16.msra.mxu1 %v14540_v58  ;;  %v3518_v58 = vld [vmem:[#allocation6 + $0x850] sm:$0xff] }
 0x5ac   : > { %7899 = vmatpush1.bf16.msra.mxu0 %v14334_v9  ;;  %7847 = vmatprep.subr.bf16.mxu1 %v14549_v31  ;;  %v3522_v9 = vld [vmem:[#allocation6 + $0x870] sm:$0xff]  ;;  %v14390_v31 = vcombine.low %v3398_v3, %v3402_v49 }
 0x5ad   : > { %7900 = vmatprep.subr.bf16.mxu0 %v14343_v20  ;;  %v14502_v20 = vcombine.low %v3510_v54, %v3514_v44  ;;  %v14511_v62 = vcombine.high %v3518_v58, %v3522_v9  ;;  %v3438_v49 = vld [vmem:[#allocation6 + $0x5d0] sm:$0xff] }
 0x5ae   : > { %v3442_v54 = vld [vmem:[#allocation6 + $0x5f0] sm:$0xff] }
 0x5af   : > { %7848 = vmatpush1.bf16.msra.mxu1 %v14548_v14  ;;  %v3526_v14 = vld [vmem:[#allocation6 + $0x890] sm:$0xff] }
 0x5b0   : > { %7901 = vmatpush1.bf16.msra.mxu0 %v14342_v59  ;;  %7849 = vmatprep.subr.bf16.mxu1 %v14557_v5  ;;  %v3530_v59 = vld [vmem:[#allocation6 + $0x8b0] sm:$0xff]  ;;  %v14398_v5 = vcombine.low %v3406_v57, %v3410_v63  ;;  %v14422_v63 = vcombine.low %v3430_v35, %v3434_v52 }
 0x5b1   : > { %7902 = vmatprep.subr.bf16.mxu0 %v14351_v4  ;;  %v14510_v4 = vcombine.low %v3518_v58, %v3522_v9  ;;  %v14519_v16 = vcombine.high %v3526_v14, %v3530_v59 }
 0x5b2   : > { %v16888_v50 = vpop.f32.mrb[64].mxu0 }
 0x5b3   : > { %v16890_v41 = vpop.f32.mrb[65].mxu0  ;;  %7850 = vmatpush1.bf16.msra.mxu1 %v14556_v27  ;;  %v3534_v27 = vld [vmem:[#allocation6 + $0x8d0] sm:$0xff] }
 0x5b4   : > { %v5986_v30 = vpop.f32.mrb[66].mxu0  ;;  %7903 = vmatpush1.bf16.msra.mxu0 %v14350_v29  ;;  %7917 = vmatprep.subr.bf16.mxu1 %v14375_v22  ;;  %v3538_v29 = vld [vmem:[#allocation6 + $0x8f0] sm:$0xff]  ;;  %v14406_v22 = vcombine.low %v3414_v12, %v3418_v13  ;;  %v14430_v13 = vcombine.low %v3438_v49, %v3442_v54 }
 0x5b5   : > { %v5987_v61 = vpop.f32.mrb[67].mxu0  ;;  %7904 = vmatprep.subr.bf16.mxu0 %v14359_v32  ;;  %v14518_v32 = vcombine.low %v3526_v14, %v3530_v59  ;;  %v14527_v46 = vcombine.high %v3534_v27, %v3538_v29  ;;  %v3546_v30 = vld [vmem:[#allocation6 + $0x930] sm:$0xff] }
 0x5b6   : > { %7868 = vmatmul.mubr.bf16.vlgmr.msra.gmra.mrb[92].mxu1 %v16852_v37  ;;  %v14423_v61 = vcombine.high %v3430_v35, %v3434_v52  ;;  %v3562_v12 = vld [vmem:[#allocation6 + $0x9b0] sm:$0xff] }
 0x5b7   : > { %7918 = vmatpush1.bf16.msra.mxu1 %v14374_v2  ;;  %7949 = vmatprep.mubr.bf16.mxu1 %v16834_v43  ;;  %v3542_v2 = vld [vmem:[#allocation6 + $0x910] sm:$0xff] }
 0x5b8   : > { %7905 = vmatpush1.bf16.msra.mxu0 %v14358_v48  ;;  %7919 = vmatprep.subr.bf16.mxu1 %v14383_v60  ;;  %v14414_v48 = vcombine.low %v3422_v51, %v3426_v17  ;;  %v14526_v60 = vcombine.low %v3534_v27, %v3538_v29  ;;  %v14535_v3 = vcombine.high %v3542_v2, %v3546_v30 }
 0x5b9   : > { %7906 = vmatprep.subr.bf16.mxu0 %v14367_v47  ;;  %v14534_v9 = vcombine.low %v3542_v2, %v3546_v30 }
 0x5bb   : > { %7920 = vmatpush1.bf16.msra.mxu1 %v14382_v24 }
 0x5bc   : > { %7907 = vmatpush1.bf16.msra.mxu0 %v14366_v56  ;;  %7921 = vmatprep.subr.bf16.mxu1 %v14391_v7  ;;  %v3550_v56 = vld [vmem:[#allocation6 + $0x950] sm:$0xff] }
 0x5bd   : > { %7958 = vmatprep.subr.bf16.mxu0 %v14503_v38  ;;  %v3554_v7 = vld [vmem:[#allocation6 + $0x970] sm:$0xff] }
 0x5bf   : > { %7909 = vmatmul.mubr.bf16.vlgmr.msra.gmra.mrb[80].mxu0 %v16840_v34  ;;  %7922 = vmatpush1.bf16.msra.mxu1 %v14390_v31  ;;  %v14431_v31 = vcombine.high %v3438_v49, %v3442_v54 }
 0x5c0   : > { %7959 = vmatpush1.bf16.msra.mxu0 %v14502_v20  ;;  %7923 = vmatprep.subr.bf16.mxu1 %v14399_v10  ;;  %v14543_v20 = vcombine.high %v3550_v56, %v3554_v7  ;;  %v3446_v10 = vld [vmem:[#allocation6 + $0x610] sm:$0xff] }
 0x5c1   : > { %7960 = vmatprep.subr.bf16.mxu0 %v14511_v62  ;;  %7990 = vmatprep.mubr.bf16.mxu0 %v16185_v0  ;;  %v3450_v62 = vld [vmem:[#allocation6 + $0x630] sm:$0xff] }
 0x5c2   : > { %v14439_v14 = vcombine.high %v3446_v10, %v3450_v62  ;;  %v14438_v51 = vcombine.low %v3446_v10, %v3450_v62  ;;  %v3486_v10 = vld [vmem:[#allocation6 + $0x750] sm:$0xff] }
 0x5c3   : > { %7924 = vmatpush1.bf16.msra.mxu1 %v14398_v5  ;;  %v3454_v5 = vld [vmem:[#allocation6 + $0x650] sm:$0xff] }
 0x5c4   : > { %7961 = vmatpush1.bf16.msra.mxu0 %v14510_v4  ;;  %7925 = vmatprep.subr.bf16.mxu1 %v14407_v18  ;;  %v3458_v4 = vld [vmem:[#allocation6 + $0x670] sm:$0xff] }
 0x5c5   : > { %7962 = vmatprep.subr.bf16.mxu0 %v14519_v16  ;;  %v3566_v18 = vld [vmem:[#allocation6 + $0x9d0] sm:$0xff]  ;;  %v14447_v27 = vcombine.high %v3454_v5, %v3458_v4  ;;  %v14446_v35 = vcombine.low %v3454_v5, %v3458_v4 }
 0x5c6   : > { %v3570_v16 = vld [vmem:[#allocation6 + $0x9f0] sm:$0xff] }
 0x5c7   : > { %7926 = vmatpush1.bf16.msra.mxu1 %v14406_v22  ;;  %v14559_v29 = vcombine.high %v3566_v18, %v3570_v16  ;;  %v3462_v22 = vld [vmem:[#allocation6 + $0x690] sm:$0xff]  ;;  %v14558_v52 = vcombine.low %v3566_v18, %v3570_v16  ;;  %v3419_v18 = vld [vmem:[#allocation6 + $0x538] sm:$0xff] }
 0x5c8   : > { %7963 = vmatpush1.bf16.msra.mxu0 %v14518_v32  ;;  %7927 = vmatprep.subr.bf16.mxu1 %v14415_v25  ;;  %v3466_v32 = vld [vmem:[#allocation6 + $0x6b0] sm:$0xff]  ;;  %v3383_v25 = vld [vmem:[#allocation6 + $0x418] sm:$0xff] }
 0x5c9   : > { %v5941_v47 = vpop.f32.mrb[76].mxu1  ;;  %7964 = vmatprep.subr.bf16.mxu0 %v14527_v46  ;;  %v3387_v46 = vld [vmem:[#allocation6 + $0x438] sm:$0xff]  ;;  %v14455_v2 = vcombine.high %v3462_v22, %v3466_v32  ;;  %v3490_v62 = vld [vmem:[#allocation6 + $0x770] sm:$0xff] }
 0x5ca   : > { %v16897_v44 = vadd.f32 %v16888_v50, %v5941_v47  ;;  %v5943_v24 = vpop.f32.mrb[77].mxu1  ;;  %v3558_v50 = vld [vmem:[#allocation6 + $0x990] sm:$0xff]  ;;  %v14377_v30 = vcombine.high %v3383_v25, %v3387_v46  ;;  %v3395_v47 = vld [vmem:[#allocation6 + $0x478] sm:$0xff]  ;;  %v14376_v49 = vcombine.low %v3383_v25, %v3387_v46  ;;  %v14478_v16 = vcombine.low %v3486_v10, %v3490_v62 }
 0x5cb   : > { %v16900_v38 = vadd.f32 %v16890_v41, %v5943_v24  ;;  %v5945_v57 = vpop.f32.mrb[78].mxu1  ;;  %7928 = vmatpush1.bf16.msra.mxu1 %v14414_v48  ;;  %v14542_v41 = vcombine.low %v3550_v56, %v3554_v7  ;;  %v14551_v59 = vcombine.high %v3558_v50, %v3562_v12  ;;  %v14550_v17 = vcombine.low %v3558_v50, %v3562_v12  ;;  %v3470_v48 = vld [vmem:[#allocation6 + $0x6d0] sm:$0xff]  ;;  %v3407_v50 = vld [vmem:[#allocation6 + $0x4d8] sm:$0xff] }
 0x5cc   : > { %7965 = vmatpush1.bf16.msra.mxu0 %v14526_v60  ;;  %v5946_v58 = vpop.f32.mrb[79].mxu1  ;;  %7929 = vmatprep.subr.bf16.mxu1 %v14423_v61  ;;  %v3474_v60 = vld [vmem:[#allocation6 + $0x6f0] sm:$0xff]  ;;  %v3391_v61 = vld [vmem:[#allocation6 + $0x458] sm:$0xff] }
 0x5cd   : > { %7966 = vmatprep.subr.bf16.mxu0 %v14535_v3  ;;  %v14454_v3 = vcombine.low %v3462_v22, %v3466_v32  ;;  %v14463_v54 = vcombine.high %v3470_v48, %v3474_v60  ;;  %v14385_v24 = vcombine.high %v3391_v61, %v3395_v47  ;;  %v3478_v56 = vld [vmem:[#allocation6 + $0x710] sm:$0xff]  ;;  %v3399_v57 = vld [vmem:[#allocation6 + $0x498] sm:$0xff]  ;;  %v14462_v58 = vcombine.low %v3470_v48, %v3474_v60 }
 0x5ce   : > { %v3482_v7 = vld [vmem:[#allocation6 + $0x730] sm:$0xff]  ;;  %v3411_v12 = vld [vmem:[#allocation6 + $0x4f8] sm:$0xff] }
 0x5cf   : > { %7930 = vmatpush1.bf16.msra.mxu1 %v14422_v63  ;;  %v3403_v63 = vld [vmem:[#allocation6 + $0x4b8] sm:$0xff]  ;;  %v3494_v5 = vld [vmem:[#allocation6 + $0x790] sm:$0xff] }
 0x5d0   : > { %7967 = vmatpush1.bf16.msra.mxu0 %v14534_v9  ;;  %7931 = vmatprep.subr.bf16.mxu1 %v14431_v31  ;;  %v14384_v9 = vcombine.low %v3391_v61, %v3395_v47  ;;  %v14471_v31 = vcombine.high %v3478_v56, %v3482_v7  ;;  %v3498_v4 = vld [vmem:[#allocation6 + $0x7b0] sm:$0xff] }
 0x5d1   : > { %7968 = vmatprep.subr.bf16.mxu0 %v14543_v20  ;;  %v14393_v20 = vcombine.high %v3399_v57, %v3403_v63  ;;  %v3502_v22 = vld [vmem:[#allocation6 + $0x7d0] sm:$0xff]  ;;  %v14486_v48 = vcombine.low %v3494_v5, %v3498_v4 }
 0x5d2   : > { %v3506_v32 = vld [vmem:[#allocation6 + $0x7f0] sm:$0xff] }
 0x5d3   : > { %7932 = vmatpush1.bf16.msra.mxu1 %v14430_v13  ;;  %v14470_v13 = vcombine.low %v3478_v56, %v3482_v7  ;;  %v14495_v47 = vcombine.high %v3502_v22, %v3506_v32  ;;  %v14494_v56 = vcombine.low %v3502_v22, %v3506_v32  ;;  %v3455_v22 = vld [vmem:[#allocation6 + $0x658] sm:$0xff] }
 0x5d4   : > { %7969 = vmatpush1.bf16.msra.mxu0 %v14542_v41  ;;  %7933 = vmatprep.subr.bf16.mxu1 %v14439_v14  ;;  %v14392_v41 = vcombine.low %v3399_v57, %v3403_v63  ;;  %v14479_v14 = vcombine.high %v3486_v10, %v3490_v62  ;;  %v3263_v63 = vld [vmem:[#allocation6 + $0x58] sm:$0xff] }
 0x5d5   : > { %7970 = vmatprep.subr.bf16.mxu0 %v14551_v59  ;;  %v14401_v59 = vcombine.high %v3407_v50, %v3411_v12  ;;  %v3459_v32 = vld [vmem:[#allocation6 + $0x678] sm:$0xff] }
 0x5d7   : > { %7934 = vmatpush1.bf16.msra.mxu1 %v14438_v51  ;;  %v14400_v51 = vcombine.low %v3407_v50, %v3411_v12 }
 0x5d8   : > { %7971 = vmatpush1.bf16.msra.mxu0 %v14550_v17  ;;  %7935 = vmatprep.subr.bf16.mxu1 %v14447_v27  ;;  %v14487_v17 = vcombine.high %v3494_v5, %v3498_v4  ;;  %v3271_v4 = vld [vmem:[#allocation6 + $0x98] sm:$0xff] }
 0x5d9   : > { %7972 = vmatprep.subr.bf16.mxu0 %v14559_v29 }
 0x5db   : > { %7936 = vmatpush1.bf16.msra.mxu1 %v14446_v35  ;;  %v3423_v35 = vld [vmem:[#allocation6 + $0x558] sm:$0xff] }
 0x5dc   : > { %7973 = vmatpush1.bf16.msra.mxu0 %v14558_v52  ;;  %7937 = vmatprep.subr.bf16.mxu1 %v14455_v2  ;;  %v3427_v52 = vld [vmem:[#allocation6 + $0x578] sm:$0xff] }
 0x5dd   : > { %8040 = vmatprep.subr.bf16.mxu0 %v14377_v30 }
 0x5df   : > { %7991 = vmatmul.mubr.bf16.vlgmr.msra.gmra.mrb[84].mxu0 %v16852_v37  ;;  %7938 = vmatpush1.bf16.msra.mxu1 %v14454_v3  ;;  %v14417_v3 = vcombine.high %v3423_v35, %v3427_v52 }
 0x5e0   : > { %8041 = vmatpush1.bf16.msra.mxu0 %v14376_v49  ;;  %8072 = vmatprep.mubr.bf16.mxu0 %v16834_v43  ;;  %v3415_v43 = vld [vmem:[#allocation6 + $0x518] sm:$0xff] }
 0x5e1   : > { %7939 = vmatprep.subr.bf16.mxu1 %v14463_v54  ;;  %8042 = vmatprep.subr.bf16.mxu0 %v14385_v24  ;;  %v14409_v29 = vcombine.high %v3415_v43, %v3419_v18  ;;  %v14408_v61 = vcombine.low %v3415_v43, %v3419_v18  ;;  %v3255_v49 = vld [vmem:[#allocation6 + $0x18] sm:$0xff] }
 0x5e2   : > { %v3259_v54 = vld [vmem:[#allocation6 + $0x38] sm:$0xff] }
 0x5e3   : > { %7940 = vmatpush1.bf16.msra.mxu1 %v14462_v58  ;;  %v3435_v24 = vld [vmem:[#allocation6 + $0x5b8] sm:$0xff]  ;;  %v14249_v7 = vcombine.high %v3255_v49, %v3259_v54  ;;  %v14248_v50 = vcombine.low %v3255_v49, %v3259_v54 }
 0x5e4   : > { %8043 = vmatpush1.bf16.msra.mxu0 %v14384_v9  ;;  %7941 = vmatprep.subr.bf16.mxu1 %v14471_v31  ;;  %v3267_v58 = vld [vmem:[#allocation6 + $0x78] sm:$0xff] }
 0x5e5   : > { %8044 = vmatprep.subr.bf16.mxu0 %v14393_v20  ;;  %v3439_v31 = vld [vmem:[#allocation6 + $0x5d8] sm:$0xff] }
 0x5e6   : > { %v3443_v20 = vld [vmem:[#allocation6 + $0x5f8] sm:$0xff] }
 0x5e7   : > { %7942 = vmatpush1.bf16.msra.mxu1 %v14470_v13  ;;  %v14433_v5 = vcombine.high %v3439_v31, %v3443_v20  ;;  %v3275_v43 = vld [vmem:[#allocation6 + $0xb8] sm:$0xff] }
 0x5e8   : > { %8045 = vmatpush1.bf16.msra.mxu0 %v14392_v41  ;;  %7943 = vmatprep.subr.bf16.mxu1 %v14479_v14  ;;  %v14257_v14 = vcombine.high %v3263_v63, %v3267_v58  ;;  %v3451_v18 = vld [vmem:[#allocation6 + $0x638] sm:$0xff] }
 0x5e9   : > { %v6023_v27 = vpop.f32.mrb[80].mxu1  ;;  %8046 = vmatprep.subr.bf16.mxu0 %v14401_v59 }
 0x5ea   : > { %v16905_v25 = vadd.f32 %v6023_v27, %v16897_v44  ;;  %v6025_v46 = vpop.f32.mrb[81].mxu1  ;;  %v3431_v44 = vld [vmem:[#allocation6 + $0x598] sm:$0xff] }
 0x5eb   : > { %v16908_v2 = vadd.f32 %v6025_v46, %v16900_v38  ;;  %v6027_v30 = vpop.f32.mrb[82].mxu1  ;;  %7944 = vmatpush1.bf16.msra.mxu1 %v14478_v16  ;;  %v14416_v38 = vcombine.low %v3423_v35, %v3427_v52  ;;  %v14425_v57 = vcombine.high %v3431_v44, %v3435_v24  ;;  %v14424_v41 = vcombine.low %v3431_v44, %v3435_v24  ;;  %v3279_v27 = vld [vmem:[#allocation6 + $0xd8] sm:$0xff] }
 0x5ec   : > { %8047 = vmatpush1.bf16.msra.mxu0 %v14400_v51  ;;  %v6028_v60 = vpop.f32.mrb[83].mxu1  ;;  %7945 = vmatprep.subr.bf16.mxu1 %v14487_v17  ;;  %v14256_v16 = vcombine.low %v3263_v63, %v3267_v58  ;;  %v14265_v51 = vcombine.high %v3271_v4, %v3275_v43  ;;  %v14264_v46 = vcombine.low %v3271_v4, %v3275_v43  ;;  %v3295_v44 = vld [vmem:[#allocation6 + $0x158] sm:$0xff] }
 0x5ed   : > { %8048 = vmatprep.subr.bf16.mxu0 %v14409_v29  ;;  %v3283_v29 = vld [vmem:[#allocation6 + $0xf8] sm:$0xff]  ;;  %v14449_v30 = vcombine.high %v3455_v22, %v3459_v32 }
 0x5ee   : > { %v14273_v52 = vcombine.high %v3279_v27, %v3283_v29  ;;  %v3463_v60 = vld [vmem:[#allocation6 + $0x698] sm:$0xff] }
 0x5ef   : > { %7946 = vmatpush1.bf16.msra.mxu1 %v14486_v48  ;;  %v3291_v48 = vld [vmem:[#allocation6 + $0x138] sm:$0xff] }
 0x5f0   : > { %8049 = vmatpush1.bf16.msra.mxu0 %v14408_v61  ;;  %7947 = vmatprep.subr.bf16.mxu1 %v14495_v47  ;;  %v3467_v61 = vld [vmem:[#allocation6 + $0x6b8] sm:$0xff]  ;;  %v14272_v47 = vcombine.low %v3279_v27, %v3283_v29 }
 0x5f1   : > { %8050 = vmatprep.subr.bf16.mxu0 %v14417_v3  ;;  %v14448_v3 = vcombine.low %v3455_v22, %v3459_v32  ;;  %v14457_v54 = vcombine.high %v3463_v60, %v3467_v61  ;;  %v3299_v24 = vld [vmem:[#allocation6 + $0x178] sm:$0xff] }
 0x5f2   : > { %v7664_v9 = vpop.f32.mrb[68].mxu0  ;;  %v14289_v63 = vcombine.high %v3295_v44, %v3299_v24  ;;  %v3487_v4 = vld [vmem:[#allocation6 + $0x758] sm:$0xff] }
 0x5f3   : > { %v16911_v10 = vadd.f32 %v7664_v9, %v16821_v39  ;;  %v7666_v62 = vpop.f32.mrb[69].mxu0  ;;  %7948 = vmatpush1.bf16.msra.mxu1 %v14494_v56  ;;  %v3447_v39 = vld [vmem:[#allocation6 + $0x618] sm:$0xff] }
 0x5f4   : > { %v16914_v12 = vadd.f32 %v7666_v62, %v16824_v45  ;;  %v7668_v13 = vpop.f32.mrb[70].mxu0  ;;  %8051 = vmatpush1.bf16.msra.mxu0 %v14416_v38  ;;  %7999 = vmatprep.subr.bf16.mxu1 %v14249_v7  ;;  %v14432_v45 = vcombine.low %v3439_v31, %v3443_v20  ;;  %v14441_v17 = vcombine.high %v3447_v39, %v3451_v18  ;;  %v3471_v56 = vld [vmem:[#allocation6 + $0x6d8] sm:$0xff] }
 0x5f5   : > { %v7669_v59 = vpop.f32.mrb[71].mxu0  ;;  %8052 = vmatprep.subr.bf16.mxu0 %v14425_v57  ;;  %v14440_v35 = vcombine.low %v3447_v39, %v3451_v18  ;;  %v3475_v38 = vld [vmem:[#allocation6 + $0x6f8] sm:$0xff]  ;;  %v14456_v57 = vcombine.low %v3463_v60, %v3467_v61 }
 0x5f6   : > { %7950 = vmatmul.mubr.bf16.vlgmr.msra.gmra.mrb[96].mxu1 %v16868_v55  ;;  %v14465_v58 = vcombine.high %v3471_v56, %v3475_v38  ;;  %v3303_v9 = vld [vmem:[#allocation6 + $0x198] sm:$0xff]  ;;  %v14464_v13 = vcombine.low %v3471_v56, %v3475_v38 }
 0x5f7   : > { %8000 = vmatpush1.bf16.msra.mxu1 %v14248_v50  ;;  %8031 = vmatprep.mubr.bf16.mxu1 %v16816_v42  ;;  %v3287_v42 = vld [vmem:[#allocation6 + $0x118] sm:$0xff]  ;;  %v14288_v50 = vcombine.low %v3295_v44, %v3299_v24 }
 0x5f8   : > { %8053 = vmatpush1.bf16.msra.mxu0 %v14424_v41  ;;  %8001 = vmatprep.subr.bf16.mxu1 %v14257_v14  ;;  %v14281_v49 = vcombine.high %v3287_v42, %v3291_v48  ;;  %v14280_v7 = vcombine.low %v3287_v42, %v3291_v48  ;;  %v3307_v31 = vld [vmem:[#allocation6 + $0x1b8] sm:$0xff] }
 0x5f9   : > { %8054 = vmatprep.subr.bf16.mxu0 %v14433_v5  ;;  %v3479_v20 = vld [vmem:[#allocation6 + $0x718] sm:$0xff]  ;;  %v14297_v41 = vcombine.high %v3303_v9, %v3307_v31  ;;  %v14296_v39 = vcombine.low %v3303_v9, %v3307_v31 }
 0x5fa   : > { %v3483_v62 = vld [vmem:[#allocation6 + $0x738] sm:$0xff] }
 0x5fb   : > { %8002 = vmatpush1.bf16.msra.mxu1 %v14256_v16  ;;  %v14473_v14 = vcombine.high %v3479_v20, %v3483_v62  ;;  %v3311_v59 = vld [vmem:[#allocation6 + $0x1d8] sm:$0xff]  ;;  %v14472_v18 = vcombine.low %v3479_v20, %v3483_v62 }
 0x5fc   : > { %8055 = vmatpush1.bf16.msra.mxu0 %v14432_v45  ;;  %8003 = vmatprep.subr.bf16.mxu1 %v14265_v51  ;;  %v3315_v5 = vld [vmem:[#allocation6 + $0x1f8] sm:$0xff] }
 0x5fd   : > { %8056 = vmatprep.subr.bf16.mxu0 %v14441_v17  ;;  %v3491_v43 = vld [vmem:[#allocation6 + $0x778] sm:$0xff]  ;;  %v14305_v16 = vcombine.high %v3311_v59, %v3315_v5  ;;  %v14304_v22 = vcombine.low %v3311_v59, %v3315_v5 }
 0x5fe   : > { %v14481_v45 = vcombine.high %v3487_v4, %v3491_v43  ;;  %v3319_v51 = vld [vmem:[#allocation6 + $0x218] sm:$0xff]  ;;  %v14480_v32 = vcombine.low %v3487_v4, %v3491_v43 }
 0x5ff   : > { %8004 = vmatpush1.bf16.msra.mxu1 %v14264_v46  ;;  %v3323_v17 = vld [vmem:[#allocation6 + $0x238] sm:$0xff] }
 0x600   : > { %8057 = vmatpush1.bf16.msra.mxu0 %v14440_v35  ;;  %8005 = vmatprep.subr.bf16.mxu1 %v14273_v52  ;;  %v3495_v27 = vld [vmem:[#allocation6 + $0x798] sm:$0xff]  ;;  %v14313_v46 = vcombine.high %v3319_v51, %v3323_v17 }
 0x601   : > { %8058 = vmatprep.subr.bf16.mxu0 %v14449_v30  ;;  %v3499_v29 = vld [vmem:[#allocation6 + $0x7b8] sm:$0xff] }
 0x602   : > { %v14489_v35 = vcombine.high %v3495_v27, %v3499_v29  ;;  %v3327_v52 = vld [vmem:[#allocation6 + $0x258] sm:$0xff] }
 0x603   : > { %8006 = vmatpush1.bf16.msra.mxu1 %v14272_v47  ;;  %v3331_v30 = vld [vmem:[#allocation6 + $0x278] sm:$0xff]  ;;  %v14312_v47 = vcombine.low %v3319_v51, %v3323_v17 }
 0x604   : > { %8059 = vmatpush1.bf16.msra.mxu0 %v14448_v3  ;;  %8007 = vmatprep.subr.bf16.mxu1 %v14281_v49  ;;  %v3503_v48 = vld [vmem:[#allocation6 + $0x7d8] sm:$0xff]  ;;  %v14488_v49 = vcombine.low %v3495_v27, %v3499_v29 }
 0x605   : > { %8060 = vmatprep.subr.bf16.mxu0 %v14457_v54  ;;  %v3507_v60 = vld [vmem:[#allocation6 + $0x7f8] sm:$0xff]  ;;  %v14321_v54 = vcombine.high %v3327_v52, %v3331_v30 }
 0x606   : > { %v14497_v24 = vcombine.high %v3503_v48, %v3507_v60  ;;  %v3335_v56 = vld [vmem:[#allocation6 + $0x298] sm:$0xff] }
 0x607   : > { %8008 = vmatpush1.bf16.msra.mxu1 %v14280_v7  ;;  %v3339_v38 = vld [vmem:[#allocation6 + $0x2b8] sm:$0xff]  ;;  %v8123_v7 = vld [vmem:[#allocation6 + $0x1400] sm:$0xff] }
 0x608   : > { %8061 = vmatpush1.bf16.msra.mxu0 %v14456_v57  ;;  %8009 = vmatprep.subr.bf16.mxu1 %v14289_v63  ;;  %v8127_v57 = vld [vmem:[#allocation6 + $0x1420] sm:$0xff]  ;;  %v14320_v63 = vcombine.low %v3327_v52, %v3331_v30  ;;  %v14329_v9 = vcombine.high %v3335_v56, %v3339_v38  ;;  %v3343_v20 = vld [vmem:[#allocation6 + $0x2d8] sm:$0xff] }
 0x609   : > { %8062 = vmatprep.subr.bf16.mxu0 %v14465_v58  ;;  %v14496_v58 = vcombine.low %v3503_v48, %v3507_v60  ;;  %v14563_v31 = vcombine.high %v8123_v7, %v8127_v57  ;;  %v3347_v62 = vld [vmem:[#allocation6 + $0x2f8] sm:$0xff]  ;;  %v8155_v60 = vld [vmem:[#allocation6 + $0x1500] sm:$0xff] }
 0x60a   : > { %v14337_v59 = vcombine.high %v3343_v20, %v3347_v62  ;;  %v3351_v4 = vld [vmem:[#allocation6 + $0x318] sm:$0xff] }
 0x60b   : > { %8010 = vmatpush1.bf16.msra.mxu1 %v14288_v50  ;;  %v8131_v50 = vld [vmem:[#allocation6 + $0x1440] sm:$0xff]  ;;  %v3355_v43 = vld [vmem:[#allocation6 + $0x338] sm:$0xff] }
 0x60c   : > { %8063 = vmatpush1.bf16.msra.mxu0 %v14464_v13  ;;  %8011 = vmatprep.subr.bf16.mxu1 %v14297_v41  ;;  %v8135_v13 = vld [vmem:[#allocation6 + $0x1460] sm:$0xff]  ;;  %v14328_v41 = vcombine.low %v3335_v56, %v3339_v38  ;;  %v14345_v17 = vcombine.high %v3351_v4, %v3355_v43  ;;  %v3359_v29 = vld [vmem:[#allocation6 + $0x358] sm:$0xff] }
 0x60d   : > { %8064 = vmatprep.subr.bf16.mxu0 %v14473_v14  ;;  %v14562_v14 = vcombine.low %v8123_v7, %v8127_v57  ;;  %v14571_v5 = vcombine.high %v8131_v50, %v8135_v13  ;;  %v14570_v51 = vcombine.low %v8131_v50, %v8135_v13  ;;  %v3367_v30 = vld [vmem:[#allocation6 + $0x398] sm:$0xff] }
 0x60e   : > { %v3371_v48 = vld [vmem:[#allocation6 + $0x3b8] sm:$0xff] }
 0x60f   : > { %8012 = vmatpush1.bf16.msra.mxu1 %v14296_v39  ;;  %v16923_v39 = vrot.slane %v16746_v40, 1  ;;  %v14344_v40 = vcombine.low %v3351_v4, %v3355_v43  ;;  %v3375_v56 = vld [vmem:[#allocation6 + $0x3d8] sm:$0xff]  ;;  %v8171_v4 = vld [vmem:[#allocation6 + $0x1580] sm:$0xff] }
 0x610   : > { %8065 = vmatpush1.bf16.msra.mxu0 %v14472_v18  ;;  %8013 = vmatprep.subr.bf16.mxu1 %v14305_v16  ;;  %v8139_v18 = vld [vmem:[#allocation6 + $0x1480] sm:$0xff]  ;;  %v3379_v38 = vld [vmem:[#allocation6 + $0x3f8] sm:$0xff] }
 0x611   : > { %8066 = vmatprep.subr.bf16.mxu0 %v14481_v45  ;;  %v8143_v16 = vld [vmem:[#allocation6 + $0x14a0] sm:$0xff]  ;;  %v14336_v45 = vcombine.low %v3343_v20, %v3347_v62  ;;  %v14360_v20 = vcombine.low %v3367_v30, %v3371_v48  ;;  %v14368_v43 = vcombine.low %v3375_v56, %v3379_v38 }
 0x612   : > { %v16918_v42 = vpop.f32.mrb[72].mxu0  ;;  %v14579_v27 = vcombine.high %v8139_v18, %v8143_v16 }
 0x613   : > { %v16920_v61 = vpop.f32.mrb[73].mxu0  ;;  %8014 = vmatpush1.bf16.msra.mxu1 %v14304_v22  ;;  %v3363_v22 = vld [vmem:[#allocation6 + $0x378] sm:$0xff] }
 0x614   : > { %v7750_v3 = vpop.f32.mrb[74].mxu0  ;;  %8067 = vmatpush1.bf16.msra.mxu0 %v14480_v32  ;;  %8015 = vmatprep.subr.bf16.mxu1 %v14313_v46  ;;  %v8147_v32 = vld [vmem:[#allocation6 + $0x14c0] sm:$0xff] }
 0x615   : > { %v7751_v44 = vpop.f32.mrb[75].mxu0  ;;  %8068 = vmatprep.subr.bf16.mxu0 %v14489_v35  ;;  %v8151_v46 = vld [vmem:[#allocation6 + $0x14e0] sm:$0xff]  ;;  %v14578_v35 = vcombine.low %v8139_v18, %v8143_v16  ;;  %v14352_v3 = vcombine.low %v3359_v29, %v3363_v22 }
 0x616   : > { %v14587_v52 = vcombine.high %v8147_v32, %v8151_v46 }
 0x617   : > { %8016 = vmatpush1.bf16.msra.mxu1 %v14312_v47  ;;  %v8159_v47 = vld [vmem:[#allocation6 + $0x1520] sm:$0xff] }
 0x618   : > { %8069 = vmatpush1.bf16.msra.mxu0 %v14488_v49  ;;  %8017 = vmatprep.subr.bf16.mxu1 %v14321_v54  ;;  %v14586_v49 = vcombine.low %v8147_v32, %v8151_v46  ;;  %v14361_v54 = vcombine.high %v3367_v30, %v3371_v48  ;;  %v14594_v13 = vcombine.low %v8155_v60, %v8159_v47  ;;  %v3527_v46 = vld [vmem:[#allocation6 + $0x898] sm:$0xff] }
 0x619   : > { %8070 = vmatprep.subr.bf16.mxu0 %v14497_v24  ;;  %v14595_v24 = vcombine.high %v8155_v60, %v8159_v47  ;;  %v3535_v47 = vld [vmem:[#allocation6 + $0x8d8] sm:$0xff] }
 0x61b   : > { %8018 = vmatpush1.bf16.msra.mxu1 %v14320_v63  ;;  %v8163_v63 = vld [vmem:[#allocation6 + $0x1540] sm:$0xff] }
 0x61c   : > { %8071 = vmatpush1.bf16.msra.mxu0 %v14496_v58  ;;  %8019 = vmatprep.subr.bf16.mxu1 %v14329_v9  ;;  %v8167_v58 = vld [vmem:[#allocation6 + $0x1560] sm:$0xff] }
 0x61d   : > { %10058 = vmatprep.subr.bf16.mxu0 %v14563_v31 }
 0x61f   : > { %8073 = vmatmul.mubr.bf16.vlgmr.msra.gmra.mrb[88].mxu0 %v16868_v55  ;;  %8020 = vmatpush1.bf16.msra.mxu1 %v14328_v41  ;;  %v14353_v55 = vcombine.high %v3359_v29, %v3363_v22  ;;  %v14369_v41 = vcombine.high %v3375_v56, %v3379_v38  ;;  %v3543_v38 = vld [vmem:[#allocation6 + $0x918] sm:$0xff] }
 0x620   : > { %10059 = vmatpush1.bf16.msra.mxu0 %v14562_v14  ;;  %10090 = vmatprep.mubr.bf16.mxu0 %v16923_v39 }
 0x621   : > { %8021 = vmatprep.subr.bf16.mxu1 %v14337_v59  ;;  %10060 = vmatprep.subr.bf16.mxu0 %v14571_v5  ;;  %v3511_v59 = vld [vmem:[#allocation6 + $0x818] sm:$0xff] }
 0x622   : > { %v3515_v5 = vld [vmem:[#allocation6 + $0x838] sm:$0xff] }
 0x623   : > { %8022 = vmatpush1.bf16.msra.mxu1 %v14336_v45  ;;  %v14505_v18 = vcombine.high %v3511_v59, %v3515_v5  ;;  %v3519_v45 = vld [vmem:[#allocation6 + $0x858] sm:$0xff] }
 0x624   : > { %10061 = vmatpush1.bf16.msra.mxu0 %v14570_v51  ;;  %8023 = vmatprep.subr.bf16.mxu1 %v14345_v17  ;;  %v3523_v51 = vld [vmem:[#allocation6 + $0x878] sm:$0xff]  ;;  %v8179_v17 = vld [vmem:[#allocation6 + $0x15c0] sm:$0xff] }
 0x625   : > { %10062 = vmatprep.subr.bf16.mxu0 %v14579_v27  ;;  %v8183_v27 = vld [vmem:[#allocation6 + $0x15e0] sm:$0xff]  ;;  %v14513_v22 = vcombine.high %v3519_v45, %v3523_v51 }
 0x626   : > { %v14619_v32 = vcombine.high %v8179_v17, %v8183_v27  ;;  %v14618_v30 = vcombine.low %v8179_v17, %v8183_v27 }
 0x627   : > { %8024 = vmatpush1.bf16.msra.mxu1 %v14344_v40  ;;  %v3531_v40 = vld [vmem:[#allocation6 + $0x8b8] sm:$0xff] }
 0x628   : > { %10063 = vmatpush1.bf16.msra.mxu0 %v14578_v35  ;;  %8025 = vmatprep.subr.bf16.mxu1 %v14353_v55  ;;  %v8187_v35 = vld [vmem:[#allocation6 + $0x1600] sm:$0xff]  ;;  %v14521_v48 = vcombine.high %v3527_v46, %v3531_v40 }
 0x629   : > { %v7705_v44 = vpop.f32.mrb[84].mxu1  ;;  %10064 = vmatprep.subr.bf16.mxu0 %v14587_v52  ;;  %v8191_v55 = vld [vmem:[#allocation6 + $0x1620] sm:$0xff]  ;;  %v14512_v52 = vcombine.low %v3519_v45, %v3523_v51 }
 0x62a   : > { %v7706_v7 = vadd.f32 %v7705_v44, %v16911_v10  ;;  %v7707_v57 = vpop.f32.mrb[85].mxu1  ;;  %v14603_v10 = vcombine.high %v8163_v63, %v8167_v58  ;;  %v14627_v60 = vcombine.high %v8187_v35, %v8191_v55  ;;  %v14520_v44 = vcombine.low %v3527_v46, %v3531_v40 }
 0x62b   : > { %v7708_v9 = vadd.f32 %v7707_v57, %v16914_v12  ;;  %v7709_v31 = vpop.f32.mrb[86].mxu1  ;;  %8026 = vmatpush1.bf16.msra.mxu1 %v14352_v3  ;;  %v8175_v12 = vld [vmem:[#allocation6 + $0x15a0] sm:$0xff]  ;;  %v3539_v3 = vld [vmem:[#allocation6 + $0x8f8] sm:$0xff] }
 0x62c   : > { %v16930_v62 = vadd.f32 %v16918_v42, %v7706_v7  ;;  %10065 = vmatpush1.bf16.msra.mxu0 %v14586_v49  ;;  %v7710_v50 = vpop.f32.mrb[87].mxu1  ;;  %8027 = vmatprep.subr.bf16.mxu1 %v14361_v54  ;;  %v14602_v42 = vcombine.low %v8163_v63, %v8167_v58  ;;  %v14611_v16 = vcombine.high %v8171_v4, %v8175_v12  ;;  %v8195_v49 = vld [vmem:[#allocation6 + $0x1640] sm:$0xff]  ;;  %v3547_v7 = vld [vmem:[#allocation6 + $0x938] sm:$0xff] }
 0x62d   : > { %v16933_v14 = vadd.f32 %v16920_v61, %v7708_v9  ;;  %10066 = vmatprep.subr.bf16.mxu0 %v14595_v24  ;;  %v14504_v61 = vcombine.low %v3511_v59, %v3515_v5  ;;  %v14610_v29 = vcombine.low %v8171_v4, %v8175_v12  ;;  %v8199_v54 = vld [vmem:[#allocation6 + $0x1660] sm:$0xff]  ;;  %v14529_v24 = vcombine.high %v3535_v47, %v3539_v3  ;;  %v3551_v50 = vld [vmem:[#allocation6 + $0x958] sm:$0xff] }
 0x62e   : > { %v14635_v56 = vcombine.high %v8195_v49, %v8199_v54  ;;  %v8203_v57 = vld [vmem:[#allocation6 + $0x1680] sm:$0xff]  ;;  %v14528_v58 = vcombine.low %v3535_v47, %v3539_v3  ;;  %v14634_v9 = vcombine.low %v8195_v49, %v8199_v54  ;;  %v14537_v31 = vcombine.high %v3543_v38, %v3547_v7 }
 0x62f   : > { %8028 = vmatpush1.bf16.msra.mxu1 %v14360_v20  ;;  %v8207_v63 = vld [vmem:[#allocation6 + $0x16a0] sm:$0xff]  ;;  %v14536_v59 = vcombine.low %v3543_v38, %v3547_v7 }
 0x630   : > { %10067 = vmatpush1.bf16.msra.mxu0 %v14594_v13  ;;  %8029 = vmatprep.subr.bf16.mxu1 %v14369_v41  ;;  %v14643_v20 = vcombine.high %v8203_v57, %v8207_v63  ;;  %v3555_v13 = vld [vmem:[#allocation6 + $0x978] sm:$0xff]  ;;  %v8211_v41 = vld [vmem:[#allocation6 + $0x16c0] sm:$0xff]  ;;  %v14642_v5 = vcombine.low %v8203_v57, %v8207_v63 }
 0x631   : > { %10068 = vmatprep.subr.bf16.mxu0 %v14603_v10  ;;  %v8215_v10 = vld [vmem:[#allocation6 + $0x16e0] sm:$0xff]  ;;  %v14545_v4 = vcombine.high %v3551_v50, %v3555_v13  ;;  %v14544_v45 = vcombine.low %v3551_v50, %v3555_v13 }
 0x632   : > { %v14651_v12 = vcombine.high %v8211_v41, %v8215_v10  ;;  %v14650_v51 = vcombine.low %v8211_v41, %v8215_v10  ;;  %v8247_v38 = vld [vmem:[#allocation6 + $0x17e0] sm:$0xff] }
 0x633   : > { %8030 = vmatpush1.bf16.msra.mxu1 %v14368_v43  ;;  %v3559_v43 = vld [vmem:[#allocation6 + $0x998] sm:$0xff]  ;;  %v8267_v13 = vld [vmem:[#allocation6 + $0x1880] sm:$0xff] }
 0x634   : > { %10069 = vmatpush1.bf16.msra.mxu0 %v14602_v42  ;;  %8081 = vmatprep.subr.bf16.mxu1 %v14505_v18  ;;  %v3563_v42 = vld [vmem:[#allocation6 + $0x9b8] sm:$0xff]  ;;  %v8219_v18 = vld [vmem:[#allocation6 + $0x1700] sm:$0xff] }
 0x635   : > { %10070 = vmatprep.subr.bf16.mxu0 %v14611_v16  ;;  %v8223_v16 = vld [vmem:[#allocation6 + $0x1720] sm:$0xff]  ;;  %v14553_v17 = vcombine.high %v3559_v43, %v3563_v42  ;;  %v14552_v46 = vcombine.low %v3559_v43, %v3563_v42 }
 0x636   : > { %8032 = vmatmul.mubr.bf16.vlgmr.msra.gmra.mrb[100].mxu1 %v16840_v34  ;;  %v14626_v34 = vcombine.low %v8187_v35, %v8191_v55  ;;  %v14659_v27 = vcombine.high %v8219_v18, %v8223_v16  ;;  %v14658_v40 = vcombine.low %v8219_v18, %v8223_v16  ;;  %v8271_v41 = vld [vmem:[#allocation6 + $0x18a0] sm:$0xff] }
 0x637   : > { %8082 = vmatpush1.bf16.msra.mxu1 %v14504_v61  ;;  %8113 = vmatprep.mubr.bf16.mxu1 %v16185_v0  ;;  %v3567_v61 = vld [vmem:[#allocation6 + $0x9d8] sm:$0xff]  ;;  %v8379_v10 = vld [vmem:[#allocation6 + $0x1c00] sm:$0xff] }
 0x638   : > { %10071 = vmatpush1.bf16.msra.mxu0 %v14610_v29  ;;  %8083 = vmatprep.subr.bf16.mxu1 %v14513_v22  ;;  %v3571_v29 = vld [vmem:[#allocation6 + $0x9f8] sm:$0xff]  ;;  %v8227_v22 = vld [vmem:[#allocation6 + $0x1740] sm:$0xff] }
 0x639   : > { %10072 = vmatprep.subr.bf16.mxu0 %v14619_v32  ;;  %v8231_v32 = vld [vmem:[#allocation6 + $0x1760] sm:$0xff]  ;;  %v14561_v35 = vcombine.high %v3567_v61, %v3571_v29  ;;  %v14560_v47 = vcombine.low %v3567_v61, %v3571_v29 }
 0x63a   : > { %v14667_v55 = vcombine.high %v8227_v22, %v8231_v32  ;;  %v14666_v3 = vcombine.low %v8227_v22, %v8231_v32  ;;  %v8275_v43 = vld [vmem:[#allocation6 + $0x18c0] sm:$0xff] }
 0x63b   : > { %8084 = vmatpush1.bf16.msra.mxu1 %v14512_v52  ;;  %v8251_v52 = vld [vmem:[#allocation6 + $0x1800] sm:$0xff] }
 0x63c   : > { %10073 = vmatpush1.bf16.msra.mxu0 %v14618_v30  ;;  %8085 = vmatprep.subr.bf16.mxu1 %v14521_v48  ;;  %v8255_v30 = vld [vmem:[#allocation6 + $0x1820] sm:$0xff] }
 0x63d   : > { %10074 = vmatprep.subr.bf16.mxu0 %v14627_v60  ;;  %v8235_v48 = vld [vmem:[#allocation6 + $0x1780] sm:$0xff]  ;;  %v14691_v49 = vcombine.high %v8251_v52, %v8255_v30  ;;  %v14690_v57 = vcombine.low %v8251_v52, %v8255_v30 }
 0x63e   : > { %v8239_v60 = vld [vmem:[#allocation6 + $0x17a0] sm:$0xff] }
 0x63f   : > { %8086 = vmatpush1.bf16.msra.mxu1 %v14520_v44  ;;  %v14675_v54 = vcombine.high %v8235_v48, %v8239_v60  ;;  %v8259_v44 = vld [vmem:[#allocation6 + $0x1840] sm:$0xff] }
 0x640   : > { %10075 = vmatpush1.bf16.msra.mxu0 %v14626_v34  ;;  %8087 = vmatprep.subr.bf16.mxu1 %v14529_v24  ;;  %v8263_v34 = vld [vmem:[#allocation6 + $0x1860] sm:$0xff] }
 0x641   : > { %10076 = vmatprep.subr.bf16.mxu0 %v14635_v56  ;;  %v8243_v56 = vld [vmem:[#allocation6 + $0x17c0] sm:$0xff] }
 0x642   : > { %v14683_v50 = vcombine.high %v8243_v56, %v8247_v38  ;;  %v8279_v42 = vld [vmem:[#allocation6 + $0x18e0] sm:$0xff] }
 0x643   : > { %8088 = vmatpush1.bf16.msra.mxu1 %v14528_v58  ;;  %v14674_v58 = vcombine.low %v8235_v48, %v8239_v60  ;;  %v8387_v18 = vld [vmem:[#allocation6 + $0x1c40] sm:$0xff] }
 0x644   : > { %10077 = vmatpush1.bf16.msra.mxu0 %v14634_v9  ;;  %8089 = vmatprep.subr.bf16.mxu1 %v14537_v31  ;;  %v14699_v9 = vcombine.high %v8259_v44, %v8263_v34  ;;  %v16942_v31 = vrot.slane %v16764_v1, 1  ;;  %v8391_v16 = vld [vmem:[#allocation6 + $0x1c60] sm:$0xff] }
 0x645   : > { %10078 = vmatprep.subr.bf16.mxu0 %v14643_v20  ;;  %v8283_v61 = vld [vmem:[#allocation6 + $0x1900] sm:$0xff] }
 0x646   : > { %v8287_v29 = vld [vmem:[#allocation6 + $0x1920] sm:$0xff] }
 0x647   : > { %8090 = vmatpush1.bf16.msra.mxu1 %v14536_v59  ;;  %v8383_v59 = vld [vmem:[#allocation6 + $0x1c20] sm:$0xff]  ;;  %v14722_v60 = vcombine.low %v8283_v61, %v8287_v29 }
 0x648   : > { %10079 = vmatpush1.bf16.msra.mxu0 %v14642_v5  ;;  %8091 = vmatprep.subr.bf16.mxu1 %v14545_v4  ;;  %v14698_v5 = vcombine.low %v8259_v44, %v8263_v34  ;;  %v14682_v4 = vcombine.low %v8243_v56, %v8247_v38  ;;  %v14819_v1 = vcombine.high %v8379_v10, %v8383_v59  ;;  %v8395_v22 = vld [vmem:[#allocation6 + $0x1c80] sm:$0xff] }
 0x649   : > { %10080 = vmatprep.subr.bf16.mxu0 %v14651_v12  ;;  %v14707_v12 = vcombine.high %v8267_v13, %v8271_v41  ;;  %v8399_v32 = vld [vmem:[#allocation6 + $0x1ca0] sm:$0xff] }
 0x64a   : > { %v8291_v52 = vld [vmem:[#allocation6 + $0x1940] sm:$0xff] }
 0x64b   : > { %8092 = vmatpush1.bf16.msra.mxu1 %v14544_v45  ;;  %v14706_v45 = vcombine.low %v8267_v13, %v8271_v41  ;;  %v8295_v30 = vld [vmem:[#allocation6 + $0x1960] sm:$0xff] }
 0x64c   : > { %10081 = vmatpush1.bf16.msra.mxu0 %v14650_v51  ;;  %8093 = vmatprep.subr.bf16.mxu1 %v14553_v17  ;;  %v14715_v51 = vcombine.high %v8275_v43, %v8279_v42  ;;  %v16947_v17 = vrot.slane %v16743_v33, 1  ;;  %v8403_v33 = vld [vmem:[#allocation6 + $0x1cc0] sm:$0xff]  ;;  %v14730_v38 = vcombine.low %v8291_v52, %v8295_v30 }
 0x64d   : > { %10082 = vmatprep.subr.bf16.mxu0 %v14659_v27  ;;  %v14827_v27 = vcombine.high %v8387_v18, %v8391_v16  ;;  %v8407_v48 = vld [vmem:[#allocation6 + $0x1ce0] sm:$0xff] }
 0x64e   : > { %v8303_v44 = vld [vmem:[#allocation6 + $0x19a0] sm:$0xff] }
 0x64f   : > { %8094 = vmatpush1.bf16.msra.mxu1 %v14552_v46  ;;  %v14714_v46 = vcombine.low %v8275_v43, %v8279_v42  ;;  %v8411_v34 = vld [vmem:[#allocation6 + $0x1d00] sm:$0xff] }
 0x650   : > { %10083 = vmatpush1.bf16.msra.mxu0 %v14658_v40  ;;  %8095 = vmatprep.subr.bf16.mxu1 %v14561_v35  ;;  %v14826_v40 = vcombine.low %v8387_v18, %v8391_v16  ;;  %v14723_v35 = vcombine.high %v8283_v61, %v8287_v29  ;;  %v8415_v56 = vld [vmem:[#allocation6 + $0x1d20] sm:$0xff] }
 0x651   : > { %10084 = vmatprep.subr.bf16.mxu0 %v14667_v55  ;;  %v14835_v55 = vcombine.high %v8395_v22, %v8399_v32  ;;  %v14850_v43 = vcombine.low %v8411_v34, %v8415_v56 }
 0x652   : > { %v16937_v24 = vpop.f32.mrb[76].mxu0 }
 0x653   : > { %v16939_v7 = vpop.f32.mrb[77].mxu0  ;;  %8096 = vmatpush1.bf16.msra.mxu1 %v14560_v47  ;;  %v14834_v47 = vcombine.low %v8395_v22, %v8399_v32  ;;  %v8323_v32 = vld [vmem:[#allocation6 + $0x1a40] sm:$0xff] }
 0x654   : > { %v7832_v63 = vpop.f32.mrb[78].mxu0  ;;  %10085 = vmatpush1.bf16.msra.mxu0 %v14666_v3  ;;  %10099 = vmatprep.subr.bf16.mxu1 %v14691_v49  ;;  %v14731_v3 = vcombine.high %v8291_v52, %v8295_v30  ;;  %v14843_v49 = vcombine.high %v8403_v33, %v8407_v48  ;;  %v8331_v30 = vld [vmem:[#allocation6 + $0x1a80] sm:$0xff] }
 0x655   : > { %v7833_v20 = vpop.f32.mrb[79].mxu0  ;;  %10086 = vmatprep.subr.bf16.mxu0 %v14675_v54  ;;  %v8299_v54 = vld [vmem:[#allocation6 + $0x1980] sm:$0xff] }
 0x656   : > { %8114 = vmatmul.mubr.bf16.vlgmr.msra.gmra.mrb[104].mxu1 %v16852_v37  ;;  %v14818_v37 = vcombine.low %v8379_v10, %v8383_v59  ;;  %v14739_v63 = vcombine.high %v8299_v54, %v8303_v44  ;;  %v8307_v20 = vld [vmem:[#allocation6 + $0x19c0] sm:$0xff] }
 0x657   : > { %10100 = vmatpush1.bf16.msra.mxu1 %v14690_v57  ;;  %10131 = vmatprep.mubr.bf16.mxu1 %v16942_v31  ;;  %v14842_v57 = vcombine.low %v8403_v33, %v8407_v48  ;;  %v8419_v10 = vld [vmem:[#allocation6 + $0x1d40] sm:$0xff]  ;;  %v8252_v48 = vld [vmem:[#allocation6 + $0x1808] sm:$0xff] }
 0x658   : > { %10087 = vmatpush1.bf16.msra.mxu0 %v14674_v58  ;;  %10101 = vmatprep.subr.bf16.mxu1 %v14699_v9  ;;  %v14851_v9 = vcombine.high %v8411_v34, %v8415_v56  ;;  %v8423_v59 = vld [vmem:[#allocation6 + $0x1d60] sm:$0xff]  ;;  %v8260_v56 = vld [vmem:[#allocation6 + $0x1848] sm:$0xff] }
 0x659   : > { %10088 = vmatprep.subr.bf16.mxu0 %v14683_v50  ;;  %v8311_v50 = vld [vmem:[#allocation6 + $0x19e0] sm:$0xff]  ;;  %v14859_v16 = vcombine.high %v8419_v10, %v8423_v59  ;;  %v14858_v61 = vcombine.low %v8419_v10, %v8423_v59  ;;  %v8272_v10 = vld [vmem:[#allocation6 + $0x18a8] sm:$0xff] }
 0x65a   : > { %v14747_v42 = vcombine.high %v8307_v20, %v8311_v50  ;;  %v8335_v33 = vld [vmem:[#allocation6 + $0x1aa0] sm:$0xff] }
 0x65b   : > { %10102 = vmatpush1.bf16.msra.mxu1 %v14698_v5  ;;  %v8343_v34 = vld [vmem:[#allocation6 + $0x1ae0] sm:$0xff] }
 0x65c   : > { %10089 = vmatpush1.bf16.msra.mxu0 %v14682_v4  ;;  %10103 = vmatprep.subr.bf16.mxu1 %v14707_v12  ;;  %v14738_v12 = vcombine.low %v8299_v54, %v8303_v44  ;;  %v8339_v44 = vld [vmem:[#allocation6 + $0x1ac0] sm:$0xff] }
 0x65d   : > { %10140 = vmatprep.subr.bf16.mxu0 %v14819_v1  ;;  %v14778_v59 = vcombine.low %v8339_v44, %v8343_v34 }
 0x65f   : > { %10091 = vmatmul.mubr.bf16.vlgmr.msra.gmra.mrb[92].mxu0 %v16947_v17  ;;  %10104 = vmatpush1.bf16.msra.mxu1 %v14706_v45  ;;  %v8315_v45 = vld [vmem:[#allocation6 + $0x1a00] sm:$0xff] }
 0x660   : > { %10141 = vmatpush1.bf16.msra.mxu0 %v14818_v37  ;;  %10105 = vmatprep.subr.bf16.mxu1 %v14715_v51  ;;  %v8427_v51 = vld [vmem:[#allocation6 + $0x1d80] sm:$0xff] }
 0x661   : > { %10142 = vmatprep.subr.bf16.mxu0 %v14827_v27  ;;  %10172 = vmatprep.mubr.bf16.mxu0 %v16185_v0  ;;  %v14746_v27 = vcombine.low %v8307_v20, %v8311_v50  ;;  %v8347_v50 = vld [vmem:[#allocation6 + $0x1b00] sm:$0xff] }
 0x663   : > { %10106 = vmatpush1.bf16.msra.mxu1 %v14714_v46  ;;  %v8435_v46 = vld [vmem:[#allocation6 + $0x1dc0] sm:$0xff] }
 0x664   : > { %10143 = vmatpush1.bf16.msra.mxu0 %v14826_v40  ;;  %10107 = vmatprep.subr.bf16.mxu1 %v14723_v35  ;;  %v8439_v40 = vld [vmem:[#allocation6 + $0x1de0] sm:$0xff] }
 0x665   : > { %10144 = vmatprep.subr.bf16.mxu0 %v14835_v55  ;;  %v14875_v52 = vcombine.high %v8435_v46, %v8439_v40 }
 0x667   : > { %10108 = vmatpush1.bf16.msra.mxu1 %v14722_v60  ;;  %v8256_v60 = vld [vmem:[#allocation6 + $0x1828] sm:$0xff] }
 0x668   : > { %10145 = vmatpush1.bf16.msra.mxu0 %v14834_v47  ;;  %10109 = vmatprep.subr.bf16.mxu1 %v14731_v3  ;;  %v14874_v3 = vcombine.low %v8435_v46, %v8439_v40  ;;  %v14693_v54 = vcombine.high %v8252_v48, %v8256_v60 }
 0x669   : > { %v7787_v58 = vpop.f32.mrb[88].mxu1  ;;  %10146 = vmatprep.subr.bf16.mxu0 %v14843_v49  ;;  %v14771_v49 = vcombine.high %v8331_v30, %v8335_v33 }
 0x66a   : > { %v7788_v13 = vadd.f32 %v7787_v58, %v16857_v15  ;;  %v7789_v41 = vpop.f32.mrb[89].mxu1  ;;  %v8319_v15 = vld [vmem:[#allocation6 + $0x1a20] sm:$0xff]  ;;  %v16960_v58 = vrot.slane %v16784_v21, 1 }
 0x66b   : > { %v7790_v5 = vadd.f32 %v7789_v41, %v16860_v26  ;;  %v7791_v4 = vpop.f32.mrb[90].mxu1  ;;  %10110 = vmatpush1.bf16.msra.mxu1 %v14730_v38  ;;  %v8431_v26 = vld [vmem:[#allocation6 + $0x1da0] sm:$0xff]  ;;  %v14755_v29 = vcombine.high %v8315_v45, %v8319_v15  ;;  %v14754_v35 = vcombine.low %v8315_v45, %v8319_v15  ;;  %v8264_v38 = vld [vmem:[#allocation6 + $0x1868] sm:$0xff] }
 0x66c   : > { %10147 = vmatpush1.bf16.msra.mxu0 %v14842_v57  ;;  %v7792_v1 = vpop.f32.mrb[91].mxu1  ;;  %10111 = vmatprep.subr.bf16.mxu1 %v14739_v63  ;;  %v16954_v18 = vadd.f32 %v16937_v24, %v7788_v13  ;;  %v14867_v22 = vcombine.high %v8427_v51, %v8431_v26  ;;  %v8327_v24 = vld [vmem:[#allocation6 + $0x1a60] sm:$0xff]  ;;  %v14770_v57 = vcombine.low %v8331_v30, %v8335_v33  ;;  %v8268_v41 = vld [vmem:[#allocation6 + $0x1888] sm:$0xff] }
 0x66d   : > { %10148 = vmatprep.subr.bf16.mxu0 %v14851_v9  ;;  %v16957_v37 = vadd.f32 %v16939_v7, %v7790_v5  ;;  %v14866_v7 = vcombine.low %v8427_v51, %v8431_v26  ;;  %v14763_v55 = vcombine.high %v8323_v32, %v8327_v24  ;;  %v14762_v47 = vcombine.low %v8323_v32, %v8327_v24  ;;  %v8351_v13 = vld [vmem:[#allocation6 + $0x1b20] sm:$0xff]  ;;  %v8292_v30 = vld [vmem:[#allocation6 + $0x1948] sm:$0xff] }
 0x66e   : > { %v14692_v63 = vcombine.low %v8252_v48, %v8256_v60  ;;  %v14779_v9 = vcombine.high %v8339_v44, %v8343_v34  ;;  %v14701_v20 = vcombine.high %v8260_v56, %v8264_v38  ;;  %v14700_v5 = vcombine.low %v8260_v56, %v8264_v38  ;;  %v8359_v1 = vld [vmem:[#allocation6 + $0x1b60] sm:$0xff]  ;;  %v8296_v33 = vld [vmem:[#allocation6 + $0x1968] sm:$0xff] }
 0x66f   : > { %10112 = vmatpush1.bf16.msra.mxu1 %v14738_v12  ;;  %v14787_v4 = vcombine.high %v8347_v50, %v8351_v13  ;;  %v14709_v21 = vcombine.high %v8268_v41, %v8272_v10  ;;  %v8355_v12 = vld [vmem:[#allocation6 + $0x1b40] sm:$0xff]  ;;  %v14708_v45 = vcombine.low %v8268_v41, %v8272_v10  ;;  %v14733_v44 = vcombine.high %v8292_v30, %v8296_v33  ;;  %v8124_v34 = vld [vmem:[#allocation6 + $0x1408] sm:$0xff] }
 0x670   : > { %10149 = vmatpush1.bf16.msra.mxu0 %v14850_v43  ;;  %10113 = vmatprep.subr.bf16.mxu1 %v14747_v42  ;;  %v8276_v43 = vld [vmem:[#allocation6 + $0x18c8] sm:$0xff]  ;;  %v14795_v15 = vcombine.high %v8355_v12, %v8359_v1  ;;  %v8363_v26 = vld [vmem:[#allocation6 + $0x1b80] sm:$0xff] }
 0x671   : > { %10150 = vmatprep.subr.bf16.mxu0 %v14859_v16  ;;  %v8280_v42 = vld [vmem:[#allocation6 + $0x18e8] sm:$0xff]  ;;  %v14786_v16 = vcombine.low %v8347_v50, %v8351_v13 }
 0x672   : > { %v14717_v51 = vcombine.high %v8276_v43, %v8280_v42  ;;  %v14716_v32 = vcombine.low %v8276_v43, %v8280_v42  ;;  %v8128_v56 = vld [vmem:[#allocation6 + $0x1428] sm:$0xff] }
 0x673   : > { %10114 = vmatpush1.bf16.msra.mxu1 %v14746_v27  ;;  %v8367_v27 = vld [vmem:[#allocation6 + $0x1ba0] sm:$0xff]  ;;  %v8304_v38 = vld [vmem:[#allocation6 + $0x19a8] sm:$0xff] }
 0x674   : > { %10151 = vmatpush1.bf16.msra.mxu0 %v14858_v61  ;;  %10115 = vmatprep.subr.bf16.mxu1 %v14755_v29  ;;  %v8284_v61 = vld [vmem:[#allocation6 + $0x1908] sm:$0xff]  ;;  %v14803_v24 = vcombine.high %v8363_v26, %v8367_v27 }
 0x675   : > { %10152 = vmatprep.subr.bf16.mxu0 %v14867_v22  ;;  %v8288_v29 = vld [vmem:[#allocation6 + $0x1928] sm:$0xff]  ;;  %v14794_v22 = vcombine.low %v8355_v12, %v8359_v1 }
 0x676   : > { %v14725_v40 = vcombine.high %v8284_v61, %v8288_v29  ;;  %v8136_v50 = vld [vmem:[#allocation6 + $0x1468] sm:$0xff] }
 0x677   : > { %10116 = vmatpush1.bf16.msra.mxu1 %v14754_v35  ;;  %v8371_v35 = vld [vmem:[#allocation6 + $0x1bc0] sm:$0xff]  ;;  %v8308_v41 = vld [vmem:[#allocation6 + $0x19c8] sm:$0xff] }
 0x678   : > { %10153 = vmatpush1.bf16.msra.mxu0 %v14866_v7  ;;  %10117 = vmatprep.subr.bf16.mxu1 %v14763_v55  ;;  %v8375_v7 = vld [vmem:[#allocation6 + $0x1be0] sm:$0xff]  ;;  %v8312_v10 = vld [vmem:[#allocation6 + $0x19e8] sm:$0xff] }
 0x679   : > { %10154 = vmatprep.subr.bf16.mxu0 %v14875_v52 }
 0x67b   : > { %10118 = vmatpush1.bf16.msra.mxu1 %v14762_v47  ;;  %v14802_v47 = vcombine.low %v8363_v26, %v8367_v27  ;;  %v8320_v26 = vld [vmem:[#allocation6 + $0x1a28] sm:$0xff] }
 0x67c   : > { %10155 = vmatpush1.bf16.msra.mxu0 %v14874_v3  ;;  %10119 = vmatprep.subr.bf16.mxu1 %v14771_v49  ;;  %v14724_v49 = vcombine.low %v8284_v61, %v8288_v29  ;;  %v8148_v29 = vld [vmem:[#allocation6 + $0x14c8] sm:$0xff] }
 0x67d   : > { %10222 = vmatprep.subr.bf16.mxu0 %v14693_v54  ;;  %v14811_v54 = vcombine.high %v8371_v35, %v8375_v7 }
 0x67f   : > { %10173 = vmatmul.mubr.bf16.vlgmr.msra.gmra.mrb[96].mxu0 %v16960_v58  ;;  %10120 = vmatpush1.bf16.msra.mxu1 %v14770_v57  ;;  %v14810_v57 = vcombine.low %v8371_v35, %v8375_v7 }
 0x680   : > { %10223 = vmatpush1.bf16.msra.mxu0 %v14692_v63  ;;  %10254 = vmatprep.mubr.bf16.mxu0 %v16942_v31  ;;  %v14565_v63 = vcombine.high %v8124_v34, %v8128_v56 }
 0x681   : > { %10121 = vmatprep.subr.bf16.mxu1 %v14779_v9  ;;  %10224 = vmatprep.subr.bf16.mxu0 %v14701_v20  ;;  %v8132_v20 = vld [vmem:[#allocation6 + $0x1448] sm:$0xff] }
 0x682   : > { %v14573_v42 = vcombine.high %v8132_v20, %v8136_v50 }
 0x683   : > { %10122 = vmatpush1.bf16.msra.mxu1 %v14778_v59 }
 0x684   : > { %10225 = vmatpush1.bf16.msra.mxu0 %v14700_v5  ;;  %10123 = vmatprep.subr.bf16.mxu1 %v14787_v4  ;;  %v14564_v4 = vcombine.low %v8124_v34, %v8128_v56  ;;  %v8168_v34 = vld [vmem:[#allocation6 + $0x1568] sm:$0xff] }
 0x685   : > { %10226 = vmatprep.subr.bf16.mxu0 %v14709_v21  ;;  %v16974_v21 = vrot.slane %v16759_v53, 1  ;;  %v14572_v53 = vcombine.low %v8132_v20, %v8136_v50  ;;  %v8340_v56 = vld [vmem:[#allocation6 + $0x1ac8] sm:$0xff] }
 0x686   : > { %v8176_v20 = vld [vmem:[#allocation6 + $0x15a8] sm:$0xff] }
 0x687   : > { %10124 = vmatpush1.bf16.msra.mxu1 %v14786_v16  ;;  %v8348_v50 = vld [vmem:[#allocation6 + $0x1b08] sm:$0xff] }
 0x688   : > { %10227 = vmatpush1.bf16.msra.mxu0 %v14708_v45  ;;  %10125 = vmatprep.subr.bf16.mxu1 %v14795_v15  ;;  %v14749_v45 = vcombine.high %v8308_v41, %v8312_v10  ;;  %v8140_v15 = vld [vmem:[#allocation6 + $0x1488] sm:$0xff] }
 0x689   : > { %v7869_v46 = vpop.f32.mrb[92].mxu1  ;;  %10228 = vmatprep.subr.bf16.mxu0 %v14717_v51  ;;  %v8316_v51 = vld [vmem:[#allocation6 + $0x1a08] sm:$0xff] }
 0x68a   : > { %v16965_v55 = vadd.f32 %v7869_v46, %v16954_v18  ;;  %v7871_v52 = vpop.f32.mrb[93].mxu1  ;;  %v8300_v18 = vld [vmem:[#allocation6 + $0x1988] sm:$0xff]  ;;  %v14757_v61 = vcombine.high %v8316_v51, %v8320_v26 }
 0x68b   : > { %v16968_v48 = vadd.f32 %v7871_v52, %v16957_v37  ;;  %v7873_v60 = vpop.f32.mrb[94].mxu1  ;;  %10126 = vmatpush1.bf16.msra.mxu1 %v14794_v22  ;;  %v14732_v37 = vcombine.low %v8292_v30, %v8296_v33  ;;  %v14741_v9 = vcombine.high %v8300_v18, %v8304_v38  ;;  %v14740_v43 = vcombine.low %v8300_v18, %v8304_v38  ;;  %v8152_v22 = vld [vmem:[#allocation6 + $0x14e8] sm:$0xff] }
 0x68c   : > { %10229 = vmatpush1.bf16.msra.mxu0 %v14716_v32  ;;  %v7874_v3 = vpop.f32.mrb[95].mxu1  ;;  %10127 = vmatprep.subr.bf16.mxu1 %v14803_v24  ;;  %v8324_v32 = vld [vmem:[#allocation6 + $0x1a48] sm:$0xff]  ;;  %v14589_v35 = vcombine.high %v8148_v29, %v8152_v22 }
 0x68d   : > { %10230 = vmatprep.subr.bf16.mxu0 %v14725_v40  ;;  %v8328_v24 = vld [vmem:[#allocation6 + $0x1a68] sm:$0xff]  ;;  %v14756_v40 = vcombine.low %v8316_v51, %v8320_v26 }
 0x68e   : > { %v14765_v7 = vcombine.high %v8324_v32, %v8328_v24  ;;  %v8156_v52 = vld [vmem:[#allocation6 + $0x1508] sm:$0xff]  ;;  %v14764_v3 = vcombine.low %v8324_v32, %v8328_v24 }
 0x68f   : > { %10128 = vmatpush1.bf16.msra.mxu1 %v14802_v47  ;;  %v8160_v30 = vld [vmem:[#allocation6 + $0x1528] sm:$0xff]  ;;  %v14588_v47 = vcombine.low %v8148_v29, %v8152_v22 }
 0x690   : > { %10231 = vmatpush1.bf16.msra.mxu0 %v14724_v49  ;;  %10129 = vmatprep.subr.bf16.mxu1 %v14811_v54  ;;  %v8332_v33 = vld [vmem:[#allocation6 + $0x1a88] sm:$0xff]  ;;  %v14597_v49 = vcombine.high %v8156_v52, %v8160_v30  ;;  %v14596_v38 = vcombine.low %v8156_v52, %v8160_v30 }
 0x691   : > { %10232 = vmatprep.subr.bf16.mxu0 %v14733_v44  ;;  %v8336_v60 = vld [vmem:[#allocation6 + $0x1aa8] sm:$0xff] }
 0x692   : > { %v7910_v13 = vpop.f32.mrb[80].mxu0  ;;  %v14773_v54 = vcombine.high %v8332_v33, %v8336_v60  ;;  %v8164_v44 = vld [vmem:[#allocation6 + $0x1548] sm:$0xff] }
 0x693   : > { %v16971_v59 = vadd.f32 %v7910_v13, %v16881_v23  ;;  %v7912_v5 = vpop.f32.mrb[81].mxu0  ;;  %10130 = vmatpush1.bf16.msra.mxu1 %v14810_v57  ;;  %v8144_v23 = vld [vmem:[#allocation6 + $0x14a8] sm:$0xff]  ;;  %v14772_v57 = vcombine.low %v8332_v33, %v8336_v60 }
 0x694   : > { %v16977_v12 = vadd.f32 %v7912_v5, %v16884_v19  ;;  %v7914_v1 = vpop.f32.mrb[82].mxu0  ;;  %10233 = vmatpush1.bf16.msra.mxu0 %v14732_v37  ;;  %10181 = vmatprep.subr.bf16.mxu1 %v14565_v63  ;;  %v14748_v19 = vcombine.low %v8308_v41, %v8312_v10  ;;  %v14581_v27 = vcombine.high %v8140_v15, %v8144_v23  ;;  %v8344_v18 = vld [vmem:[#allocation6 + $0x1ae8] sm:$0xff] }
 0x695   : > { %v7915_v16 = vpop.f32.mrb[83].mxu0  ;;  %10234 = vmatprep.subr.bf16.mxu0 %v14741_v9  ;;  %v14580_v46 = vcombine.low %v8140_v15, %v8144_v23  ;;  %v14605_v37 = vcombine.high %v8164_v44, %v8168_v34  ;;  %v14781_v63 = vcombine.high %v8340_v56, %v8344_v18  ;;  %v8172_v9 = vld [vmem:[#allocation6 + $0x1588] sm:$0xff]  ;;  %v14604_v41 = vcombine.low %v8164_v44, %v8168_v34  ;;  %v8125_v34 = vld [vmem:[#allocation6 + $0x1410] sm:$0xff] }
 0x696   : > { %10132 = vmatmul.mubr.bf16.vlgmr.msra.gmra.mrb[108].mxu1 %v16974_v21  ;;  %v8352_v13 = vld [vmem:[#allocation6 + $0x1b28] sm:$0xff]  ;;  %v14780_v10 = vcombine.low %v8340_v56, %v8344_v18  ;;  %v14613_v5 = vcombine.high %v8172_v9, %v8176_v20  ;;  %v8129_v56 = vld [vmem:[#allocation6 + $0x1430] sm:$0xff] }
 0x697   : > { %10182 = vmatpush1.bf16.msra.mxu1 %v14564_v4  ;;  %10213 = vmatprep.mubr.bf16.mxu1 %v16923_v39  ;;  %v14789_v4 = vcombine.high %v8348_v50, %v8352_v13  ;;  %v8180_v1 = vld [vmem:[#allocation6 + $0x15c8] sm:$0xff]  ;;  %v14788_v15 = vcombine.low %v8348_v50, %v8352_v13  ;;  %v8137_v50 = vld [vmem:[#allocation6 + $0x1470] sm:$0xff] }
 0x698   : > { %10235 = vmatpush1.bf16.msra.mxu0 %v14740_v43  ;;  %10183 = vmatprep.subr.bf16.mxu1 %v14573_v42  ;;  %v8184_v43 = vld [vmem:[#allocation6 + $0x15e8] sm:$0xff] }
 0x699   : > { %10236 = vmatprep.subr.bf16.mxu0 %v14749_v45  ;;  %v8356_v42 = vld [vmem:[#allocation6 + $0x1b48] sm:$0xff]  ;;  %v14612_v45 = vcombine.low %v8172_v9, %v8176_v20  ;;  %v14621_v23 = vcombine.high %v8180_v1, %v8184_v43  ;;  %v8133_v20 = vld [vmem:[#allocation6 + $0x1450] sm:$0xff] }
 0x69a   : > { %v8360_v16 = vld [vmem:[#allocation6 + $0x1b68] sm:$0xff] }
 0x69b   : > { %10184 = vmatpush1.bf16.msra.mxu1 %v14572_v53  ;;  %v14797_v51 = vcombine.high %v8356_v42, %v8360_v16  ;;  %v8188_v26 = vld [vmem:[#allocation6 + $0x1608] sm:$0xff]  ;;  %v14796_v29 = vcombine.low %v8356_v42, %v8360_v16  ;;  %v8145_v42 = vld [vmem:[#allocation6 + $0x14b0] sm:$0xff] }
 0x69c   : > { %10237 = vmatpush1.bf16.msra.mxu0 %v14748_v19  ;;  %10185 = vmatprep.subr.bf16.mxu1 %v14581_v27  ;;  %v8192_v53 = vld [vmem:[#allocation6 + $0x1628] sm:$0xff] }
 0x69d   : > { %10238 = vmatprep.subr.bf16.mxu0 %v14757_v61  ;;  %v8364_v19 = vld [vmem:[#allocation6 + $0x1b88] sm:$0xff]  ;;  %v14620_v61 = vcombine.low %v8180_v1, %v8184_v43  ;;  %v14629_v22 = vcombine.high %v8188_v26, %v8192_v53  ;;  %v14628_v30 = vcombine.low %v8188_v26, %v8192_v53  ;;  %v8141_v43 = vld [vmem:[#allocation6 + $0x1490] sm:$0xff] }
 0x69e   : > { %v8368_v27 = vld [vmem:[#allocation6 + $0x1ba8] sm:$0xff]  ;;  %v8149_v53 = vld [vmem:[#allocation6 + $0x14d0] sm:$0xff] }
 0x69f   : > { %10186 = vmatpush1.bf16.msra.mxu1 %v14580_v46  ;;  %v14805_v32 = vcombine.high %v8364_v19, %v8368_v27  ;;  %v8196_v24 = vld [vmem:[#allocation6 + $0x1648] sm:$0xff]  ;;  %v14804_v60 = vcombine.low %v8364_v19, %v8368_v27  ;;  %v8153_v19 = vld [vmem:[#allocation6 + $0x14f0] sm:$0xff] }
 0x6a0   : > { %10239 = vmatpush1.bf16.msra.mxu0 %v14756_v40  ;;  %10187 = vmatprep.subr.bf16.mxu1 %v14589_v35  ;;  %v8200_v46 = vld [vmem:[#allocation6 + $0x1668] sm:$0xff] }
 0x6a1   : > { %10240 = vmatprep.subr.bf16.mxu0 %v14765_v7  ;;  %v8372_v35 = vld [vmem:[#allocation6 + $0x1bc8] sm:$0xff]  ;;  %v14636_v18 = vcombine.low %v8196_v24, %v8200_v46 }
 0x6a2   : > { %v8376_v7 = vld [vmem:[#allocation6 + $0x1be8] sm:$0xff] }
 0x6a3   : > { %10188 = vmatpush1.bf16.msra.mxu1 %v14588_v47  ;;  %v14637_v47 = vcombine.high %v8196_v24, %v8200_v46  ;;  %v8208_v44 = vld [vmem:[#allocation6 + $0x16a8] sm:$0xff]  ;;  %v8157_v46 = vld [vmem:[#allocation6 + $0x1510] sm:$0xff] }
 0x6a4   : > { %10241 = vmatpush1.bf16.msra.mxu0 %v14764_v3  ;;  %10189 = vmatprep.subr.bf16.mxu1 %v14597_v49  ;;  %v14813_v49 = vcombine.high %v8372_v35, %v8376_v7  ;;  %v8216_v9 = vld [vmem:[#allocation6 + $0x16e8] sm:$0xff] }
 0x6a5   : > { %10242 = vmatprep.subr.bf16.mxu0 %v14773_v54  ;;  %v8204_v54 = vld [vmem:[#allocation6 + $0x1688] sm:$0xff] }
 0x6a6   : > { %v14644_v13 = vcombine.low %v8204_v54, %v8208_v44  ;;  %v8224_v1 = vld [vmem:[#allocation6 + $0x1728] sm:$0xff] }
 0x6a7   : > { %10190 = vmatpush1.bf16.msra.mxu1 %v14596_v38  ;;  %v14812_v38 = vcombine.low %v8372_v35, %v8376_v7  ;;  %v8232_v26 = vld [vmem:[#allocation6 + $0x1768] sm:$0xff]  ;;  %v8161_v35 = vld [vmem:[#allocation6 + $0x1530] sm:$0xff] }
 0x6a8   : > { %10243 = vmatpush1.bf16.msra.mxu0 %v14772_v57  ;;  %10191 = vmatprep.subr.bf16.mxu1 %v14605_v37  ;;  %v14645_v57 = vcombine.high %v8204_v54, %v8208_v44  ;;  %v14567_v37 = vcombine.high %v8125_v34, %v8129_v56  ;;  %v8240_v24 = vld [vmem:[#allocation6 + $0x17a8] sm:$0xff] }
 0x6a9   : > { %10244 = vmatprep.subr.bf16.mxu0 %v14781_v63  ;;  %v8212_v63 = vld [vmem:[#allocation6 + $0x16c8] sm:$0xff] }
 0x6aa   : > { %v14652_v16 = vcombine.low %v8212_v63, %v8216_v9 }
 0x6ab   : > { %10192 = vmatpush1.bf16.msra.mxu1 %v14604_v41  ;;  %v14566_v41 = vcombine.low %v8125_v34, %v8129_v56  ;;  %v8165_v34 = vld [vmem:[#allocation6 + $0x1550] sm:$0xff] }
 0x6ac   : > { %10245 = vmatpush1.bf16.msra.mxu0 %v14780_v10  ;;  %10193 = vmatprep.subr.bf16.mxu1 %v14613_v5  ;;  %v14653_v10 = vcombine.high %v8212_v63, %v8216_v9  ;;  %v14575_v5 = vcombine.high %v8133_v20, %v8137_v50  ;;  %v8169_v56 = vld [vmem:[#allocation6 + $0x1570] sm:$0xff]  ;;  %v14598_v9 = vcombine.low %v8157_v46, %v8161_v35 }
 0x6ad   : > { %10246 = vmatprep.subr.bf16.mxu0 %v14789_v4  ;;  %v8220_v4 = vld [vmem:[#allocation6 + $0x1708] sm:$0xff] }
 0x6ae   : > { %v14660_v27 = vcombine.low %v8220_v4, %v8224_v1 }
 0x6af   : > { %10194 = vmatpush1.bf16.msra.mxu1 %v14612_v45  ;;  %v14574_v45 = vcombine.low %v8133_v20, %v8137_v50 }
 0x6b0   : > { %10247 = vmatpush1.bf16.msra.mxu0 %v14788_v15  ;;  %10195 = vmatprep.subr.bf16.mxu1 %v14621_v23  ;;  %v14661_v15 = vcombine.high %v8220_v4, %v8224_v1  ;;  %v14583_v23 = vcombine.high %v8141_v43, %v8145_v42 }
 0x6b1   : > { %10248 = vmatprep.subr.bf16.mxu0 %v14797_v51  ;;  %v8228_v51 = vld [vmem:[#allocation6 + $0x1748] sm:$0xff] }
 0x6b2   : > { %v16981_v40 = vpop.f32.mrb[84].mxu0  ;;  %v14668_v7 = vcombine.low %v8228_v51, %v8232_v26 }
 0x6b3   : > { %v16983_v52 = vpop.f32.mrb[85].mxu0  ;;  %10196 = vmatpush1.bf16.msra.mxu1 %v14620_v61  ;;  %v14582_v61 = vcombine.low %v8141_v43, %v8145_v42  ;;  %v8388_v43 = vld [vmem:[#allocation6 + $0x1c48] sm:$0xff] }
 0x6b4   : > { %v7996_v33 = vpop.f32.mrb[86].mxu0  ;;  %10249 = vmatpush1.bf16.msra.mxu0 %v14796_v29  ;;  %10197 = vmatprep.subr.bf16.mxu1 %v14629_v22  ;;  %v14669_v29 = vcombine.high %v8228_v51, %v8232_v26  ;;  %v14591_v22 = vcombine.high %v8149_v53, %v8153_v19  ;;  %v8392_v42 = vld [vmem:[#allocation6 + $0x1c68] sm:$0xff] }
 0x6b5   : > { %v7997_v3 = vpop.f32.mrb[87].mxu0  ;;  %10250 = vmatprep.subr.bf16.mxu0 %v14805_v32  ;;  %v8236_v32 = vld [vmem:[#allocation6 + $0x1788] sm:$0xff] }
 0x6b6   : > { %v14677_v33 = vcombine.high %v8236_v32, %v8240_v24  ;;  %v8244_v3 = vld [vmem:[#allocation6 + $0x17c8] sm:$0xff] }
 0x6b7   : > { %10198 = vmatpush1.bf16.msra.mxu1 %v14628_v30  ;;  %v14590_v30 = vcombine.low %v8149_v53, %v8153_v19  ;;  %v8396_v26 = vld [vmem:[#allocation6 + $0x1c88] sm:$0xff]  ;;  %v8189_v19 = vld [vmem:[#allocation6 + $0x1610] sm:$0xff] }
 0x6b8   : > { %10251 = vmatpush1.bf16.msra.mxu0 %v14804_v60  ;;  %10199 = vmatprep.subr.bf16.mxu1 %v14637_v47  ;;  %v14599_v47 = vcombine.high %v8157_v46, %v8161_v35  ;;  %v8400_v53 = vld [vmem:[#allocation6 + $0x1ca8] sm:$0xff]  ;;  %v8197_v35 = vld [vmem:[#allocation6 + $0x1650] sm:$0xff] }
 0x6b9   : > { %10252 = vmatprep.subr.bf16.mxu0 %v14813_v49  ;;  %v8248_v49 = vld [vmem:[#allocation6 + $0x17e8] sm:$0xff] }
 0x6ba   : > { %v14685_v20 = vcombine.high %v8244_v3, %v8248_v49  ;;  %v8408_v46 = vld [vmem:[#allocation6 + $0x1ce8] sm:$0xff] }
 0x6bb   : > { %10200 = vmatpush1.bf16.msra.mxu1 %v14636_v18 }
 0x6bc   : > { %10253 = vmatpush1.bf16.msra.mxu0 %v14812_v38  ;;  %10201 = vmatprep.subr.bf16.mxu1 %v14645_v57  ;;  %v14676_v57 = vcombine.low %v8236_v32, %v8240_v24  ;;  %v8404_v24 = vld [vmem:[#allocation6 + $0x1cc8] sm:$0xff] }
 0x6bd   : > { %10304 = vmatprep.subr.bf16.mxu0 %v14567_v37 }
 0x6bf   : > { %10255 = vmatmul.mubr.bf16.vlgmr.msra.gmra.mrb[100].mxu0 %v16974_v21  ;;  %10202 = vmatpush1.bf16.msra.mxu1 %v14644_v13  ;;  %v8380_v13 = vld [vmem:[#allocation6 + $0x1c08] sm:$0xff] }
 0x6c0   : > { %10305 = vmatpush1.bf16.msra.mxu0 %v14566_v41  ;;  %10336 = vmatprep.mubr.bf16.mxu0 %v16923_v39  ;;  %v8384_v41 = vld [vmem:[#allocation6 + $0x1c28] sm:$0xff] }
 0x6c1   : > { %10203 = vmatprep.subr.bf16.mxu1 %v14653_v10  ;;  %10306 = vmatprep.subr.bf16.mxu0 %v14575_v5  ;;  %v8173_v10 = vld [vmem:[#allocation6 + $0x1590] sm:$0xff]  ;;  %v14684_v5 = vcombine.low %v8244_v3, %v8248_v49  ;;  %v14821_v4 = vcombine.high %v8380_v13, %v8384_v41  ;;  %v8412_v3 = vld [vmem:[#allocation6 + $0x1d08] sm:$0xff] }
 0x6c2   : > { %v8416_v49 = vld [vmem:[#allocation6 + $0x1d28] sm:$0xff] }
 0x6c3   : > { %10204 = vmatpush1.bf16.msra.mxu1 %v14652_v16  ;;  %v8181_v16 = vld [vmem:[#allocation6 + $0x15d0] sm:$0xff] }
 0x6c4   : > { %10307 = vmatpush1.bf16.msra.mxu0 %v14574_v45  ;;  %10205 = vmatprep.subr.bf16.mxu1 %v14661_v15  ;;  %v8185_v45 = vld [vmem:[#allocation6 + $0x15f0] sm:$0xff] }
 0x6c5   : > { %10308 = vmatprep.subr.bf16.mxu0 %v14583_v23  ;;  %v14829_v23 = vcombine.high %v8388_v43, %v8392_v42  ;;  %v14623_v51 = vcombine.high %v8181_v16, %v8185_v45 }
 0x6c7   : > { %10206 = vmatpush1.bf16.msra.mxu1 %v14660_v27  ;;  %v8193_v27 = vld [vmem:[#allocation6 + $0x1630] sm:$0xff] }
 0x6c8   : > { %10309 = vmatpush1.bf16.msra.mxu0 %v14582_v61  ;;  %10207 = vmatprep.subr.bf16.mxu1 %v14669_v29  ;;  %v14828_v61 = vcombine.low %v8388_v43, %v8392_v42  ;;  %v14622_v29 = vcombine.low %v8181_v16, %v8185_v45  ;;  %v14631_v32 = vcombine.high %v8189_v19, %v8193_v27  ;;  %v8436_v45 = vld [vmem:[#allocation6 + $0x1dc8] sm:$0xff] }
 0x6c9   : > { %v7951_v60 = vpop.f32.mrb[96].mxu1  ;;  %10310 = vmatprep.subr.bf16.mxu0 %v14591_v22  ;;  %v14837_v22 = vcombine.high %v8396_v26, %v8400_v53 }
 0x6ca   : > { %v7952_v54 = vadd.f32 %v7951_v60, %v16971_v59  ;;  %v7953_v44 = vpop.f32.mrb[97].mxu1  ;;  %v14607_v59 = vcombine.high %v8165_v34, %v8169_v56  ;;  %v14845_v60 = vcombine.high %v8404_v24, %v8408_v46 }
 0x6cb   : > { %v7954_v18 = vadd.f32 %v7953_v44, %v16977_v12  ;;  %v7955_v38 = vpop.f32.mrb[98].mxu1  ;;  %10208 = vmatpush1.bf16.msra.mxu1 %v14668_v7  ;;  %v8177_v12 = vld [vmem:[#allocation6 + $0x15b0] sm:$0xff] }
 0x6cc   : > { %v16990_v37 = vadd.f32 %v16981_v40, %v7952_v54  ;;  %10311 = vmatpush1.bf16.msra.mxu0 %v14590_v30  ;;  %v7956_v63 = vpop.f32.mrb[99].mxu1  ;;  %10209 = vmatprep.subr.bf16.mxu1 %v14677_v33  ;;  %v14606_v40 = vcombine.low %v8165_v34, %v8169_v56  ;;  %v14615_v1 = vcombine.high %v8173_v10, %v8177_v12  ;;  %v8201_v7 = vld [vmem:[#allocation6 + $0x1670] sm:$0xff] }
 0x6cd   : > { %v16993_v50 = vadd.f32 %v16983_v52, %v7954_v18  ;;  %10312 = vmatprep.subr.bf16.mxu0 %v14599_v47  ;;  %v14820_v52 = vcombine.low %v8380_v13, %v8384_v41  ;;  %v14614_v15 = vcombine.low %v8173_v10, %v8177_v12  ;;  %v14836_v30 = vcombine.low %v8396_v26, %v8400_v53  ;;  %v8205_v54 = vld [vmem:[#allocation6 + $0x1690] sm:$0xff]  ;;  %v8424_v63 = vld [vmem:[#allocation6 + $0x1d68] sm:$0xff] }
 0x6ce   : > { %v14630_v33 = vcombine.low %v8189_v19, %v8193_v27  ;;  %v14639_v47 = vcombine.high %v8197_v35, %v8201_v7  ;;  %v8209_v44 = vld [vmem:[#allocation6 + $0x16b0] sm:$0xff]  ;;  %v14844_v34 = vcombine.low %v8404_v24, %v8408_v46  ;;  %v14638_v56 = vcombine.low %v8197_v35, %v8201_v7  ;;  %v8428_v12 = vld [vmem:[#allocation6 + $0x1d88] sm:$0xff] }
 0x6cf   : > { %10210 = vmatpush1.bf16.msra.mxu1 %v14676_v57  ;;  %v14853_v18 = vcombine.high %v8412_v3, %v8416_v49  ;;  %v14647_v38 = vcombine.high %v8205_v54, %v8209_v44  ;;  %v8420_v57 = vld [vmem:[#allocation6 + $0x1d48] sm:$0xff]  ;;  %v14646_v13 = vcombine.low %v8205_v54, %v8209_v44  ;;  %v8253_v27 = vld [vmem:[#allocation6 + $0x1810] sm:$0xff] }
 0x6d0   : > { %10313 = vmatpush1.bf16.msra.mxu0 %v14598_v9  ;;  %10211 = vmatprep.subr.bf16.mxu1 %v14685_v20  ;;  %v8213_v9 = vld [vmem:[#allocation6 + $0x16d0] sm:$0xff]  ;;  %v14861_v41 = vcombine.high %v8420_v57, %v8424_v63 }
 0x6d1   : > { %10314 = vmatprep.subr.bf16.mxu0 %v14607_v59  ;;  %v8217_v20 = vld [vmem:[#allocation6 + $0x16f0] sm:$0xff]  ;;  %v14852_v59 = vcombine.low %v8412_v3, %v8416_v49 }
 0x6d2   : > { %v14655_v10 = vcombine.high %v8213_v9, %v8217_v20  ;;  %v14654_v43 = vcombine.low %v8213_v9, %v8217_v20  ;;  %v8261_v7 = vld [vmem:[#allocation6 + $0x1850] sm:$0xff] }
 0x6d3   : > { %10212 = vmatpush1.bf16.msra.mxu1 %v14684_v5  ;;  %v8432_v5 = vld [vmem:[#allocation6 + $0x1da8] sm:$0xff]  ;;  %v8385_v9 = vld [vmem:[#allocation6 + $0x1c30] sm:$0xff] }
 0x6d4   : > { %10315 = vmatpush1.bf16.msra.mxu0 %v14606_v40  ;;  %10263 = vmatprep.subr.bf16.mxu1 %v14821_v4  ;;  %v8221_v40 = vld [vmem:[#allocation6 + $0x1710] sm:$0xff]  ;;  %v14869_v42 = vcombine.high %v8428_v12, %v8432_v5 }
 0x6d5   : > { %10316 = vmatprep.subr.bf16.mxu0 %v14615_v1  ;;  %v8225_v4 = vld [vmem:[#allocation6 + $0x1730] sm:$0xff]  ;;  %v14860_v1 = vcombine.low %v8420_v57, %v8424_v63 }
 0x6d6   : > { %10214 = vmatmul.mubr.bf16.vlgmr.msra.gmra.mrb[112].mxu1 %v16947_v17  ;;  %v14663_v16 = vcombine.high %v8221_v40, %v8225_v4  ;;  %v14662_v26 = vcombine.low %v8221_v40, %v8225_v4  ;;  %v8273_v57 = vld [vmem:[#allocation6 + $0x18b0] sm:$0xff] }
 0x6d7   : > { %10264 = vmatpush1.bf16.msra.mxu1 %v14820_v52  ;;  %10295 = vmatprep.mubr.bf16.mxu1 %v16185_v0  ;;  %v8440_v52 = vld [vmem:[#allocation6 + $0x1de8] sm:$0xff]  ;;  %v8381_v63 = vld [vmem:[#allocation6 + $0x1c10] sm:$0xff] }
 0x6d8   : > { %10317 = vmatpush1.bf16.msra.mxu0 %v14614_v15  ;;  %10265 = vmatprep.subr.bf16.mxu1 %v14829_v23  ;;  %v8229_v15 = vld [vmem:[#allocation6 + $0x1750] sm:$0xff]  ;;  %v14877_v53 = vcombine.high %v8436_v45, %v8440_v52 }
 0x6d9   : > { %10318 = vmatprep.subr.bf16.mxu0 %v14623_v51  ;;  %v8233_v23 = vld [vmem:[#allocation6 + $0x1770] sm:$0xff]  ;;  %v14868_v51 = vcombine.low %v8428_v12, %v8432_v5 }
 0x6da   : > { %v14671_v19 = vcombine.high %v8229_v15, %v8233_v23  ;;  %v14670_v24 = vcombine.low %v8229_v15, %v8233_v23  ;;  %v8281_v12 = vld [vmem:[#allocation6 + $0x18f0] sm:$0xff] }
 0x6db   : > { %10266 = vmatpush1.bf16.msra.mxu1 %v14828_v61  ;;  %v8257_v61 = vld [vmem:[#allocation6 + $0x1830] sm:$0xff] }
 0x6dc   : > { %10319 = vmatpush1.bf16.msra.mxu0 %v14622_v29  ;;  %10267 = vmatprep.subr.bf16.mxu1 %v14837_v22  ;;  %v8237_v29 = vld [vmem:[#allocation6 + $0x1790] sm:$0xff]  ;;  %v14695_v46 = vcombine.high %v8253_v27, %v8257_v61  ;;  %v14694_v49 = vcombine.low %v8253_v27, %v8257_v61 }
 0x6dd   : > { %10320 = vmatprep.subr.bf16.mxu0 %v14631_v32  ;;  %v8241_v22 = vld [vmem:[#allocation6 + $0x17b0] sm:$0xff]  ;;  %v14876_v32 = vcombine.low %v8436_v45, %v8440_v52 }
 0x6de   : > { %v14679_v35 = vcombine.high %v8237_v29, %v8241_v22  ;;  %v14678_v44 = vcombine.low %v8237_v29, %v8241_v22  ;;  %v8389_v5 = vld [vmem:[#allocation6 + $0x1c50] sm:$0xff] }
 0x6df   : > { %10268 = vmatpush1.bf16.msra.mxu1 %v14836_v30  ;;  %v8265_v30 = vld [vmem:[#allocation6 + $0x1870] sm:$0xff] }
 0x6e0   : > { %10321 = vmatpush1.bf16.msra.mxu0 %v14630_v33  ;;  %10269 = vmatprep.subr.bf16.mxu1 %v14845_v60  ;;  %v8245_v60 = vld [vmem:[#allocation6 + $0x17d0] sm:$0xff]  ;;  %v14702_v20 = vcombine.low %v8261_v7, %v8265_v30 }
 0x6e1   : > { %10322 = vmatprep.subr.bf16.mxu0 %v14639_v47  ;;  %v8249_v47 = vld [vmem:[#allocation6 + $0x17f0] sm:$0xff] }
 0x6e2   : > { %v8393_v40 = vld [vmem:[#allocation6 + $0x1c70] sm:$0xff] }
 0x6e3   : > { %10270 = vmatpush1.bf16.msra.mxu1 %v14844_v34  ;;  %v14703_v34 = vcombine.high %v8261_v7, %v8265_v30  ;;  %v8289_v45 = vld [vmem:[#allocation6 + $0x1930] sm:$0xff] }
 0x6e4   : > { %10323 = vmatpush1.bf16.msra.mxu0 %v14638_v56  ;;  %10271 = vmatprep.subr.bf16.mxu1 %v14853_v18  ;;  %v14687_v18 = vcombine.high %v8245_v60, %v8249_v47  ;;  %v8397_v52 = vld [vmem:[#allocation6 + $0x1c90] sm:$0xff] }
 0x6e5   : > { %10324 = vmatprep.subr.bf16.mxu0 %v14647_v38  ;;  %v8269_v38 = vld [vmem:[#allocation6 + $0x1890] sm:$0xff] }
 0x6e6   : > { %v14710_v4 = vcombine.low %v8269_v38, %v8273_v57  ;;  %v8401_v15 = vld [vmem:[#allocation6 + $0x1cb0] sm:$0xff] }
 0x6e7   : > { %10272 = vmatpush1.bf16.msra.mxu1 %v14852_v59  ;;  %v14686_v59 = vcombine.low %v8245_v60, %v8249_v47  ;;  %v8297_v27 = vld [vmem:[#allocation6 + $0x1970] sm:$0xff] }
 0x6e8   : > { %10325 = vmatpush1.bf16.msra.mxu0 %v14646_v13  ;;  %10273 = vmatprep.subr.bf16.mxu1 %v14861_v41  ;;  %v14711_v13 = vcombine.high %v8269_v38, %v8273_v57  ;;  %v14823_v41 = vcombine.high %v8381_v63, %v8385_v9  ;;  %v8405_v61 = vld [vmem:[#allocation6 + $0x1cd0] sm:$0xff] }
 0x6e9   : > { %10326 = vmatprep.subr.bf16.mxu0 %v14655_v10  ;;  %v8277_v10 = vld [vmem:[#allocation6 + $0x18d0] sm:$0xff] }
 0x6ea   : > { %v14718_v23 = vcombine.low %v8277_v10, %v8281_v12  ;;  %v8409_v29 = vld [vmem:[#allocation6 + $0x1cf0] sm:$0xff] }
 0x6eb   : > { %10274 = vmatpush1.bf16.msra.mxu1 %v14860_v1  ;;  %v14822_v1 = vcombine.low %v8381_v63, %v8385_v9  ;;  %v8305_v7 = vld [vmem:[#allocation6 + $0x19b0] sm:$0xff] }
 0x6ec   : > { %10327 = vmatpush1.bf16.msra.mxu0 %v14654_v43  ;;  %10275 = vmatprep.subr.bf16.mxu1 %v14869_v42  ;;  %v14719_v43 = vcombine.high %v8277_v10, %v8281_v12  ;;  %v14831_v42 = vcombine.high %v8389_v5, %v8393_v40  ;;  %v8413_v30 = vld [vmem:[#allocation6 + $0x1d10] sm:$0xff] }
 0x6ed   : > { %10328 = vmatprep.subr.bf16.mxu0 %v14663_v16  ;;  %v8285_v16 = vld [vmem:[#allocation6 + $0x1910] sm:$0xff] }
 0x6ee   : > { %v14726_v22 = vcombine.low %v8285_v16, %v8289_v45  ;;  %v8417_v60 = vld [vmem:[#allocation6 + $0x1d30] sm:$0xff] }
 0x6ef   : > { %10276 = vmatpush1.bf16.msra.mxu1 %v14868_v51  ;;  %v14830_v51 = vcombine.low %v8389_v5, %v8393_v40  ;;  %v8421_v63 = vld [vmem:[#allocation6 + $0x1d50] sm:$0xff]  ;;  %v14854_v10 = vcombine.low %v8413_v30, %v8417_v60 }
 0x6f0   : > { %10329 = vmatpush1.bf16.msra.mxu0 %v14662_v26  ;;  %10277 = vmatprep.subr.bf16.mxu1 %v14877_v53  ;;  %v14727_v26 = vcombine.high %v8285_v16, %v8289_v45  ;;  %v14839_v53 = vcombine.high %v8397_v52, %v8401_v15  ;;  %v8425_v9 = vld [vmem:[#allocation6 + $0x1d70] sm:$0xff] }
 0x6f1   : > { %10330 = vmatprep.subr.bf16.mxu0 %v14671_v19  ;;  %v8293_v19 = vld [vmem:[#allocation6 + $0x1950] sm:$0xff]  ;;  %v14863_v40 = vcombine.high %v8421_v63, %v8425_v9  ;;  %v14862_v16 = vcombine.low %v8421_v63, %v8425_v9 }
 0x6f2   : > { %v16997_v33 = vpop.f32.mrb[88].mxu0  ;;  %v14734_v47 = vcombine.low %v8293_v19, %v8297_v27 }
 0x6f3   : > { %v16999_v3 = vpop.f32.mrb[89].mxu0  ;;  %10278 = vmatpush1.bf16.msra.mxu1 %v14876_v32  ;;  %v14838_v32 = vcombine.low %v8397_v52, %v8401_v15  ;;  %v8325_v15 = vld [vmem:[#allocation6 + $0x1a50] sm:$0xff] }
 0x6f4   : > { %v8078_v54 = vpop.f32.mrb[90].mxu0  ;;  %10331 = vmatpush1.bf16.msra.mxu0 %v14670_v24  ;;  %10345 = vmatprep.subr.bf16.mxu1 %v14695_v46  ;;  %v14735_v24 = vcombine.high %v8293_v19, %v8297_v27  ;;  %v14847_v46 = vcombine.high %v8405_v61, %v8409_v29  ;;  %v8333_v27 = vld [vmem:[#allocation6 + $0x1a90] sm:$0xff] }
 0x6f5   : > { %v8079_v56 = vpop.f32.mrb[91].mxu0  ;;  %10332 = vmatprep.subr.bf16.mxu0 %v14679_v35  ;;  %v8301_v35 = vld [vmem:[#allocation6 + $0x1990] sm:$0xff] }
 0x6f6   : > { %10296 = vmatmul.mubr.bf16.vlgmr.msra.gmra.mrb[116].mxu1 %v16960_v58  ;;  %v14743_v54 = vcombine.high %v8301_v35, %v8305_v7  ;;  %v8309_v56 = vld [vmem:[#allocation6 + $0x19d0] sm:$0xff] }
 0x6f7   : > { %10346 = vmatpush1.bf16.msra.mxu1 %v14694_v49  ;;  %10377 = vmatprep.mubr.bf16.mxu1 %v16942_v31  ;;  %v14846_v49 = vcombine.low %v8405_v61, %v8409_v29  ;;  %v8337_v61 = vld [vmem:[#allocation6 + $0x1ab0] sm:$0xff]  ;;  %v8254_v29 = vld [vmem:[#allocation6 + $0x1818] sm:$0xff] }
 0x6f8   : > { %10333 = vmatpush1.bf16.msra.mxu0 %v14678_v44  ;;  %10347 = vmatprep.subr.bf16.mxu1 %v14703_v34  ;;  %v14855_v34 = vcombine.high %v8413_v30, %v8417_v60  ;;  %v8345_v30 = vld [vmem:[#allocation6 + $0x1af0] sm:$0xff]  ;;  %v8262_v60 = vld [vmem:[#allocation6 + $0x1858] sm:$0xff] }
 0x6f9   : > { %10334 = vmatprep.subr.bf16.mxu0 %v14687_v18  ;;  %v8313_v18 = vld [vmem:[#allocation6 + $0x19f0] sm:$0xff] }
 0x6fa   : > { %v14751_v12 = vcombine.high %v8309_v56, %v8313_v18 }
 0x6fb   : > { %10348 = vmatpush1.bf16.msra.mxu1 %v14702_v20 }
 0x6fc   : > { %10335 = vmatpush1.bf16.msra.mxu0 %v14686_v59  ;;  %10349 = vmatprep.subr.bf16.mxu1 %v14711_v13  ;;  %v14742_v13 = vcombine.low %v8301_v35, %v8305_v7  ;;  %v8341_v7 = vld [vmem:[#allocation6 + $0x1ad0] sm:$0xff] }
 0x6fd   : > { %10386 = vmatprep.subr.bf16.mxu0 %v14823_v41  ;;  %v14782_v63 = vcombine.low %v8341_v7, %v8345_v30 }
 0x6ff   : > { %10337 = vmatmul.mubr.bf16.vlgmr.msra.gmra.mrb[104].mxu0 %v16947_v17  ;;  %10350 = vmatpush1.bf16.msra.mxu1 %v14710_v4  ;;  %v8317_v4 = vld [vmem:[#allocation6 + $0x1a10] sm:$0xff] }
 0x700   : > { %10387 = vmatpush1.bf16.msra.mxu0 %v14822_v1  ;;  %10351 = vmatprep.subr.bf16.mxu1 %v14719_v43  ;;  %v8429_v43 = vld [vmem:[#allocation6 + $0x1d90] sm:$0xff] }
 0x701   : > { %10388 = vmatprep.subr.bf16.mxu0 %v14831_v42  ;;  %10418 = vmatprep.mubr.bf16.mxu0 %v16185_v0  ;;  %v14750_v42 = vcombine.low %v8309_v56, %v8313_v18  ;;  %v8349_v56 = vld [vmem:[#allocation6 + $0x1b10] sm:$0xff] }
 0x702   : > { %v8353_v18 = vld [vmem:[#allocation6 + $0x1b30] sm:$0xff] }
 0x703   : > { %10352 = vmatpush1.bf16.msra.mxu1 %v14718_v23  ;;  %v8437_v23 = vld [vmem:[#allocation6 + $0x1dd0] sm:$0xff] }
 0x704   : > { %10389 = vmatpush1.bf16.msra.mxu0 %v14830_v51  ;;  %10353 = vmatprep.subr.bf16.mxu1 %v14727_v26  ;;  %v8441_v51 = vld [vmem:[#allocation6 + $0x1df0] sm:$0xff] }
 0x705   : > { %10390 = vmatprep.subr.bf16.mxu0 %v14839_v53  ;;  %v14879_v19 = vcombine.high %v8437_v23, %v8441_v51 }
 0x707   : > { %10354 = vmatpush1.bf16.msra.mxu1 %v14726_v22  ;;  %v8258_v22 = vld [vmem:[#allocation6 + $0x1838] sm:$0xff] }
 0x708   : > { %10391 = vmatpush1.bf16.msra.mxu0 %v14838_v32  ;;  %10355 = vmatprep.subr.bf16.mxu1 %v14735_v24  ;;  %v14878_v24 = vcombine.low %v8437_v23, %v8441_v51  ;;  %v14697_v35 = vcombine.high %v8254_v29, %v8258_v22  ;;  %v8373_v51 = vld [vmem:[#allocation6 + $0x1bd0] sm:$0xff] }
 0x709   : > { %v8033_v44 = vpop.f32.mrb[100].mxu1  ;;  %10392 = vmatprep.subr.bf16.mxu0 %v14847_v46  ;;  %v14775_v46 = vcombine.high %v8333_v27, %v8337_v61 }
 0x70a   : > { %v8034_v38 = vadd.f32 %v8033_v44, %v16905_v25  ;;  %v8035_v57 = vpop.f32.mrb[101].mxu1  ;;  %v8321_v25 = vld [vmem:[#allocation6 + $0x1a30] sm:$0xff]  ;;  %v14783_v44 = vcombine.high %v8341_v7, %v8345_v30  ;;  %v8126_v7 = vld [vmem:[#allocation6 + $0x1418] sm:$0xff] }
 0x70b   : > { %v8036_v20 = vadd.f32 %v8035_v57, %v16908_v2  ;;  %v8037_v59 = vpop.f32.mrb[102].mxu1  ;;  %10356 = vmatpush1.bf16.msra.mxu1 %v14734_v47  ;;  %v8433_v2 = vld [vmem:[#allocation6 + $0x1db0] sm:$0xff]  ;;  %v14759_v45 = vcombine.high %v8317_v4, %v8321_v25  ;;  %v14758_v26 = vcombine.low %v8317_v4, %v8321_v25  ;;  %v8266_v47 = vld [vmem:[#allocation6 + $0x1878] sm:$0xff] }
 0x70c   : > { %10393 = vmatpush1.bf16.msra.mxu0 %v14846_v49  ;;  %v8038_v41 = vpop.f32.mrb[103].mxu1  ;;  %10357 = vmatprep.subr.bf16.mxu1 %v14743_v54  ;;  %v17008_v5 = vadd.f32 %v16997_v33, %v8034_v38  ;;  %v14871_v52 = vcombine.high %v8429_v43, %v8433_v2  ;;  %v8329_v33 = vld [vmem:[#allocation6 + $0x1a70] sm:$0xff]  ;;  %v14774_v49 = vcombine.low %v8333_v27, %v8337_v61  ;;  %v8270_v38 = vld [vmem:[#allocation6 + $0x1898] sm:$0xff] }
 0x70d   : > { %10394 = vmatprep.subr.bf16.mxu0 %v14855_v34  ;;  %v17011_v1 = vadd.f32 %v16999_v3, %v8036_v20  ;;  %v14870_v3 = vcombine.low %v8429_v43, %v8433_v2  ;;  %v14767_v53 = vcombine.high %v8325_v15, %v8329_v33  ;;  %v14766_v32 = vcombine.low %v8325_v15, %v8329_v33  ;;  %v8274_v57 = vld [vmem:[#allocation6 + $0x18b8] sm:$0xff]  ;;  %v8361_v41 = vld [vmem:[#allocation6 + $0x1b70] sm:$0xff] }
 0x70e   : > { %v14696_v54 = vcombine.low %v8254_v29, %v8258_v22  ;;  %v14705_v34 = vcombine.high %v8262_v60, %v8266_v47  ;;  %v14704_v9 = vcombine.low %v8262_v60, %v8266_v47  ;;  %v14791_v20 = vcombine.high %v8349_v56, %v8353_v18  ;;  %v8365_v2 = vld [vmem:[#allocation6 + $0x1b90] sm:$0xff]  ;;  %v8298_v27 = vld [vmem:[#allocation6 + $0x1978] sm:$0xff] }
 0x70f   : > { %10358 = vmatpush1.bf16.msra.mxu1 %v14742_v13  ;;  %v14713_v59 = vcombine.high %v8270_v38, %v8274_v57  ;;  %v8357_v13 = vld [vmem:[#allocation6 + $0x1b50] sm:$0xff]  ;;  %v14712_v4 = vcombine.low %v8270_v38, %v8274_v57  ;;  %v8130_v30 = vld [vmem:[#allocation6 + $0x1438] sm:$0xff] }
 0x710   : > { %10395 = vmatpush1.bf16.msra.mxu0 %v14854_v10  ;;  %10359 = vmatprep.subr.bf16.mxu1 %v14751_v12  ;;  %v8278_v10 = vld [vmem:[#allocation6 + $0x18d8] sm:$0xff]  ;;  %v14799_v25 = vcombine.high %v8357_v13, %v8361_v41 }
 0x711   : > { %10396 = vmatprep.subr.bf16.mxu0 %v14863_v40  ;;  %v8282_v12 = vld [vmem:[#allocation6 + $0x18f8] sm:$0xff]  ;;  %v14790_v40 = vcombine.low %v8349_v56, %v8353_v18 }
 0x712   : > { %v14721_v43 = vcombine.high %v8278_v10, %v8282_v12  ;;  %v8306_v60 = vld [vmem:[#allocation6 + $0x19b8] sm:$0xff] }
 0x713   : > { %10360 = vmatpush1.bf16.msra.mxu1 %v14750_v42  ;;  %v8369_v42 = vld [vmem:[#allocation6 + $0x1bb0] sm:$0xff]  ;;  %v8310_v18 = vld [vmem:[#allocation6 + $0x19d8] sm:$0xff] }
 0x714   : > { %10397 = vmatpush1.bf16.msra.mxu0 %v14862_v16  ;;  %10361 = vmatprep.subr.bf16.mxu1 %v14759_v45  ;;  %v8290_v16 = vld [vmem:[#allocation6 + $0x1938] sm:$0xff]  ;;  %v14798_v45 = vcombine.low %v8357_v13, %v8361_v41  ;;  %v14807_v15 = vcombine.high %v8365_v2, %v8369_v42  ;;  %v14806_v22 = vcombine.low %v8365_v2, %v8369_v42 }
 0x715   : > { %10398 = vmatprep.subr.bf16.mxu0 %v14871_v52  ;;  %v14720_v52 = vcombine.low %v8278_v10, %v8282_v12  ;;  %v8314_v38 = vld [vmem:[#allocation6 + $0x19f8] sm:$0xff] }
 0x716   : > { %v14753_v41 = vcombine.high %v8310_v18, %v8314_v38  ;;  %v8142_v10 = vld [vmem:[#allocation6 + $0x1498] sm:$0xff] }
 0x717   : > { %10362 = vmatpush1.bf16.msra.mxu1 %v14758_v26  ;;  %v8377_v26 = vld [vmem:[#allocation6 + $0x1bf0] sm:$0xff]  ;;  %v8146_v12 = vld [vmem:[#allocation6 + $0x14b8] sm:$0xff] }
 0x718   : > { %10399 = vmatpush1.bf16.msra.mxu0 %v14870_v3  ;;  %10363 = vmatprep.subr.bf16.mxu1 %v14767_v53  ;;  %v14814_v47 = vcombine.low %v8373_v51, %v8377_v26  ;;  %v14585_v2 = vcombine.high %v8142_v10, %v8146_v12 }
 0x719   : > { %10400 = vmatprep.subr.bf16.mxu0 %v14879_v19  ;;  %v8294_v19 = vld [vmem:[#allocation6 + $0x1958] sm:$0xff] }
 0x71b   : > { %10364 = vmatpush1.bf16.msra.mxu1 %v14766_v32 }
 0x71c   : > { %10401 = vmatpush1.bf16.msra.mxu0 %v14878_v24  ;;  %10365 = vmatprep.subr.bf16.mxu1 %v14775_v46  ;;  %v14815_v46 = vcombine.high %v8373_v51, %v8377_v26  ;;  %v8162_v26 = vld [vmem:[#allocation6 + $0x1538] sm:$0xff] }
 0x71d   : > { %10468 = vmatprep.subr.bf16.mxu0 %v14697_v35  ;;  %v14737_v35 = vcombine.high %v8294_v19, %v8298_v27 }
 0x71f   : > { %10419 = vmatmul.mubr.bf16.vlgmr.msra.gmra.mrb[108].mxu0 %v16960_v58  ;;  %10366 = vmatpush1.bf16.msra.mxu1 %v14774_v49  ;;  %v14569_v49 = vcombine.high %v8126_v7, %v8130_v30 }
 0x720   : > { %10469 = vmatpush1.bf16.msra.mxu0 %v14696_v54  ;;  %10500 = vmatprep.mubr.bf16.mxu0 %v16942_v31  ;;  %v8286_v31 = vld [vmem:[#allocation6 + $0x1918] sm:$0xff] }
 0x721   : > { %10367 = vmatprep.subr.bf16.mxu1 %v14783_v44  ;;  %10470 = vmatprep.subr.bf16.mxu0 %v14705_v34  ;;  %v14729_v23 = vcombine.high %v8286_v31, %v8290_v16  ;;  %v14728_v24 = vcombine.low %v8286_v31, %v8290_v16  ;;  %v8134_v44 = vld [vmem:[#allocation6 + $0x1458] sm:$0xff] }
 0x722   : > { %v8138_v34 = vld [vmem:[#allocation6 + $0x1478] sm:$0xff] }
 0x723   : > { %10368 = vmatpush1.bf16.msra.mxu1 %v14782_v63  ;;  %v14568_v63 = vcombine.low %v8126_v7, %v8130_v30  ;;  %v8150_v31 = vld [vmem:[#allocation6 + $0x14d8] sm:$0xff] }
 0x724   : > { %10471 = vmatpush1.bf16.msra.mxu0 %v14704_v9  ;;  %10369 = vmatprep.subr.bf16.mxu1 %v14791_v20  ;;  %v8154_v16 = vld [vmem:[#allocation6 + $0x14f8] sm:$0xff] }
 0x725   : > { %10472 = vmatprep.subr.bf16.mxu0 %v14713_v59  ;;  %v14577_v59 = vcombine.high %v8134_v44, %v8138_v34  ;;  %v8346_v7 = vld [vmem:[#allocation6 + $0x1af8] sm:$0xff] }
 0x727   : > { %10370 = vmatpush1.bf16.msra.mxu1 %v14790_v40  ;;  %v8318_v40 = vld [vmem:[#allocation6 + $0x1a18] sm:$0xff] }
 0x728   : > { %10473 = vmatpush1.bf16.msra.mxu0 %v14712_v4  ;;  %10371 = vmatprep.subr.bf16.mxu1 %v14799_v25  ;;  %v8322_v4 = vld [vmem:[#allocation6 + $0x1a38] sm:$0xff]  ;;  %v14576_v25 = vcombine.low %v8134_v44, %v8138_v34 }
 0x729   : > { %v8115_v33 = vpop.f32.mrb[104].mxu1  ;;  %10474 = vmatprep.subr.bf16.mxu0 %v14721_v43  ;;  %v14752_v43 = vcombine.low %v8310_v18, %v8314_v38  ;;  %v14761_v42 = vcombine.high %v8318_v40, %v8322_v4  ;;  %v8354_v44 = vld [vmem:[#allocation6 + $0x1b38] sm:$0xff] }
 0x72a   : > { %v17016_v3 = vadd.f32 %v8115_v33, %v17008_v5  ;;  %v8117_v53 = vpop.f32.mrb[105].mxu1  ;;  %v8302_v5 = vld [vmem:[#allocation6 + $0x1998] sm:$0xff]  ;;  %v14760_v33 = vcombine.low %v8318_v40, %v8322_v4 }
 0x72b   : > { %v17019_v61 = vadd.f32 %v8117_v53, %v17011_v1  ;;  %v8119_v29 = vpop.f32.mrb[106].mxu1  ;;  %10372 = vmatpush1.bf16.msra.mxu1 %v14798_v45  ;;  %v14736_v1 = vcombine.low %v8294_v19, %v8298_v27  ;;  %v14745_v54 = vcombine.high %v8302_v5, %v8306_v60  ;;  %v14744_v20 = vcombine.low %v8302_v5, %v8306_v60  ;;  %v8326_v45 = vld [vmem:[#allocation6 + $0x1a58] sm:$0xff] }
 0x72c   : > { %10475 = vmatpush1.bf16.msra.mxu0 %v14720_v52  ;;  %v8120_v32 = vpop.f32.mrb[107].mxu1  ;;  %10373 = vmatprep.subr.bf16.mxu1 %v14807_v15  ;;  %v8330_v52 = vld [vmem:[#allocation6 + $0x1a78] sm:$0xff]  ;;  %v14584_v15 = vcombine.low %v8142_v10, %v8146_v12  ;;  %v14592_v27 = vcombine.low %v8150_v31, %v8154_v16 }
 0x72d   : > { %10476 = vmatprep.subr.bf16.mxu0 %v14729_v23  ;;  %v14593_v23 = vcombine.high %v8150_v31, %v8154_v16  ;;  %v14769_v51 = vcombine.high %v8326_v45, %v8330_v52  ;;  %v8334_v53 = vld [vmem:[#allocation6 + $0x1a98] sm:$0xff]  ;;  %v14768_v29 = vcombine.low %v8326_v45, %v8330_v52 }
 0x72e   : > { %v8338_v19 = vld [vmem:[#allocation6 + $0x1ab8] sm:$0xff] }
 0x72f   : > { %10374 = vmatpush1.bf16.msra.mxu1 %v14806_v22  ;;  %v14777_v32 = vcombine.high %v8334_v53, %v8338_v19  ;;  %v14776_v5 = vcombine.low %v8334_v53, %v8338_v19  ;;  %v8190_v4 = vld [vmem:[#allocation6 + $0x1618] sm:$0xff] }
 0x730   : > { %10477 = vmatpush1.bf16.msra.mxu0 %v14728_v24  ;;  %10375 = vmatprep.subr.bf16.mxu1 %v14815_v46  ;;  %v8166_v24 = vld [vmem:[#allocation6 + $0x1558] sm:$0xff] }
 0x731   : > { %10478 = vmatprep.subr.bf16.mxu0 %v14737_v35  ;;  %v8170_v46 = vld [vmem:[#allocation6 + $0x1578] sm:$0xff] }
 0x732   : > { %v17021_v56 = vpop.f32.mrb[92].mxu0  ;;  %v8342_v35 = vld [vmem:[#allocation6 + $0x1ad8] sm:$0xff]  ;;  %v14609_v60 = vcombine.high %v8166_v24, %v8170_v46  ;;  %v14608_v34 = vcombine.low %v8166_v24, %v8170_v46 }
 0x733   : > { %v17023_v57 = vpop.f32.mrb[93].mxu0  ;;  %10376 = vmatpush1.bf16.msra.mxu1 %v14814_v47  ;;  %v14785_v47 = vcombine.high %v8342_v35, %v8346_v7  ;;  %v14784_v18 = vcombine.low %v8342_v35, %v8346_v7  ;;  %v8198_v52 = vld [vmem:[#allocation6 + $0x1658] sm:$0xff] }
 0x734   : > { %v10096_v9 = vpop.f32.mrb[94].mxu0  ;;  %10479 = vmatpush1.bf16.msra.mxu0 %v14736_v1  ;;  %10427 = vmatprep.subr.bf16.mxu1 %v14569_v49  ;;  %v8174_v1 = vld [vmem:[#allocation6 + $0x1598] sm:$0xff] }
 0x735   : > { %v10097_v13 = vpop.f32.mrb[95].mxu0  ;;  %10480 = vmatprep.subr.bf16.mxu0 %v14745_v54  ;;  %v8178_v49 = vld [vmem:[#allocation6 + $0x15b8] sm:$0xff] }
 0x736   : > { %10378 = vmatmul.mubr.bf16.vlgmr.msra.gmra.mrb[120].mxu1 %v16974_v21  ;;  %v8350_v54 = vld [vmem:[#allocation6 + $0x1b18] sm:$0xff]  ;;  %v14617_v38 = vcombine.high %v8174_v1, %v8178_v49 }
 0x737   : > { %10428 = vmatpush1.bf16.msra.mxu1 %v14568_v63  ;;  %10459 = vmatprep.mubr.bf16.mxu1 %v16923_v39  ;;  %v8158_v39 = vld [vmem:[#allocation6 + $0x1518] sm:$0xff]  ;;  %v14793_v63 = vcombine.high %v8350_v54, %v8354_v44  ;;  %v14792_v10 = vcombine.low %v8350_v54, %v8354_v44 }
 0x738   : > { %10481 = vmatpush1.bf16.msra.mxu0 %v14744_v20  ;;  %10429 = vmatprep.subr.bf16.mxu1 %v14577_v59  ;;  %v14601_v22 = vcombine.high %v8158_v39, %v8162_v26  ;;  %v14600_v30 = vcombine.low %v8158_v39, %v8162_v26  ;;  %v8182_v9 = vld [vmem:[#allocation6 + $0x15d8] sm:$0xff] }
 0x739   : > { %10482 = vmatprep.subr.bf16.mxu0 %v14753_v41  ;;  %v8186_v20 = vld [vmem:[#allocation6 + $0x15f8] sm:$0xff]  ;;  %v14616_v41 = vcombine.low %v8174_v1, %v8178_v49 }
 0x73a   : > { %v8358_v59 = vld [vmem:[#allocation6 + $0x1b58] sm:$0xff]  ;;  %v14625_v12 = vcombine.high %v8182_v9, %v8186_v20 }
 0x73b   : > { %10430 = vmatpush1.bf16.msra.mxu1 %v14576_v25  ;;  %v8362_v13 = vld [vmem:[#allocation6 + $0x1b78] sm:$0xff] }
 0x73c   : > { %10483 = vmatpush1.bf16.msra.mxu0 %v14752_v43  ;;  %10431 = vmatprep.subr.bf16.mxu1 %v14585_v2  ;;  %v14801_v40 = vcombine.high %v8358_v59, %v8362_v13  ;;  %v8194_v25 = vld [vmem:[#allocation6 + $0x1638] sm:$0xff]  ;;  %v14800_v31 = vcombine.low %v8358_v59, %v8362_v13 }
 0x73d   : > { %10484 = vmatprep.subr.bf16.mxu0 %v14761_v42  ;;  %v8366_v43 = vld [vmem:[#allocation6 + $0x1b98] sm:$0xff]  ;;  %v14624_v42 = vcombine.low %v8182_v9, %v8186_v20  ;;  %v14633_v16 = vcombine.high %v8190_v4, %v8194_v25  ;;  %v14632_v26 = vcombine.low %v8190_v4, %v8194_v25 }
 0x73e   : > { %v8370_v2 = vld [vmem:[#allocation6 + $0x1bb8] sm:$0xff] }
 0x73f   : > { %10432 = vmatpush1.bf16.msra.mxu1 %v14584_v15  ;;  %v14809_v45 = vcombine.high %v8366_v43, %v8370_v2  ;;  %v8202_v15 = vld [vmem:[#allocation6 + $0x1678] sm:$0xff]  ;;  %v14808_v19 = vcombine.low %v8366_v43, %v8370_v2 }
 0x740   : > { %10485 = vmatpush1.bf16.msra.mxu0 %v14760_v33  ;;  %10433 = vmatprep.subr.bf16.mxu1 %v14593_v23  ;;  %v8374_v23 = vld [vmem:[#allocation6 + $0x1bd8] sm:$0xff]  ;;  %v14640_v46 = vcombine.low %v8198_v52, %v8202_v15 }
 0x741   : > { %10486 = vmatprep.subr.bf16.mxu0 %v14769_v51  ;;  %v8378_v51 = vld [vmem:[#allocation6 + $0x1bf8] sm:$0xff] }
 0x742   : > { %v8210_v24 = vld [vmem:[#allocation6 + $0x16b8] sm:$0xff]  ;;  %v14816_v35 = vcombine.low %v8374_v23, %v8378_v51 }
 0x743   : > { %10434 = vmatpush1.bf16.msra.mxu1 %v14592_v27  ;;  %v14641_v27 = vcombine.high %v8198_v52, %v8202_v15  ;;  %v8222_v1 = vld [vmem:[#allocation6 + $0x1718] sm:$0xff] }
 0x744   : > { %10487 = vmatpush1.bf16.msra.mxu0 %v14768_v29  ;;  %10435 = vmatprep.subr.bf16.mxu1 %v14601_v22  ;;  %v14817_v22 = vcombine.high %v8374_v23, %v8378_v51  ;;  %v8226_v49 = vld [vmem:[#allocation6 + $0x1738] sm:$0xff] }
 0x745   : > { %10488 = vmatprep.subr.bf16.mxu0 %v14777_v32  ;;  %v8206_v32 = vld [vmem:[#allocation6 + $0x1698] sm:$0xff]  ;;  %v14665_v44 = vcombine.high %v8222_v1, %v8226_v49 }
 0x746   : > { %v14649_v7 = vcombine.high %v8206_v32, %v8210_v24  ;;  %v8238_v9 = vld [vmem:[#allocation6 + $0x1798] sm:$0xff] }
 0x747   : > { %10436 = vmatpush1.bf16.msra.mxu1 %v14600_v30  ;;  %v8214_v30 = vld [vmem:[#allocation6 + $0x16d8] sm:$0xff] }
 0x748   : > { %10489 = vmatpush1.bf16.msra.mxu0 %v14776_v5  ;;  %10437 = vmatprep.subr.bf16.mxu1 %v14609_v60  ;;  %v8218_v5 = vld [vmem:[#allocation6 + $0x16f8] sm:$0xff]  ;;  %v14648_v60 = vcombine.low %v8206_v32, %v8210_v24 }
 0x749   : > { %10490 = vmatprep.subr.bf16.mxu0 %v14785_v47  ;;  %v14657_v47 = vcombine.high %v8214_v30, %v8218_v5  ;;  %v14656_v54 = vcombine.low %v8214_v30, %v8218_v5  ;;  %v8242_v20 = vld [vmem:[#allocation6 + $0x17b8] sm:$0xff] }
 0x74a   : > { %v14681_v13 = vcombine.high %v8238_v9, %v8242_v20  ;;  %v14680_v43 = vcombine.low %v8238_v9, %v8242_v20  ;;  %v8386_v52 = vld [vmem:[#allocation6 + $0x1c38] sm:$0xff] }
 0x74b   : > { %10438 = vmatpush1.bf16.msra.mxu1 %v14608_v34  ;;  %v8230_v34 = vld [vmem:[#allocation6 + $0x1758] sm:$0xff] }
 0x74c   : > { %10491 = vmatpush1.bf16.msra.mxu0 %v14784_v18  ;;  %10439 = vmatprep.subr.bf16.mxu1 %v14617_v38  ;;  %v8234_v18 = vld [vmem:[#allocation6 + $0x1778] sm:$0xff]  ;;  %v14664_v38 = vcombine.low %v8222_v1, %v8226_v49 }
 0x74d   : > { %10492 = vmatprep.subr.bf16.mxu0 %v14793_v63  ;;  %v14673_v63 = vcombine.high %v8230_v34, %v8234_v18  ;;  %v14672_v59 = vcombine.low %v8230_v34, %v8234_v18  ;;  %v8390_v51 = vld [vmem:[#allocation6 + $0x1c58] sm:$0xff] }
 0x74e   : > { %v8414_v24 = vld [vmem:[#allocation6 + $0x1d18] sm:$0xff] }
 0x74f   : > { %10440 = vmatpush1.bf16.msra.mxu1 %v14616_v41  ;;  %v8422_v30 = vld [vmem:[#allocation6 + $0x1d58] sm:$0xff] }
 0x750   : > { %10493 = vmatpush1.bf16.msra.mxu0 %v14792_v10  ;;  %10441 = vmatprep.subr.bf16.mxu1 %v14625_v12  ;;  %v8250_v10 = vld [vmem:[#allocation6 + $0x17f8] sm:$0xff] }
 0x751   : > { %10494 = vmatprep.subr.bf16.mxu0 %v14801_v40  ;;  %v8434_v1 = vld [vmem:[#allocation6 + $0x1db8] sm:$0xff] }
 0x752   : > { %v10174_v33 = vpop.f32.mrb[96].mxu0  ;;  %v8442_v34 = vld [vmem:[#allocation6 + $0x1df8] sm:$0xff] }
 0x753   : > { %v10176_v39 = vpop.f32.mrb[97].mxu0  ;;  %10442 = vmatpush1.bf16.msra.mxu1 %v14624_v42 }
 0x754   : > { %v10178_v53 = vpop.f32.mrb[98].mxu0  ;;  %10495 = vmatpush1.bf16.msra.mxu0 %v14800_v31  ;;  %10443 = vmatprep.subr.bf16.mxu1 %v14633_v16 }
 0x755   : > { %v10179_v29 = vpop.f32.mrb[99].mxu0  ;;  %10496 = vmatprep.subr.bf16.mxu0 %v14809_v45  ;;  %v8382_v45 = vld [vmem:[#allocation6 + $0x1c18] sm:$0xff] }
 0x756   : > { %v8410_v29 = vld [vmem:[#allocation6 + $0x1cf8] sm:$0xff] }
 0x757   : > { %10444 = vmatpush1.bf16.msra.mxu1 %v14632_v26  ;;  %v8394_v26 = vld [vmem:[#allocation6 + $0x1c78] sm:$0xff] }
 0x758   : > { %10497 = vmatpush1.bf16.msra.mxu0 %v14808_v19  ;;  %10445 = vmatprep.subr.bf16.mxu1 %v14641_v27  ;;  %v14833_v53 = vcombine.high %v8390_v51, %v8394_v26  ;;  %v8398_v19 = vld [vmem:[#allocation6 + $0x1c98] sm:$0xff] }
 0x759   : > { %10498 = vmatprep.subr.bf16.mxu0 %v14817_v22  ;;  %v8406_v27 = vld [vmem:[#allocation6 + $0x1cd8] sm:$0xff] }
 0x75a   : > { %v14849_v32 = vcombine.high %v8406_v27, %v8410_v29 }
 0x75b   : > { %10446 = vmatpush1.bf16.msra.mxu1 %v14640_v46  ;;  %v8418_v46 = vld [vmem:[#allocation6 + $0x1d38] sm:$0xff] }
 0x75c   : > { %10499 = vmatpush1.bf16.msra.mxu0 %v14816_v35  ;;  %10447 = vmatprep.subr.bf16.mxu1 %v14649_v7  ;;  %v14848_v35 = vcombine.low %v8406_v27, %v8410_v29  ;;  %v14857_v7 = vcombine.high %v8414_v24, %v8418_v46  ;;  %v14856_v5 = vcombine.low %v8414_v24, %v8418_v46  ;;  %v10803_v24 = vld [vmem:[#allocation10 + $0x20] sm:$0xff] }
 0x75d   : > { %v10807_v46 = vld [vmem:[#allocation10 + $0x40] sm:$0xff] }
 0x75f   : > { %10501 = vmatmul.mubr.bf16.vlgmr.msra.gmra.mrb[112].mxu0 %v16974_v21  ;;  %10448 = vmatpush1.bf16.msra.mxu1 %v14648_v60  ;;  %v8246_v21 = vld [vmem:[#allocation6 + $0x17d8] sm:$0xff] }
 0x760   : > { %10449 = vmatprep.subr.bf16.mxu1 %v14657_v47  ;;  %10654 = vmatprep.mubr.bf16.mxu0 %v16185_v0  ;;  %v14689_v31 = vcombine.high %v8246_v21, %v8250_v10  ;;  %v8430_v47 = vld [vmem:[#allocation6 + $0x1d98] sm:$0xff] }
 0x761   : > { %v14872_v18 = vcombine.low %v8430_v47, %v8434_v1 }
 0x763   : > { %10450 = vmatpush1.bf16.msra.mxu1 %v14656_v54  ;;  %v14873_v54 = vcombine.high %v8430_v47, %v8434_v1  ;;  %v10815_v1 = vld [vmem:[#allocation10 + $0x80] sm:$0xff] }
 0x764   : > { %10451 = vmatprep.subr.bf16.mxu1 %v14665_v44  ;;  %v8438_v44 = vld [vmem:[#allocation6 + $0x1dd8] sm:$0xff] }
 0x767   : > { %10452 = vmatpush1.bf16.msra.mxu1 %v14664_v38  ;;  %v14881_v38 = vcombine.high %v8438_v44, %v8442_v34 }
 0x768   : > { %10453 = vmatprep.subr.bf16.mxu1 %v14673_v63  ;;  %v14880_v63 = vcombine.low %v8438_v44, %v8442_v34 }
 0x769   : > { %v10133_v41 = vpop.f32.mrb[108].mxu1 }
 0x76a   : > { %v10134_v12 = vadd.f32 %v10133_v41, %v17021_v56  ;;  %v10135_v40 = vpop.f32.mrb[109].mxu1  ;;  %v14688_v56 = vcombine.low %v8246_v21, %v8250_v10 }
 0x76b   : > { %v10136_v4 = vadd.f32 %v10135_v40, %v17023_v57  ;;  %v10137_v25 = vpop.f32.mrb[110].mxu1  ;;  %10454 = vmatpush1.bf16.msra.mxu1 %v14672_v59  ;;  %v14825_v57 = vcombine.high %v8382_v45, %v8386_v52 }
 0x76c   : > { %v10175_v2 = vadd.f32 %v10174_v33, %v10134_v12  ;;  %v10138_v42 = vpop.f32.mrb[111].mxu1  ;;  %10455 = vmatprep.subr.bf16.mxu1 %v14681_v13  ;;  %v14824_v33 = vcombine.low %v8382_v45, %v8386_v52 }
 0x76d   : > { %v10177_v16 = vadd.f32 %v10176_v39, %v10136_v4  ;;  %v8402_v39 = vld [vmem:[#allocation6 + $0x1cb8] sm:$0xff] }
 0x76e   : > { %v17032_v15 = vadd.f32 %v10175_v2, %v16930_v62  ;;  %v14832_v62 = vcombine.low %v8390_v51, %v8394_v26  ;;  %v14840_v22 = vcombine.low %v8398_v19, %v8402_v39 }
 0x76f   : > { %v17035_v23 = vadd.f32 %v10177_v16, %v16933_v14  ;;  %10456 = vmatpush1.bf16.msra.mxu1 %v14680_v43  ;;  %v14841_v14 = vcombine.high %v8398_v19, %v8402_v39  ;;  %v17046_v39 = vld [vmem:[#allocation7] sm:$0xf] }
 0x770   : > { %10457 = vmatprep.subr.bf16.mxu1 %v14689_v31 }
 0x773   : > { %10458 = vmatpush1.bf16.msra.mxu1 %v14688_v56 }
 0x774   : > { %10509 = vmatprep.subr.bf16.mxu1 %v14825_v57 }
 0x776   : > { %10460 = vmatmul.mubr.bf16.vlgmr.msra.gmra.mrb[124].mxu1 %v16947_v17  ;;  %v8426_v17 = vld [vmem:[#allocation6 + $0x1d78] sm:$0xff] }
 0x777   : > { %10510 = vmatpush1.bf16.msra.mxu1 %v14824_v33  ;;  %10541 = vmatprep.mubr.bf16.mxu1 %v16185_v0  ;;  %v14865_v60 = vcombine.high %v8422_v30, %v8426_v17  ;;  %v14864_v49 = vcombine.low %v8422_v30, %v8426_v17 }
 0x778   : > { %10511 = vmatprep.subr.bf16.mxu1 %v14833_v53 }
 0x77b   : > { %10512 = vmatpush1.bf16.msra.mxu1 %v14832_v62 }
 0x77c   : > { %10513 = vmatprep.subr.bf16.mxu1 %v14841_v14  ;;  %v10563_v14 = vrot.slane %v17046_v39, %v16650_v36 }
 0x77f   : > { %10514 = vmatpush1.bf16.msra.mxu1 %v14840_v22 }
 0x780   : > { %10515 = vmatprep.subr.bf16.mxu1 %v14849_v32  ;;  %v10799_v32 = vld [vmem:[#allocation10] sm:$0xff] }
 0x781   : > { %v14890_v30 = vcombine.low %v10799_v32, %v10803_v24  ;;  %v14891_v17 = vcombine.high %v10799_v32, %v10803_v24  ;;  %v10871_v24 = vld [vmem:[#allocation10 + $0x240] sm:$0xff] }
 0x783   : > { %10516 = vmatpush1.bf16.msra.mxu1 %v14848_v35 }
 0x784   : > { %10517 = vmatprep.subr.bf16.mxu1 %v14857_v7 }
 0x787   : > { %10518 = vmatpush1.bf16.msra.mxu1 %v14856_v5  ;;  %v10811_v5 = vld [vmem:[#allocation10 + $0x60] sm:$0xff] }
 0x788   : > { %10519 = vmatprep.subr.bf16.mxu1 %v14865_v60  ;;  %v14899_v47 = vcombine.high %v10807_v46, %v10811_v5 }
 0x78b   : > { %10520 = vmatpush1.bf16.msra.mxu1 %v14864_v49  ;;  %v10819_v49 = vld [vmem:[#allocation10 + $0xa0] sm:$0xff] }
 0x78c   : > { %10521 = vmatprep.subr.bf16.mxu1 %v14873_v54  ;;  %v10580_v54 = vadd.f32 %v10563_v14, %v17032_v15  ;;  %v14906_v15 = vcombine.low %v10815_v1, %v10819_v49 }
 0x78f   : > { %10522 = vmatpush1.bf16.msra.mxu1 %v14872_v18 }
 0x790   : > { %10523 = vmatprep.subr.bf16.mxu1 %v14881_v38  ;;  %v14898_v38 = vcombine.low %v10807_v46, %v10811_v5  ;;  %v10875_v46 = vld [vmem:[#allocation10 + $0x260] sm:$0xff] }
 0x792   : > { %v10256_v9 = vpop.f32.mrb[100].mxu0 }
 0x793   : > { %v10258_v20 = vpop.f32.mrb[101].mxu0  ;;  %10524 = vmatpush1.bf16.msra.mxu1 %v14880_v63 }
 0x794   : > { %v10260_v59 = vpop.f32.mrb[102].mxu0  ;;  %12335 = vmatprep.subr.bf16.mxu1 %v14891_v17 }
 0x795   : > { %v10261_v13 = vpop.f32.mrb[103].mxu0  ;;  %v10823_v59 = vld [vmem:[#allocation10 + $0xc0] sm:$0xff] }
 0x796   : > { %10542 = vmatmul.mubr.bf16.vlgmr.msra.gmra.mrb[128].mxu1 %v16960_v58  ;;  %v10827_v13 = vld [vmem:[#allocation10 + $0xe0] sm:$0xff] }
 0x797   : > { %12336 = vmatpush1.bf16.msra.mxu1 %v14890_v30  ;;  %v14962_v30 = vcombine.low %v10871_v24, %v10875_v46 }
 0x798   : > { %12337 = vmatprep.subr.bf16.mxu1 %v14899_v47 }
 0x79b   : > { %12338 = vmatpush1.bf16.msra.mxu1 %v14898_v38  ;;  %v10571_v38 = vrot.slane %v17046_v39, %v16624_v6 }
 0x7a9   : > { %v10215_v41 = vpop.f32.mrb[112].mxu1 }
 0x7aa   : > { %v10257_v21 = vadd.f32 %v10256_v9, %v10215_v41  ;;  %v10217_v10 = vpop.f32.mrb[113].mxu1  ;;  %v14907_v9 = vcombine.high %v10815_v1, %v10819_v49  ;;  %v10584_v41 = vmax.f32 %v10580_v54, 0.0 }
 0x7ab   : > { %v10259_v12 = vadd.f32 %v10258_v20, %v10217_v10  ;;  %v10219_v40 = vpop.f32.mrb[114].mxu1 }
 0x7ac   : > { %v10220_v4 = vpop.f32.mrb[115].mxu1  ;;  %12339 = vmatprep.subr.bf16.mxu1 %v14907_v9  ;;  %v14915_v40 = vcombine.high %v10823_v59, %v10827_v13 }
 0x7ad   : > { %v10835_v4 = vld [vmem:[#allocation10 + $0x120] sm:$0xff]  ;;  %12340 = vmatpush1.bf16.msra.mxu1 %v14906_v15 }
 0x7ae   : > { %12341 = vmatprep.subr.bf16.mxu1 %v14915_v40 }
 0x7c9   : > { %v10297_v25 = vpop.f32.mrb[116].mxu1 }
 0x7ca   : > { %v10298_v43 = vadd.f32 %v10297_v25, %v10257_v21  ;;  %v10299_v2 = vpop.f32.mrb[117].mxu1 }
 0x7cb   : > { %v10300_v42 = vadd.f32 %v10299_v2, %v10259_v12  ;;  %v10301_v31 = vpop.f32.mrb[118].mxu1  ;;  %v14914_v2 = vcombine.low %v10823_v59, %v10827_v13 }
 0x7cc   : > { %v17041_v16 = vadd.f32 %v10298_v43, %v16965_v55  ;;  %v10302_v45 = vpop.f32.mrb[119].mxu1 }
 0x7cd   : > { %v17044_v52 = vadd.f32 %v10300_v42, %v16968_v48  ;;  %v10567_v48 = vrot.slane %v17046_v39, %v16640_v28  ;;  %v10839_v45 = vld [vmem:[#allocation10 + $0x140] sm:$0xff]  ;;  %12342 = vmatpush1.bf16.msra.mxu1 %v14914_v2 }
 0x7ce   : > { %v10879_v2 = vld [vmem:[#allocation10 + $0x280] sm:$0xff] }
 0x7cf   : > { %v10581_v34 = vadd.f32 %v10567_v48, %v17035_v23 }
 0x7d1   : > { %v10585_v10 = vmax.f32 %v10581_v34, 0.0 }
 0x7d2   : > { %v10338_v56 = vpop.f32.mrb[104].mxu0 }
 0x7d3   : > { %v10340_v58 = vpop.f32.mrb[105].mxu0 }
 0x7d4   : > { %v10342_v57 = vpop.f32.mrb[106].mxu0 }
 0x7d5   : > { %v10343_v51 = vpop.f32.mrb[107].mxu0 }
 0x7f2   : > { %v10420_v26 = vpop.f32.mrb[108].mxu0 }
 0x7f3   : > { %v10422_v33 = vpop.f32.mrb[109].mxu0 }
 0x7f4   : > { %v10424_v53 = vpop.f32.mrb[110].mxu0 }
 0x7f5   : > { %v10425_v19 = vpop.f32.mrb[111].mxu0 }
 0x809   : > { %v10379_v62 = vpop.f32.mrb[120].mxu1 }
 0x80a   : > { %v10380_v55 = vadd.f32 %v10379_v62, %v10338_v56  ;;  %v10381_v27 = vpop.f32.mrb[121].mxu1  ;;  %v10843_v56 = vld [vmem:[#allocation10 + $0x160] sm:$0xff] }
 0x80b   : > { %v10382_v29 = vadd.f32 %v10381_v27, %v10340_v58  ;;  %v10383_v22 = vpop.f32.mrb[122].mxu1  ;;  %v17064_v58 = vld [vmem:[#allocation9] sm:$0x3]  ;;  %v14931_v51 = vcombine.high %v10839_v45, %v10843_v56  ;;  %v14930_v53 = vcombine.low %v10839_v45, %v10843_v56  ;;  %v10855_v62 = vld [vmem:[#allocation10 + $0x1c0] sm:$0xff] }
 0x80c   : > { %v10421_v35 = vadd.f32 %v10420_v26, %v10380_v55  ;;  %v10384_v7 = vpop.f32.mrb[123].mxu1  ;;  %v10847_v26 = vld [vmem:[#allocation10 + $0x180] sm:$0xff] }
 0x80d   : > { %v10423_v60 = vadd.f32 %v10422_v33, %v10382_v29  ;;  %v10851_v33 = vld [vmem:[#allocation10 + $0x1a0] sm:$0xff]  ;;  %v14963_v7 = vcombine.high %v10871_v24, %v10875_v46 }
 0x80e   : > { %v10554_v44 = vadd.f32 %v10421_v35, %v16990_v37  ;;  %v14939_v19 = vcombine.high %v10847_v26, %v10851_v33  ;;  %v14938_v55 = vcombine.low %v10847_v26, %v10851_v33  ;;  %v10867_v29 = vld [vmem:[#allocation10 + $0x220] sm:$0xff] }
 0x80f   : > { %v10555_v18 = vadd.f32 %v10423_v60, %v16993_v50  ;;  %v10831_v50 = vld [vmem:[#allocation10 + $0x100] sm:$0xff] }
 0x810   : > { %v10588_v63 = vadd.f32 %v10563_v14, %v10554_v44  ;;  %v14923_v31 = vcombine.high %v10831_v50, %v10835_v4  ;;  %v14922_v57 = vcombine.low %v10831_v50, %v10835_v4  ;;  %v10859_v14 = vld [vmem:[#allocation10 + $0x1e0] sm:$0xff] }
 0x811   : > { %v10589_v20 = vadd.f32 %v10567_v48, %v10555_v18  ;;  %v14947_v27 = vcombine.high %v10855_v62, %v10859_v14  ;;  %v10863_v48 = vld [vmem:[#allocation10 + $0x200] sm:$0xff]  ;;  %v14946_v22 = vcombine.low %v10855_v62, %v10859_v14 }
 0x812   : > { %v10592_v21 = vmax.f32 %v10588_v63, 0.0  ;;  %12343 = vmatprep.subr.bf16.mxu1 %v14923_v31  ;;  %v14955_v32 = vcombine.high %v10863_v48, %v10867_v29  ;;  %v14954_v35 = vcombine.low %v10863_v48, %v10867_v29  ;;  %v10575_v63 = vrot.slane %v17046_v39, %v16673_v11  ;;  %v10883_v31 = vld [vmem:[#allocation10 + $0x2a0] sm:$0xff]  ;;  %v10705_v29 = vld [vmem:[#allocation9 + $0x2] sm:$0x3] }
 0x813   : > { %v10593_v12 = vmax.f32 %v10589_v20, 0.0  ;;  %12344 = vmatpush1.bf16.msra.mxu1 %v14922_v57  ;;  %v14970_v56 = vcombine.low %v10879_v2, %v10883_v31  ;;  %v14971_v57 = vcombine.high %v10879_v2, %v10883_v31  ;;  %v10891_v26 = vld [vmem:[#allocation10 + $0x2e0] sm:$0xff] }
 0x814   : > { %v10596_v37 = vmax.f32 %v10584_v41, %v10592_v21  ;;  %12345 = vmatprep.subr.bf16.mxu1 %v14931_v51  ;;  %v10582_v21 = vadd.f32 %v10571_v38, %v17041_v16  ;;  %v10583_v15 = vadd.f32 %v10575_v63, %v17044_v52  ;;  %v10887_v16 = vld [vmem:[#allocation10 + $0x2c0] sm:$0xff] }
 0x815   : > { %v10597_v23 = vmax.f32 %v10585_v10, %v10593_v12  ;;  %v14979_v33 = vcombine.high %v10887_v16, %v10891_v26  ;;  %v10895_v52 = vld [vmem:[#allocation10 + $0x300] sm:$0xff] }
 0x816   : > { %v10600_v25 = vpack.c.bf16 %v10596_v37, %v10596_v37  ;;  %v10586_v50 = vmax.f32 %v10582_v21, 0.0  ;;  %v10931_v48 = vld [vmem:[#allocation10 + $0x420] sm:$0xff] }
 0x817   : > { %v17056_v43 = vpack.c.bf16 %v10597_v23, %v10597_v23  ;;  %12346 = vmatpush1.bf16.msra.mxu1 %v14930_v53  ;;  %v10899_v53 = vld [vmem:[#allocation10 + $0x320] sm:$0xff] }
 0x818   : > { %v17059_v42 = vsel %vm10609_vm5, %v10600_v25, 0  ;;  %12347 = vmatprep.subr.bf16.mxu1 %v14939_v19  ;;  %v10587_v25 = vmax.f32 %v10583_v15, 0.0  ;;  %v14978_v19 = vcombine.low %v10887_v16, %v10891_v26  ;;  %v14987_v14 = vcombine.high %v10895_v52, %v10899_v53  ;;  %v10947_v46 = vld [vmem:[#allocation10 + $0x4a0] sm:$0xff] }
 0x819   : > { %14882 = vmatprep.subr.msk.bf16.mxu0 %vm10609_vm5, %v17056_v43  ;;  %v10995_v15 = vld [vmem:[#allocation10 + $0x620] sm:$0xff] }
 0x81a   : > { %10623 = vmatpush1.bf16.msra.mxu0 %v17059_v42  ;;  %v11011_v2 = vld [vmem:[#allocation10 + $0x6a0] sm:$0xff] }
 0x81b   : > { %12348 = vmatpush1.bf16.msra.mxu1 %v14938_v55  ;;  %v14986_v55 = vcombine.low %v10895_v52, %v10899_v53  ;;  %v11015_v16 = vld [vmem:[#allocation10 + $0x6c0] sm:$0xff] }
 0x81c   : > { %12349 = vmatprep.subr.bf16.mxu1 %v14947_v27  ;;  %v10927_v27 = vld [vmem:[#allocation10 + $0x400] sm:$0xff] }
 0x81d   : > { %14883 = vmatmul.mubr.msk.bf16.vlgmr.msra.gmra.mrb[116].mxu0 %vm10605_vm6, %v17064_v58 }
 0x81e   : > { %10695 = vmatprep.mubr.bf16.mxu0 %v16185_v0 }
 0x81f   : > { %12350 = vmatpush1.bf16.msra.mxu1 %v14946_v22  ;;  %v15019_v22 = vcombine.high %v10927_v27, %v10931_v48 }
 0x820   : > { %12351 = vmatprep.subr.bf16.mxu1 %v14955_v32  ;;  %v10939_v32 = vld [vmem:[#allocation10 + $0x460] sm:$0xff] }
 0x823   : > { %12352 = vmatpush1.bf16.msra.mxu1 %v14954_v35 }
 0x824   : > { %12353 = vmatprep.subr.bf16.mxu1 %v14963_v7 }
 0x827   : > { %12354 = vmatpush1.bf16.msra.mxu1 %v14962_v30  ;;  %v10951_v30 = vld [vmem:[#allocation10 + $0x4c0] sm:$0xff] }
 0x828   : > { %12355 = vmatprep.subr.bf16.mxu1 %v14971_v57  ;;  %v10903_v57 = vld [vmem:[#allocation10 + $0x340] sm:$0xff] }
 0x82b   : > { %12356 = vmatpush1.bf16.msra.mxu1 %v14970_v56 }
 0x82c   : > { %12357 = vmatprep.subr.bf16.mxu1 %v14979_v33 }
 0x82f   : > { %12358 = vmatpush1.bf16.msra.mxu1 %v14978_v19  ;;  %v10915_v19 = vld [vmem:[#allocation10 + $0x3a0] sm:$0xff] }
 0x830   : > { %12359 = vmatprep.subr.bf16.mxu1 %v14987_v14 }
 0x832   : > { %v10502_v17 = vpop.f32.mrb[112].mxu0 }
 0x833   : > { %v10504_v5 = vpop.f32.mrb[113].mxu0  ;;  %12360 = vmatpush1.bf16.msra.mxu1 %v14986_v55 }
 0x834   : > { %v10506_v60 = vpop.f32.mrb[114].mxu0 }
 0x835   : > { %v10507_v47 = vpop.f32.mrb[115].mxu0 }
 0x836   : > { %v10959_v47 = vld [vmem:[#allocation10 + $0x500] sm:$0xff] }
 0x849   : > { %v10461_v1 = vpop.f32.mrb[124].mxu1 }
 0x84a   : > { %v10503_v49 = vadd.f32 %v10502_v17, %v10461_v1  ;;  %v10463_v54 = vpop.f32.mrb[125].mxu1  ;;  %v10955_v17 = vld [vmem:[#allocation10 + $0x4e0] sm:$0xff] }
 0x84b   : > { %v10505_v44 = vadd.f32 %v10504_v5, %v10463_v54  ;;  %v10465_v34 = vpop.f32.mrb[126].mxu1  ;;  %v15043_v60 = vcombine.high %v10951_v30, %v10955_v17  ;;  %v10963_v1 = vld [vmem:[#allocation10 + $0x520] sm:$0xff] }
 0x84c   : > { %v10466_v18 = vpop.f32.mrb[127].mxu1  ;;  %v15051_v54 = vcombine.high %v10959_v47, %v10963_v1  ;;  %v10971_v34 = vld [vmem:[#allocation10 + $0x560] sm:$0xff] }
 0x84d   : > { %v15050_v18 = vcombine.low %v10959_v47, %v10963_v1 }
 0x869   : > { %v10543_v9 = vpop.f32.mrb[128].mxu1 }
 0x86a   : > { %v10544_v20 = vadd.f32 %v10543_v9, %v10503_v49  ;;  %v10545_v59 = vpop.f32.mrb[129].mxu1  ;;  %v15042_v49 = vcombine.low %v10951_v30, %v10955_v17  ;;  %v10979_v9 = vld [vmem:[#allocation10 + $0x5a0] sm:$0xff]  ;;  %v10800_v17 = vld [vmem:[#allocation10 + $0x8] sm:$0xff] }
 0x86b   : > { %v10546_v13 = vadd.f32 %v10545_v59, %v10505_v44  ;;  %v10547_v41 = vpop.f32.mrb[130].mxu1  ;;  %v10967_v44 = vld [vmem:[#allocation10 + $0x540] sm:$0xff] }
 0x86c   : > { %v10556_v10 = vadd.f32 %v10544_v20, %v17016_v3  ;;  %v10548_v12 = vpop.f32.mrb[131].mxu1  ;;  %v15058_v20 = vcombine.low %v10967_v44, %v10971_v34  ;;  %v10987_v41 = vld [vmem:[#allocation10 + $0x5e0] sm:$0xff] }
 0x86d   : > { %v10557_v37 = vadd.f32 %v10546_v13, %v17019_v61  ;;  %v10983_v13 = vld [vmem:[#allocation10 + $0x5c0] sm:$0xff] }
 0x86e   : > { %v10590_v40 = vadd.f32 %v10571_v38, %v10556_v10  ;;  %v15059_v38 = vcombine.high %v10967_v44, %v10971_v34  ;;  %v15075_v10 = vcombine.high %v10983_v13, %v10987_v41  ;;  %v10991_v12 = vld [vmem:[#allocation10 + $0x600] sm:$0xff] }
 0x86f   : > { %v10591_v23 = vadd.f32 %v10575_v63, %v10557_v37  ;;  %v10975_v63 = vld [vmem:[#allocation10 + $0x580] sm:$0xff]  ;;  %v15074_v37 = vcombine.low %v10983_v13, %v10987_v41 }
 0x870   : > { %v10594_v4 = vmax.f32 %v10590_v40, 0.0  ;;  %v15067_v59 = vcombine.high %v10975_v63, %v10979_v9  ;;  %v15066_v21 = vcombine.low %v10975_v63, %v10979_v9  ;;  %v15083_v40 = vcombine.high %v10991_v12, %v10995_v15  ;;  %v11043_v30 = vld [vmem:[#allocation10 + $0x7a0] sm:$0xff]  ;;  %v10932_v63 = vld [vmem:[#allocation10 + $0x428] sm:$0xff] }
 0x871   : > { %v10595_v39 = vmax.f32 %v10591_v23, 0.0  ;;  %v10999_v23 = vld [vmem:[#allocation10 + $0x640] sm:$0xff] }
 0x872   : > { %v10598_v45 = vmax.f32 %v10586_v50, %v10594_v4  ;;  %v11003_v50 = vld [vmem:[#allocation10 + $0x660] sm:$0xff]  ;;  %v15082_v4 = vcombine.low %v10991_v12, %v10995_v15 }
 0x873   : > { %v10599_v51 = vmax.f32 %v10587_v25, %v10595_v39  ;;  %v15091_v25 = vcombine.high %v10999_v23, %v11003_v50  ;;  %v11007_v39 = vld [vmem:[#allocation10 + $0x680] sm:$0xff]  ;;  %v15090_v31 = vcombine.low %v10999_v23, %v11003_v50 }
 0x874   : > { %v10602_v3 = vpack.c.bf16 %v10598_v45, %v10598_v45  ;;  %v15099_v45 = vcombine.high %v11007_v39, %v11011_v2  ;;  %v15098_v56 = vcombine.low %v11007_v39, %v11011_v2  ;;  %v11051_v44 = vld [vmem:[#allocation10 + $0x7e0] sm:$0xff]  ;;  %v10808_v39 = vld [vmem:[#allocation10 + $0x48] sm:$0xff] }
 0x875   : > { %v10603_v61 = vpack.c.bf16 %v10599_v51, %v10599_v51  ;;  %v10907_v51 = vld [vmem:[#allocation10 + $0x360] sm:$0xff]  ;;  %v10812_v2 = vld [vmem:[#allocation10 + $0x68] sm:$0xff] }
 0x876   : > { %v10617_v62 = vsel %vm10609_vm5, %v10602_v3, 0  ;;  %v14995_v26 = vcombine.high %v10903_v57, %v10907_v51  ;;  %v11019_v3 = vld [vmem:[#allocation10 + $0x6e0] sm:$0xff]  ;;  %v14994_v33 = vcombine.low %v10903_v57, %v10907_v51  ;;  %v14901_v57 = vcombine.high %v10808_v39, %v10812_v2  ;;  %v10816_v51 = vld [vmem:[#allocation10 + $0x88] sm:$0xff] }
 0x877   : > { %14884 = vmatprep.subr.msk.bf16.mxu0 %vm10609_vm5, %v10603_v61  ;;  %v15106_v52 = vcombine.low %v11015_v16, %v11019_v3  ;;  %v15107_v53 = vcombine.high %v11015_v16, %v11019_v3  ;;  %v10820_v16 = vld [vmem:[#allocation10 + $0xa8] sm:$0xff]  ;;  %v14900_v3 = vcombine.low %v10808_v39, %v10812_v2 }
 0x878   : > { %10664 = vmatpush1.bf16.msra.mxu0 %v10617_v62  ;;  %12361 = vmatprep.subr.bf16.mxu1 %v14995_v26  ;;  %v10868_v39 = vld [vmem:[#allocation10 + $0x228] sm:$0xff] }
 0x879   : > { %14886 = vmatprep.subr.msk.bf16.mxu0 %vm10609_vm5, %v17056_v43  ;;  %v10935_v43 = vld [vmem:[#allocation10 + $0x440] sm:$0xff]  ;;  %12362 = vmatpush1.bf16.msra.mxu1 %v14994_v33  ;;  %v10976_v2 = vld [vmem:[#allocation10 + $0x588] sm:$0xff] }
 0x87a   : > { %v15027_v24 = vcombine.high %v10935_v43, %v10939_v32  ;;  %v15026_v35 = vcombine.low %v10935_v43, %v10939_v32  ;;  %v10923_v43 = vld [vmem:[#allocation10 + $0x3e0] sm:$0xff] }
 0x87b   : > { %14885 = vmatmul.mubr.msk.bf16.vlgmr.msra.gmra.mrb[120].mxu0 %vm10605_vm6, %v17064_v58  ;;  %v15018_v58 = vcombine.low %v10927_v27, %v10931_v48  ;;  %v11027_v27 = vld [vmem:[#allocation10 + $0x720] sm:$0xff] }
 0x87c   : > { %10710 = vmatpush1.bf16.msra.mxu0 %v17059_v42  ;;  %10741 = vmatprep.mubr.bf16.mxu0 %v16185_v0  ;;  %v10943_v42 = vld [vmem:[#allocation10 + $0x480] sm:$0xff] }
 0x87d   : > { %14888 = vmatprep.subr.msk.bf16.mxu0 %vm10609_vm5, %v10603_v61  ;;  %v15035_v7 = vcombine.high %v10943_v42, %v10947_v46  ;;  %v15034_v5 = vcombine.low %v10943_v42, %v10947_v46  ;;  %v10911_v61 = vld [vmem:[#allocation10 + $0x380] sm:$0xff] }
 0x87e   : > { %v15002_v14 = vcombine.low %v10911_v61, %v10915_v19  ;;  %v15003_v55 = vcombine.high %v10911_v61, %v10915_v19  ;;  %v11031_v32 = vld [vmem:[#allocation10 + $0x740] sm:$0xff] }
 0x880   : > { %12363 = vmatprep.subr.bf16.mxu1 %v15003_v55 }
 0x881   : > { %12364 = vmatpush1.bf16.msra.mxu1 %v15002_v14  ;;  %v10828_v14 = vld [vmem:[#allocation10 + $0xe8] sm:$0xff] }
 0x883   : > { %14887 = vmatmul.mubr.msk.bf16.vlgmr.msra.gmra.mrb[124].mxu0 %vm10605_vm6, %v10705_v29 }
 0x884   : > { %10751 = vmatpush1.bf16.msra.mxu0 %v10617_v62  ;;  %10782 = vmatprep.mubr.bf16.mxu0 %v16185_v0  ;;  %v11023_v62 = vld [vmem:[#allocation10 + $0x700] sm:$0xff] }
 0x885   : > { %12376 = vmatprep.subr.bf16.mxu0 %v15019_v22  ;;  %v15114_v48 = vcombine.low %v11023_v62, %v11027_v27  ;;  %v10919_v22 = vld [vmem:[#allocation10 + $0x3c0] sm:$0xff] }
 0x886   : > { %v15010_v42 = vcombine.low %v10919_v22, %v10923_v43 }
 0x88b   : > { %14889 = vmatmul.mubr.msk.bf16.vlgmr.msra.gmra.mrb[128].mxu0 %vm10605_vm6, %v10705_v29  ;;  %v15115_v29 = vcombine.high %v11023_v62, %v11027_v27  ;;  %v10824_v62 = vld [vmem:[#allocation10 + $0xc8] sm:$0xff] }
 0x88c   : > { %12377 = vmatpush1.bf16.msra.mxu0 %v15018_v58  ;;  %v15011_v58 = vcombine.high %v10919_v22, %v10923_v43  ;;  %v10936_v27 = vld [vmem:[#allocation10 + $0x448] sm:$0xff]  ;;  %v14908_v22 = vcombine.low %v10816_v51, %v10820_v16 }
 0x88d   : > { %12378 = vmatprep.subr.bf16.mxu0 %v15027_v24  ;;  %v11035_v24 = vld [vmem:[#allocation10 + $0x760] sm:$0xff] }
 0x88e   : > { %v15122_v46 = vcombine.low %v11031_v32, %v11035_v24  ;;  %12365 = vmatprep.subr.bf16.mxu1 %v15011_v58  ;;  %v10832_v58 = vld [vmem:[#allocation10 + $0x108] sm:$0xff] }
 0x88f   : > { %12366 = vmatpush1.bf16.msra.mxu1 %v15010_v42  ;;  %v10836_v42 = vld [vmem:[#allocation10 + $0x128] sm:$0xff] }
 0x890   : > { %12379 = vmatpush1.bf16.msra.mxu0 %v15026_v35  ;;  %v15123_v35 = vcombine.high %v11031_v32, %v11035_v24  ;;  %v14917_v32 = vcombine.high %v10824_v62, %v10828_v14 }
 0x891   : > { %12380 = vmatprep.subr.bf16.mxu0 %v15035_v7  ;;  %v11039_v7 = vld [vmem:[#allocation10 + $0x780] sm:$0xff] }
 0x892   : > { %v15130_v47 = vcombine.low %v11039_v7, %v11043_v30 }
 0x894   : > { %12381 = vmatpush1.bf16.msra.mxu0 %v15034_v5  ;;  %v15131_v5 = vcombine.high %v11039_v7, %v11043_v30  ;;  %v14916_v7 = vcombine.low %v10824_v62, %v10828_v14 }
 0x895   : > { %12382 = vmatprep.subr.bf16.mxu0 %v15043_v60  ;;  %v10804_v60 = vld [vmem:[#allocation10 + $0x28] sm:$0xff] }
 0x896   : > { %v14892_v1 = vcombine.low %v10800_v17, %v10804_v60 }
 0x898   : > { %12383 = vmatpush1.bf16.msra.mxu0 %v15042_v49  ;;  %v14893_v49 = vcombine.high %v10800_v17, %v10804_v60  ;;  %v14925_v17 = vcombine.high %v10832_v58, %v10836_v42  ;;  %v10840_v60 = vld [vmem:[#allocation10 + $0x148] sm:$0xff] }
 0x899   : > { %12384 = vmatprep.subr.bf16.mxu0 %v15051_v54  ;;  %v11047_v54 = vld [vmem:[#allocation10 + $0x7c0] sm:$0xff] }
 0x89a   : > { %12417 = vmatprep.subr.bf16.mxu1 %v14893_v49  ;;  %v15139_v34 = vcombine.high %v11047_v54, %v11051_v44  ;;  %v10956_v49 = vld [vmem:[#allocation10 + $0x4e8] sm:$0xff] }
 0x89c   : > { %12385 = vmatpush1.bf16.msra.mxu0 %v15050_v18  ;;  %v15138_v18 = vcombine.low %v11047_v54, %v11051_v44  ;;  %v14924_v54 = vcombine.low %v10832_v58, %v10836_v42 }
 0x89d   : > { %12386 = vmatprep.subr.bf16.mxu0 %v15059_v38  ;;  %v10928_v38 = vld [vmem:[#allocation10 + $0x408] sm:$0xff] }
 0x89e   : > { %v15020_v9 = vcombine.low %v10928_v38, %v10932_v63 }
 0x8a0   : > { %12387 = vmatpush1.bf16.msra.mxu0 %v15058_v20  ;;  %v15021_v20 = vcombine.high %v10928_v38, %v10932_v63  ;;  %v10848_v38 = vld [vmem:[#allocation10 + $0x188] sm:$0xff] }
 0x8a1   : > { %12388 = vmatprep.subr.bf16.mxu0 %v15067_v59  ;;  %v10852_v63 = vld [vmem:[#allocation10 + $0x1a8] sm:$0xff] }
 0x8a4   : > { %12389 = vmatpush1.bf16.msra.mxu0 %v15066_v21 }
 0x8a5   : > { %12390 = vmatprep.subr.bf16.mxu0 %v15075_v10 }
 0x8a8   : > { %12391 = vmatpush1.bf16.msra.mxu0 %v15074_v37 }
 0x8a9   : > { %12392 = vmatprep.subr.bf16.mxu0 %v15083_v40 }
 0x8ac   : > { %12393 = vmatpush1.bf16.msra.mxu0 %v15082_v4 }
 0x8ad   : > { %12394 = vmatprep.subr.bf16.mxu0 %v15091_v25 }
 0x8b0   : > { %12395 = vmatpush1.bf16.msra.mxu0 %v15090_v31 }
 0x8b1   : > { %12396 = vmatprep.subr.bf16.mxu0 %v15099_v45 }
 0x8b4   : > { %12397 = vmatpush1.bf16.msra.mxu0 %v15098_v56 }
 0x8b5   : > { %12398 = vmatprep.subr.bf16.mxu0 %v15107_v53  ;;  %v14909_v53 = vcombine.high %v10816_v51, %v10820_v16 }
 0x8b8   : > { %12399 = vmatpush1.bf16.msra.mxu0 %v15106_v52 }
 0x8b9   : > { %12400 = vmatprep.subr.bf16.mxu0 %v15115_v29 }
 0x8bc   : > { %12401 = vmatpush1.bf16.msra.mxu0 %v15114_v48  ;;  %v10940_v48 = vld [vmem:[#allocation10 + $0x468] sm:$0xff] }
 0x8bd   : > { %12402 = vmatprep.subr.bf16.mxu0 %v15123_v35  ;;  %v15029_v24 = vcombine.high %v10936_v27, %v10940_v48  ;;  %v10948_v35 = vld [vmem:[#allocation10 + $0x4a8] sm:$0xff]  ;;  %v15028_v30 = vcombine.low %v10936_v27, %v10940_v48 }
 0x8be   : > { %v10884_v27 = vld [vmem:[#allocation10 + $0x2a8] sm:$0xff] }
 0x8bf   : > { %v10992_v48 = vld [vmem:[#allocation10 + $0x608] sm:$0xff] }
 0x8c0   : > { %12403 = vmatpush1.bf16.msra.mxu0 %v15122_v46  ;;  %v10944_v46 = vld [vmem:[#allocation10 + $0x488] sm:$0xff] }
 0x8c1   : > { %12404 = vmatprep.subr.bf16.mxu0 %v15131_v5  ;;  %v15037_v5 = vcombine.high %v10944_v46, %v10948_v35  ;;  %v15036_v44 = vcombine.low %v10944_v46, %v10948_v35  ;;  %v10888_v46 = vld [vmem:[#allocation10 + $0x2c8] sm:$0xff] }
 0x8c2   : > { %v10892_v35 = vld [vmem:[#allocation10 + $0x2e8] sm:$0xff] }
 0x8c4   : > { %12405 = vmatpush1.bf16.msra.mxu0 %v15130_v47  ;;  %v10844_v47 = vld [vmem:[#allocation10 + $0x168] sm:$0xff] }
 0x8c5   : > { %12406 = vmatprep.subr.bf16.mxu0 %v15139_v34  ;;  %v14933_v34 = vcombine.high %v10840_v60, %v10844_v47 }
 0x8c8   : > { %12407 = vmatpush1.bf16.msra.mxu0 %v15138_v18 }
 0x8c9   : > { %12458 = vmatprep.subr.bf16.mxu0 %v15021_v20  ;;  %v10964_v20 = vld [vmem:[#allocation10 + $0x528] sm:$0xff] }
 0x8f0   : > { %v10656_v59 = vpop.f32.mrb[116].mxu0 }
 0x8f1   : > { %v10658_v13 = vpop.f32.mrb[117].mxu0 }
 0x8f2   : > { %v10660_v41 = vpop.f32.mrb[118].mxu0 }
 0x8f3   : > { %v10661_v21 = vpop.f32.mrb[119].mxu0  ;;  %v14941_v41 = vcombine.high %v10848_v38, %v10852_v63 }
 0x94e   : > { %v10697_v10 = vpop.f32.mrb[120].mxu0 }
 0x94f   : > { %v10699_v12 = vpop.f32.mrb[121].mxu0 }
 0x950   : > { %v10701_v15 = vpop.f32.mrb[122].mxu0 }
 0x951   : > { %v10702_v37 = vpop.f32.mrb[123].mxu0  ;;  %v10968_v15 = vld [vmem:[#allocation10 + $0x548] sm:$0xff] }
 0x952   : > { %v10972_v37 = vld [vmem:[#allocation10 + $0x568] sm:$0xff] }
 0x953   : > { %v15060_v51 = vcombine.low %v10968_v15, %v10972_v37 }
 0x956   : > { %v10743_v40 = vpop.f32.mrb[124].mxu0 }
 0x957   : > { %v10791_v23 = vmax.f32 %v10656_v59, %v10743_v40  ;;  %v10745_v50 = vpop.f32.mrb[125].mxu0  ;;  %v14932_v59 = vcombine.low %v10840_v60, %v10844_v47  ;;  %v14940_v40 = vcombine.low %v10848_v38, %v10852_v63  ;;  %v14981_v60 = vcombine.high %v10888_v46, %v10892_v35 }
 0x958   : > { %v10792_v4 = vmax.f32 %v10658_v13, %v10745_v50  ;;  %v10747_v25 = vpop.f32.mrb[126].mxu0 }
 0x959   : > { %v10748_v31 = vpop.f32.mrb[127].mxu0  ;;  %v17091_v56 = vpack.c.bf16 %v10791_v23, %v10791_v23  ;;  %v10864_v25 = vld [vmem:[#allocation10 + $0x208] sm:$0xff] }
 0x95a   : > { %v17089_v45 = vpack.c.bf16 %v10792_v4, %v10792_v4  ;;  %v15061_v4 = vcombine.high %v10968_v15, %v10972_v37  ;;  %v10980_v31 = vld [vmem:[#allocation10 + $0x5a8] sm:$0xff]  ;;  %v14957_v16 = vcombine.high %v10864_v25, %v10868_v39 }
 0x95b   : > { %v10912_v15 = vld [vmem:[#allocation10 + $0x388] sm:$0xff] }
 0x95c   : > { %12367 = vmatprep.mubr.bf16.mxu1 %v17089_v45  ;;  %v10916_v37 = vld [vmem:[#allocation10 + $0x3a8] sm:$0xff] }
 0x95d   : > { %12368 = vmatmul.mubr.bf16.vlgmr.msra.gmra.mrb[132].mxu1 %v17091_v56 }
 0x95e   : > { %12418 = vmatpush1.bf16.msra.mxu1 %v14892_v1  ;;  %v10784_v26 = vpop.f32.mrb[128].mxu0  ;;  %12449 = vmatprep.mubr.bf16.mxu1 %v17089_v45  ;;  %v10952_v1 = vld [vmem:[#allocation10 + $0x4c8] sm:$0xff] }
 0x95f   : > { %v10793_v33 = vmax.f32 %v10697_v10, %v10784_v26  ;;  %v10786_v52 = vpop.f32.mrb[129].mxu0  ;;  %12419 = vmatprep.subr.bf16.mxu1 %v14901_v57  ;;  %v15045_v18 = vcombine.high %v10952_v1, %v10956_v49  ;;  %v15044_v13 = vcombine.low %v10952_v1, %v10956_v49  ;;  %v10856_v10 = vld [vmem:[#allocation10 + $0x1c8] sm:$0xff]  ;;  %v15069_v26 = vcombine.high %v10976_v2, %v10980_v31 }
 0x960   : > { %v10794_v61 = vmax.f32 %v10699_v12, %v10786_v52  ;;  %v10788_v19 = vpop.f32.mrb[130].mxu0  ;;  %v10860_v12 = vld [vmem:[#allocation10 + $0x1e8] sm:$0xff] }
 0x961   : > { %v10789_v55 = vpop.f32.mrb[131].mxu0  ;;  %v17098_v43 = vpack.c.bf16 %v10793_v33, %v10793_v33  ;;  %v14949_v50 = vcombine.high %v10856_v10, %v10860_v12  ;;  %v14948_v57 = vcombine.low %v10856_v10, %v10860_v12  ;;  %v10876_v33 = vld [vmem:[#allocation10 + $0x268] sm:$0xff]  ;;  %v15068_v19 = vcombine.low %v10976_v2, %v10980_v31 }
 0x962   : > { %v17096_v29 = vpack.c.bf16 %v10794_v61, %v10794_v61  ;;  %12420 = vmatpush1.bf16.msra.mxu1 %v14900_v3  ;;  %v10872_v3 = vld [vmem:[#allocation10 + $0x248] sm:$0xff]  ;;  %v14956_v61 = vcombine.low %v10864_v25, %v10868_v39  ;;  %v15005_v25 = vcombine.high %v10912_v15, %v10916_v37 }
 0x963   : > { %12421 = vmatprep.subr.bf16.mxu1 %v14909_v53  ;;  %v10984_v52 = vld [vmem:[#allocation10 + $0x5c8] sm:$0xff]  ;;  %v14965_v62 = vcombine.high %v10872_v3, %v10876_v33 }
 0x964   : > { %12408 = vmatprep.mubr.bf16.mxu0 %v17096_v29  ;;  %v10988_v53 = vld [vmem:[#allocation10 + $0x5e8] sm:$0xff] }
 0x965   : > { %12409 = vmatmul.mubr.bf16.vlgmr.msra.gmra.mrb[132].mxu0 %v17098_v43  ;;  %v15077_v14 = vcombine.high %v10984_v52, %v10988_v53  ;;  %v10880_v55 = vld [vmem:[#allocation10 + $0x288] sm:$0xff]  ;;  %v15076_v58 = vcombine.low %v10984_v52, %v10988_v53 }
 0x966   : > { %12422 = vmatpush1.bf16.msra.mxu1 %v14908_v22  ;;  %12459 = vmatpush1.bf16.msra.mxu0 %v15020_v9  ;;  %v10960_v9 = vld [vmem:[#allocation10 + $0x508] sm:$0xff] }
 0x967   : > { %12490 = vmatprep.mubr.bf16.mxu0 %v17096_v29  ;;  %12423 = vmatprep.subr.bf16.mxu1 %v14917_v32  ;;  %v15053_v21 = vcombine.high %v10960_v9, %v10964_v20  ;;  %v15052_v23 = vcombine.low %v10960_v9, %v10964_v20  ;;  %v10996_v22 = vld [vmem:[#allocation10 + $0x628] sm:$0xff]  ;;  %v14964_v32 = vcombine.low %v10872_v3, %v10876_v33 }
 0x968   : > { %12460 = vmatprep.subr.bf16.mxu0 %v15029_v24  ;;  %v14973_v24 = vcombine.high %v10880_v55, %v10884_v27  ;;  %v15085_v42 = vcombine.high %v10992_v48, %v10996_v22  ;;  %v10896_v1 = vld [vmem:[#allocation10 + $0x308] sm:$0xff] }
 0x969   : > { %v10900_v49 = vld [vmem:[#allocation10 + $0x328] sm:$0xff] }
 0x96a   : > { %12424 = vmatpush1.bf16.msra.mxu1 %v14916_v7  ;;  %12461 = vmatpush1.bf16.msra.mxu0 %v15028_v30  ;;  %v11000_v7 = vld [vmem:[#allocation10 + $0x648] sm:$0xff]  ;;  %v14989_v38 = vcombine.high %v10896_v1, %v10900_v49 }
 0x96b   : > { %12425 = vmatprep.subr.bf16.mxu1 %v14925_v17  ;;  %12462 = vmatprep.subr.bf16.mxu0 %v15037_v5  ;;  %v11004_v30 = vld [vmem:[#allocation10 + $0x668] sm:$0xff]  ;;  %v14972_v17 = vcombine.low %v10880_v55, %v10884_v27  ;;  %v15084_v5 = vcombine.low %v10992_v48, %v10996_v22 }
 0x96c   : > { %v15093_v47 = vcombine.high %v11000_v7, %v11004_v30  ;;  %v10904_v9 = vld [vmem:[#allocation10 + $0x348] sm:$0xff] }
 0x96d   : > { %v10908_v20 = vld [vmem:[#allocation10 + $0x368] sm:$0xff] }
 0x96e   : > { %12426 = vmatpush1.bf16.msra.mxu1 %v14924_v54  ;;  %12463 = vmatpush1.bf16.msra.mxu0 %v15036_v44  ;;  %v11008_v54 = vld [vmem:[#allocation10 + $0x688] sm:$0xff]  ;;  %v14997_v10 = vcombine.high %v10904_v9, %v10908_v20 }
 0x96f   : > { %12427 = vmatprep.subr.bf16.mxu1 %v14933_v34  ;;  %12464 = vmatprep.subr.bf16.mxu0 %v15045_v18  ;;  %v11012_v44 = vld [vmem:[#allocation10 + $0x6a8] sm:$0xff]  ;;  %v14980_v34 = vcombine.low %v10888_v46, %v10892_v35  ;;  %v15092_v18 = vcombine.low %v11000_v7, %v11004_v30  ;;  %v10817_v35 = vld [vmem:[#allocation10 + $0x90] sm:$0xff] }
 0x970   : > { %v15101_v63 = vcombine.high %v11008_v54, %v11012_v44  ;;  %v10920_v2 = vld [vmem:[#allocation10 + $0x3c8] sm:$0xff]  ;;  %v10821_v30 = vld [vmem:[#allocation10 + $0xb0] sm:$0xff] }
 0x971   : > { %v10924_v31 = vld [vmem:[#allocation10 + $0x3e8] sm:$0xff] }
 0x972   : > { %12428 = vmatpush1.bf16.msra.mxu1 %v14932_v59  ;;  %12465 = vmatpush1.bf16.msra.mxu0 %v15044_v13  ;;  %v11016_v59 = vld [vmem:[#allocation10 + $0x6c8] sm:$0xff]  ;;  %v15013_v3 = vcombine.high %v10920_v2, %v10924_v31 }
 0x973   : > { %12429 = vmatprep.subr.bf16.mxu1 %v14941_v41  ;;  %12466 = vmatprep.subr.bf16.mxu0 %v15053_v21  ;;  %v11020_v13 = vld [vmem:[#allocation10 + $0x6e8] sm:$0xff]  ;;  %v14988_v41 = vcombine.low %v10896_v1, %v10900_v49  ;;  %v15100_v21 = vcombine.low %v11008_v54, %v11012_v44  ;;  %v14911_v1 = vcombine.high %v10817_v35, %v10821_v30  ;;  %v10825_v54 = vld [vmem:[#allocation10 + $0xd0] sm:$0xff] }
 0x974   : > { %v15109_v12 = vcombine.high %v11016_v59, %v11020_v13  ;;  %v11040_v52 = vld [vmem:[#allocation10 + $0x788] sm:$0xff]  ;;  %v10829_v44 = vld [vmem:[#allocation10 + $0xf0] sm:$0xff] }
 0x975   : > { %v11044_v53 = vld [vmem:[#allocation10 + $0x7a8] sm:$0xff] }
 0x976   : > { %12430 = vmatpush1.bf16.msra.mxu1 %v14940_v40  ;;  %12467 = vmatpush1.bf16.msra.mxu0 %v15052_v23  ;;  %v11024_v40 = vld [vmem:[#allocation10 + $0x708] sm:$0xff]  ;;  %v15133_v55 = vcombine.high %v11040_v52, %v11044_v53 }
 0x977   : > { %12431 = vmatprep.subr.bf16.mxu1 %v14949_v50  ;;  %12468 = vmatprep.subr.bf16.mxu0 %v15061_v4  ;;  %v11028_v23 = vld [vmem:[#allocation10 + $0x728] sm:$0xff]  ;;  %v14996_v50 = vcombine.low %v10904_v9, %v10908_v20  ;;  %v15108_v4 = vcombine.low %v11016_v59, %v11020_v13  ;;  %v14919_v9 = vcombine.high %v10825_v54, %v10829_v44  ;;  %v10833_v20 = vld [vmem:[#allocation10 + $0x110] sm:$0xff] }
 0x978   : > { %v15117_v39 = vcombine.high %v11024_v40, %v11028_v23  ;;  %v11048_v48 = vld [vmem:[#allocation10 + $0x7c8] sm:$0xff]  ;;  %v10837_v13 = vld [vmem:[#allocation10 + $0x130] sm:$0xff] }
 0x979   : > { %v11052_v22 = vld [vmem:[#allocation10 + $0x7e8] sm:$0xff] }
 0x97a   : > { %12432 = vmatpush1.bf16.msra.mxu1 %v14948_v57  ;;  %12469 = vmatpush1.bf16.msra.mxu0 %v15060_v51  ;;  %v11032_v57 = vld [vmem:[#allocation10 + $0x748] sm:$0xff]  ;;  %v15141_v46 = vcombine.high %v11048_v48, %v11052_v22 }
 0x97b   : > { %12433 = vmatprep.subr.bf16.mxu1 %v14957_v16  ;;  %12470 = vmatprep.subr.bf16.mxu0 %v15069_v26  ;;  %v11036_v51 = vld [vmem:[#allocation10 + $0x768] sm:$0xff]  ;;  %v15004_v16 = vcombine.low %v10912_v15, %v10916_v37  ;;  %v15116_v26 = vcombine.low %v11024_v40, %v11028_v23  ;;  %v14927_v15 = vcombine.high %v10833_v20, %v10837_v13  ;;  %v10841_v40 = vld [vmem:[#allocation10 + $0x150] sm:$0xff] }
 0x97c   : > { %v15125_v33 = vcombine.high %v11032_v57, %v11036_v51  ;;  %v10845_v23 = vld [vmem:[#allocation10 + $0x170] sm:$0xff] }
 0x97e   : > { %12434 = vmatpush1.bf16.msra.mxu1 %v14956_v61  ;;  %12471 = vmatpush1.bf16.msra.mxu0 %v15068_v19  ;;  %v10801_v61 = vld [vmem:[#allocation10 + $0x10] sm:$0xff] }
 0x97f   : > { %12435 = vmatprep.subr.bf16.mxu1 %v14965_v62  ;;  %12472 = vmatprep.subr.bf16.mxu0 %v15077_v14  ;;  %v10805_v19 = vld [vmem:[#allocation10 + $0x30] sm:$0xff]  ;;  %v15012_v62 = vcombine.low %v10920_v2, %v10924_v31  ;;  %v15124_v14 = vcombine.low %v11032_v57, %v11036_v51  ;;  %v14935_v2 = vcombine.high %v10841_v40, %v10845_v23 }
 0x980   : > { %v14895_v27 = vcombine.high %v10801_v61, %v10805_v19  ;;  %v10849_v57 = vld [vmem:[#allocation10 + $0x190] sm:$0xff] }
 0x981   : > { %v10853_v51 = vld [vmem:[#allocation10 + $0x1b0] sm:$0xff] }
 0x982   : > { %12436 = vmatpush1.bf16.msra.mxu1 %v14964_v32  ;;  %12473 = vmatpush1.bf16.msra.mxu0 %v15076_v58  ;;  %v10809_v32 = vld [vmem:[#allocation10 + $0x50] sm:$0xff] }
 0x983   : > { %12437 = vmatprep.subr.bf16.mxu1 %v14973_v24  ;;  %12474 = vmatprep.subr.bf16.mxu0 %v15085_v42  ;;  %v10813_v58 = vld [vmem:[#allocation10 + $0x70] sm:$0xff]  ;;  %v15132_v24 = vcombine.low %v11040_v52, %v11044_v53  ;;  %v14894_v42 = vcombine.low %v10801_v61, %v10805_v19  ;;  %v14943_v52 = vcombine.high %v10849_v57, %v10853_v51 }
 0x984   : > { %v14903_v7 = vcombine.high %v10809_v32, %v10813_v58  ;;  %v10857_v61 = vld [vmem:[#allocation10 + $0x1d0] sm:$0xff] }
 0x985   : > { %v10861_v19 = vld [vmem:[#allocation10 + $0x1f0] sm:$0xff] }
 0x986   : > { %12438 = vmatpush1.bf16.msra.mxu1 %v14972_v17  ;;  %12475 = vmatpush1.bf16.msra.mxu0 %v15084_v5  ;;  %v10929_v17 = vld [vmem:[#allocation10 + $0x410] sm:$0xff] }
 0x987   : > { %12439 = vmatprep.subr.bf16.mxu1 %v14981_v60  ;;  %12476 = vmatprep.subr.bf16.mxu0 %v15093_v47  ;;  %v10933_v5 = vld [vmem:[#allocation10 + $0x430] sm:$0xff]  ;;  %v15140_v60 = vcombine.low %v11048_v48, %v11052_v22  ;;  %v14902_v47 = vcombine.low %v10809_v32, %v10813_v58  ;;  %v14951_v48 = vcombine.high %v10857_v61, %v10861_v19 }
 0x988   : > { %v15023_v49 = vcombine.high %v10929_v17, %v10933_v5  ;;  %v10865_v32 = vld [vmem:[#allocation10 + $0x210] sm:$0xff] }
 0x989   : > { %v10869_v58 = vld [vmem:[#allocation10 + $0x230] sm:$0xff] }
 0x98a   : > { %12440 = vmatpush1.bf16.msra.mxu1 %v14980_v34  ;;  %12477 = vmatpush1.bf16.msra.mxu0 %v15092_v18  ;;  %v10937_v34 = vld [vmem:[#allocation10 + $0x450] sm:$0xff] }
 0x98b   : > { %12441 = vmatprep.subr.bf16.mxu1 %v14989_v38  ;;  %12478 = vmatprep.subr.bf16.mxu0 %v15101_v63  ;;  %v10941_v18 = vld [vmem:[#allocation10 + $0x470] sm:$0xff]  ;;  %v14910_v38 = vcombine.low %v10817_v35, %v10821_v30  ;;  %v15022_v63 = vcombine.low %v10929_v17, %v10933_v5 }
 0x98c   : > { %v15031_v59 = vcombine.high %v10937_v34, %v10941_v18  ;;  %v10873_v17 = vld [vmem:[#allocation10 + $0x250] sm:$0xff] }
 0x98d   : > { %v10877_v5 = vld [vmem:[#allocation10 + $0x270] sm:$0xff] }
 0x98e   : > { %12442 = vmatpush1.bf16.msra.mxu1 %v14988_v41  ;;  %12479 = vmatpush1.bf16.msra.mxu0 %v15100_v21  ;;  %v10945_v41 = vld [vmem:[#allocation10 + $0x490] sm:$0xff] }
 0x98f   : > { %12443 = vmatprep.subr.bf16.mxu1 %v14997_v10  ;;  %12480 = vmatprep.subr.bf16.mxu0 %v15109_v12  ;;  %v10949_v21 = vld [vmem:[#allocation10 + $0x4b0] sm:$0xff]  ;;  %v14918_v10 = vcombine.low %v10825_v54, %v10829_v44  ;;  %v15030_v12 = vcombine.low %v10937_v34, %v10941_v18  ;;  %v14967_v54 = vcombine.high %v10873_v17, %v10877_v5 }
 0x990   : > { %v15039_v37 = vcombine.high %v10945_v41, %v10949_v21  ;;  %v10881_v34 = vld [vmem:[#allocation10 + $0x290] sm:$0xff] }
 0x991   : > { %v10885_v18 = vld [vmem:[#allocation10 + $0x2b0] sm:$0xff] }
 0x992   : > { %12444 = vmatpush1.bf16.msra.mxu1 %v14996_v50  ;;  %12481 = vmatpush1.bf16.msra.mxu0 %v15108_v4  ;;  %v10953_v50 = vld [vmem:[#allocation10 + $0x4d0] sm:$0xff] }
 0x993   : > { %12445 = vmatprep.subr.bf16.mxu1 %v15005_v25  ;;  %12482 = vmatprep.subr.bf16.mxu0 %v15117_v39  ;;  %v10957_v4 = vld [vmem:[#allocation10 + $0x4f0] sm:$0xff]  ;;  %v14926_v25 = vcombine.low %v10833_v20, %v10837_v13  ;;  %v15038_v39 = vcombine.low %v10945_v41, %v10949_v21 }
 0x994   : > { %v15047_v31 = vcombine.high %v10953_v50, %v10957_v4  ;;  %v10889_v41 = vld [vmem:[#allocation10 + $0x2d0] sm:$0xff] }
 0x995   : > { %v10893_v21 = vld [vmem:[#allocation10 + $0x2f0] sm:$0xff] }
 0x996   : > { %12446 = vmatpush1.bf16.msra.mxu1 %v15004_v16  ;;  %12483 = vmatpush1.bf16.msra.mxu0 %v15116_v26  ;;  %v10961_v16 = vld [vmem:[#allocation10 + $0x510] sm:$0xff] }
 0x997   : > { %12447 = vmatprep.subr.bf16.mxu1 %v15013_v3  ;;  %12484 = vmatprep.subr.bf16.mxu0 %v15125_v33  ;;  %v10965_v26 = vld [vmem:[#allocation10 + $0x530] sm:$0xff]  ;;  %v14934_v3 = vcombine.low %v10841_v40, %v10845_v23  ;;  %v15046_v33 = vcombine.low %v10953_v50, %v10957_v4  ;;  %v14983_v40 = vcombine.high %v10889_v41, %v10893_v21 }
 0x998   : > { %v15055_v53 = vcombine.high %v10961_v16, %v10965_v26  ;;  %v10897_v50 = vld [vmem:[#allocation10 + $0x310] sm:$0xff] }
 0x999   : > { %v10901_v4 = vld [vmem:[#allocation10 + $0x330] sm:$0xff] }
 0x99a   : > { %12448 = vmatpush1.bf16.msra.mxu1 %v15012_v62  ;;  %12485 = vmatpush1.bf16.msra.mxu0 %v15124_v14  ;;  %v10969_v62 = vld [vmem:[#allocation10 + $0x550] sm:$0xff] }
 0x99b   : > { %12486 = vmatprep.subr.bf16.mxu0 %v15133_v55  ;;  %12499 = vmatprep.subr.bf16.mxu1 %v14895_v27  ;;  %v10973_v14 = vld [vmem:[#allocation10 + $0x570] sm:$0xff]  ;;  %v14942_v55 = vcombine.low %v10849_v57, %v10853_v51  ;;  %v15054_v27 = vcombine.low %v10961_v16, %v10965_v26  ;;  %v14991_v57 = vcombine.high %v10897_v50, %v10901_v4 }
 0x99c   : > { %v15063_v22 = vcombine.high %v10969_v62, %v10973_v14  ;;  %v15062_v35 = vcombine.low %v10969_v62, %v10973_v14  ;;  %v10905_v16 = vld [vmem:[#allocation10 + $0x350] sm:$0xff] }
 0x99d   : > { %12450 = vmatmul.mubr.bf16.vlgmr.msra.gmra.mrb[136].mxu1 %v17091_v56  ;;  %v10909_v26 = vld [vmem:[#allocation10 + $0x370] sm:$0xff] }
 0x99e   : > { %12487 = vmatpush1.bf16.msra.mxu0 %v15132_v24  ;;  %12500 = vmatpush1.bf16.msra.mxu1 %v14894_v42  ;;  %v10977_v24 = vld [vmem:[#allocation10 + $0x590] sm:$0xff] }
 0x99f   : > { %12531 = vmatprep.mubr.bf16.mxu1 %v17089_v45  ;;  %12488 = vmatprep.subr.bf16.mxu0 %v15141_v46  ;;  %v10981_v42 = vld [vmem:[#allocation10 + $0x5b0] sm:$0xff]  ;;  %v14950_v46 = vcombine.low %v10857_v61, %v10861_v19  ;;  %v14999_v61 = vcombine.high %v10905_v16, %v10909_v26 }
 0x9a0   : > { %12501 = vmatprep.subr.bf16.mxu1 %v14903_v7  ;;  %v14959_v7 = vcombine.high %v10865_v32, %v10869_v58  ;;  %v15071_v30 = vcombine.high %v10977_v24, %v10981_v42  ;;  %v10913_v62 = vld [vmem:[#allocation10 + $0x390] sm:$0xff] }
 0x9a1   : > { %v10917_v14 = vld [vmem:[#allocation10 + $0x3b0] sm:$0xff] }
 0x9a2   : > { %12489 = vmatpush1.bf16.msra.mxu0 %v15140_v60  ;;  %12502 = vmatpush1.bf16.msra.mxu1 %v14902_v47  ;;  %v10985_v60 = vld [vmem:[#allocation10 + $0x5d0] sm:$0xff] }
 0x9a3   : > { %12503 = vmatprep.subr.bf16.mxu1 %v14911_v1  ;;  %12540 = vmatprep.subr.bf16.mxu0 %v15023_v49  ;;  %v10989_v47 = vld [vmem:[#allocation10 + $0x5f0] sm:$0xff]  ;;  %v14958_v1 = vcombine.low %v10865_v32, %v10869_v58  ;;  %v15070_v49 = vcombine.low %v10977_v24, %v10981_v42  ;;  %v15007_v32 = vcombine.high %v10913_v62, %v10917_v14 }
 0x9a4   : > { %v15079_v44 = vcombine.high %v10985_v60, %v10989_v47  ;;  %v15078_v20 = vcombine.low %v10985_v60, %v10989_v47  ;;  %v10921_v24 = vld [vmem:[#allocation10 + $0x3d0] sm:$0xff] }
 0x9a5   : > { %12491 = vmatmul.mubr.bf16.vlgmr.msra.gmra.mrb[136].mxu0 %v17098_v43  ;;  %v10925_v42 = vld [vmem:[#allocation10 + $0x3f0] sm:$0xff] }
 0x9a6   : > { %12504 = vmatpush1.bf16.msra.mxu1 %v14910_v38  ;;  %12541 = vmatpush1.bf16.msra.mxu0 %v15022_v63  ;;  %v10993_v38 = vld [vmem:[#allocation10 + $0x610] sm:$0xff] }
 0x9a7   : > { %12572 = vmatprep.mubr.bf16.mxu0 %v17096_v29  ;;  %12505 = vmatprep.subr.bf16.mxu1 %v14919_v9  ;;  %v10997_v63 = vld [vmem:[#allocation10 + $0x630] sm:$0xff]  ;;  %v14966_v9 = vcombine.low %v10873_v17, %v10877_v5  ;;  %v15015_v17 = vcombine.high %v10921_v24, %v10925_v42 }
 0x9a8   : > { %12542 = vmatprep.subr.bf16.mxu0 %v15031_v59  ;;  %v14975_v59 = vcombine.high %v10881_v34, %v10885_v18  ;;  %v15087_v13 = vcombine.high %v10993_v38, %v10997_v63  ;;  %v11041_v60 = vld [vmem:[#allocation10 + $0x790] sm:$0xff] }
 0x9a9   : > { %v11045_v47 = vld [vmem:[#allocation10 + $0x7b0] sm:$0xff] }
 0x9aa   : > { %12506 = vmatpush1.bf16.msra.mxu1 %v14918_v10  ;;  %12543 = vmatpush1.bf16.msra.mxu0 %v15030_v12  ;;  %v11001_v10 = vld [vmem:[#allocation10 + $0x650] sm:$0xff] }
 0x9ab   : > { %12507 = vmatprep.subr.bf16.mxu1 %v14927_v15  ;;  %12544 = vmatprep.subr.bf16.mxu0 %v15039_v37  ;;  %v11005_v12 = vld [vmem:[#allocation10 + $0x670] sm:$0xff]  ;;  %v14974_v15 = vcombine.low %v10881_v34, %v10885_v18  ;;  %v15086_v37 = vcombine.low %v10993_v38, %v10997_v63  ;;  %v15135_v34 = vcombine.high %v11041_v60, %v11045_v47 }
 0x9ac   : > { %v15095_v23 = vcombine.high %v11001_v10, %v11005_v12  ;;  %v11049_v38 = vld [vmem:[#allocation10 + $0x7d0] sm:$0xff] }
 0x9ad   : > { %v11053_v63 = vld [vmem:[#allocation10 + $0x7f0] sm:$0xff] }
 0x9ae   : > { %12508 = vmatpush1.bf16.msra.mxu1 %v14926_v25  ;;  %12545 = vmatpush1.bf16.msra.mxu0 %v15038_v39  ;;  %v11009_v25 = vld [vmem:[#allocation10 + $0x690] sm:$0xff] }
 0x9af   : > { %12509 = vmatprep.subr.bf16.mxu1 %v14935_v2  ;;  %12546 = vmatprep.subr.bf16.mxu0 %v15047_v31  ;;  %v11013_v39 = vld [vmem:[#allocation10 + $0x6b0] sm:$0xff]  ;;  %v14982_v2 = vcombine.low %v10889_v41, %v10893_v21  ;;  %v15094_v31 = vcombine.low %v11001_v10, %v11005_v12  ;;  %v15143_v41 = vcombine.high %v11049_v38, %v11053_v63  ;;  %v10818_v21 = vld [vmem:[#allocation10 + $0x98] sm:$0xff] }
 0x9b0   : > { %v15103_v51 = vcombine.high %v11009_v25, %v11013_v39  ;;  %v10822_v12 = vld [vmem:[#allocation10 + $0xb8] sm:$0xff] }
 0x9b2   : > { %12510 = vmatpush1.bf16.msra.mxu1 %v14934_v3  ;;  %12547 = vmatpush1.bf16.msra.mxu0 %v15046_v33  ;;  %v11017_v3 = vld [vmem:[#allocation10 + $0x6d0] sm:$0xff] }
 0x9b3   : > { %12511 = vmatprep.subr.bf16.mxu1 %v14943_v52  ;;  %12548 = vmatprep.subr.bf16.mxu0 %v15055_v53  ;;  %v11021_v33 = vld [vmem:[#allocation10 + $0x6f0] sm:$0xff]  ;;  %v14990_v52 = vcombine.low %v10897_v50, %v10901_v4  ;;  %v15102_v53 = vcombine.low %v11009_v25, %v11013_v39  ;;  %v14913_v50 = vcombine.high %v10818_v21, %v10822_v12  ;;  %v10826_v25 = vld [vmem:[#allocation10 + $0xd8] sm:$0xff] }
 0x9b4   : > { %v15111_v19 = vcombine.high %v11017_v3, %v11021_v33  ;;  %v10830_v39 = vld [vmem:[#allocation10 + $0xf8] sm:$0xff] }
 0x9b6   : > { %12512 = vmatpush1.bf16.msra.mxu1 %v14942_v55  ;;  %12549 = vmatpush1.bf16.msra.mxu0 %v15054_v27  ;;  %v11025_v55 = vld [vmem:[#allocation10 + $0x710] sm:$0xff] }
 0x9b7   : > { %12513 = vmatprep.subr.bf16.mxu1 %v14951_v48  ;;  %12550 = vmatprep.subr.bf16.mxu0 %v15063_v22  ;;  %v11029_v27 = vld [vmem:[#allocation10 + $0x730] sm:$0xff]  ;;  %v14998_v48 = vcombine.low %v10905_v16, %v10909_v26  ;;  %v15110_v22 = vcombine.low %v11017_v3, %v11021_v33  ;;  %v14921_v16 = vcombine.high %v10826_v25, %v10830_v39  ;;  %v10834_v26 = vld [vmem:[#allocation10 + $0x118] sm:$0xff] }
 0x9b8   : > { %v15119_v58 = vcombine.high %v11025_v55, %v11029_v27  ;;  %v10838_v33 = vld [vmem:[#allocation10 + $0x138] sm:$0xff] }
 0x9ba   : > { %12514 = vmatpush1.bf16.msra.mxu1 %v14950_v46  ;;  %12551 = vmatpush1.bf16.msra.mxu0 %v15062_v35  ;;  %v11033_v46 = vld [vmem:[#allocation10 + $0x750] sm:$0xff] }
 0x9bb   : > { %12515 = vmatprep.subr.bf16.mxu1 %v14959_v7  ;;  %12552 = vmatprep.subr.bf16.mxu0 %v15071_v30  ;;  %v11037_v35 = vld [vmem:[#allocation10 + $0x770] sm:$0xff]  ;;  %v15006_v7 = vcombine.low %v10913_v62, %v10917_v14  ;;  %v15118_v30 = vcombine.low %v11025_v55, %v11029_v27  ;;  %v10842_v14 = vld [vmem:[#allocation10 + $0x158] sm:$0xff] }
 0x9bc   : > { %v15127_v5 = vcombine.high %v11033_v46, %v11037_v35  ;;  %v10846_v55 = vld [vmem:[#allocation10 + $0x178] sm:$0xff] }
 0x9bd   : > { %v10954_v27 = vld [vmem:[#allocation10 + $0x4d8] sm:$0xff] }
 0x9be   : > { %12516 = vmatpush1.bf16.msra.mxu1 %v14958_v1  ;;  %12553 = vmatpush1.bf16.msra.mxu0 %v15070_v49  ;;  %v10802_v1 = vld [vmem:[#allocation10 + $0x18] sm:$0xff] }
 0x9bf   : > { %12517 = vmatprep.subr.bf16.mxu1 %v14967_v54  ;;  %12554 = vmatprep.subr.bf16.mxu0 %v15079_v44  ;;  %v10806_v49 = vld [vmem:[#allocation10 + $0x38] sm:$0xff]  ;;  %v15014_v54 = vcombine.low %v10921_v24, %v10925_v42  ;;  %v15126_v44 = vcombine.low %v11033_v46, %v11037_v35 }
 0x9c0   : > { %v14897_v18 = vcombine.high %v10802_v1, %v10806_v49  ;;  %v10850_v42 = vld [vmem:[#allocation10 + $0x198] sm:$0xff] }
 0x9c1   : > { %v10854_v46 = vld [vmem:[#allocation10 + $0x1b8] sm:$0xff] }
 0x9c2   : > { %12518 = vmatpush1.bf16.msra.mxu1 %v14966_v9  ;;  %12555 = vmatpush1.bf16.msra.mxu0 %v15078_v20  ;;  %v10810_v9 = vld [vmem:[#allocation10 + $0x58] sm:$0xff] }
 0x9c3   : > { %12519 = vmatprep.subr.bf16.mxu1 %v14975_v59  ;;  %12556 = vmatprep.subr.bf16.mxu0 %v15087_v13  ;;  %v10814_v20 = vld [vmem:[#allocation10 + $0x78] sm:$0xff]  ;;  %v15134_v59 = vcombine.low %v11041_v60, %v11045_v47  ;;  %v14896_v13 = vcombine.low %v10802_v1, %v10806_v49 }
 0x9c4   : > { %v14905_v10 = vcombine.high %v10810_v9, %v10814_v20  ;;  %v10962_v35 = vld [vmem:[#allocation10 + $0x518] sm:$0xff] }
 0x9c5   : > { %v10858_v60 = vld [vmem:[#allocation10 + $0x1d8] sm:$0xff] }
 0x9c6   : > { %12520 = vmatpush1.bf16.msra.mxu1 %v14974_v15  ;;  %12557 = vmatpush1.bf16.msra.mxu0 %v15086_v37  ;;  %v10930_v15 = vld [vmem:[#allocation10 + $0x418] sm:$0xff] }
 0x9c7   : > { %12521 = vmatprep.subr.bf16.mxu1 %v14983_v40  ;;  %12558 = vmatprep.subr.bf16.mxu0 %v15095_v23  ;;  %v10934_v37 = vld [vmem:[#allocation10 + $0x438] sm:$0xff]  ;;  %v15142_v40 = vcombine.low %v11049_v38, %v11053_v63  ;;  %v14904_v23 = vcombine.low %v10810_v9, %v10814_v20 }
 0x9c8   : > { %v15025_v4 = vcombine.high %v10930_v15, %v10934_v37  ;;  %v10862_v47 = vld [vmem:[#allocation10 + $0x1f8] sm:$0xff] }
 0x9c9   : > { %v10970_v1 = vld [vmem:[#allocation10 + $0x558] sm:$0xff] }
 0x9ca   : > { %12522 = vmatpush1.bf16.msra.mxu1 %v14982_v2  ;;  %12559 = vmatpush1.bf16.msra.mxu0 %v15094_v31  ;;  %v10938_v2 = vld [vmem:[#allocation10 + $0x458] sm:$0xff] }
 0x9cb   : > { %12523 = vmatprep.subr.bf16.mxu1 %v14991_v57  ;;  %12560 = vmatprep.subr.bf16.mxu0 %v15103_v51  ;;  %v10942_v31 = vld [vmem:[#allocation10 + $0x478] sm:$0xff]  ;;  %v14912_v57 = vcombine.low %v10818_v21, %v10822_v12  ;;  %v15024_v51 = vcombine.low %v10930_v15, %v10934_v37 }
 0x9cc   : > { %v15033_v3 = vcombine.high %v10938_v2, %v10942_v31  ;;  %v10974_v49 = vld [vmem:[#allocation10 + $0x578] sm:$0xff] }
 0x9cd   : > { %v10866_v38 = vld [vmem:[#allocation10 + $0x218] sm:$0xff] }
 0x9ce   : > { %12524 = vmatpush1.bf16.msra.mxu1 %v14990_v52  ;;  %12561 = vmatpush1.bf16.msra.mxu0 %v15102_v53  ;;  %v10946_v52 = vld [vmem:[#allocation10 + $0x498] sm:$0xff]  ;;  %v14920_v53 = vcombine.low %v10826_v25, %v10830_v39 }
 0x9cf   : > { %12525 = vmatprep.subr.bf16.mxu1 %v14999_v61  ;;  %12562 = vmatprep.subr.bf16.mxu0 %v15111_v19  ;;  %v15032_v61 = vcombine.low %v10938_v2, %v10942_v31  ;;  %v14929_v19 = vcombine.high %v10834_v26, %v10838_v33  ;;  %v10870_v63 = vld [vmem:[#allocation10 + $0x238] sm:$0xff] }
 0x9d0   : > { %v10978_v9 = vld [vmem:[#allocation10 + $0x598] sm:$0xff] }
 0x9d1   : > { %v10982_v20 = vld [vmem:[#allocation10 + $0x5b8] sm:$0xff] }
 0x9d2   : > { %12526 = vmatpush1.bf16.msra.mxu1 %v14998_v48  ;;  %12563 = vmatpush1.bf16.msra.mxu0 %v15110_v22  ;;  %v10958_v48 = vld [vmem:[#allocation10 + $0x4f8] sm:$0xff]  ;;  %v14928_v22 = vcombine.low %v10834_v26, %v10838_v33  ;;  %v15073_v21 = vcombine.high %v10978_v9, %v10982_v20 }
 0x9d3   : > { %12527 = vmatprep.subr.bf16.mxu1 %v15007_v32  ;;  %12564 = vmatprep.subr.bf16.mxu0 %v15119_v58  ;;  %v14937_v58 = vcombine.high %v10842_v14, %v10846_v55  ;;  %v15049_v24 = vcombine.high %v10954_v27, %v10958_v48  ;;  %v10878_v12 = vld [vmem:[#allocation10 + $0x278] sm:$0xff] }
 0x9d4   : > { %v10986_v15 = vld [vmem:[#allocation10 + $0x5d8] sm:$0xff] }
 0x9d5   : > { %v10990_v37 = vld [vmem:[#allocation10 + $0x5f8] sm:$0xff] }
 0x9d6   : > { %12528 = vmatpush1.bf16.msra.mxu1 %v15006_v7  ;;  %12565 = vmatpush1.bf16.msra.mxu0 %v15118_v30  ;;  %v14936_v7 = vcombine.low %v10842_v14, %v10846_v55  ;;  %v15048_v30 = vcombine.low %v10954_v27, %v10958_v48  ;;  %v10882_v25 = vld [vmem:[#allocation10 + $0x298] sm:$0xff] }
 0x9d7   : > { %12529 = vmatprep.subr.bf16.mxu1 %v15015_v17  ;;  %12566 = vmatprep.subr.bf16.mxu0 %v15127_v5  ;;  %v14945_v17 = vcombine.high %v10850_v42, %v10854_v46  ;;  %v10886_v39 = vld [vmem:[#allocation10 + $0x2b8] sm:$0xff] }
 0x9d8   : > { %v10994_v2 = vld [vmem:[#allocation10 + $0x618] sm:$0xff] }
 0x9d9   : > { %v10998_v31 = vld [vmem:[#allocation10 + $0x638] sm:$0xff] }
 0x9da   : > { %12530 = vmatpush1.bf16.msra.mxu1 %v15014_v54  ;;  %12567 = vmatpush1.bf16.msra.mxu0 %v15126_v44  ;;  %v14944_v54 = vcombine.low %v10850_v42, %v10854_v46  ;;  %v15089_v26 = vcombine.high %v10994_v2, %v10998_v31  ;;  %v10894_v33 = vld [vmem:[#allocation10 + $0x2f8] sm:$0xff] }
 0x9db   : > { %12568 = vmatprep.subr.bf16.mxu0 %v15135_v34  ;;  %12581 = vmatprep.subr.bf16.mxu1 %v14897_v18  ;;  %v14953_v34 = vcombine.high %v10858_v60, %v10862_v47  ;;  %v15065_v18 = vcombine.high %v10970_v1, %v10974_v49  ;;  %v10898_v14 = vld [vmem:[#allocation10 + $0x318] sm:$0xff] }
 0x9dc   : > { %v10902_v55 = vld [vmem:[#allocation10 + $0x338] sm:$0xff] }
 0x9dd   : > { %12532 = vmatmul.mubr.bf16.vlgmr.msra.gmra.mrb[140].mxu1 %v17091_v56  ;;  %v11010_v27 = vld [vmem:[#allocation10 + $0x698] sm:$0xff] }
 0x9de   : > { %12569 = vmatpush1.bf16.msra.mxu0 %v15134_v59  ;;  %12582 = vmatpush1.bf16.msra.mxu1 %v14896_v13  ;;  %v14952_v59 = vcombine.low %v10858_v60, %v10862_v47  ;;  %v15064_v13 = vcombine.low %v10970_v1, %v10974_v49  ;;  %v11014_v48 = vld [vmem:[#allocation10 + $0x6b8] sm:$0xff] }
 0x9df   : > { %12613 = vmatprep.mubr.bf16.mxu1 %v17089_v45  ;;  %12570 = vmatprep.subr.bf16.mxu0 %v15143_v41  ;;  %v10950_v45 = vld [vmem:[#allocation10 + $0x4b8] sm:$0xff]  ;;  %v14961_v41 = vcombine.high %v10866_v38, %v10870_v63 }
 0x9e0   : > { %12583 = vmatprep.subr.bf16.mxu1 %v14905_v10  ;;  %v15041_v62 = vcombine.high %v10946_v52, %v10950_v45  ;;  %v15040_v32 = vcombine.low %v10946_v52, %v10950_v45  ;;  %v10874_v10 = vld [vmem:[#allocation10 + $0x258] sm:$0xff] }
 0x9e1   : > { %v11002_v52 = vld [vmem:[#allocation10 + $0x658] sm:$0xff] }
 0x9e2   : > { %12571 = vmatpush1.bf16.msra.mxu0 %v15142_v40  ;;  %12584 = vmatpush1.bf16.msra.mxu1 %v14904_v23  ;;  %v14960_v40 = vcombine.low %v10866_v38, %v10870_v63  ;;  %v15072_v23 = vcombine.low %v10978_v9, %v10982_v20  ;;  %v11006_v45 = vld [vmem:[#allocation10 + $0x678] sm:$0xff] }
 0x9e3   : > { %12585 = vmatprep.subr.bf16.mxu1 %v14913_v50  ;;  %12622 = vmatprep.subr.bf16.mxu0 %v15025_v4  ;;  %v14969_v50 = vcombine.high %v10874_v10, %v10878_v12  ;;  %v15081_v4 = vcombine.high %v10986_v15, %v10990_v37  ;;  %v10906_v42 = vld [vmem:[#allocation10 + $0x358] sm:$0xff] }
 0x9e4   : > { %v10910_v46 = vld [vmem:[#allocation10 + $0x378] sm:$0xff] }
 0x9e5   : > { %12573 = vmatmul.mubr.bf16.vlgmr.msra.gmra.mrb[140].mxu0 %v17098_v43  ;;  %v10914_v60 = vld [vmem:[#allocation10 + $0x398] sm:$0xff] }
 0x9e6   : > { %12586 = vmatpush1.bf16.msra.mxu1 %v14912_v57  ;;  %12623 = vmatpush1.bf16.msra.mxu0 %v15024_v51  ;;  %v14968_v57 = vcombine.low %v10874_v10, %v10878_v12  ;;  %v15080_v51 = vcombine.low %v10986_v15, %v10990_v37  ;;  %v10918_v47 = vld [vmem:[#allocation10 + $0x3b8] sm:$0xff] }
 0x9e7   : > { %12654 = vmatprep.mubr.bf16.mxu0 %v17096_v29  ;;  %12587 = vmatprep.subr.bf16.mxu1 %v14921_v16  ;;  %v10966_v29 = vld [vmem:[#allocation10 + $0x538] sm:$0xff]  ;;  %v14977_v16 = vcombine.high %v10882_v25, %v10886_v39 }
 0x9e8   : > { %12624 = vmatprep.subr.bf16.mxu0 %v15033_v3  ;;  %v15057_v5 = vcombine.high %v10962_v35, %v10966_v29  ;;  %v15056_v44 = vcombine.low %v10962_v35, %v10966_v29  ;;  %v10890_v3 = vld [vmem:[#allocation10 + $0x2d8] sm:$0xff] }
 0x9e9   : > { %v11018_v35 = vld [vmem:[#allocation10 + $0x6d8] sm:$0xff] }
 0x9ea   : > { %12588 = vmatpush1.bf16.msra.mxu1 %v14920_v53  ;;  %12625 = vmatpush1.bf16.msra.mxu0 %v15032_v61  ;;  %v14976_v53 = vcombine.low %v10882_v25, %v10886_v39  ;;  %v15088_v61 = vcombine.low %v10994_v2, %v10998_v31  ;;  %v11022_v29 = vld [vmem:[#allocation10 + $0x6f8] sm:$0xff] }
 0x9eb   : > { %12589 = vmatprep.subr.bf16.mxu1 %v14929_v19  ;;  %12626 = vmatprep.subr.bf16.mxu0 %v15041_v62  ;;  %v14985_v19 = vcombine.high %v10890_v3, %v10894_v33  ;;  %v15097_v62 = vcombine.high %v11002_v52, %v11006_v45  ;;  %v11026_v1 = vld [vmem:[#allocation10 + $0x718] sm:$0xff] }
 0x9ec   : > { %v11030_v49 = vld [vmem:[#allocation10 + $0x738] sm:$0xff] }
 0x9ed   : > { %v10922_v38 = vld [vmem:[#allocation10 + $0x3d8] sm:$0xff] }
 0x9ee   : > { %12590 = vmatpush1.bf16.msra.mxu1 %v14928_v22  ;;  %12627 = vmatpush1.bf16.msra.mxu0 %v15040_v32  ;;  %v14984_v22 = vcombine.low %v10890_v3, %v10894_v33  ;;  %v15096_v32 = vcombine.low %v11002_v52, %v11006_v45  ;;  %v10926_v63 = vld [vmem:[#allocation10 + $0x3f8] sm:$0xff] }
 0x9ef   : > { %12591 = vmatprep.subr.bf16.mxu1 %v14937_v58  ;;  %12628 = vmatprep.subr.bf16.mxu0 %v15049_v24  ;;  %v14993_v58 = vcombine.high %v10898_v14, %v10902_v55  ;;  %v15105_v24 = vcombine.high %v11010_v27, %v11014_v48  ;;  %v11034_v9 = vld [vmem:[#allocation10 + $0x758] sm:$0xff]  ;;  %v15016_v15 = vcombine.low %v10922_v38, %v10926_v63 }
 0x9f0   : > { %v11038_v20 = vld [vmem:[#allocation10 + $0x778] sm:$0xff] }
 0x9f1   : > { %v11042_v10 = vld [vmem:[#allocation10 + $0x798] sm:$0xff]  ;;  %v15128_v37 = vcombine.low %v11034_v9, %v11038_v20 }
 0x9f2   : > { %12592 = vmatpush1.bf16.msra.mxu1 %v14936_v7  ;;  %12629 = vmatpush1.bf16.msra.mxu0 %v15048_v30  ;;  %v14992_v7 = vcombine.low %v10898_v14, %v10902_v55  ;;  %v15104_v30 = vcombine.low %v11010_v27, %v11014_v48  ;;  %v11046_v12 = vld [vmem:[#allocation10 + $0x7b8] sm:$0xff] }
 0x9f3   : > { %12593 = vmatprep.subr.bf16.mxu1 %v14945_v17  ;;  %12630 = vmatprep.subr.bf16.mxu0 %v15057_v5  ;;  %v15001_v17 = vcombine.high %v10906_v42, %v10910_v46  ;;  %v15113_v5 = vcombine.high %v11018_v35, %v11022_v29 }
 0x9f6   : > { %12594 = vmatpush1.bf16.msra.mxu1 %v14944_v54  ;;  %12631 = vmatpush1.bf16.msra.mxu0 %v15056_v44  ;;  %v15000_v54 = vcombine.low %v10906_v42, %v10910_v46  ;;  %v15112_v44 = vcombine.low %v11018_v35, %v11022_v29 }
 0x9f7   : > { %12595 = vmatprep.subr.bf16.mxu1 %v14953_v34  ;;  %12632 = vmatprep.subr.bf16.mxu0 %v15065_v18  ;;  %v15009_v34 = vcombine.high %v10914_v60, %v10918_v47  ;;  %v15121_v18 = vcombine.high %v11026_v1, %v11030_v49 }
 0x9fa   : > { %12596 = vmatpush1.bf16.msra.mxu1 %v14952_v59  ;;  %12633 = vmatpush1.bf16.msra.mxu0 %v15064_v13  ;;  %v15008_v59 = vcombine.low %v10914_v60, %v10918_v47  ;;  %v15120_v13 = vcombine.low %v11026_v1, %v11030_v49 }
 0x9fb   : > { %12597 = vmatprep.subr.bf16.mxu1 %v14961_v41  ;;  %12634 = vmatprep.subr.bf16.mxu0 %v15073_v21  ;;  %v15017_v41 = vcombine.high %v10922_v38, %v10926_v63  ;;  %v15129_v21 = vcombine.high %v11034_v9, %v11038_v20 }
 0x9fe   : > { %12598 = vmatpush1.bf16.msra.mxu1 %v14960_v40  ;;  %12635 = vmatpush1.bf16.msra.mxu0 %v15072_v23  ;;  %v15137_v40 = vcombine.high %v11042_v10, %v11046_v12  ;;  %v11050_v23 = vld [vmem:[#allocation10 + $0x7d8] sm:$0xff] }
 0x9ff   : > { %12599 = vmatprep.subr.bf16.mxu1 %v14969_v50  ;;  %12636 = vmatprep.subr.bf16.mxu0 %v15081_v4  ;;  %v11054_v50 = vld [vmem:[#allocation10 + $0x7f8] sm:$0xff]  ;;  %v15136_v4 = vcombine.low %v11042_v10, %v11046_v12  ;;  %v17144_v12 = vld [vmem:[%s17193_s9] sm:$0xf] }
 0xa00   : > { %v15145_v25 = vcombine.high %v11050_v23, %v11054_v50  ;;  %v15144_v39 = vcombine.low %v11050_v23, %v11054_v50  ;;  %v15799_v23 = vld [vmem:[#allocation13 + $0x24] ss:$8 sps:$4 sm:$0xff]   ;;  %v15797_v50 = vld [vmem:[#allocation13 + $0x20] ss:$8 sps:$4 sm:$0xff]  }
 0xa02   : > { %12600 = vmatpush1.bf16.msra.mxu1 %v14968_v57  ;;  %12637 = vmatpush1.bf16.msra.mxu0 %v15080_v51 }
 0xa03   : > { %12601 = vmatprep.subr.bf16.mxu1 %v14977_v16  ;;  %12638 = vmatprep.subr.bf16.mxu0 %v15089_v26 }
 0xa06   : > { %12602 = vmatpush1.bf16.msra.mxu1 %v14976_v53  ;;  %12639 = vmatpush1.bf16.msra.mxu0 %v15088_v61 }
 0xa07   : > { %12603 = vmatprep.subr.bf16.mxu1 %v14985_v19  ;;  %12640 = vmatprep.subr.bf16.mxu0 %v15097_v62  ;;  %v12663_v62 = vld [vmem:[#allocation12] sm:$0xf] }
 0xa08   : > { %v17116_v14 = vrot.slane %v12663_v62, %v16624_v6  ;;  %v17119_v55 = vrot.slane %v12663_v62, %v16673_v11  ;;  %v12672_v11 = vrot.slane %v12663_v62, %v16640_v28 }
 0xa0a   : > { %12604 = vmatpush1.bf16.msra.mxu1 %v14984_v22  ;;  %12641 = vmatpush1.bf16.msra.mxu0 %v15096_v32 }
 0xa0b   : > { %12605 = vmatprep.subr.bf16.mxu1 %v14993_v58  ;;  %12642 = vmatprep.subr.bf16.mxu0 %v15105_v24 }
 0xa0e   : > { %12606 = vmatpush1.bf16.msra.mxu1 %v14992_v7  ;;  %12643 = vmatpush1.bf16.msra.mxu0 %v15104_v30  ;;  %v12668_v7 = vrot.slane %v12663_v62, %v16650_v36  ;;  %v15833_v62 = vld [vmem:[#allocation13 + $0x90] ss:$8 sps:$4 sm:$0xff]  }
 0xa0f   : > { %12607 = vmatprep.subr.bf16.mxu1 %v15001_v17  ;;  %12644 = vmatprep.subr.bf16.mxu0 %v15113_v5 }
 0xa12   : > { %12608 = vmatpush1.bf16.msra.mxu1 %v15000_v54  ;;  %12645 = vmatpush1.bf16.msra.mxu0 %v15112_v44 }
 0xa13   : > { %12609 = vmatprep.subr.bf16.mxu1 %v15009_v34  ;;  %12646 = vmatprep.subr.bf16.mxu0 %v15121_v18 }
 0xa16   : > { %12610 = vmatpush1.bf16.msra.mxu1 %v15008_v59  ;;  %12647 = vmatpush1.bf16.msra.mxu0 %v15120_v13 }
 0xa17   : > { %12611 = vmatprep.subr.bf16.mxu1 %v15017_v41  ;;  %12648 = vmatprep.subr.bf16.mxu0 %v15129_v21  ;;  %v17134_v41 = vld [vmem:[%s17193_s9 + $0x4] sm:$0xf]  ;;  %v15793_v21 = vld [vmem:[#allocation13 + $0x4] ss:$8 sps:$4 sm:$0xff]  }
 0xa1a   : > { %12612 = vmatpush1.bf16.msra.mxu1 %v15016_v15  ;;  %12649 = vmatpush1.bf16.msra.mxu0 %v15128_v37  ;;  %v15791_v15 = vld [vmem:[#allocation13] ss:$8 sps:$4 sm:$0xff]   ;;  %v15796_v37 = vld [vmem:[#allocation13 + $0x14] ss:$8 sps:$4 sm:$0xff]  }
 0xa1b   : > { %12650 = vmatprep.subr.bf16.mxu0 %v15137_v40  ;;  %v15794_v40 = vld [vmem:[#allocation13 + $0x10] ss:$8 sps:$4 sm:$0xff]  }
 0xa1d   : > { %12614 = vmatmul.mubr.bf16.vlgmr.msra.gmra.mrb[144].mxu1 %v17091_v56 }
 0xa1e   : > { %12651 = vmatpush1.bf16.msra.mxu0 %v15136_v4  ;;  %12760 = vmatprep.mubr.bf16.mxu1 %v16185_v0  ;;  %v15802_v4 = vld [vmem:[#allocation13 + $0x34] ss:$8 sps:$4 sm:$0xff]  }
 0xa1f   : > { %12652 = vmatprep.subr.bf16.mxu0 %v15145_v25  ;;  %v15800_v25 = vld [vmem:[#allocation13 + $0x30] ss:$8 sps:$4 sm:$0xff]  }
 0xa22   : > { %12653 = vmatpush1.bf16.msra.mxu0 %v15144_v39  ;;  %v15805_v39 = vld [vmem:[#allocation13 + $0x44] ss:$8 sps:$4 sm:$0xff]  }
 0xa25   : > { %12655 = vmatmul.mubr.bf16.vlgmr.msra.gmra.mrb[144].mxu0 %v17098_v43 }
 0xa26   : > { %12801 = vmatprep.mubr.bf16.mxu0 %v16185_v0 }
 0xa30   : > { %v12369_v2 = vpop.f32.mrb[132].mxu1 }
 0xa31   : > { %v12371_v31 = vpop.f32.mrb[133].mxu1 }
 0xa32   : > { %v12373_v57 = vpop.f32.mrb[134].mxu1 }
 0xa33   : > { %v12374_v51 = vpop.f32.mrb[135].mxu1  ;;  %v15809_v57 = vld [vmem:[#allocation13 + $0x50] ss:$8 sps:$4 sm:$0xff]  }
 0xa34   : > { %v15817_v51 = vld [vmem:[#allocation13 + $0x64] ss:$8 sps:$4 sm:$0xff]  }
 0xa38   : > { %v12410_v16 = vpop.f32.mrb[132].mxu0 }
 0xa39   : > { %v12411_v26 = vadd.f32 %v12410_v16, %v12369_v2  ;;  %v12412_v3 = vpop.f32.mrb[133].mxu0  ;;  %v15803_v2 = vld [vmem:[#allocation13 + $0x40] ss:$8 sps:$4 sm:$0xff]  }
 0xa3a   : > { %v12413_v33 = vadd.f32 %v12412_v3, %v12371_v31  ;;  %v12414_v52 = vpop.f32.mrb[134].mxu0  ;;  %v15811_v31 = vld [vmem:[#allocation13 + $0x54] ss:$8 sps:$4 sm:$0xff]   ;;  %v15815_v16 = vld [vmem:[#allocation13 + $0x60] ss:$8 sps:$4 sm:$0xff]  }
 0xa3b   : > { %v12415_v56 = vpop.f32.mrb[135].mxu0  ;;  %v12685_v60 = vadd.f32 %v12668_v7, %v12411_v26  ;;  %v15823_v26 = vld [vmem:[#allocation13 + $0x74] ss:$8 sps:$4 sm:$0xff]   ;;  %v15821_v3 = vld [vmem:[#allocation13 + $0x70] ss:$8 sps:$4 sm:$0xff]  }
 0xa3c   : > { %v12686_v47 = vadd.f32 %v12672_v11, %v12413_v33  ;;  %v15829_v33 = vld [vmem:[#allocation13 + $0x84] ss:$8 sps:$4 sm:$0xff]   ;;  %v15827_v52 = vld [vmem:[#allocation13 + $0x80] ss:$8 sps:$4 sm:$0xff]  }
 0xa3d   : > { %v12693_v38 = vmax.f32 %v12685_v60, 0.0 }
 0xa3e   : > { %v12694_v63 = vmax.f32 %v12686_v47, 0.0 }
 0xa3f   : > { %v12701_v13 = vpack.c.bf16 %v12693_v38, %v12693_v38 }
 0xa40   : > { %v12702_v28 = vpack.c.bf16 %v12694_v63, %v12694_v63  ;;  %v15863_v63 = vld [vmem:[#allocation13 + $0xe0] ss:$8 sps:$4 sm:$0xff]  }
 0xa41   : > { %v12814_v10 = vsel %vm2956_vm2, %v12701_v13, 0  ;;  %v15818_v13 = vld [vmem:[#allocation13 + $0x120] ss:$8 sps:$4 sm:$0xff]  }
 0xa70   : > { %v12451_v45 = vpop.f32.mrb[136].mxu1 }
 0xa71   : > { %v12453_v53 = vpop.f32.mrb[137].mxu1 }
 0xa72   : > { %v12455_v61 = vpop.f32.mrb[138].mxu1 }
 0xa73   : > { %v12456_v19 = vpop.f32.mrb[139].mxu1 }
 0xa78   : > { %v12492_v43 = vpop.f32.mrb[136].mxu0 }
 0xa79   : > { %v12493_v27 = vadd.f32 %v12492_v43, %v12451_v45  ;;  %v12494_v48 = vpop.f32.mrb[137].mxu0  ;;  %v15835_v45 = vld [vmem:[#allocation13 + $0x94] ss:$8 sps:$4 sm:$0xff]   ;;  %v15841_v43 = vld [vmem:[#allocation13 + $0xa4] ss:$8 sps:$4 sm:$0xff]  }
 0xa7a   : > { %v12495_v22 = vadd.f32 %v12494_v48, %v12453_v53  ;;  %v12496_v32 = vpop.f32.mrb[138].mxu0 }
 0xa7b   : > { %v17122_v58 = vadd.f32 %v17116_v14, %v12493_v27  ;;  %v12497_v24 = vpop.f32.mrb[139].mxu0  ;;  %v15839_v27 = vld [vmem:[#allocation13 + $0xa0] ss:$8 sps:$4 sm:$0xff]  }
 0xa7c   : > { %v17125_v42 = vadd.f32 %v17119_v55, %v12495_v22  ;;  %v15847_v22 = vld [vmem:[#allocation13 + $0xb4] ss:$8 sps:$4 sm:$0xff]  }
 0xa7e   : > { %v12696_v60 = vmax.f32 %v17125_v42, 0.0  ;;  %v15865_v42 = vld [vmem:[#allocation13 + $0xe4] ss:$8 sps:$4 sm:$0xff]  }
 0xab0   : > { %v12533_v46 = vpop.f32.mrb[140].mxu1 }
 0xab1   : > { %v12535_v35 = vpop.f32.mrb[141].mxu1 }
 0xab2   : > { %v12537_v29 = vpop.f32.mrb[142].mxu1 }
 0xab3   : > { %v12538_v6 = vpop.f32.mrb[143].mxu1 }
 0xab8   : > { %v12574_v30 = vpop.f32.mrb[140].mxu0 }
 0xab9   : > { %v12575_v17 = vadd.f32 %v12574_v30, %v12533_v46  ;;  %v12576_v5 = vpop.f32.mrb[141].mxu0  ;;  %v15853_v30 = vld [vmem:[#allocation13 + $0xc4] ss:$8 sps:$4 sm:$0xff]  }
 0xaba   : > { %v12577_v1 = vadd.f32 %v12576_v5, %v12535_v35  ;;  %v12578_v49 = vpop.f32.mrb[142].mxu0  ;;  %v12695_v5 = vmax.f32 %v17122_v58, 0.0  ;;  %v15857_v58 = vld [vmem:[#allocation13 + $0xd0] ss:$8 sps:$4 sm:$0xff]  }
 0xabb   : > { %v12689_v54 = vadd.f32 %v12668_v7, %v12575_v17  ;;  %v12579_v44 = vpop.f32.mrb[143].mxu0  ;;  %v15845_v7 = vld [vmem:[#allocation13 + $0xb0] ss:$8 sps:$4 sm:$0xff]   ;;  %v15851_v49 = vld [vmem:[#allocation13 + $0xc0] ss:$8 sps:$4 sm:$0xff]  }
 0xabc   : > { %v12690_v34 = vadd.f32 %v12672_v11, %v12577_v1  ;;  %v15859_v44 = vld [vmem:[#allocation13 + $0xd4] ss:$8 sps:$4 sm:$0xff]  }
 0xabd   : > { %v12697_v18 = vmax.f32 %v12689_v54, 0.0 }
 0xabe   : > { %v12698_v9 = vmax.f32 %v12690_v34, 0.0  ;;  %v12703_v34 = vpack.c.bf16 %v12695_v5, %v12695_v5 }
 0xabf   : > { %v12705_v20 = vpack.c.bf16 %v12697_v18, %v12697_v18  ;;  %v12704_v18 = vpack.c.bf16 %v12696_v60, %v12696_v60 }
 0xac0   : > { %v12706_v59 = vpack.c.bf16 %v12698_v9, %v12698_v9  ;;  %v12820_v38 = vsel %vm2956_vm2, %v12703_v34, 0  ;;  %v15806_v9 = vld [vmem:[#allocation13 + $0x100] ss:$8 sps:$4 sm:$0xff]  }
 0xac1   : > { %v12717_v36 = vsel %vm2956_vm2, %v12705_v20, 0  ;;  %v15814_v20 = vld [vmem:[#allocation13 + $0x114] ss:$8 sps:$4 sm:$0xff]  }
 0xac2   : > { %15147 = vmatprep.subr.msk.bf16.mxu1 %vm2956_vm2, %v12706_v59  ;;  %v15812_v59 = vld [vmem:[#allocation13 + $0x110] ss:$8 sps:$4 sm:$0xff]  }
 0xac3   : > { %12729 = vmatpush1.bf16.msra.mxu1 %v12717_v36  ;;  %v15820_v36 = vld [vmem:[#allocation13 + $0x124] ss:$8 sps:$4 sm:$0xff]  }
 0xac4   : > { %15151 = vmatprep.subr.msk.bf16.mxu1 %vm2956_vm2, %v12702_v28  ;;  %v15826_v28 = vld [vmem:[#allocation13 + $0x134] ss:$8 sps:$4 sm:$0xff]  }
 0xac6   : > { %15148 = vmatmul.mubr.msk.bf16.vlgmr.msra.gmra.mrb[148].mxu1 %vm12712_vm7, %v17134_v41 }
 0xac7   : > { %12826 = vmatpush1.bf16.msra.mxu1 %v12814_v10  ;;  %12857 = vmatprep.mubr.bf16.mxu1 %v16185_v0  ;;  %v15838_v10 = vld [vmem:[#allocation13 + $0x154] ss:$8 sps:$4 sm:$0xff]  }
 0xac8   : > { %13295 = vmatprep.subr.bf16.mxu1 %v15793_v21  ;;  %v15830_v21 = vld [vmem:[#allocation13 + $0x140] ss:$8 sps:$4 sm:$0xff]  }
 0xad2   : > { %15152 = vmatmul.mubr.msk.bf16.vlgmr.msra.gmra.mrb[148].mxu1 %vm12712_vm7, %v17144_v12 }
 0xad3   : > { %13296 = vmatpush1.bf16.msra.mxu1 %v15791_v15  ;;  %v15836_v15 = vld [vmem:[#allocation13 + $0x150] ss:$8 sps:$4 sm:$0xff]  }
 0xad4   : > { %13297 = vmatprep.subr.bf16.mxu1 %v15796_v37  ;;  %v15842_v37 = vld [vmem:[#allocation13 + $0x160] ss:$8 sps:$4 sm:$0xff]  }
 0xad7   : > { %13298 = vmatpush1.bf16.msra.mxu1 %v15794_v40  ;;  %v15869_v40 = vld [vmem:[#allocation13 + $0xf0] ss:$8 sps:$4 sm:$0xff]  }
 0xad8   : > { %13299 = vmatprep.subr.bf16.mxu1 %v15799_v23  ;;  %v15871_v23 = vld [vmem:[#allocation13 + $0xf4] ss:$8 sps:$4 sm:$0xff]  }
 0xadb   : > { %13300 = vmatpush1.bf16.msra.mxu1 %v15797_v50  ;;  %v15850_v50 = vld [vmem:[#allocation13 + $0x174] ss:$8 sps:$4 sm:$0xff]  }
 0xadc   : > { %13301 = vmatprep.subr.bf16.mxu1 %v15802_v4  ;;  %v15848_v4 = vld [vmem:[#allocation13 + $0x170] ss:$8 sps:$4 sm:$0xff]  }
 0xadf   : > { %13302 = vmatpush1.bf16.msra.mxu1 %v15800_v25  ;;  %v15856_v25 = vld [vmem:[#allocation13 + $0x184] ss:$8 sps:$4 sm:$0xff]  }
 0xae0   : > { %13303 = vmatprep.subr.bf16.mxu1 %v15805_v39  ;;  %v15854_v39 = vld [vmem:[#allocation13 + $0x180] ss:$8 sps:$4 sm:$0xff]  }
 0xae3   : > { %13304 = vmatpush1.bf16.msra.mxu1 %v15803_v2  ;;  %v15862_v2 = vld [vmem:[#allocation13 + $0x194] ss:$8 sps:$4 sm:$0xff]  }
 0xae4   : > { %13305 = vmatprep.subr.bf16.mxu1 %v15811_v31  ;;  %v15860_v31 = vld [vmem:[#allocation13 + $0x190] ss:$8 sps:$4 sm:$0xff]  }
 0xae7   : > { %13306 = vmatpush1.bf16.msra.mxu1 %v15809_v57  ;;  %v15868_v57 = vld [vmem:[#allocation13 + $0x1a4] ss:$8 sps:$4 sm:$0xff]  }
 0xae8   : > { %13307 = vmatprep.subr.bf16.mxu1 %v15817_v51  ;;  %v15866_v51 = vld [vmem:[#allocation13 + $0x1a0] ss:$8 sps:$4 sm:$0xff]  }
 0xaeb   : > { %13308 = vmatpush1.bf16.msra.mxu1 %v15815_v16  ;;  %v15874_v16 = vld [vmem:[#allocation13 + $0x1b4] ss:$8 sps:$4 sm:$0xff]  }
 0xaec   : > { %13309 = vmatprep.subr.bf16.mxu1 %v15823_v26  ;;  %v15872_v26 = vld [vmem:[#allocation13 + $0x1b0] ss:$8 sps:$4 sm:$0xff]  }
 0xaef   : > { %13310 = vmatpush1.bf16.msra.mxu1 %v15821_v3  ;;  %v15877_v3 = vld [vmem:[#allocation13 + $0x1c4] ss:$8 sps:$4 sm:$0xff]  }
 0xaf0   : > { %v12615_v56 = vpop.f32.mrb[144].mxu1  ;;  %13311 = vmatprep.subr.bf16.mxu1 %v15829_v33  ;;  %v15875_v33 = vld [vmem:[#allocation13 + $0x1c0] ss:$8 sps:$4 sm:$0xff]  }
 0xaf1   : > { %v12617_v53 = vpop.f32.mrb[145].mxu1 }
 0xaf2   : > { %v12619_v61 = vpop.f32.mrb[146].mxu1 }
 0xaf3   : > { %v12620_v19 = vpop.f32.mrb[147].mxu1  ;;  %13312 = vmatpush1.bf16.msra.mxu1 %v15827_v52  ;;  %v15880_v52 = vld [vmem:[#allocation13 + $0x1d4] ss:$8 sps:$4 sm:$0xff]  }
 0xaf4   : > { %13313 = vmatprep.subr.bf16.mxu1 %v15835_v45  ;;  %v15883_v45 = vld [vmem:[#allocation13 + $0x1e4] ss:$8 sps:$4 sm:$0xff]   ;;  %v15886_v61 = vld [vmem:[#allocation13 + $0x1f4] ss:$8 sps:$4 sm:$0xff]   ;;  %v15884_v19 = vld [vmem:[#allocation13 + $0x1f0] ss:$8 sps:$4 sm:$0xff]  }
 0xaf7   : > { %13314 = vmatpush1.bf16.msra.mxu1 %v15833_v62 }
 0xaf8   : > { %v12656_v48 = vpop.f32.mrb[144].mxu0  ;;  %13315 = vmatprep.subr.bf16.mxu1 %v15841_v43 }
 0xaf9   : > { %v12657_v32 = vadd.f32 %v12656_v48, %v12615_v56  ;;  %v12658_v24 = vpop.f32.mrb[145].mxu0  ;;  %v15878_v56 = vld [vmem:[#allocation13 + $0x1d0] ss:$8 sps:$4 sm:$0xff]  }
 0xafa   : > { %v12659_v46 = vadd.f32 %v12658_v24, %v12617_v53  ;;  %v12660_v35 = vpop.f32.mrb[146].mxu0  ;;  %v15881_v53 = vld [vmem:[#allocation13 + $0x1e0] ss:$8 sps:$4 sm:$0xff]  }
 0xafb   : > { %v12691_v29 = vadd.f32 %v17116_v14, %v12657_v32  ;;  %v12661_v6 = vpop.f32.mrb[147].mxu0  ;;  %13316 = vmatpush1.bf16.msra.mxu1 %v15839_v27 }
 0xafc   : > { %v12692_v11 = vadd.f32 %v17119_v55, %v12659_v46  ;;  %13317 = vmatprep.subr.bf16.mxu1 %v15847_v22  ;;  %v15808_v55 = vld [vmem:[#allocation13 + $0x104] ss:$8 sps:$4 sm:$0xff]  }
 0xafd   : > { %v12699_v17 = vmax.f32 %v12691_v29, 0.0 }
 0xafe   : > { %v12700_v47 = vmax.f32 %v12692_v11, 0.0 }
 0xaff   : > { %v12707_v1 = vpack.c.bf16 %v12699_v17, %v12699_v17  ;;  %13318 = vmatpush1.bf16.msra.mxu1 %v15845_v7 }
 0xb00   : > { %v12708_v54 = vpack.c.bf16 %v12700_v47, %v12700_v47  ;;  %13319 = vmatprep.subr.bf16.mxu1 %v15853_v30 }
 0xb01   : > { %v12723_v14 = vsel %vm2956_vm2, %v12707_v1, 0  ;;  %v15219_v1 = vld [vmem:[#allocation15] ss:$0 sm:$0xff] }
 0xb02   : > { %15149 = vmatprep.subr.msk.bf16.mxu0 %vm2956_vm2, %v12708_v54 }
 0xb03   : > { %12770 = vmatpush1.bf16.msra.mxu0 %v12723_v14  ;;  %13320 = vmatpush1.bf16.msra.mxu1 %v15851_v49 }
 0xb04   : > { %15153 = vmatprep.subr.msk.bf16.mxu0 %vm2956_vm2, %v12704_v18  ;;  %13321 = vmatprep.subr.bf16.mxu1 %v15859_v44 }
 0xb06   : > { %15150 = vmatmul.mubr.msk.bf16.vlgmr.msra.gmra.mrb[148].mxu0 %vm12712_vm7, %v17134_v41  ;;  %v15832_v41 = vld [vmem:[#allocation13 + $0x144] ss:$8 sps:$4 sm:$0xff]  }
 0xb07   : > { %12867 = vmatpush1.bf16.msra.mxu0 %v12820_v38  ;;  %12898 = vmatprep.mubr.bf16.mxu0 %v16185_v0  ;;  %v15824_v0 = vld [vmem:[#allocation13 + $0x130] ss:$8 sps:$4 sm:$0xff]  }
 0xb08   : > { %13336 = vmatprep.subr.bf16.mxu0 %v15808_v55  ;;  %13322 = vmatpush1.bf16.msra.mxu1 %v15857_v58  ;;  %v15887_v38 = vld [vmem:[%s17196_s12 + $0x8] sm:$0xff]  }
 0xb09   : > { %13323 = vmatprep.subr.bf16.mxu1 %v15865_v42 }
 0xb0c   : > { %13324 = vmatpush1.bf16.msra.mxu1 %v15863_v63 }
 0xb0d   : > { %13325 = vmatprep.subr.bf16.mxu1 %v15871_v23 }
 0xb10   : > { %13326 = vmatpush1.bf16.msra.mxu1 %v15869_v40 }
 0xb11   : > { %15255 = vmatprep.subr.bf16.mxu1 %v16186_v8 }
 0xb12   : > { %15154 = vmatmul.mubr.msk.bf16.vlgmr.msra.gmra.mrb[148].mxu0 %vm12712_vm7, %v17144_v12  ;;  %v15844_v12 = vld [vmem:[#allocation13 + $0x164] ss:$8 sps:$4 sm:$0xff]  }
 0xb13   : > { %13337 = vmatpush1.bf16.msra.mxu0 %v15806_v9  ;;  %v15888_v9 = vld [vmem:[%s17196_s12] sm:$0xff]  }
 0xb14   : > { %13338 = vmatprep.subr.bf16.mxu0 %v15814_v20 }
 0xb17   : > { %13339 = vmatpush1.bf16.msra.mxu0 %v15812_v59 }
 0xb18   : > { %13340 = vmatprep.subr.bf16.mxu0 %v15820_v36 }
 0xb1b   : > { %13341 = vmatpush1.bf16.msra.mxu0 %v15818_v13 }
 0xb1c   : > { %13342 = vmatprep.subr.bf16.mxu0 %v15826_v28 }
 0xb1f   : > { %13343 = vmatpush1.bf16.msra.mxu0 %v15824_v0 }
 0xb20   : > { %13344 = vmatprep.subr.bf16.mxu0 %v15832_v41 }
 0xb23   : > { %13345 = vmatpush1.bf16.msra.mxu0 %v15830_v21 }
 0xb24   : > { %13346 = vmatprep.subr.bf16.mxu0 %v15838_v10 }
 0xb27   : > { %13347 = vmatpush1.bf16.msra.mxu0 %v15836_v15 }
 0xb28   : > { %13348 = vmatprep.subr.bf16.mxu0 %v15844_v12 }
 0xb2b   : > { %13349 = vmatpush1.bf16.msra.mxu0 %v15842_v37 }
 0xb2c   : > { %13350 = vmatprep.subr.bf16.mxu0 %v15850_v50 }
 0xb2f   : > { %13351 = vmatpush1.bf16.msra.mxu0 %v15848_v4 }
 0xb30   : > { %13352 = vmatprep.subr.bf16.mxu0 %v15856_v25 }
 0xb33   : > { %13353 = vmatpush1.bf16.msra.mxu0 %v15854_v39 }
 0xb34   : > { %13354 = vmatprep.subr.bf16.mxu0 %v15862_v2 }
 0xb37   : > { %13355 = vmatpush1.bf16.msra.mxu0 %v15860_v31 }
 0xb38   : > { %13356 = vmatprep.subr.bf16.mxu0 %v15868_v57 }
 0xb3b   : > { %13357 = vmatpush1.bf16.msra.mxu0 %v15866_v51 }
 0xb3c   : > { %13358 = vmatprep.subr.bf16.mxu0 %v15874_v16 }
 0xb3f   : > { %13359 = vmatpush1.bf16.msra.mxu0 %v15872_v26 }
 0xb40   : > { %13360 = vmatprep.subr.bf16.mxu0 %v15877_v3 }
 0xb43   : > { %13361 = vmatpush1.bf16.msra.mxu0 %v15875_v33 }
 0xb44   : > { %13362 = vmatprep.subr.bf16.mxu0 %v15880_v52 }
 0xb47   : > { %13363 = vmatpush1.bf16.msra.mxu0 %v15878_v56 }
 0xb48   : > { %13364 = vmatprep.subr.bf16.mxu0 %v15883_v45 }
 0xb4b   : > { %13365 = vmatpush1.bf16.msra.mxu0 %v15881_v53 }
 0xb4c   : > { %13366 = vmatprep.subr.bf16.mxu0 %v15886_v61 }
 0xb4f   : > { %13367 = vmatpush1.bf16.msra.mxu0 %v15884_v19 }
 0xba5   : > { %v12859_v62 = vpop.f32.mrb[148].mxu1 }
 0xba6   : > { %v12907_v43 = vpack.c.bf16 %v12859_v62, %v12859_v62  ;;  %v12861_v27 = vpop.f32.mrb[149].mxu1 }
 0xba7   : > { %v12908_v48 = vpack.c.bf16 %v12861_v27, %v12861_v27  ;;  %v12863_v22 = vpop.f32.mrb[150].mxu1 }
 0xba8   : > { %v12864_v32 = vpop.f32.mrb[151].mxu1 }
 0xba9   : > { %13327 = vmatprep.mubr.bf16.mxu1 %v12908_v48 }
 0xbaa   : > { %13328 = vmatmul.mubr.bf16.vlgmr.msra.gmra.mrb[152].mxu1 %v12907_v43 }
 0xbab   : > { %15257 = vmatprep.mubr.msk.bf16.mxu1 %vm16187_vm4, %v16186_v8 }
 0xbe5   : > { %v12900_v24 = vpop.f32.mrb[148].mxu0 }
 0xbe6   : > { %v12902_v46 = vpop.f32.mrb[149].mxu0  ;;  %v12909_v6 = vpack.c.bf16 %v12900_v24, %v12900_v24 }
 0xbe7   : > { %v12910_v35 = vpack.c.bf16 %v12902_v46, %v12902_v46  ;;  %v12904_v29 = vpop.f32.mrb[150].mxu0 }
 0xbe8   : > { %v12905_v7 = vpop.f32.mrb[151].mxu0 }
 0xbe9   : > { %13368 = vmatprep.mubr.bf16.mxu0 %v12910_v35 }
 0xbea   : > { %13369 = vmatmul.mubr.bf16.vlgmr.msra.gmra.mrb[152].mxu0 %v12909_v6 }
 0xc7d   : > { %v13329_v11 = vpop.f32.mrb[152].mxu1 }
 0xc7e   : > { %v13331_v30 = vpop.f32.mrb[153].mxu1 }
 0xc7f   : > { %v13333_v17 = vpop.f32.mrb[154].mxu1 }
 0xc80   : > { %v13334_v5 = vpop.f32.mrb[155].mxu1 }
 0xcbd   : > { %v13370_v60 = vpop.f32.mrb[152].mxu0 }
 0xcbe   : > { %v13371_v47 = vadd.f32 %v13370_v60, %v13329_v11  ;;  %v13372_v49 = vpop.f32.mrb[153].mxu0 }
 0xcbf   : > { %v13373_v54 = vadd.f32 %v13372_v49, %v13331_v30  ;;  %v13374_v44 = vpop.f32.mrb[154].mxu0 }
 0xcc0   : > { %v13375_v14 = vpop.f32.mrb[155].mxu0  ;;  %v13384_v34 = vadd.f32 %v15219_v1, %v13371_v47 }
 0xcc1   : > { %v13385_v18 = vadd.f32 %v15219_v1, %v13373_v54 }
 0xcc2   : > { %v13386_v58 = vpack.c.bf16 %v13384_v34, %v13384_v34 }
 0xcc3   : > { %v13387_v55 = vpack.c.bf16 %v13385_v18, %v13385_v18 }
 0xcc4   : > { %v13454_v63 = vsel %vm10609_vm5, %v13386_v58, 0 }
 0xcc5   : > { %v13402_v42 = vsel %vm10609_vm5, %v13387_v55, 0 }
 0xcc6   : > { %15256 = vmatpush3.bf16.msra.mxu1 %v13402_v42 }
 0xcc7   : > { %15261 = vmatprep.subr.bf16.mxu1 %v16186_v8 }
 0xcc9   : > { %15258 = vmatmul.mubr.msk.bf16.vlgmr.msra.gmra.mrb[156].mxu1 %vm10605_vm6, %v15887_v38 }
 0xcca   : > { %15262 = vmatpush3.bf16.msra.mxu1 %v13454_v63  ;;  %15263 = vmatprep.mubr.msk.bf16.mxu1 %vm16187_vm4, %v16186_v8 }
 0xcd5   : > { %15264 = vmatmul.mubr.msk.bf16.vlgmr.msra.gmra.mrb[156].mxu1 %vm10605_vm6, %v15888_v9 }
 0xda8   : > { %v13490_v20 = vpop.f32.mrb[156].mxu1 }
 0xda9   : > { %13497 = vst [vmem:[%s563_s15] sm:$0xff] %v13490_v20  ;;  %v15265_v59 = vpop.f32.mrb[157].mxu1 }
 0xdaa   : > { %v13493_v36 = vpop.f32.mrb[158].mxu1 }
 0xdab   : > { %13498 = vst [vmem:[%s563_s15 + $0x8] sm:$0xff] %v13493_v36  ;;  %v15266_v13 = vpop.f32.mrb[159].mxu1 }
 0xdac PF: > { %s17225_s26 = sld [smem:[#allocation21_spill]] }
 0xdb2   : > { %s28_s25 = sadd.s32 1, %s17225_s26  }
 0xdb3   : > { %p25_p11 = scmp.ge.s32.totalorder %s28_s25, 4  }
 0xdb5   :  { %27 = sbr.rel (!%p25_p11) target bundleno = 8 (0x8), region = 147 }
 0xdbc   :  { %13520 = vsyncpa [#allocation3], 1 }
 0xdbd   :  { %13522 = vsyncpa [#allocation3 + $0x1], 1 }
 0xdbe   :  { %13523 = vsyncpa [#allocation5], 1 }
 0xdbf   :  { %13524 = vsyncpa [#allocation8], 1 }
 0xdc0   :  { %13525 = vsyncpa [#allocation11], 1 }
 0xdc1   :  { %13526 = vsyncpa [#allocation14], 1 }

</bundles_post_ra>
